<compile_context>
chip_gen: v6e
topology: v6e:2x2x1
jax: 0.10.0
libtpu: 0.0.40
codegen_flags: <defaults>
</compile_context>

<pallas_src>
import numpy as np

import jax
import jax.numpy as jnp
from jax import lax
from jax.experimental import pallas as pl
from jax.experimental.pallas import tpu as pltpu

BN_EPS = 1e-3


# ---------------------------------------------------------------------------
# In-kernel helpers (operate on values, traced into the Pallas kernel body)
# ---------------------------------------------------------------------------
def _bn_relu(y, pool, pool_t, gamma, beta, count):
    """Training-mode BatchNorm (biased var, eps=1e-3) folded to scale/bias, then ReLU.

    y      : [N, S*C] f32 conv output, lane order = (spatial, channel).
    pool   : [S*C, C] 0/1 matrix that sums lanes belonging to the same channel.
    pool_t : [C, S*C] its transpose (broadcast per-channel vectors back to lanes).
    count  : number of BN samples per channel (N * S), python float.
    """
    colsum = jnp.sum(y, axis=0, keepdims=True)                                    # [1, S*C]
    mean_c = jnp.dot(colsum, pool, preferred_element_type=jnp.float32) / count    # [1, C]
    cen = y - jnp.dot(mean_c, pool_t, preferred_element_type=jnp.float32)         # [N, S*C]
    var_c = jnp.dot(jnp.sum(cen * cen, axis=0, keepdims=True), pool,
                    preferred_element_type=jnp.float32) / count                   # [1, C]
    scale_c = gamma * lax.rsqrt(var_c + BN_EPS)                                   # [1, C]  (EUP)
    bias_c = beta - mean_c * scale_c                                              # [1, C]
    scale = jnp.dot(scale_c, pool_t, preferred_element_type=jnp.float32)          # [1, S*C]
    bias = jnp.dot(bias_c, pool_t, preferred_element_type=jnp.float32)            # [1, S*C]
    return jnp.maximum(y * scale + bias, 0.0)                                     # one FMA + ReLU


def _prestem_kernel(x_ref, w1_ref, w3_ref, w4_ref,
                    p1_ref, p1t_ref, p3_ref, p3t_ref,
                    g1_ref, b1_ref, g3_ref, b3_ref, g4_ref, b4_ref,
                    o_ref):
    n = x_ref.shape[0]
    p1, p1t = p1_ref[...], p1t_ref[...]
    p3, p3t = p3_ref[...], p3t_ref[...]
    cnt1 = float(n * (p1.shape[0] // p1.shape[1]))    # N * OH1*OW1
    cnt3 = float(n * (p3.shape[0] // p3.shape[1]))    # N * OH3*OW3

    # Stage 1: Conv2d_1_7x7 (stride 3) — bf16 MXU matmul, f32 accumulation.
    y = jnp.dot(x_ref[...], w1_ref[...], preferred_element_type=jnp.float32)   # [N, 1024]
    a = _bn_relu(y, p1, p1t, g1_ref[...], b1_ref[...], cnt1)

    # Stage 2: Conv2d_3_7x7 (stride 3).
    y = jnp.dot(a.astype(jnp.bfloat16), w3_ref[...],
                preferred_element_type=jnp.float32)                            # [N, 288]
    a = _bn_relu(y, p3, p3t, g3_ref[...], b3_ref[...], cnt3)

    # Stages 3 & 4: Conv2d_4_7x7 applied twice — shared weights, loaded from VMEM once.
    w4 = w4_ref[...]
    g4, b4 = g4_ref[...], b4_ref[...]
    y = jnp.dot(a.astype(jnp.bfloat16), w4, preferred_element_type=jnp.float32)
    a = _bn_relu(y, p3, p3t, g4, b4, cnt3)
    y = jnp.dot(a.astype(jnp.bfloat16), w4, preferred_element_type=jnp.float32)
    o_ref[...] = _bn_relu(y, p3, p3t, g4, b4, cnt3)                            # [N, 288] f32


# ---------------------------------------------------------------------------
# Setup-time weight folding (done once, outside the forward path)
# ---------------------------------------------------------------------------
def _conv_to_dense(w_oihw, hin, win, stride, pad):
    """Fold Conv2d(bias=False) at a fixed input size into a dense matrix.

    Returns (W_big, oh, ow) with W_big [hin*win*cin, oh*ow*cout] such that
        y.reshape(N, oh*ow*cout) = x_nhwc.reshape(N, hin*win*cin) @ W_big
    (NHWC flattening on both sides, zero padding encoded as dropped taps).
    """
    cout, cin, kh, kw = w_oihw.shape
    oh = (hin + 2 * pad - kh) // stride + 1
    ow = (win + 2 * pad - kw) // stride + 1
    y_idx, x_idx = np.arange(hin), np.arange(win)
    oy, ox = np.arange(oh), np.arange(ow)
    ky, kx = np.arange(kh), np.arange(kw)
    gy = (y_idx[:, None, None] == oy[None, :, None] * stride + ky[None, None, :] - pad)  # [hin,oh,kh]
    gx = (x_idx[:, None, None] == ox[None, :, None] * stride + kx[None, None, :] - pad)  # [win,ow,kw]
    geom = gy[:, None, :, None, :, None] & gx[None, :, None, :, None, :]   # [hin,win,oh,ow,kh,kw]
    geom = jnp.asarray(geom.astype(np.float32))
    # [hin, win, cin, oh, ow, cout]; at most one (ky,kx) tap is selected per entry -> exact.
    wb = jnp.einsum('YXuvyx,oiyx->YXiuvo', geom, w_oihw.astype(jnp.float32))
    return wb.reshape(hin * win * cin, oh * ow * cout), oh, ow


def _channel_pool(spatial, c):
    """0/1 matrix [spatial*c, c] grouping (spatial, channel) lanes by channel."""
    return jnp.tile(jnp.eye(c, dtype=jnp.float32), (spatial, 1))


def init_prestem_params(key):
    """Raw module parameters (deterministic PyTorch-style init)."""
    k1, k3, k4 = jax.random.split(key, 3)

    def conv_w(k, cout, cin, ksz):
        fan_in = cin * ksz * ksz
        bound = 1.0 / np.sqrt(float(fan_in))
        return jax.random.uniform(k, (cout, cin, ksz, ksz), jnp.float32, -bound, bound)

    return {
        "conv1": {"w": conv_w(k1, 16, 3, 7),
                  "gamma": jnp.ones(16, jnp.float32), "beta": jnp.zeros(16, jnp.float32)},
        # Conv2d_2_7x7 exists in __init__ but is never used in forward(); omitted.
        "conv3": {"w": conv_w(k3, 32, 16, 7),
                  "gamma": jnp.ones(32, jnp.float32), "beta": jnp.zeros(32, jnp.float32)},
        "conv4": {"w": conv_w(k4, 32, 32, 7),
                  "gamma": jnp.ones(32, jnp.float32), "beta": jnp.zeros(32, jnp.float32)},
    }


def prepare_prestem(params, height, width):
    """Fold the stem's convolutions into dense matmul operands for the fused kernel."""
    w1, oh1, ow1 = _conv_to_dense(params["conv1"]["w"], height, width, 3, 3)
    w3, oh3, ow3 = _conv_to_dense(params["conv3"]["w"], oh1, ow1, 3, 3)
    w4, oh4, ow4 = _conv_to_dense(params["conv4"]["w"], oh3, ow3, 1, 3)
    assert (oh4, ow4) == (oh3, ow3)      # conv4 (k=7, s=1, p=3) preserves 3x3
    c1 = params["conv1"]["w"].shape[0]
    c3 = params["conv3"]["w"].shape[0]
    assert c3 == params["conv4"]["w"].shape[0]
    p1 = _channel_pool(oh1 * ow1, c1)
    p3 = _channel_pool(oh3 * ow3, c3)
    return {
        "w1": w1.astype(jnp.bfloat16),     # [1728, 1024]
        "w3": w3.astype(jnp.bfloat16),     # [1024,  288]
        "w4": w4.astype(jnp.bfloat16),     # [ 288,  288]  (shared across both conv4 uses)
        "p1": p1, "p1t": jnp.transpose(p1),
        "p3": p3, "p3t": jnp.transpose(p3),
        "g1": params["conv1"]["gamma"].reshape(1, -1),
        "b1": params["conv1"]["beta"].reshape(1, -1),
        "g3": params["conv3"]["gamma"].reshape(1, -1),
        "b3": params["conv3"]["beta"].reshape(1, -1),
        "g4": params["conv4"]["gamma"].reshape(1, -1),
        "b4": params["conv4"]["beta"].reshape(1, -1),
    }


def _stem_out_hw(h, w):
    def conv_hw(h, w, k, s, p):
        return (h + 2 * p - k) // s + 1, (w + 2 * p - k) // s + 1
    h, w = conv_hw(h, w, 7, 3, 3)    # Conv2d_1_7x7
    h, w = conv_hw(h, w, 7, 3, 3)    # Conv2d_3_7x7
    h, w = conv_hw(h, w, 7, 1, 3)    # Conv2d_4_7x7
    h, w = conv_hw(h, w, 7, 1, 3)    # Conv2d_4_7x7 (again)
    return h, w


# ---------------------------------------------------------------------------
# Forward: one fused pallas_call for the whole stem
# ---------------------------------------------------------------------------
def prestem_forward(packed, x_nchw, transform_input=False):
    n, _, h, w = x_nchw.shape
    oh, ow = _stem_out_hw(h, w)
    cout = packed["g4"].shape[1]

    x = jnp.transpose(x_nchw, (0, 2, 3, 1)).astype(jnp.float32)   # NCHW -> NHWC
    if transform_input:
        scale = jnp.array([0.229 / 0.5, 0.224 / 0.5, 0.225 / 0.5], jnp.float32)
        shift = jnp.array([(0.485 - 0.5) / 0.5, (0.456 - 0.5) / 0.5,
                           (0.406 - 0.5) / 0.5], jnp.float32)
        x = x * scale + shift
    x_flat = x.reshape(n, -1).astype(jnp.bfloat16)                # [N, H*W*C] bf16
    assert x_flat.shape[1] == packed["w1"].shape[0], "prepare_prestem() spatial size mismatch"

    operands = (x_flat, packed["w1"], packed["w3"], packed["w4"],
                packed["p1"], packed["p1t"], packed["p3"], packed["p3t"],
                packed["g1"], packed["b1"], packed["g3"], packed["b3"],
                packed["g4"], packed["b4"])

    flops = 2 * n * (packed["w1"].shape[0] * packed["w1"].shape[1]
                     + packed["w3"].shape[0] * packed["w3"].shape[1]
                     + 2 * packed["w4"].shape[0] * packed["w4"].shape[1])
    bytes_accessed = sum(int(a.size) * a.dtype.itemsize for a in operands) \
        + n * oh * ow * cout * 4
    transcendentals = packed["g1"].shape[1] + 3 * cout            # rsqrt per channel per stage

    # NOTE: single-block design — the whole stem (~4.5 MiB of operands at these shapes)
    # lives in VMEM.  If the batch is scaled up significantly, switch to a gridded
    # design (batch-parallel grid axis + two-pass BN) rather than growing this block.
    out_flat = pl.pallas_call(
        _prestem_kernel,
        out_shape=jax.ShapeDtypeStruct((n, oh * ow * cout), jnp.float32),
        in_specs=[pl.BlockSpec(memory_space=pltpu.MemorySpace.VMEM)] * len(operands),
        out_specs=pl.BlockSpec(memory_space=pltpu.MemorySpace.VMEM),
        cost_estimate=pl.CostEstimate(flops=int(flops),
                                      transcendentals=int(transcendentals),
                                      bytes_accessed=int(bytes_accessed)),
    )(*operands)

    out = out_flat.reshape(n, oh, ow, cout)                       # NHWC
    return jnp.transpose(out, (0, 3, 1, 2))                       # NHWC -> NCHW


# ---------------------------------------------------------------------------
# Pure-JAX references for the correctness check
# ---------------------------------------------------------------------------
def _ref_basic_conv2d(x, w, gamma, beta, stride, pad, cast_bf16):
    if cast_bf16:   # mirror the kernel's numerics: bf16 MXU operands, f32 accumulation
        x = x.astype(jnp.bfloat16)
        w = w.astype(jnp.bfloat16)
    y = lax.conv_general_dilated(x, w, (stride, stride), [(pad, pad), (pad, pad)],
                                 dimension_numbers=("NCHW", "OIHW", "NCHW"),
                                 preferred_element_type=jnp.float32,
                                 precision=lax.Precision.HIGHEST)
    mean = jnp.mean(y, axis=(0, 2, 3), keepdims=True)
    var = jnp.mean(jnp.square(y - mean), axis=(0, 2, 3), keepdims=True)
    y = (y - mean) * lax.rsqrt(var + BN_EPS)
    y = y * gamma.reshape(1, -1, 1, 1) + beta.reshape(1, -1, 1, 1)
    return jnp.maximum(y, 0.0)


def _ref_prestem(params, x_nchw, cast_bf16=False):
    p = params
    x = _ref_basic_conv2d(x_nchw, p["conv1"]["w"], p["conv1"]["gamma"], p["conv1"]["beta"], 3, 3, cast_bf16)
    x = _ref_basic_conv2d(x, p["conv3"]["w"], p["conv3"]["gamma"], p["conv3"]["beta"], 3, 3, cast_bf16)
    x = _ref_basic_conv2d(x, p["conv4"]["w"], p["conv4"]["gamma"], p["conv4"]["beta"], 1, 3, cast_bf16)
    x = _ref_basic_conv2d(x, p["conv4"]["w"], p["conv4"]["gamma"], p["conv4"]["beta"], 1, 3, cast_bf16)
    return x


if __name__ == "__main__":
    key = jax.random.PRNGKey(0)
    kx, kp = jax.random.split(key)
    # Small input consistent with the module: N=2, C=3 (RGB), 24x24 spatial.
    x = jax.random.normal(kx, (2, 3, 24, 24), jnp.float32)

    params = init_prestem_params(kp)
    packed = prepare_prestem(params, 24, 24)

    fwd = jax.jit(prestem_forward)
    out = jax.block_until_ready(fwd(packed, x))
    assert out.shape == (2, 32, 3, 3), out.shape

    # Tight check vs. a reference with matching numerics (bf16 operands, f32 accum/BN).
    ref_bf16 = jax.block_until_ready(_ref_prestem(params, x, cast_bf16=True))
    err = float(jnp.max(jnp.abs(out - ref_bf16)))
    assert err < 2e-2, err
    # Loose sanity check vs. the pure-f32 module reference (difference = bf16 operand rounding).
    ref_f32 = jax.block_until_ready(_ref_prestem(params, x, cast_bf16=False))
    err32 = float(jnp.max(jnp.abs(out - ref_f32)))
    assert err32 < 1e-1, err32

    print("KERNEL_OK")
</pallas_src>

<mosaic_0001>
module attributes {stable_mosaic.version = 11 : i64} {
  func.func @_prestem_kernel(%arg0: memref<2x1728xbf16, #tpu.memory_space<vmem>>, %arg1: memref<1728x1024xbf16, #tpu.memory_space<vmem>>, %arg2: memref<1024x288xbf16, #tpu.memory_space<vmem>>, %arg3: memref<288x288xbf16, #tpu.memory_space<vmem>>, %arg4: memref<1024x16xf32, #tpu.memory_space<vmem>>, %arg5: memref<16x1024xf32, #tpu.memory_space<vmem>>, %arg6: memref<288x32xf32, #tpu.memory_space<vmem>>, %arg7: memref<32x288xf32, #tpu.memory_space<vmem>>, %arg8: memref<1x16xf32, #tpu.memory_space<vmem>>, %arg9: memref<1x16xf32, #tpu.memory_space<vmem>>, %arg10: memref<1x32xf32, #tpu.memory_space<vmem>>, %arg11: memref<1x32xf32, #tpu.memory_space<vmem>>, %arg12: memref<1x32xf32, #tpu.memory_space<vmem>>, %arg13: memref<1x32xf32, #tpu.memory_space<vmem>>, %arg14: memref<2x288xf32, #tpu.memory_space<vmem>>) attributes {dimension_semantics = [], scalar_prefetch = 0 : i64, scratch_operands = 0 : i64, tpu.core_type = #tpu.core_type<tc>} {
    %c0 = arith.constant 0 : index
    %c0_0 = arith.constant 0 : index
    %0 = vector.load %arg4[%c0, %c0_0] : memref<1024x16xf32, #tpu.memory_space<vmem>>, vector<1024x16xf32>
    %c0_1 = arith.constant 0 : index
    %c0_2 = arith.constant 0 : index
    %1 = vector.load %arg5[%c0_1, %c0_2] : memref<16x1024xf32, #tpu.memory_space<vmem>>, vector<16x1024xf32>
    %c0_3 = arith.constant 0 : index
    %c0_4 = arith.constant 0 : index
    %2 = vector.load %arg6[%c0_3, %c0_4] : memref<288x32xf32, #tpu.memory_space<vmem>>, vector<288x32xf32>
    %c0_5 = arith.constant 0 : index
    %c0_6 = arith.constant 0 : index
    %3 = vector.load %arg7[%c0_5, %c0_6] : memref<32x288xf32, #tpu.memory_space<vmem>>, vector<32x288xf32>
    %c0_7 = arith.constant 0 : index
    %c0_8 = arith.constant 0 : index
    %4 = vector.load %arg0[%c0_7, %c0_8] : memref<2x1728xbf16, #tpu.memory_space<vmem>>, vector<2x1728xbf16>
    %c0_9 = arith.constant 0 : index
    %c0_10 = arith.constant 0 : index
    %5 = vector.load %arg1[%c0_9, %c0_10] : memref<1728x1024xbf16, #tpu.memory_space<vmem>>, vector<1728x1024xbf16>
    %cst = arith.constant dense<0.000000e+00> : vector<2x1024xf32>
    %6 = tpu.matmul %4, %5, %cst {dimension_numbers = #tpu.dot_dimension_numbers<[1], [0], [0], [1], [0, 0, 1, 1], [], []>} : vector<2x1728xbf16>, vector<1728x1024xbf16>, vector<2x1024xf32> -> vector<2x1024xf32>
    %c0_11 = arith.constant 0 : index
    %c0_12 = arith.constant 0 : index
    %7 = vector.load %arg8[%c0_11, %c0_12] : memref<1x16xf32, #tpu.memory_space<vmem>>, vector<1x16xf32>
    %c0_13 = arith.constant 0 : index
    %c0_14 = arith.constant 0 : index
    %8 = vector.load %arg9[%c0_13, %c0_14] : memref<1x16xf32, #tpu.memory_space<vmem>>, vector<1x16xf32>
    %cst_15 = arith.constant dense<0.000000e+00> : vector<1024xf32>
    %9 = vector.multi_reduction <add>, %6, %cst_15 [0] : vector<2x1024xf32> to vector<1024xf32>
    %10 = vector.shape_cast %9 : vector<1024xf32> to vector<1x1024xf32>
    %cst_16 = arith.constant dense<0.000000e+00> : vector<1x16xf32>
    %11 = tpu.matmul %10, %0, %cst_16 {dimension_numbers = #tpu.dot_dimension_numbers<[1], [0], [0], [1], [0, 0, 1, 1], [], []>} : vector<1x1024xf32>, vector<1024x16xf32>, vector<1x16xf32> -> vector<1x16xf32>
    %cst_17 = arith.constant 1.280000e+02 : f32
    %12 = vector.broadcast %cst_17 : f32 to vector<1x16xf32>
    %13 = arith.divf %11, %12 : vector<1x16xf32>
    %cst_18 = arith.constant dense<0.000000e+00> : vector<1x1024xf32>
    %14 = tpu.matmul %13, %1, %cst_18 {dimension_numbers = #tpu.dot_dimension_numbers<[1], [0], [0], [1], [0, 0, 1, 1], [], []>} : vector<1x16xf32>, vector<16x1024xf32>, vector<1x1024xf32> -> vector<1x1024xf32>
    %15 = vector.broadcast %14 : vector<1x1024xf32> to vector<2x1024xf32>
    %16 = arith.subf %6, %15 : vector<2x1024xf32>
    %17 = arith.mulf %16, %16 : vector<2x1024xf32>
    %cst_19 = arith.constant dense<0.000000e+00> : vector<1024xf32>
    %18 = vector.multi_reduction <add>, %17, %cst_19 [0] : vector<2x1024xf32> to vector<1024xf32>
    %19 = vector.shape_cast %18 : vector<1024xf32> to vector<1x1024xf32>
    %cst_20 = arith.constant dense<0.000000e+00> : vector<1x16xf32>
    %20 = tpu.matmul %19, %0, %cst_20 {dimension_numbers = #tpu.dot_dimension_numbers<[1], [0], [0], [1], [0, 0, 1, 1], [], []>} : vector<1x1024xf32>, vector<1024x16xf32>, vector<1x16xf32> -> vector<1x16xf32>
    %cst_21 = arith.constant 1.280000e+02 : f32
    %21 = vector.broadcast %cst_21 : f32 to vector<1x16xf32>
    %22 = arith.divf %20, %21 : vector<1x16xf32>
    %cst_22 = arith.constant 1.000000e-03 : f32
    %23 = vector.broadcast %cst_22 : f32 to vector<1x16xf32>
    %24 = arith.addf %22, %23 : vector<1x16xf32>
    %25 = math.rsqrt %24 : vector<1x16xf32>
    %26 = arith.mulf %7, %25 : vector<1x16xf32>
    %27 = arith.mulf %13, %26 : vector<1x16xf32>
    %28 = arith.subf %8, %27 : vector<1x16xf32>
    %cst_23 = arith.constant dense<0.000000e+00> : vector<1x1024xf32>
    %29 = tpu.matmul %26, %1, %cst_23 {dimension_numbers = #tpu.dot_dimension_numbers<[1], [0], [0], [1], [0, 0, 1, 1], [], []>} : vector<1x16xf32>, vector<16x1024xf32>, vector<1x1024xf32> -> vector<1x1024xf32>
    %cst_24 = arith.constant dense<0.000000e+00> : vector<1x1024xf32>
    %30 = tpu.matmul %28, %1, %cst_24 {dimension_numbers = #tpu.dot_dimension_numbers<[1], [0], [0], [1], [0, 0, 1, 1], [], []>} : vector<1x16xf32>, vector<16x1024xf32>, vector<1x1024xf32> -> vector<1x1024xf32>
    %31 = vector.broadcast %29 : vector<1x1024xf32> to vector<2x1024xf32>
    %32 = arith.mulf %6, %31 : vector<2x1024xf32>
    %33 = vector.broadcast %30 : vector<1x1024xf32> to vector<2x1024xf32>
    %34 = arith.addf %32, %33 : vector<2x1024xf32>
    %cst_25 = arith.constant 0.000000e+00 : f32
    %35 = vector.broadcast %cst_25 : f32 to vector<2x1024xf32>
    %36 = arith.maximumf %34, %35 : vector<2x1024xf32>
    %37 = arith.truncf %36 : vector<2x1024xf32> to vector<2x1024xbf16>
    %c0_26 = arith.constant 0 : index
    %c0_27 = arith.constant 0 : index
    %38 = vector.load %arg2[%c0_26, %c0_27] : memref<1024x288xbf16, #tpu.memory_space<vmem>>, vector<1024x288xbf16>
    %cst_28 = arith.constant dense<0.000000e+00> : vector<2x288xf32>
    %39 = tpu.matmul %37, %38, %cst_28 {dimension_numbers = #tpu.dot_dimension_numbers<[1], [0], [0], [1], [0, 0, 1, 1], [], []>} : vector<2x1024xbf16>, vector<1024x288xbf16>, vector<2x288xf32> -> vector<2x288xf32>
    %c0_29 = arith.constant 0 : index
    %c0_30 = arith.constant 0 : index
    %40 = vector.load %arg10[%c0_29, %c0_30] : memref<1x32xf32, #tpu.memory_space<vmem>>, vector<1x32xf32>
    %c0_31 = arith.constant 0 : index
    %c0_32 = arith.constant 0 : index
    %41 = vector.load %arg11[%c0_31, %c0_32] : memref<1x32xf32, #tpu.memory_space<vmem>>, vector<1x32xf32>
    %cst_33 = arith.constant dense<0.000000e+00> : vector<288xf32>
    %42 = vector.multi_reduction <add>, %39, %cst_33 [0] : vector<2x288xf32> to vector<288xf32>
    %43 = vector.shape_cast %42 : vector<288xf32> to vector<1x288xf32>
    %cst_34 = arith.constant dense<0.000000e+00> : vector<1x32xf32>
    %44 = tpu.matmul %43, %2, %cst_34 {dimension_numbers = #tpu.dot_dimension_numbers<[1], [0], [0], [1], [0, 0, 1, 1], [], []>} : vector<1x288xf32>, vector<288x32xf32>, vector<1x32xf32> -> vector<1x32xf32>
    %cst_35 = arith.constant 1.800000e+01 : f32
    %45 = vector.broadcast %cst_35 : f32 to vector<1x32xf32>
    %46 = arith.divf %44, %45 : vector<1x32xf32>
    %cst_36 = arith.constant dense<0.000000e+00> : vector<1x288xf32>
    %47 = tpu.matmul %46, %3, %cst_36 {dimension_numbers = #tpu.dot_dimension_numbers<[1], [0], [0], [1], [0, 0, 1, 1], [], []>} : vector<1x32xf32>, vector<32x288xf32>, vector<1x288xf32> -> vector<1x288xf32>
    %48 = vector.broadcast %47 : vector<1x288xf32> to vector<2x288xf32>
    %49 = arith.subf %39, %48 : vector<2x288xf32>
    %50 = arith.mulf %49, %49 : vector<2x288xf32>
    %cst_37 = arith.constant dense<0.000000e+00> : vector<288xf32>
    %51 = vector.multi_reduction <add>, %50, %cst_37 [0] : vector<2x288xf32> to vector<288xf32>
    %52 = vector.shape_cast %51 : vector<288xf32> to vector<1x288xf32>
    %cst_38 = arith.constant dense<0.000000e+00> : vector<1x32xf32>
    %53 = tpu.matmul %52, %2, %cst_38 {dimension_numbers = #tpu.dot_dimension_numbers<[1], [0], [0], [1], [0, 0, 1, 1], [], []>} : vector<1x288xf32>, vector<288x32xf32>, vector<1x32xf32> -> vector<1x32xf32>
    %cst_39 = arith.constant 1.800000e+01 : f32
    %54 = vector.broadcast %cst_39 : f32 to vector<1x32xf32>
    %55 = arith.divf %53, %54 : vector<1x32xf32>
    %cst_40 = arith.constant 1.000000e-03 : f32
    %56 = vector.broadcast %cst_40 : f32 to vector<1x32xf32>
    %57 = arith.addf %55, %56 : vector<1x32xf32>
    %58 = math.rsqrt %57 : vector<1x32xf32>
    %59 = arith.mulf %40, %58 : vector<1x32xf32>
    %60 = arith.mulf %46, %59 : vector<1x32xf32>
    %61 = arith.subf %41, %60 : vector<1x32xf32>
    %cst_41 = arith.constant dense<0.000000e+00> : vector<1x288xf32>
    %62 = tpu.matmul %59, %3, %cst_41 {dimension_numbers = #tpu.dot_dimension_numbers<[1], [0], [0], [1], [0, 0, 1, 1], [], []>} : vector<1x32xf32>, vector<32x288xf32>, vector<1x288xf32> -> vector<1x288xf32>
    %cst_42 = arith.constant dense<0.000000e+00> : vector<1x288xf32>
    %63 = tpu.matmul %61, %3, %cst_42 {dimension_numbers = #tpu.dot_dimension_numbers<[1], [0], [0], [1], [0, 0, 1, 1], [], []>} : vector<1x32xf32>, vector<32x288xf32>, vector<1x288xf32> -> vector<1x288xf32>
    %64 = vector.broadcast %62 : vector<1x288xf32> to vector<2x288xf32>
    %65 = arith.mulf %39, %64 : vector<2x288xf32>
    %66 = vector.broadcast %63 : vector<1x288xf32> to vector<2x288xf32>
    %67 = arith.addf %65, %66 : vector<2x288xf32>
    %cst_43 = arith.constant 0.000000e+00 : f32
    %68 = vector.broadcast %cst_43 : f32 to vector<2x288xf32>
    %69 = arith.maximumf %67, %68 : vector<2x288xf32>
    %c0_44 = arith.constant 0 : index
    %c0_45 = arith.constant 0 : index
    %70 = vector.load %arg3[%c0_44, %c0_45] : memref<288x288xbf16, #tpu.memory_space<vmem>>, vector<288x288xbf16>
    %c0_46 = arith.constant 0 : index
    %c0_47 = arith.constant 0 : index
    %71 = vector.load %arg12[%c0_46, %c0_47] : memref<1x32xf32, #tpu.memory_space<vmem>>, vector<1x32xf32>
    %c0_48 = arith.constant 0 : index
    %c0_49 = arith.constant 0 : index
    %72 = vector.load %arg13[%c0_48, %c0_49] : memref<1x32xf32, #tpu.memory_space<vmem>>, vector<1x32xf32>
    %73 = arith.truncf %69 : vector<2x288xf32> to vector<2x288xbf16>
    %cst_50 = arith.constant dense<0.000000e+00> : vector<2x288xf32>
    %74 = tpu.matmul %73, %70, %cst_50 {dimension_numbers = #tpu.dot_dimension_numbers<[1], [0], [0], [1], [0, 0, 1, 1], [], []>} : vector<2x288xbf16>, vector<288x288xbf16>, vector<2x288xf32> -> vector<2x288xf32>
    %cst_51 = arith.constant dense<0.000000e+00> : vector<288xf32>
    %75 = vector.multi_reduction <add>, %74, %cst_51 [0] : vector<2x288xf32> to vector<288xf32>
    %76 = vector.shape_cast %75 : vector<288xf32> to vector<1x288xf32>
    %cst_52 = arith.constant dense<0.000000e+00> : vector<1x32xf32>
    %77 = tpu.matmul %76, %2, %cst_52 {dimension_numbers = #tpu.dot_dimension_numbers<[1], [0], [0], [1], [0, 0, 1, 1], [], []>} : vector<1x288xf32>, vector<288x32xf32>, vector<1x32xf32> -> vector<1x32xf32>
    %cst_53 = arith.constant 1.800000e+01 : f32
    %78 = vector.broadcast %cst_53 : f32 to vector<1x32xf32>
    %79 = arith.divf %77, %78 : vector<1x32xf32>
    %cst_54 = arith.constant dense<0.000000e+00> : vector<1x288xf32>
    %80 = tpu.matmul %79, %3, %cst_54 {dimension_numbers = #tpu.dot_dimension_numbers<[1], [0], [0], [1], [0, 0, 1, 1], [], []>} : vector<1x32xf32>, vector<32x288xf32>, vector<1x288xf32> -> vector<1x288xf32>
    %81 = vector.broadcast %80 : vector<1x288xf32> to vector<2x288xf32>
    %82 = arith.subf %74, %81 : vector<2x288xf32>
    %83 = arith.mulf %82, %82 : vector<2x288xf32>
    %cst_55 = arith.constant dense<0.000000e+00> : vector<288xf32>
    %84 = vector.multi_reduction <add>, %83, %cst_55 [0] : vector<2x288xf32> to vector<288xf32>
    %85 = vector.shape_cast %84 : vector<288xf32> to vector<1x288xf32>
    %cst_56 = arith.constant dense<0.000000e+00> : vector<1x32xf32>
    %86 = tpu.matmul %85, %2, %cst_56 {dimension_numbers = #tpu.dot_dimension_numbers<[1], [0], [0], [1], [0, 0, 1, 1], [], []>} : vector<1x288xf32>, vector<288x32xf32>, vector<1x32xf32> -> vector<1x32xf32>
    %cst_57 = arith.constant 1.800000e+01 : f32
    %87 = vector.broadcast %cst_57 : f32 to vector<1x32xf32>
    %88 = arith.divf %86, %87 : vector<1x32xf32>
    %cst_58 = arith.constant 1.000000e-03 : f32
    %89 = vector.broadcast %cst_58 : f32 to vector<1x32xf32>
    %90 = arith.addf %88, %89 : vector<1x32xf32>
    %91 = math.rsqrt %90 : vector<1x32xf32>
    %92 = arith.mulf %71, %91 : vector<1x32xf32>
    %93 = arith.mulf %79, %92 : vector<1x32xf32>
    %94 = arith.subf %72, %93 : vector<1x32xf32>
    %cst_59 = arith.constant dense<0.000000e+00> : vector<1x288xf32>
    %95 = tpu.matmul %92, %3, %cst_59 {dimension_numbers = #tpu.dot_dimension_numbers<[1], [0], [0], [1], [0, 0, 1, 1], [], []>} : vector<1x32xf32>, vector<32x288xf32>, vector<1x288xf32> -> vector<1x288xf32>
    %cst_60 = arith.constant dense<0.000000e+00> : vector<1x288xf32>
    %96 = tpu.matmul %94, %3, %cst_60 {dimension_numbers = #tpu.dot_dimension_numbers<[1], [0], [0], [1], [0, 0, 1, 1], [], []>} : vector<1x32xf32>, vector<32x288xf32>, vector<1x288xf32> -> vector<1x288xf32>
    %97 = vector.broadcast %95 : vector<1x288xf32> to vector<2x288xf32>
    %98 = arith.mulf %74, %97 : vector<2x288xf32>
    %99 = vector.broadcast %96 : vector<1x288xf32> to vector<2x288xf32>
    %100 = arith.addf %98, %99 : vector<2x288xf32>
    %cst_61 = arith.constant 0.000000e+00 : f32
    %101 = vector.broadcast %cst_61 : f32 to vector<2x288xf32>
    %102 = arith.maximumf %100, %101 : vector<2x288xf32>
    %103 = arith.truncf %102 : vector<2x288xf32> to vector<2x288xbf16>
    %cst_62 = arith.constant dense<0.000000e+00> : vector<2x288xf32>
    %104 = tpu.matmul %103, %70, %cst_62 {dimension_numbers = #tpu.dot_dimension_numbers<[1], [0], [0], [1], [0, 0, 1, 1], [], []>} : vector<2x288xbf16>, vector<288x288xbf16>, vector<2x288xf32> -> vector<2x288xf32>
    %cst_63 = arith.constant dense<0.000000e+00> : vector<288xf32>
    %105 = vector.multi_reduction <add>, %104, %cst_63 [0] : vector<2x288xf32> to vector<288xf32>
    %106 = vector.shape_cast %105 : vector<288xf32> to vector<1x288xf32>
    %cst_64 = arith.constant dense<0.000000e+00> : vector<1x32xf32>
    %107 = tpu.matmul %106, %2, %cst_64 {dimension_numbers = #tpu.dot_dimension_numbers<[1], [0], [0], [1], [0, 0, 1, 1], [], []>} : vector<1x288xf32>, vector<288x32xf32>, vector<1x32xf32> -> vector<1x32xf32>
    %cst_65 = arith.constant 1.800000e+01 : f32
    %108 = vector.broadcast %cst_65 : f32 to vector<1x32xf32>
    %109 = arith.divf %107, %108 : vector<1x32xf32>
    %cst_66 = arith.constant dense<0.000000e+00> : vector<1x288xf32>
    %110 = tpu.matmul %109, %3, %cst_66 {dimension_numbers = #tpu.dot_dimension_numbers<[1], [0], [0], [1], [0, 0, 1, 1], [], []>} : vector<1x32xf32>, vector<32x288xf32>, vector<1x288xf32> -> vector<1x288xf32>
    %111 = vector.broadcast %110 : vector<1x288xf32> to vector<2x288xf32>
    %112 = arith.subf %104, %111 : vector<2x288xf32>
    %113 = arith.mulf %112, %112 : vector<2x288xf32>
    %cst_67 = arith.constant dense<0.000000e+00> : vector<288xf32>
    %114 = vector.multi_reduction <add>, %113, %cst_67 [0] : vector<2x288xf32> to vector<288xf32>
    %115 = vector.shape_cast %114 : vector<288xf32> to vector<1x288xf32>
    %cst_68 = arith.constant dense<0.000000e+00> : vector<1x32xf32>
    %116 = tpu.matmul %115, %2, %cst_68 {dimension_numbers = #tpu.dot_dimension_numbers<[1], [0], [0], [1], [0, 0, 1, 1], [], []>} : vector<1x288xf32>, vector<288x32xf32>, vector<1x32xf32> -> vector<1x32xf32>
    %cst_69 = arith.constant 1.800000e+01 : f32
    %117 = vector.broadcast %cst_69 : f32 to vector<1x32xf32>
    %118 = arith.divf %116, %117 : vector<1x32xf32>
    %cst_70 = arith.constant 1.000000e-03 : f32
    %119 = vector.broadcast %cst_70 : f32 to vector<1x32xf32>
    %120 = arith.addf %118, %119 : vector<1x32xf32>
    %121 = math.rsqrt %120 : vector<1x32xf32>
    %122 = arith.mulf %71, %121 : vector<1x32xf32>
    %123 = arith.mulf %109, %122 : vector<1x32xf32>
    %124 = arith.subf %72, %123 : vector<1x32xf32>
    %cst_71 = arith.constant dense<0.000000e+00> : vector<1x288xf32>
    %125 = tpu.matmul %122, %3, %cst_71 {dimension_numbers = #tpu.dot_dimension_numbers<[1], [0], [0], [1], [0, 0, 1, 1], [], []>} : vector<1x32xf32>, vector<32x288xf32>, vector<1x288xf32> -> vector<1x288xf32>
    %cst_72 = arith.constant dense<0.000000e+00> : vector<1x288xf32>
    %126 = tpu.matmul %124, %3, %cst_72 {dimension_numbers = #tpu.dot_dimension_numbers<[1], [0], [0], [1], [0, 0, 1, 1], [], []>} : vector<1x32xf32>, vector<32x288xf32>, vector<1x288xf32> -> vector<1x288xf32>
    %127 = vector.broadcast %125 : vector<1x288xf32> to vector<2x288xf32>
    %128 = arith.mulf %104, %127 : vector<2x288xf32>
    %129 = vector.broadcast %126 : vector<1x288xf32> to vector<2x288xf32>
    %130 = arith.addf %128, %129 : vector<2x288xf32>
    %cst_73 = arith.constant 0.000000e+00 : f32
    %131 = vector.broadcast %cst_73 : f32 to vector<2x288xf32>
    %132 = arith.maximumf %130, %131 : vector<2x288xf32>
    %c0_74 = arith.constant 0 : index
    %c0_75 = arith.constant 0 : index
    %133 = vector.load %arg14[%c0_74, %c0_75] : memref<2x288xf32, #tpu.memory_space<vmem>>, vector<2x288xf32>
    tpu.vector_store %arg14[%c0_74, %c0_75], %132 {strides = array<i32>} : memref<2x288xf32, #tpu.memory_space<vmem>>, vector<2x288xf32>,
    return
  }
}

</mosaic_0001>

<bundles_post_ra>
// kernel: prestem_forward.1
= control target key start
LH: loop header
LB: loop body
LE: loop exit
PB: predicated region body
PF: predicated region fallthrough
CT: control target
= control target key end

     0   :  { %19 = vsyncpa [#allocation3], 0  ;;  %s19235_s0 = inlined_call_operand.vmem [shape: bf16[2,1728], index: 0, kind: input, shape index: {}]   ;;  %s19236_s1 = inlined_call_operand.hbm [shape: bf16[1728,1024], index: 1, kind: input, shape index: {}]   ;;  %s19237_s2 = inlined_call_operand.vmem [shape: bf16[1024,288], index: 2, kind: input, shape index: {}]   ;;  %s19238_s3 = inlined_call_operand.hbm [shape: bf16[288,288], index: 3, kind: input, shape index: {}]   ;;  %s19239_s4 = inlined_call_operand.vmem [shape: f32[1024,16], index: 4, kind: input, shape index: {}]   ;;  %s19240_s5 = inlined_call_operand.hbm [shape: f32[16,1024], index: 5, kind: input, shape index: {}]   ;;  %s19241_s6 = inlined_call_operand.vmem [shape: f32[288,32], index: 6, kind: input, shape index: {}]   ;;  %s19242_s7 = inlined_call_operand.hbm [shape: f32[32,288], index: 7, kind: input, shape index: {}]   ;;  %s19243_s8 = inlined_call_operand.hbm [shape: f32[1,16], index: 8, kind: input, shape index: {}]   ;;  %s19244_s9 = inlined_call_operand.hbm [shape: f32[1,16], index: 9, kind: input, shape index: {}]   ;;  %s19245_s10 = inlined_call_operand.hbm [shape: f32[1,32], index: 10, kind: input, shape index: {}]   ;;  %s19246_s11 = inlined_call_operand.hbm [shape: f32[1,32], index: 11, kind: input, shape index: {}]   ;;  %s19247_s12 = inlined_call_operand.hbm [shape: f32[1,32], index: 12, kind: input, shape index: {}]   ;;  %s19248_s13 = inlined_call_operand.hbm [shape: f32[1,32], index: 13, kind: input, shape index: {}]   ;;  %s19249_s14 = inlined_call_operand.vmem [shape: f32[2,288], index: 14, kind: output, shape index: {}]  }
   0x1   :  { %20 = vsyncpa [#allocation5], 0 }
   0x2   :  { %21 = vsyncpa [#allocation8], 0 }
   0x3   :  { %22 = vsyncpa [#allocation11], 0 }
   0x4   :  { %23 = vsyncpa [#allocation14], 0 }
   0x5   :  { %24 = vsyncpa [#allocation17], 0  ;;  %s15957_s29 = smov [#allocation4]  }
   0x6   :  { %s46_s30 = sshll.u32 %s15957_s29, 4  ;;  %s47_s30 = int_to_ptr.vmem [resolvable:$true] %s46_s30 }
   0x7   :  { %s15753_s15 = scalar_lea.vmem %s47_s30, 6912  ;;  %p15758_p1 = scmp.lt.s32.totalorder %s47_s30, %s47_s30 }
   0x8   :  { %p15754_p0 = scmp.ne.s32.totalorder %s47_s30, %s15753_s15  ;;  %p15759_p2 = scmp.lt.s32.totalorder %s15753_s15, %s15753_s15 }
   0xa   :  { %p15760_p3 = por %p15759_p2, %p15758_p1 }
   0xc   :  { %p15761_p4 = pnand %p15760_p3, %p15754_p0 }
   0xe   :  { %15764 = shalt.err (!%p15761_p4)
}
   0xf   :  { %s15958_s16 = smov 192   ;;  %s15959_s17 = smov 12  }
  0x10   :  { %52 = dma.hbm_to_vmem [thread:$0]  %s19238_s3, 6912, %s47_s30, [#allocation5], %s15958_s16, %s15958_s16, %s15959_s17  }
  0x11   :  { %s15960_s20 = smov [#allocation7]  }
  0x12   :  { %s74_s21 = sshll.u32 %s15960_s20, 4  ;;  %s75_s21 = int_to_ptr.vmem [resolvable:$true] %s74_s21 }
  0x13   :  { %s15773_s22 = scalar_lea.vmem %s75_s21, 1536  ;;  %p15778_p6 = scmp.lt.s32.totalorder %s75_s21, %s75_s21 }
  0x14   :  { %p15774_p5 = scmp.ne.s32.totalorder %s75_s21, %s15773_s22  ;;  %p15779_p7 = scmp.lt.s32.totalorder %s15773_s22, %s15773_s22 }
  0x16   :  { %p15780_p8 = por %p15779_p7, %p15778_p6 }
  0x18   :  { %p15781_p9 = pnand %p15780_p8, %p15774_p5 }
  0x1a   :  { %15784 = shalt.err (!%p15781_p9)
}
  0x1b   :  { %s15961_s23 = smov 384   ;;  %s15962_s24 = smov 24  }
  0x1c   :  { %80 = dma.hbm_to_vmem [thread:$0]  %s19242_s7, 1536, %s75_s21, [#allocation8], %s15961_s23, %s15961_s23, %s15962_s24  }
  0x1d   :  { %s15963_s27 = smov [#allocation10]   ;;  %s15964_s29 = smov [#allocation13]  }
  0x1e   :  { %s97_s28 = sshll.u32 %s15963_s27, 4  ;;  %s117_s3 = sshll.u32 %s15964_s29, 4  ;;  %s98_s28 = int_to_ptr.vmem [resolvable:$true] %s97_s28  ;;  %s118_s3 = int_to_ptr.vmem [resolvable:$true] %s117_s3 }
  0x1f   :  { %s15793_s30 = scalar_lea.vmem %s98_s28, 16  ;;  %s15797_s15 = scalar_lea.vmem %s98_s28, 32 }
  0x20   :  { %p15794_p10 = scmp.ne.s32.totalorder %s98_s28, %s15793_s30  ;;  %p15798_p11 = scmp.lt.s32.totalorder %s98_s28, %s98_s28 }
  0x21   :  { %p15799_p12 = scmp.lt.s32.totalorder %s15797_s15, %s15793_s30 }
  0x23   :  { %p15800_p13 = por %p15799_p12, %p15798_p11 }
  0x25   :  { %p15801_p0 = pnand %p15800_p13, %p15794_p10 }
  0x27   :  { %15804 = shalt.err (!%p15801_p0)
}
  0x28   :  { %100 = dma.hbm_to_vmem [thread:$0]  %s19244_s9, 16, %s98_s28, [#allocation11]  }
  0x29   :  { %s15813_s18 = scalar_lea.vmem %s118_s3, 16  ;;  %s15817_s7 = scalar_lea.vmem %s118_s3, 32 }
  0x2a   :  { %p15814_p1 = scmp.ne.s32.totalorder %s118_s3, %s15813_s18  ;;  %p15818_p2 = scmp.lt.s32.totalorder %s118_s3, %s118_s3 }
  0x2b   :  { %p15819_p3 = scmp.lt.s32.totalorder %s15817_s7, %s15813_s18 }
  0x2d   :  { %p15820_p4 = por %p15819_p3, %p15818_p2 }
  0x2f   :  { %p15821_p5 = pnand %p15820_p4, %p15814_p1 }
  0x31   :  { %15824 = shalt.err (!%p15821_p5)
}
  0x32   :  { %120 = dma.hbm_to_vmem [thread:$0]  %s19246_s11, 16, %s118_s3, [#allocation14]  }
  0x33   :  { %s15965_s21 = smov [#allocation2]  }
  0x34   :  { %s32_s22 = sshll.u32 %s15965_s21, 4  ;;  %s33_s22 = int_to_ptr.vmem [resolvable:$true] %s32_s22 }
  0x35   :  { %s15833_s23 = scalar_lea.vmem %s33_s22, 110592  ;;  %p15838_p7 = scmp.lt.s32.totalorder %s33_s22, %s33_s22 }
  0x36   :  { %p15834_p6 = scmp.ne.s32.totalorder %s33_s22, %s15833_s23  ;;  %p15839_p8 = scmp.lt.s32.totalorder %s15833_s23, %s15833_s23 }
  0x38   :  { %p15840_p9 = por %p15839_p8, %p15838_p7 }
  0x3a   :  { %p15841_p10 = pnand %p15840_p9, %p15834_p6 }
  0x3c   :  { %15844 = shalt.err (!%p15841_p10)
}
  0x3d   :  { %s15966_s9 = smov 512   ;;  %s15967_s24 = smov 32  }
  0x3e   :  { %38 = dma.hbm_to_vmem [thread:$0]  %s19236_s1, 110592, %s33_s22, [#allocation3], %s15966_s9, %s15966_s9, %s15967_s24  }
  0x3f   :  { %s15968_s27 = smov [#allocation6]  }
  0x40   :  { %s60_s28 = sshll.u32 %s15968_s27, 4  ;;  %s61_s28 = int_to_ptr.vmem [resolvable:$true] %s60_s28 }
  0x41   :  { %s15853_s11 = scalar_lea.vmem %s61_s28, 2048  ;;  %p15858_p12 = scmp.lt.s32.totalorder %s61_s28, %s61_s28 }
  0x42   :  { %p15854_p11 = scmp.ne.s32.totalorder %s61_s28, %s15853_s11  ;;  %p15859_p13 = scmp.lt.s32.totalorder %s15853_s11, %s15853_s11 }
  0x44   :  { %p15860_p0 = por %p15859_p13, %p15858_p12 }
  0x46   :  { %p15861_p1 = pnand %p15860_p0, %p15854_p11 }
  0x48   :  { %15864 = shalt.err (!%p15861_p1)
}
  0x49   :  { %s15969_s29 = smov 1024   ;;  %s15970_s3 = smov 64  }
  0x4a   :  { %66 = dma.hbm_to_vmem [thread:$0]  %s19240_s5, 2048, %s61_s28, [#allocation5], %s15969_s29, %s15969_s29, %s15970_s3  }
  0x4b   :  { %s15971_s16 = smov [#allocation9]   ;;  %s15972_s18 = smov [#allocation12]  }
  0x4c   :  { %s87_s17 = sshll.u32 %s15971_s16, 4  ;;  %s107_s1 = sshll.u32 %s15972_s18, 4  ;;  %s88_s17 = int_to_ptr.vmem [resolvable:$true] %s87_s17  ;;  %s108_s1 = int_to_ptr.vmem [resolvable:$true] %s107_s1 }
  0x4d   :  { %s15873_s7 = scalar_lea.vmem %s88_s17, 16  ;;  %s15877_s19 = scalar_lea.vmem %s88_s17, 32 }
  0x4e   :  { %p15874_p2 = scmp.ne.s32.totalorder %s88_s17, %s15873_s7  ;;  %p15878_p3 = scmp.lt.s32.totalorder %s88_s17, %s88_s17 }
  0x4f   :  { %p15879_p4 = scmp.lt.s32.totalorder %s15877_s19, %s15873_s7 }
  0x51   :  { %p15880_p5 = por %p15879_p4, %p15878_p3 }
  0x53   :  { %p15881_p6 = pnand %p15880_p5, %p15874_p2 }
  0x55   :  { %15884 = shalt.err (!%p15881_p6)
}
  0x56   :  { %90 = dma.hbm_to_vmem [thread:$0]  %s19243_s8, 16, %s88_s17, [#allocation8]  }
  0x57   :  { %s15893_s22 = scalar_lea.vmem %s108_s1, 16  ;;  %s15897_s5 = scalar_lea.vmem %s108_s1, 32 }
  0x58   :  { %p15894_p7 = scmp.ne.s32.totalorder %s108_s1, %s15893_s22  ;;  %p15898_p8 = scmp.lt.s32.totalorder %s108_s1, %s108_s1 }
  0x59   :  { %p15899_p9 = scmp.lt.s32.totalorder %s15897_s5, %s15893_s22 }
  0x5b   :  { %p15900_p10 = por %p15899_p9, %p15898_p8 }
  0x5d   :  { %p15901_p11 = pnand %p15900_p10, %p15894_p7 }
  0x5f   :  { %15904 = shalt.err (!%p15901_p11)
}
  0x60   :  { %110 = dma.hbm_to_vmem [thread:$0]  %s19245_s10, 16, %s108_s1, [#allocation11]  }
  0x61   :  { %s15973_s24 = smov [#allocation15]   ;;  %s15974_s26 = smov [#allocation16]  }
  0x62   :  { %s127_s25 = sshll.u32 %s15973_s24, 4  ;;  %s137_s27 = sshll.u32 %s15974_s26, 4  ;;  %s128_s25 = int_to_ptr.vmem [resolvable:$true] %s127_s25  ;;  %s138_s27 = int_to_ptr.vmem [resolvable:$true] %s137_s27 }
  0x63   :  { %s15913_s28 = scalar_lea.vmem %s128_s25, 16  ;;  %s15917_s8 = scalar_lea.vmem %s128_s25, 32 }
  0x64   :  { %p15914_p12 = scmp.ne.s32.totalorder %s128_s25, %s15913_s28  ;;  %p15918_p13 = scmp.lt.s32.totalorder %s128_s25, %s128_s25 }
  0x65   :  { %p15919_p0 = scmp.lt.s32.totalorder %s15917_s8, %s15913_s28 }
  0x67   :  { %p15920_p1 = por %p15919_p0, %p15918_p13 }
  0x69   :  { %p15921_p2 = pnand %p15920_p1, %p15914_p12 }
  0x6b   :  { %15924 = shalt.err (!%p15921_p2)
}
  0x6c   :  { %130 = dma.hbm_to_vmem [thread:$0]  %s19247_s12, 16, %s128_s25, [#allocation14]  }
  0x6d   :  { %s15933_s3 = scalar_lea.vmem %s138_s27, 16  ;;  %s15937_s10 = scalar_lea.vmem %s138_s27, 32 }
  0x6e   :  { %p15934_p3 = scmp.ne.s32.totalorder %s138_s27, %s15933_s3  ;;  %p15938_p4 = scmp.lt.s32.totalorder %s138_s27, %s138_s27 }
  0x6f   :  { %p15939_p5 = scmp.lt.s32.totalorder %s15937_s10, %s15933_s3 }
  0x71   :  { %p15940_p6 = por %p15939_p5, %p15938_p4 }
  0x73   :  { %p15941_p7 = pnand %p15940_p6, %p15934_p3 }
  0x75   :  { %15944 = shalt.err (!%p15941_p7)
}
  0x76   :  { %140 = dma.hbm_to_vmem [thread:$0]  %s19248_s13, 16, %s138_s27, [#allocation17]  }
  0x77   :  { %15945 = dma.done.wait [#allocation3], 110592  }
  0x78   :  { %15946 = vsyncadd [#allocation3], 4294856704 }
  0x79   :  { %15947 = dma.done.wait [#allocation5], 8960  }
  0x7a   :  { %15948 = vsyncadd [#allocation5], 4294958336 }
  0x7b   :  { %15949 = dma.done.wait [#allocation8], 1552  }
  0x7c   :  { %15950 = vsyncadd [#allocation8], 4294965744 }
  0x7d   :  { %15951 = dma.done.wait [#allocation11], 32  }
  0x7e   :  { %15952 = vsyncadd [#allocation11], 4294967264 }
  0x7f   :  { %15953 = dma.done.wait [#allocation14], 32  }
  0x80   :  { %15954 = vsyncadd [#allocation14], 4294967264 }
  0x81   :  { %15955 = dma.done.wait [#allocation17], 16  }
  0x82   :  { %15956 = vsyncadd [#allocation17], 4294967280  ;;  %v422_v0 = vld [vmem:[#allocation2 + $0x1c0] sm:$0xff]  ;;  %v15975_v32 = vmov 1966171168   ;;  %v1236_v34 = vlaneseq  ;;  %vm5661_vm0 = vcmask 523264  }
  0x83   :  { %v426_v1 = vld [vmem:[#allocation2 + $0x1e0] sm:$0xff]  ;;  %v1234_v33 = vunpack.c.l.s4 %v15975_v32  ;;  %vm6815_vm1 = vcmask 1041408   ;;  %vm7154_vm2 = vcmask 130048   ;;  %vm15977_vm3 = vmmov 0  }
  0x84   :  { %v550_v2 = vld [vmem:[#allocation2 + $0x5c0] sm:$0xff]  ;;  %v13355_v3 = vcombine.high %v422_v0, %v426_v1  ;;  %v13354_v5 = vcombine.low %v422_v0, %v426_v1  ;;  %v16085_v44 = vshrl.u32 %v1236_v34, 7  ;;  %vm10122_vm4 = vcmask 254976  }
  0x85   :  { %v554_v4 = vld [vmem:[#allocation2 + $0x5e0] sm:$0xff]  ;;  %v1235_v43 = vunpack.c.0.s8 %v1234_v33  ;;  %vm10130_vm5 = vcmask 261120   ;;  %vm13283_vm6 = vcmask 1043458   ;;  %vm13285_vm8 = vcmask 259076  }
  0x86   :  { %v414_v6 = vld [vmem:[#allocation2 + $0x180] sm:$0xff]  ;;  %v13483_v8 = vcombine.high %v550_v2, %v554_v4  ;;  %v13482_v9 = vcombine.low %v550_v2, %v554_v4  ;;  %5665 = vmatprep.subr.bf16.mxu0 %v13355_v3  ;;  %19486 = vst [vmem:[#allocation24_spill] sm:$0xff] %v16085_v44  ;;  %vm13284_vm7 = vmor %vm13283_vm6, %vm6815_vm1 }
  0x87   :  { %v418_v7 = vld [vmem:[#allocation2 + $0x1a0] sm:$0xff]  ;;  %5666 = vmatpush1.bf16.msra.mxu0 %v13354_v5  ;;  %v16088_v53 = vsub.s32 %v1235_v43, %v16085_v44  ;;  %vm13286_vm9 = vmor %vm13285_vm8, %vm13284_vm7 }
  0x88   :  { %v13347_v10 = vcombine.high %v414_v6, %v418_v7  ;;  %v542_v11 = vld [vmem:[#allocation2 + $0x580] sm:$0xff]  ;;  %5706 = vmatprep.subr.bf16.mxu1 %v13483_v8  ;;  %v13346_v18 = vcombine.low %v414_v6, %v418_v7 }
  0x89   :  { %v546_v12 = vld [vmem:[#allocation2 + $0x5a0] sm:$0xff]  ;;  %5707 = vmatpush1.bf16.msra.mxu1 %v13482_v9 }
  0x8a   :  { %v406_v13 = vld [vmem:[#allocation2 + $0x140] sm:$0xff]  ;;  %v13475_v14 = vcombine.high %v542_v11, %v546_v12  ;;  %5667 = vmatprep.subr.bf16.mxu0 %v13347_v10  ;;  %v13474_v19 = vcombine.low %v542_v11, %v546_v12 }
  0x8b   :  { %v410_v15 = vld [vmem:[#allocation2 + $0x160] sm:$0xff]  ;;  %5668 = vmatpush1.bf16.msra.mxu0 %v13346_v18 }
  0x8c   :  { %v534_v16 = vld [vmem:[#allocation2 + $0x540] sm:$0xff]  ;;  %v13339_v20 = vcombine.high %v406_v13, %v410_v15  ;;  %5708 = vmatprep.subr.bf16.mxu1 %v13475_v14  ;;  %v13338_v26 = vcombine.low %v406_v13, %v410_v15 }
  0x8d   :  { %v538_v17 = vld [vmem:[#allocation2 + $0x560] sm:$0xff]  ;;  %5709 = vmatpush1.bf16.msra.mxu1 %v13474_v19 }
  0x8e   :  { %v13467_v21 = vcombine.high %v534_v16, %v538_v17  ;;  %v398_v22 = vld [vmem:[#allocation2 + $0x100] sm:$0xff]  ;;  %5669 = vmatprep.subr.bf16.mxu0 %v13339_v20  ;;  %v13466_v27 = vcombine.low %v534_v16, %v538_v17 }
  0x8f   :  { %v402_v23 = vld [vmem:[#allocation2 + $0x120] sm:$0xff]  ;;  %5670 = vmatpush1.bf16.msra.mxu0 %v13338_v26 }
  0x90   :  { %v526_v24 = vld [vmem:[#allocation2 + $0x500] sm:$0xff]  ;;  %v13331_v28 = vcombine.high %v398_v22, %v402_v23  ;;  %5710 = vmatprep.subr.bf16.mxu1 %v13467_v21  ;;  %v13330_v37 = vcombine.low %v398_v22, %v402_v23 }
  0x91   :  { %v530_v25 = vld [vmem:[#allocation2 + $0x520] sm:$0xff]  ;;  %5711 = vmatpush1.bf16.msra.mxu1 %v13466_v27 }
  0x92   :  { %v13459_v29 = vcombine.high %v526_v24, %v530_v25  ;;  %v390_v30 = vld [vmem:[#allocation2 + $0xc0] sm:$0xff]  ;;  %5671 = vmatprep.subr.bf16.mxu0 %v13331_v28  ;;  %v13458_v38 = vcombine.low %v526_v24, %v530_v25 }
  0x93   :  { %v394_v31 = vld [vmem:[#allocation2 + $0xe0] sm:$0xff]  ;;  %5672 = vmatpush1.bf16.msra.mxu0 %v13330_v37 }
  0x94   :  { %v518_v35 = vld [vmem:[#allocation2 + $0x4c0] sm:$0xff]  ;;  %v13323_v39 = vcombine.high %v390_v30, %v394_v31  ;;  %5712 = vmatprep.subr.bf16.mxu1 %v13459_v29  ;;  %v13322_v47 = vcombine.low %v390_v30, %v394_v31 }
  0x95   :  { %v522_v36 = vld [vmem:[#allocation2 + $0x4e0] sm:$0xff]  ;;  %5713 = vmatpush1.bf16.msra.mxu1 %v13458_v38 }
  0x96   :  { %v13451_v40 = vcombine.high %v518_v35, %v522_v36  ;;  %v382_v41 = vld [vmem:[#allocation2 + $0x80] sm:$0xff]  ;;  %5673 = vmatprep.subr.bf16.mxu0 %v13323_v39  ;;  %v13450_v48 = vcombine.low %v518_v35, %v522_v36 }
  0x97   :  { %v386_v42 = vld [vmem:[#allocation2 + $0xa0] sm:$0xff]  ;;  %5674 = vmatpush1.bf16.msra.mxu0 %v13322_v47 }
  0x98   :  { %v510_v45 = vld [vmem:[#allocation2 + $0x480] sm:$0xff]  ;;  %v13315_v49 = vcombine.high %v382_v41, %v386_v42  ;;  %5714 = vmatprep.subr.bf16.mxu1 %v13451_v40  ;;  %v13314_v56 = vcombine.low %v382_v41, %v386_v42 }
  0x99   :  { %v514_v46 = vld [vmem:[#allocation2 + $0x4a0] sm:$0xff]  ;;  %5715 = vmatpush1.bf16.msra.mxu1 %v13450_v48 }
  0x9a   :  { %v13443_v50 = vcombine.high %v510_v45, %v514_v46  ;;  %v374_v51 = vld [vmem:[#allocation2 + $0x40] sm:$0xff]  ;;  %5675 = vmatprep.subr.bf16.mxu0 %v13315_v49  ;;  %v13442_v57 = vcombine.low %v510_v45, %v514_v46 }
  0x9b   :  { %v378_v52 = vld [vmem:[#allocation2 + $0x60] sm:$0xff]  ;;  %5676 = vmatpush1.bf16.msra.mxu0 %v13314_v56 }
  0x9c   :  { %v502_v54 = vld [vmem:[#allocation2 + $0x440] sm:$0xff]  ;;  %v13307_v58 = vcombine.high %v374_v51, %v378_v52  ;;  %5716 = vmatprep.subr.bf16.mxu1 %v13443_v50  ;;  %v13306_v2 = vcombine.low %v374_v51, %v378_v52 }
  0x9d   :  { %v506_v55 = vld [vmem:[#allocation2 + $0x460] sm:$0xff]  ;;  %5717 = vmatpush1.bf16.msra.mxu1 %v13442_v57 }
  0x9e   :  { %v16093_v59 = vld [vmem:[%s19235_s0] sm:$0xff]  ;;  %v13435_v60 = vcombine.high %v502_v54, %v506_v55  ;;  %5677 = vmatprep.subr.bf16.mxu0 %v13307_v58  ;;  %v13434_v4 = vcombine.low %v502_v54, %v506_v55 }
  0x9f   :  { %v366_v61 = vld [vmem:[#allocation2] sm:$0xff]  ;;  %v16097_v63 = vrot.slane %v16093_v59, %v16088_v53  ;;  %5678 = vmatpush1.bf16.msra.mxu0 %v13306_v2 }
  0xa0   :  { %v370_v62 = vld [vmem:[#allocation2 + $0x20] sm:$0xff]  ;;  %5718 = vmatprep.subr.bf16.mxu1 %v13435_v60 }
  0xa1   :  { %v494_v0 = vld [vmem:[#allocation2 + $0x400] sm:$0xff]  ;;  %v1247_v3 = vcombine.high %v16097_v63, %v16097_v63  ;;  %v13299_v5 = vcombine.high %v366_v61, %v370_v62  ;;  %v13298_v12 = vcombine.low %v366_v61, %v370_v62  ;;  %5719 = vmatpush1.bf16.msra.mxu1 %v13434_v4 }
  0xa2   :  { %v498_v1 = vld [vmem:[#allocation2 + $0x420] sm:$0xff] }
  0xa3   :  { %v13427_v6 = vcombine.high %v494_v0, %v498_v1  ;;  %v486_v7 = vld [vmem:[#allocation2 + $0x3c0] sm:$0xff]  ;;  %v16102_v9 = vrot.slane %v1247_v3, %v16088_v53  ;;  %5679 = vmatprep.subr.bf16.mxu0 %v13299_v5  ;;  %v13426_v14 = vcombine.low %v494_v0, %v498_v1  ;;  %v1232_v1 = vcombine.high %v16093_v59, %v16093_v59 }
  0xa4   :  { %v490_v8 = vld [vmem:[#allocation2 + $0x3e0] sm:$0xff]  ;;  %5680 = vmatpush1.bf16.msra.mxu0 %v13298_v12 }
  0xa5   :  { %v614_v10 = vld [vmem:[#allocation2 + $0x7c0] sm:$0xff]  ;;  %5697 = vmatprep.mubr.bf16.mxu0 %v16102_v9  ;;  %v16107_v13 = vcombine.high %v16102_v9, %v16102_v9  ;;  %v13419_v15 = vcombine.high %v486_v7, %v490_v8  ;;  %5720 = vmatprep.subr.bf16.mxu1 %v13427_v6  ;;  %v13418_v21 = vcombine.low %v486_v7, %v490_v8 }
  0xa6   :  { %v618_v11 = vld [vmem:[#allocation2 + $0x7e0] sm:$0xff]  ;;  %5721 = vmatpush1.bf16.msra.mxu1 %v13426_v14 }
  0xa7   :  { %v13547_v16 = vcombine.high %v614_v10, %v618_v11  ;;  %v478_v17 = vld [vmem:[#allocation2 + $0x380] sm:$0xff]  ;;  %5738 = vmatprep.mubr.bf16.mxu1 %v16107_v13  ;;  %5681 = vmatprep.subr.bf16.mxu0 %v13419_v15  ;;  %v13546_v22 = vcombine.low %v614_v10, %v618_v11  ;;  %v16113_v11 = vrot.slane %v1232_v1, %v16088_v53 }
  0xa8   :  { %v482_v18 = vld [vmem:[#allocation2 + $0x3a0] sm:$0xff]  ;;  %5682 = vmatpush2.bf16.msra.mxu0 %v13418_v21 }
  0xa9   :  { %v606_v19 = vld [vmem:[#allocation2 + $0x780] sm:$0xff]  ;;  %v13411_v23 = vcombine.high %v478_v17, %v482_v18  ;;  %5722 = vmatprep.subr.bf16.mxu1 %v13547_v16  ;;  %v13410_v29 = vcombine.low %v478_v17, %v482_v18 }
  0xaa   :  { %v610_v20 = vld [vmem:[#allocation2 + $0x7a0] sm:$0xff]  ;;  %5723 = vmatpush2.bf16.msra.mxu1 %v13546_v22  ;;  %v16119_v22 = vrot.slane %v16097_v63, %v16088_v53 }
  0xab   :  { %v13539_v24 = vcombine.high %v606_v19, %v610_v20  ;;  %v470_v25 = vld [vmem:[#allocation2 + $0x340] sm:$0xff]  ;;  %5683 = vmatprep.subr.bf16.mxu0 %v13411_v23  ;;  %v13538_v30 = vcombine.low %v606_v19, %v610_v20  ;;  %v1248_v20 = vcombine.high %v16113_v11, %v16113_v11 }
  0xac   :  { %v474_v26 = vld [vmem:[#allocation2 + $0x360] sm:$0xff]  ;;  %5684 = vmatpush2.bf16.msra.mxu0 %v13410_v29 }
  0xad   :  { %v598_v27 = vld [vmem:[#allocation2 + $0x740] sm:$0xff]  ;;  %v13403_v31 = vcombine.high %v470_v25, %v474_v26  ;;  %5724 = vmatprep.subr.bf16.mxu1 %v13539_v24  ;;  %v13402_v37 = vcombine.low %v470_v25, %v474_v26 }
  0xae   :  { %v602_v28 = vld [vmem:[#allocation2 + $0x760] sm:$0xff]  ;;  %5725 = vmatpush2.bf16.msra.mxu1 %v13538_v30  ;;  %v16122_v30 = vrot.slane %v1248_v20, %v16088_v53 }
  0xaf   :  { %v13531_v32 = vcombine.high %v598_v27, %v602_v28  ;;  %v462_v33 = vld [vmem:[#allocation2 + $0x300] sm:$0xff]  ;;  %5685 = vmatprep.subr.bf16.mxu0 %v13403_v31  ;;  %v13530_v38 = vcombine.low %v598_v27, %v602_v28  ;;  %v16126_v31 = vcombine.high %v16119_v22, %v16119_v22 }
  0xb0   :  { %v466_v34 = vld [vmem:[#allocation2 + $0x320] sm:$0xff]  ;;  %5686 = vmatpush2.bf16.msra.mxu0 %v13402_v37 }
  0xb1   :  { %v590_v35 = vld [vmem:[#allocation2 + $0x700] sm:$0xff]  ;;  %v13395_v39 = vcombine.high %v462_v33, %v466_v34  ;;  %5726 = vmatprep.subr.bf16.mxu1 %v13531_v32  ;;  %v13394_v46 = vcombine.low %v462_v33, %v466_v34 }
  0xb2   :  { %v594_v36 = vld [vmem:[#allocation2 + $0x720] sm:$0xff]  ;;  %5727 = vmatpush2.bf16.msra.mxu1 %v13530_v38 }
  0xb3   :  { %v13523_v40 = vcombine.high %v590_v35, %v594_v36  ;;  %v454_v41 = vld [vmem:[#allocation2 + $0x2c0] sm:$0xff]  ;;  %5687 = vmatprep.subr.bf16.mxu0 %v13395_v39  ;;  %v13522_v47 = vcombine.low %v590_v35, %v594_v36  ;;  %v16131_v39 = vcombine.high %v16122_v30, %v16122_v30 }
  0xb4   :  { %v458_v42 = vld [vmem:[#allocation2 + $0x2e0] sm:$0xff]  ;;  %5688 = vmatpush2.bf16.msra.mxu0 %v13394_v46 }
  0xb5   :  { %v582_v43 = vld [vmem:[#allocation2 + $0x6c0] sm:$0xff]  ;;  %v13387_v48 = vcombine.high %v454_v41, %v458_v42  ;;  %5728 = vmatprep.subr.bf16.mxu1 %v13523_v40  ;;  %v13386_v55 = vcombine.low %v454_v41, %v458_v42 }
  0xb6   :  { %v586_v45 = vld [vmem:[#allocation2 + $0x6e0] sm:$0xff]  ;;  %5729 = vmatpush2.bf16.msra.mxu1 %v13522_v47 }
  0xb7   :  { %v13515_v49 = vcombine.high %v582_v43, %v586_v45  ;;  %v446_v50 = vld [vmem:[#allocation2 + $0x280] sm:$0xff]  ;;  %5689 = vmatprep.subr.bf16.mxu0 %v13387_v48  ;;  %v13514_v56 = vcombine.low %v582_v43, %v586_v45 }
  0xb8   :  { %v450_v51 = vld [vmem:[#allocation2 + $0x2a0] sm:$0xff]  ;;  %5690 = vmatpush2.bf16.msra.mxu0 %v13386_v55 }
  0xb9   :  { %v574_v52 = vld [vmem:[#allocation2 + $0x680] sm:$0xff]  ;;  %v13379_v57 = vcombine.high %v446_v50, %v450_v51  ;;  %5730 = vmatprep.subr.bf16.mxu1 %v13515_v49  ;;  %v13378_v2 = vcombine.low %v446_v50, %v450_v51 }
  0xba   :  { %v578_v54 = vld [vmem:[#allocation2 + $0x6a0] sm:$0xff]  ;;  %5731 = vmatpush2.bf16.msra.mxu1 %v13514_v56 }
  0xbb   :  { %v13507_v58 = vcombine.high %v574_v52, %v578_v54  ;;  %v438_v60 = vld [vmem:[#allocation2 + $0x240] sm:$0xff]  ;;  %5691 = vmatprep.subr.bf16.mxu0 %v13379_v57  ;;  %v13506_v3 = vcombine.low %v574_v52, %v578_v54 }
  0xbc   :  { %v442_v61 = vld [vmem:[#allocation2 + $0x260] sm:$0xff]  ;;  %5692 = vmatpush2.bf16.msra.mxu0 %v13378_v2 }
  0xbd   :  { %v566_v62 = vld [vmem:[#allocation2 + $0x640] sm:$0xff]  ;;  %v13371_v4 = vcombine.high %v438_v60, %v442_v61  ;;  %5732 = vmatprep.subr.bf16.mxu1 %v13507_v58  ;;  %v13370_v12 = vcombine.low %v438_v60, %v442_v61 }
  0xbe   :  { %v570_v0 = vld [vmem:[#allocation2 + $0x660] sm:$0xff]  ;;  %5733 = vmatpush2.bf16.msra.mxu1 %v13506_v3 }
  0xbf   :  { %v13499_v5 = vcombine.high %v566_v62, %v570_v0  ;;  %v430_v6 = vld [vmem:[#allocation2 + $0x200] sm:$0xff]  ;;  %5693 = vmatprep.subr.bf16.mxu0 %v13371_v4  ;;  %v13498_v59 = vcombine.low %v566_v62, %v570_v0 }
  0xc0   :  { %v434_v7 = vld [vmem:[#allocation2 + $0x220] sm:$0xff]  ;;  %5694 = vmatpush2.bf16.msra.mxu0 %v13370_v12 }
  0xc1   :  { %v558_v8 = vld [vmem:[#allocation2 + $0x600] sm:$0xff]  ;;  %v13363_v14 = vcombine.high %v430_v6, %v434_v7  ;;  %5734 = vmatprep.subr.bf16.mxu1 %v13499_v5  ;;  %v13362_v21 = vcombine.low %v430_v6, %v434_v7 }
  0xc2   :  { %v562_v10 = vld [vmem:[#allocation2 + $0x620] sm:$0xff]  ;;  %5735 = vmatpush2.bf16.msra.mxu1 %v13498_v59 }
  0xc3   :  { %v13491_v15 = vcombine.high %v558_v8, %v562_v10  ;;  %v678_v16 = vld [vmem:[#allocation2 + $0x9c0] sm:$0xff]  ;;  %5695 = vmatprep.subr.bf16.mxu0 %v13363_v14  ;;  %v13490_v23 = vcombine.low %v558_v8, %v562_v10 }
  0xc4   :  { %v682_v17 = vld [vmem:[#allocation2 + $0x9e0] sm:$0xff]  ;;  %5696 = vmatpush2.bf16.msra.mxu0 %v13362_v21 }
  0xc5   :  { %v806_v18 = vld [vmem:[#allocation2 + $0xdc0] sm:$0xff]  ;;  %v13611_v24 = vcombine.high %v678_v16, %v682_v17  ;;  %5736 = vmatprep.subr.bf16.mxu1 %v13491_v15  ;;  %v13610_v63 = vcombine.low %v678_v16, %v682_v17 }
  0xc6   :  { %v810_v19 = vld [vmem:[#allocation2 + $0xde0] sm:$0xff]  ;;  %5737 = vmatpush2.bf16.msra.mxu1 %v13490_v23 }
  0xc7   :  { %v13739_v25 = vcombine.high %v806_v18, %v810_v19  ;;  %v670_v26 = vld [vmem:[#allocation2 + $0x980] sm:$0xff]  ;;  %5747 = vmatprep.subr.bf16.mxu0 %v13611_v24  ;;  %v13738_v32 = vcombine.low %v806_v18, %v810_v19  ;;  %5698 = vmatmul.mubr.bf16.vlgmr.msra.gmra.mxu0 %v16119_v22 }
  0xc8   :  { %v674_v27 = vld [vmem:[#allocation2 + $0x9a0] sm:$0xff]  ;;  %5748 = vmatpush1.bf16.msra.mxu0 %v13610_v63  ;;  %5779 = vmatprep.mubr.bf16.mxu0 %v16122_v30 }
  0xc9   :  { %v798_v28 = vld [vmem:[#allocation2 + $0xd80] sm:$0xff]  ;;  %v13603_v33 = vcombine.high %v670_v26, %v674_v27  ;;  %5788 = vmatprep.subr.bf16.mxu1 %v13739_v25  ;;  %5739 = vmatmul.mubr.bf16.vlgmr.msra.gmra.mxu1 %v16126_v31  ;;  %v13602_v40 = vcombine.low %v670_v26, %v674_v27 }
  0xca   :  { %v802_v29 = vld [vmem:[#allocation2 + $0xda0] sm:$0xff]  ;;  %5789 = vmatpush1.bf16.msra.mxu1 %v13738_v32  ;;  %5820 = vmatprep.mubr.bf16.mxu1 %v16131_v39 }
  0xcb   :  { %v662_v34 = vld [vmem:[#allocation2 + $0x940] sm:$0xff]  ;;  %v13731_v37 = vcombine.high %v798_v28, %v802_v29  ;;  %5749 = vmatprep.subr.bf16.mxu0 %v13603_v33  ;;  %v13730_v41 = vcombine.low %v798_v28, %v802_v29 }
  0xcc   :  { %v666_v35 = vld [vmem:[#allocation2 + $0x960] sm:$0xff]  ;;  %5750 = vmatpush1.bf16.msra.mxu0 %v13602_v40 }
  0xcd   :  { %v790_v36 = vld [vmem:[#allocation2 + $0xd40] sm:$0xff]  ;;  %v13595_v42 = vcombine.high %v662_v34, %v666_v35  ;;  %5790 = vmatprep.subr.bf16.mxu1 %v13731_v37  ;;  %v13594_v49 = vcombine.low %v662_v34, %v666_v35 }
  0xce   :  { %v794_v38 = vld [vmem:[#allocation2 + $0xd60] sm:$0xff]  ;;  %5791 = vmatpush1.bf16.msra.mxu1 %v13730_v41 }
  0xcf   :  { %v654_v43 = vld [vmem:[#allocation2 + $0x900] sm:$0xff]  ;;  %v13723_v47 = vcombine.high %v790_v36, %v794_v38  ;;  %5751 = vmatprep.subr.bf16.mxu0 %v13595_v42  ;;  %v13722_v50 = vcombine.low %v790_v36, %v794_v38 }
  0xd0   :  { %v658_v45 = vld [vmem:[#allocation2 + $0x920] sm:$0xff]  ;;  %5752 = vmatpush1.bf16.msra.mxu0 %v13594_v49 }
  0xd1   :  { %v782_v46 = vld [vmem:[#allocation2 + $0xd00] sm:$0xff]  ;;  %v13587_v51 = vcombine.high %v654_v43, %v658_v45  ;;  %5792 = vmatprep.subr.bf16.mxu1 %v13723_v47  ;;  %v13586_v58 = vcombine.low %v654_v43, %v658_v45 }
  0xd2   :  { %v786_v48 = vld [vmem:[#allocation2 + $0xd20] sm:$0xff]  ;;  %5793 = vmatpush1.bf16.msra.mxu1 %v13722_v50 }
  0xd3   :  { %v646_v52 = vld [vmem:[#allocation2 + $0x8c0] sm:$0xff]  ;;  %v13715_v56 = vcombine.high %v782_v46, %v786_v48  ;;  %5753 = vmatprep.subr.bf16.mxu0 %v13587_v51  ;;  %v13714_v60 = vcombine.low %v782_v46, %v786_v48 }
  0xd4   :  { %v650_v54 = vld [vmem:[#allocation2 + $0x8e0] sm:$0xff]  ;;  %5754 = vmatpush1.bf16.msra.mxu0 %v13586_v58 }
  0xd5   :  { %v774_v55 = vld [vmem:[#allocation2 + $0xcc0] sm:$0xff]  ;;  %v13579_v61 = vcombine.high %v646_v52, %v650_v54  ;;  %5794 = vmatprep.subr.bf16.mxu1 %v13715_v56  ;;  %v13578_v4 = vcombine.low %v646_v52, %v650_v54 }
  0xd6   :  { %v778_v57 = vld [vmem:[#allocation2 + $0xce0] sm:$0xff]  ;;  %5795 = vmatpush1.bf16.msra.mxu1 %v13714_v60 }
  0xd7   :  { %v638_v62 = vld [vmem:[#allocation2 + $0x880] sm:$0xff]  ;;  %v13707_v2 = vcombine.high %v774_v55, %v778_v57  ;;  %5755 = vmatprep.subr.bf16.mxu0 %v13579_v61  ;;  %v13706_v5 = vcombine.low %v774_v55, %v778_v57 }
  0xd8   :  { %v642_v0 = vld [vmem:[#allocation2 + $0x8a0] sm:$0xff]  ;;  %5756 = vmatpush1.bf16.msra.mxu0 %v13578_v4 }
  0xd9   :  { %v766_v1 = vld [vmem:[#allocation2 + $0xc80] sm:$0xff]  ;;  %v13571_v6 = vcombine.high %v638_v62, %v642_v0  ;;  %5796 = vmatprep.subr.bf16.mxu1 %v13707_v2  ;;  %v13570_v14 = vcombine.low %v638_v62, %v642_v0 }
  0xda   :  { %v770_v3 = vld [vmem:[#allocation2 + $0xca0] sm:$0xff]  ;;  %5797 = vmatpush1.bf16.msra.mxu1 %v13706_v5 }
  0xdb   :  { %v630_v7 = vld [vmem:[#allocation2 + $0x840] sm:$0xff]  ;;  %v13699_v12 = vcombine.high %v766_v1, %v770_v3  ;;  %5757 = vmatprep.subr.bf16.mxu0 %v13571_v6  ;;  %v13698_v15 = vcombine.low %v766_v1, %v770_v3 }
  0xdc   :  { %v634_v8 = vld [vmem:[#allocation2 + $0x860] sm:$0xff]  ;;  %5758 = vmatpush1.bf16.msra.mxu0 %v13570_v14 }
  0xdd   :  { %v758_v10 = vld [vmem:[#allocation2 + $0xc40] sm:$0xff]  ;;  %v13563_v16 = vcombine.high %v630_v7, %v634_v8  ;;  %5798 = vmatprep.subr.bf16.mxu1 %v13699_v12  ;;  %v13562_v23 = vcombine.low %v630_v7, %v634_v8 }
  0xde   :  { %v762_v59 = vld [vmem:[#allocation2 + $0xc60] sm:$0xff]  ;;  %5799 = vmatpush1.bf16.msra.mxu1 %v13698_v15 }
  0xdf   :  { %v622_v17 = vld [vmem:[#allocation2 + $0x800] sm:$0xff]  ;;  %v13691_v20 = vcombine.high %v758_v10, %v762_v59  ;;  %5759 = vmatprep.subr.bf16.mxu0 %v13563_v16  ;;  %v13690_v24 = vcombine.low %v758_v10, %v762_v59 }
  0xe0   :  { %v626_v18 = vld [vmem:[#allocation2 + $0x820] sm:$0xff]  ;;  %5760 = vmatpush1.bf16.msra.mxu0 %v13562_v23 }
  0xe1   :  { %v750_v19 = vld [vmem:[#allocation2 + $0xc00] sm:$0xff]  ;;  %v13555_v25 = vcombine.high %v622_v17, %v626_v18  ;;  %5800 = vmatprep.subr.bf16.mxu1 %v13691_v20  ;;  %v13554_v32 = vcombine.low %v622_v17, %v626_v18 }
  0xe2   :  { %v754_v21 = vld [vmem:[#allocation2 + $0xc20] sm:$0xff]  ;;  %5801 = vmatpush1.bf16.msra.mxu1 %v13690_v24  ;;  %v16139_v24 = vld [vmem:[%s19235_s0 + $0x8] sm:$0x3f] }
  0xe3   :  { %v742_v26 = vld [vmem:[#allocation2 + $0xbc0] sm:$0xff]  ;;  %v13683_v29 = vcombine.high %v750_v19, %v754_v21  ;;  %5761 = vmatprep.subr.bf16.mxu0 %v13555_v25  ;;  %v13682_v33 = vcombine.low %v750_v19, %v754_v21 }
  0xe4   :  { %v746_v27 = vld [vmem:[#allocation2 + $0xbe0] sm:$0xff]  ;;  %5762 = vmatpush1.bf16.msra.mxu0 %v13554_v32 }
  0xe5   :  { %v870_v28 = vld [vmem:[#allocation2 + $0xfc0] sm:$0xff]  ;;  %v13675_v34 = vcombine.high %v742_v26, %v746_v27  ;;  %5802 = vmatprep.subr.bf16.mxu1 %v13683_v29  ;;  %v13674_v41 = vcombine.low %v742_v26, %v746_v27 }
  0xe6   :  { %v874_v63 = vld [vmem:[#allocation2 + $0xfe0] sm:$0xff]  ;;  %5803 = vmatpush1.bf16.msra.mxu1 %v13682_v33 }
  0xe7   :  { %v734_v35 = vld [vmem:[#allocation2 + $0xb80] sm:$0xff]  ;;  %v13803_v38 = vcombine.high %v870_v28, %v874_v63  ;;  %5763 = vmatprep.subr.bf16.mxu0 %v13675_v34  ;;  %v13802_v42 = vcombine.low %v870_v28, %v874_v63  ;;  %v16143_v34 = vrot.slane %v16139_v24, %v16088_v53 }
  0xe8   :  { %v738_v36 = vld [vmem:[#allocation2 + $0xba0] sm:$0xff]  ;;  %5764 = vmatpush2.bf16.msra.mxu0 %v13674_v41 }
  0xe9   :  { %v862_v37 = vld [vmem:[#allocation2 + $0xf80] sm:$0xff]  ;;  %v13667_v43 = vcombine.high %v734_v35, %v738_v36  ;;  %5804 = vmatprep.subr.bf16.mxu1 %v13803_v38  ;;  %v13666_v50 = vcombine.low %v734_v35, %v738_v36 }
  0xea   :  { %v866_v40 = vld [vmem:[#allocation2 + $0xfa0] sm:$0xff]  ;;  %5805 = vmatpush2.bf16.msra.mxu1 %v13802_v42 }
  0xeb   :  { %v726_v45 = vld [vmem:[#allocation2 + $0xb40] sm:$0xff]  ;;  %v13795_v48 = vcombine.high %v862_v37, %v866_v40  ;;  %5765 = vmatprep.subr.bf16.mxu0 %v13667_v43  ;;  %v13794_v51 = vcombine.low %v862_v37, %v866_v40 }
  0xec   :  { %v730_v46 = vld [vmem:[#allocation2 + $0xb60] sm:$0xff]  ;;  %5766 = vmatpush2.bf16.msra.mxu0 %v13666_v50 }
  0xed   :  { %v854_v47 = vld [vmem:[#allocation2 + $0xf40] sm:$0xff]  ;;  %v13659_v52 = vcombine.high %v726_v45, %v730_v46  ;;  %5806 = vmatprep.subr.bf16.mxu1 %v13795_v48  ;;  %v13658_v60 = vcombine.low %v726_v45, %v730_v46  ;;  %v1296_v45 = vcombine.high %v16143_v34, %v16143_v34 }
  0xee   :  { %v858_v49 = vld [vmem:[#allocation2 + $0xf60] sm:$0xff]  ;;  %5807 = vmatpush2.bf16.msra.mxu1 %v13794_v51 }
  0xef   :  { %v718_v54 = vld [vmem:[#allocation2 + $0xb00] sm:$0xff]  ;;  %v13787_v57 = vcombine.high %v854_v47, %v858_v49  ;;  %5767 = vmatprep.subr.bf16.mxu0 %v13659_v52  ;;  %v13786_v61 = vcombine.low %v854_v47, %v858_v49  ;;  %v16149_v47 = vrot.slane %v16113_v11, %v16088_v53 }
  0xf0   :  { %v722_v55 = vld [vmem:[#allocation2 + $0xb20] sm:$0xff]  ;;  %5768 = vmatpush2.bf16.msra.mxu0 %v13658_v60 }
  0xf1   :  { %v846_v56 = vld [vmem:[#allocation2 + $0xf00] sm:$0xff]  ;;  %v13651_v62 = vcombine.high %v718_v54, %v722_v55  ;;  %5808 = vmatprep.subr.bf16.mxu1 %v13787_v57  ;;  %v13650_v5 = vcombine.low %v718_v54, %v722_v55  ;;  %v16156_v57 = vcombine.high %v16149_v47, %v16149_v47 }
  0xf2   :  { %v850_v58 = vld [vmem:[#allocation2 + $0xf20] sm:$0xff]  ;;  %5809 = vmatpush2.bf16.msra.mxu1 %v13786_v61 }
  0xf3   :  { %v710_v0 = vld [vmem:[#allocation2 + $0xac0] sm:$0xff]  ;;  %v13779_v3 = vcombine.high %v846_v56, %v850_v58  ;;  %5769 = vmatprep.subr.bf16.mxu0 %v13651_v62  ;;  %v13778_v6 = vcombine.low %v846_v56, %v850_v58  ;;  %v16152_v56 = vrot.slane %v1296_v45, %v16088_v53 }
  0xf4   :  { %v714_v1 = vld [vmem:[#allocation2 + $0xae0] sm:$0xff]  ;;  %5770 = vmatpush2.bf16.msra.mxu0 %v13650_v5 }
  0xf5   :  { %v838_v2 = vld [vmem:[#allocation2 + $0xec0] sm:$0xff]  ;;  %v13643_v7 = vcombine.high %v710_v0, %v714_v1  ;;  %5810 = vmatprep.subr.bf16.mxu1 %v13779_v3  ;;  %v13642_v15 = vcombine.low %v710_v0, %v714_v1  ;;  %v16161_v3 = vcombine.high %v16152_v56, %v16152_v56 }
  0xf6   :  { %v842_v4 = vld [vmem:[#allocation2 + $0xee0] sm:$0xff]  ;;  %5811 = vmatpush2.bf16.msra.mxu1 %v13778_v6 }
  0xf7   :  { %v702_v8 = vld [vmem:[#allocation2 + $0xa80] sm:$0xff]  ;;  %v13771_v59 = vcombine.high %v838_v2, %v842_v4  ;;  %5771 = vmatprep.subr.bf16.mxu0 %v13643_v7  ;;  %v13770_v17 = vcombine.low %v838_v2, %v842_v4 }
  0xf8   :  { %v706_v10 = vld [vmem:[#allocation2 + $0xaa0] sm:$0xff]  ;;  %5772 = vmatpush2.bf16.msra.mxu0 %v13642_v15 }
  0xf9   :  { %v830_v12 = vld [vmem:[#allocation2 + $0xe80] sm:$0xff]  ;;  %v13635_v18 = vcombine.high %v702_v8, %v706_v10  ;;  %5812 = vmatprep.subr.bf16.mxu1 %v13771_v59  ;;  %v13634_v25 = vcombine.low %v702_v8, %v706_v10 }
  0xfa   :  { %v834_v14 = vld [vmem:[#allocation2 + $0xea0] sm:$0xff]  ;;  %5813 = vmatpush2.bf16.msra.mxu1 %v13770_v17 }
  0xfb   :  { %v694_v16 = vld [vmem:[#allocation2 + $0xa40] sm:$0xff]  ;;  %v13763_v23 = vcombine.high %v830_v12, %v834_v14  ;;  %5773 = vmatprep.subr.bf16.mxu0 %v13635_v18  ;;  %v13762_v26 = vcombine.low %v830_v12, %v834_v14 }
  0xfc   :  { %v698_v19 = vld [vmem:[#allocation2 + $0xa60] sm:$0xff]  ;;  %5774 = vmatpush2.bf16.msra.mxu0 %v13634_v25 }
  0xfd   :  { %v822_v20 = vld [vmem:[#allocation2 + $0xe40] sm:$0xff]  ;;  %v13627_v27 = vcombine.high %v694_v16, %v698_v19  ;;  %5814 = vmatprep.subr.bf16.mxu1 %v13763_v23  ;;  %v13626_v35 = vcombine.low %v694_v16, %v698_v19 }
  0xfe   :  { %v826_v21 = vld [vmem:[#allocation2 + $0xe60] sm:$0xff]  ;;  %5815 = vmatpush2.bf16.msra.mxu1 %v13762_v26 }
  0xff   :  { %v686_v28 = vld [vmem:[#allocation2 + $0xa00] sm:$0xff]  ;;  %v13755_v32 = vcombine.high %v822_v20, %v826_v21  ;;  %5775 = vmatprep.subr.bf16.mxu0 %v13627_v27  ;;  %v13754_v36 = vcombine.low %v822_v20, %v826_v21 }
 0x100   :  { %v690_v29 = vld [vmem:[#allocation2 + $0xa20] sm:$0xff]  ;;  %5776 = vmatpush2.bf16.msra.mxu0 %v13626_v35 }
 0x101   :  { %v814_v63 = vld [vmem:[#allocation2 + $0xe00] sm:$0xff]  ;;  %v13619_v37 = vcombine.high %v686_v28, %v690_v29  ;;  %5816 = vmatprep.subr.bf16.mxu1 %v13755_v32  ;;  %v13618_v46 = vcombine.low %v686_v28, %v690_v29 }
 0x102   :  { %v818_v33 = vld [vmem:[#allocation2 + $0xe20] sm:$0xff]  ;;  %5817 = vmatpush2.bf16.msra.mxu1 %v13754_v36 }
 0x103   :  { %v934_v38 = vld [vmem:[#allocation2 + $0x11c0] sm:$0xff]  ;;  %v13747_v42 = vcombine.high %v814_v63, %v818_v33  ;;  %5777 = vmatprep.subr.bf16.mxu0 %v13619_v37  ;;  %v13746_v48 = vcombine.low %v814_v63, %v818_v33 }
 0x104   :  { %v938_v40 = vld [vmem:[#allocation2 + $0x11e0] sm:$0xff]  ;;  %5778 = vmatpush2.bf16.msra.mxu0 %v13618_v46 }
 0x105   :  { %v1062_v41 = vld [vmem:[#allocation2 + $0x15c0] sm:$0xff]  ;;  %v13867_v49 = vcombine.high %v934_v38, %v938_v40  ;;  %5818 = vmatprep.subr.bf16.mxu1 %v13747_v42  ;;  %v13866_v11 = vcombine.low %v934_v38, %v938_v40 }
 0x106   :  { %v1066_v43 = vld [vmem:[#allocation2 + $0x15e0] sm:$0xff]  ;;  %5819 = vmatpush2.bf16.msra.mxu1 %v13746_v48 }
 0x107   :  { %v926_v50 = vld [vmem:[#allocation2 + $0x1180] sm:$0xff]  ;;  %v13995_v54 = vcombine.high %v1062_v41, %v1066_v43  ;;  %5829 = vmatprep.subr.bf16.mxu0 %v13867_v49  ;;  %v13994_v58 = vcombine.low %v1062_v41, %v1066_v43  ;;  %5780 = vmatmul.mubr.bf16.vlgmr.msra.gmra.mxu0 %v16149_v47 }
 0x108   :  { %v930_v51 = vld [vmem:[#allocation2 + $0x11a0] sm:$0xff]  ;;  %5830 = vmatpush1.bf16.msra.mxu0 %v13866_v11  ;;  %5861 = vmatprep.mubr.bf16.mxu0 %v16152_v56 }
 0x109   :  { %v1054_v52 = vld [vmem:[#allocation2 + $0x1580] sm:$0xff]  ;;  %v13859_v60 = vcombine.high %v926_v50, %v930_v51  ;;  %5870 = vmatprep.subr.bf16.mxu1 %v13995_v54  ;;  %5821 = vmatmul.mubr.bf16.vlgmr.msra.gmra.mxu1 %v16156_v57  ;;  %v13858_v4 = vcombine.low %v926_v50, %v930_v51 }
 0x10a   :  { %v1058_v55 = vld [vmem:[#allocation2 + $0x15a0] sm:$0xff]  ;;  %5871 = vmatpush1.bf16.msra.mxu1 %v13994_v58  ;;  %5902 = vmatprep.mubr.bf16.mxu1 %v16161_v3 }
 0x10b   :  { %v918_v61 = vld [vmem:[#allocation2 + $0x1140] sm:$0xff]  ;;  %v13987_v1 = vcombine.high %v1054_v52, %v1058_v55  ;;  %5831 = vmatprep.subr.bf16.mxu0 %v13859_v60  ;;  %v13986_v5 = vcombine.low %v1054_v52, %v1058_v55 }
 0x10c   :  { %v922_v62 = vld [vmem:[#allocation2 + $0x1160] sm:$0xff]  ;;  %5832 = vmatpush1.bf16.msra.mxu0 %v13858_v4 }
 0x10d   :  { %v1046_v0 = vld [vmem:[#allocation2 + $0x1540] sm:$0xff]  ;;  %v13851_v6 = vcombine.high %v918_v61, %v922_v62  ;;  %5872 = vmatprep.subr.bf16.mxu1 %v13987_v1  ;;  %v13850_v14 = vcombine.low %v918_v61, %v922_v62 }
 0x10e   :  { %v1050_v2 = vld [vmem:[#allocation2 + $0x1560] sm:$0xff]  ;;  %5873 = vmatpush1.bf16.msra.mxu1 %v13986_v5 }
 0x10f   :  { %v910_v7 = vld [vmem:[#allocation2 + $0x1100] sm:$0xff]  ;;  %v13979_v12 = vcombine.high %v1046_v0, %v1050_v2  ;;  %5833 = vmatprep.subr.bf16.mxu0 %v13851_v6  ;;  %v13978_v15 = vcombine.low %v1046_v0, %v1050_v2 }
 0x110   :  { %v914_v8 = vld [vmem:[#allocation2 + $0x1120] sm:$0xff]  ;;  %5834 = vmatpush1.bf16.msra.mxu0 %v13850_v14 }
 0x111   :  { %v1038_v10 = vld [vmem:[#allocation2 + $0x1500] sm:$0xff]  ;;  %v13843_v16 = vcombine.high %v910_v7, %v914_v8  ;;  %5874 = vmatprep.subr.bf16.mxu1 %v13979_v12  ;;  %v13842_v23 = vcombine.low %v910_v7, %v914_v8 }
 0x112   :  { %v1042_v59 = vld [vmem:[#allocation2 + $0x1520] sm:$0xff]  ;;  %5875 = vmatpush1.bf16.msra.mxu1 %v13978_v15 }
 0x113   :  { %v902_v17 = vld [vmem:[#allocation2 + $0x10c0] sm:$0xff]  ;;  %v13971_v20 = vcombine.high %v1038_v10, %v1042_v59  ;;  %5835 = vmatprep.subr.bf16.mxu0 %v13843_v16  ;;  %v13970_v25 = vcombine.low %v1038_v10, %v1042_v59 }
 0x114   :  { %v906_v18 = vld [vmem:[#allocation2 + $0x10e0] sm:$0xff]  ;;  %5836 = vmatpush1.bf16.msra.mxu0 %v13842_v23 }
 0x115   :  { %v1030_v19 = vld [vmem:[#allocation2 + $0x14c0] sm:$0xff]  ;;  %v13835_v26 = vcombine.high %v902_v17, %v906_v18  ;;  %5876 = vmatprep.subr.bf16.mxu1 %v13971_v20  ;;  %v13834_v33 = vcombine.low %v902_v17, %v906_v18 }
 0x116   :  { %v1034_v21 = vld [vmem:[#allocation2 + $0x14e0] sm:$0xff]  ;;  %5877 = vmatpush1.bf16.msra.mxu1 %v13970_v25 }
 0x117   :  { %v894_v27 = vld [vmem:[#allocation2 + $0x1080] sm:$0xff]  ;;  %v13963_v63 = vcombine.high %v1030_v19, %v1034_v21  ;;  %5837 = vmatprep.subr.bf16.mxu0 %v13835_v26  ;;  %v13962_v35 = vcombine.low %v1030_v19, %v1034_v21 }
 0x118   :  { %v898_v28 = vld [vmem:[#allocation2 + $0x10a0] sm:$0xff]  ;;  %5838 = vmatpush1.bf16.msra.mxu0 %v13834_v33 }
 0x119   :  { %v1022_v29 = vld [vmem:[#allocation2 + $0x1480] sm:$0xff]  ;;  %v13827_v36 = vcombine.high %v894_v27, %v898_v28  ;;  %5878 = vmatprep.subr.bf16.mxu1 %v13963_v63  ;;  %v13826_v43 = vcombine.low %v894_v27, %v898_v28 }
 0x11a   :  { %v1026_v32 = vld [vmem:[#allocation2 + $0x14a0] sm:$0xff]  ;;  %5879 = vmatpush1.bf16.msra.mxu1 %v13962_v35 }
 0x11b   :  { %v886_v37 = vld [vmem:[#allocation2 + $0x1040] sm:$0xff]  ;;  %v13955_v41 = vcombine.high %v1022_v29, %v1026_v32  ;;  %5839 = vmatprep.subr.bf16.mxu0 %v13827_v36  ;;  %v13954_v45 = vcombine.low %v1022_v29, %v1026_v32 }
 0x11c   :  { %v890_v38 = vld [vmem:[#allocation2 + $0x1060] sm:$0xff]  ;;  %5840 = vmatpush1.bf16.msra.mxu0 %v13826_v43 }
 0x11d   :  { %v1014_v40 = vld [vmem:[#allocation2 + $0x1440] sm:$0xff]  ;;  %v13819_v46 = vcombine.high %v886_v37, %v890_v38  ;;  %5880 = vmatprep.subr.bf16.mxu1 %v13955_v41  ;;  %v13818_v54 = vcombine.low %v886_v37, %v890_v38 }
 0x11e   :  { %v1018_v42 = vld [vmem:[#allocation2 + $0x1460] sm:$0xff]  ;;  %5881 = vmatpush1.bf16.msra.mxu1 %v13954_v45 }
 0x11f   :  { %v878_v48 = vld [vmem:[#allocation2 + $0x1000] sm:$0xff]  ;;  %v13947_v51 = vcombine.high %v1014_v40, %v1018_v42  ;;  %5841 = vmatprep.subr.bf16.mxu0 %v13819_v46  ;;  %v13946_v55 = vcombine.low %v1014_v40, %v1018_v42 }
 0x120   :  { %v882_v49 = vld [vmem:[#allocation2 + $0x1020] sm:$0xff]  ;;  %5842 = vmatpush1.bf16.msra.mxu0 %v13818_v54 }
 0x121   :  { %v1006_v50 = vld [vmem:[#allocation2 + $0x1400] sm:$0xff]  ;;  %v13811_v11 = vcombine.high %v878_v48, %v882_v49  ;;  %5882 = vmatprep.subr.bf16.mxu1 %v13947_v51  ;;  %v13810_v1 = vcombine.low %v878_v48, %v882_v49 }
 0x122   :  { %v1010_v52 = vld [vmem:[#allocation2 + $0x1420] sm:$0xff]  ;;  %5883 = vmatpush1.bf16.msra.mxu1 %v13946_v55 }
 0x123   :  { %v998_v58 = vld [vmem:[#allocation2 + $0x13c0] sm:$0xff]  ;;  %v13939_v62 = vcombine.high %v1006_v50, %v1010_v52  ;;  %5843 = vmatprep.subr.bf16.mxu0 %v13811_v11  ;;  %v13938_v2 = vcombine.low %v1006_v50, %v1010_v52 }
 0x124   :  { %v1002_v60 = vld [vmem:[#allocation2 + $0x13e0] sm:$0xff]  ;;  %5844 = vmatpush1.bf16.msra.mxu0 %v13810_v1 }
 0x125   :  { %v1126_v61 = vld [vmem:[#allocation2 + $0x17c0] sm:$0xff]  ;;  %v13931_v4 = vcombine.high %v998_v58, %v1002_v60  ;;  %5884 = vmatprep.subr.bf16.mxu1 %v13939_v62  ;;  %v13930_v12 = vcombine.low %v998_v58, %v1002_v60 }
 0x126   :  { %v1130_v0 = vld [vmem:[#allocation2 + $0x17e0] sm:$0xff]  ;;  %5885 = vmatpush1.bf16.msra.mxu1 %v13938_v2 }
 0x127   :  { %v990_v5 = vld [vmem:[#allocation2 + $0x1380] sm:$0xff]  ;;  %v14059_v8 = vcombine.high %v1126_v61, %v1130_v0  ;;  %5845 = vmatprep.subr.bf16.mxu0 %v13931_v4  ;;  %v14058_v59 = vcombine.low %v1126_v61, %v1130_v0 }
 0x128   :  { %v994_v6 = vld [vmem:[#allocation2 + $0x13a0] sm:$0xff]  ;;  %5846 = vmatpush2.bf16.msra.mxu0 %v13930_v12 }
 0x129   :  { %v1118_v7 = vld [vmem:[#allocation2 + $0x1780] sm:$0xff]  ;;  %v13923_v14 = vcombine.high %v990_v5, %v994_v6  ;;  %5886 = vmatprep.subr.bf16.mxu1 %v14059_v8  ;;  %v13922_v20 = vcombine.low %v990_v5, %v994_v6  ;;  %v1281_v8 = vcombine.high %v16139_v24, %v16139_v24  ;;  %v16173_v24 = vrot.slane %v16143_v34, %v16088_v53 }
 0x12a   :  { %v1122_v10 = vld [vmem:[#allocation2 + $0x17a0] sm:$0xff]  ;;  %5887 = vmatpush2.bf16.msra.mxu1 %v14058_v59 }
 0x12b   :  { %v982_v15 = vld [vmem:[#allocation2 + $0x1340] sm:$0xff]  ;;  %v14051_v18 = vcombine.high %v1118_v7, %v1122_v10  ;;  %5847 = vmatprep.subr.bf16.mxu0 %v13923_v14  ;;  %v14050_v21 = vcombine.low %v1118_v7, %v1122_v10 }
 0x12c   :  { %v986_v16 = vld [vmem:[#allocation2 + $0x1360] sm:$0xff]  ;;  %5848 = vmatpush2.bf16.msra.mxu0 %v13922_v20 }
 0x12d   :  { %v1110_v17 = vld [vmem:[#allocation2 + $0x1740] sm:$0xff]  ;;  %v13915_v23 = vcombine.high %v982_v15, %v986_v16  ;;  %5888 = vmatprep.subr.bf16.mxu1 %v14051_v18  ;;  %v13914_v63 = vcombine.low %v982_v15, %v986_v16  ;;  %v423_v16 = vld [vmem:[#allocation2 + $0x1c8] sm:$0xff] }
 0x12e   :  { %v1114_v19 = vld [vmem:[#allocation2 + $0x1760] sm:$0xff]  ;;  %5889 = vmatpush2.bf16.msra.mxu1 %v14050_v21  ;;  %v427_v18 = vld [vmem:[#allocation2 + $0x1e8] sm:$0xff] }
 0x12f   :  { %v974_v25 = vld [vmem:[#allocation2 + $0x1300] sm:$0xff]  ;;  %v14043_v28 = vcombine.high %v1110_v17, %v1114_v19  ;;  %5849 = vmatprep.subr.bf16.mxu0 %v13915_v23  ;;  %v14042_v32 = vcombine.low %v1110_v17, %v1114_v19  ;;  %v16169_v19 = vrot.slane %v1281_v8, %v16088_v53 }
 0x130   :  { %v978_v26 = vld [vmem:[#allocation2 + $0x1320] sm:$0xff]  ;;  %5850 = vmatpush2.bf16.msra.mxu0 %v13914_v63 }
 0x131   :  { %v1102_v27 = vld [vmem:[#allocation2 + $0x1700] sm:$0xff]  ;;  %v13907_v33 = vcombine.high %v974_v25, %v978_v26  ;;  %5890 = vmatprep.subr.bf16.mxu1 %v14043_v28  ;;  %v13906_v41 = vcombine.low %v974_v25, %v978_v26  ;;  %v13357_v28 = vcombine.high %v423_v16, %v427_v18  ;;  %v1297_v63 = vcombine.high %v16169_v19, %v16169_v19 }
 0x132   :  { %v1106_v29 = vld [vmem:[#allocation2 + $0x1720] sm:$0xff]  ;;  %5891 = vmatpush2.bf16.msra.mxu1 %v14042_v32  ;;  %v16179_v32 = vcombine.high %v16173_v24, %v16173_v24 }
 0x133   :  { %v966_v35 = vld [vmem:[#allocation2 + $0x12c0] sm:$0xff]  ;;  %v14035_v38 = vcombine.high %v1102_v27, %v1106_v29  ;;  %5851 = vmatprep.subr.bf16.mxu0 %v13907_v33  ;;  %v14034_v42 = vcombine.low %v1102_v27, %v1106_v29  ;;  %v415_v27 = vld [vmem:[#allocation2 + $0x188] sm:$0xff]  ;;  %v13356_v33 = vcombine.low %v423_v16, %v427_v18 }
 0x134   :  { %v970_v36 = vld [vmem:[#allocation2 + $0x12e0] sm:$0xff]  ;;  %5852 = vmatpush2.bf16.msra.mxu0 %v13906_v41  ;;  %v419_v29 = vld [vmem:[#allocation2 + $0x1a8] sm:$0xff] }
 0x135   :  { %v1094_v37 = vld [vmem:[#allocation2 + $0x16c0] sm:$0xff]  ;;  %v13899_v43 = vcombine.high %v966_v35, %v970_v36  ;;  %5892 = vmatprep.subr.bf16.mxu1 %v14035_v38  ;;  %v13898_v51 = vcombine.low %v966_v35, %v970_v36  ;;  %v407_v38 = vld [vmem:[#allocation2 + $0x148] sm:$0xff] }
 0x136   :  { %v1098_v40 = vld [vmem:[#allocation2 + $0x16e0] sm:$0xff]  ;;  %5893 = vmatpush2.bf16.msra.mxu1 %v14034_v42  ;;  %v411_v41 = vld [vmem:[#allocation2 + $0x168] sm:$0xff]  ;;  %v16182_v42 = vrot.slane %v1297_v63, %v16088_v53 }
 0x137   :  { %v958_v45 = vld [vmem:[#allocation2 + $0x1280] sm:$0xff]  ;;  %v14027_v49 = vcombine.high %v1094_v37, %v1098_v40  ;;  %5853 = vmatprep.subr.bf16.mxu0 %v13899_v43  ;;  %v14026_v52 = vcombine.low %v1094_v37, %v1098_v40  ;;  %v13349_v40 = vcombine.high %v415_v27, %v419_v29  ;;  %v371_v63 = vld [vmem:[#allocation2 + $0x28] sm:$0xff] }
 0x138   :  { %v962_v46 = vld [vmem:[#allocation2 + $0x12a0] sm:$0xff]  ;;  %5854 = vmatpush2.bf16.msra.mxu0 %v13898_v51  ;;  %v13341_v51 = vcombine.high %v407_v38, %v411_v41 }
 0x139   :  { %v1086_v48 = vld [vmem:[#allocation2 + $0x1680] sm:$0xff]  ;;  %v13891_v54 = vcombine.high %v958_v45, %v962_v46  ;;  %5894 = vmatprep.subr.bf16.mxu1 %v14027_v49  ;;  %v13890_v62 = vcombine.low %v958_v45, %v962_v46  ;;  %v13348_v45 = vcombine.low %v415_v27, %v419_v29 }
 0x13a   :  { %v1090_v50 = vld [vmem:[#allocation2 + $0x16a0] sm:$0xff]  ;;  %5895 = vmatpush2.bf16.msra.mxu1 %v14026_v52  ;;  %v403_v52 = vld [vmem:[#allocation2 + $0x128] sm:$0xff] }
 0x13b   :  { %v950_v55 = vld [vmem:[#allocation2 + $0x1240] sm:$0xff]  ;;  %v14019_v60 = vcombine.high %v1086_v48, %v1090_v50  ;;  %5855 = vmatprep.subr.bf16.mxu0 %v13891_v54  ;;  %v14018_v0 = vcombine.low %v1086_v48, %v1090_v50  ;;  %v399_v50 = vld [vmem:[#allocation2 + $0x108] sm:$0xff] }
 0x13c   :  { %v954_v11 = vld [vmem:[#allocation2 + $0x1260] sm:$0xff]  ;;  %5856 = vmatpush2.bf16.msra.mxu0 %v13890_v62  ;;  %v13333_v62 = vcombine.high %v399_v50, %v403_v52 }
 0x13d   :  { %v1078_v58 = vld [vmem:[#allocation2 + $0x1640] sm:$0xff]  ;;  %v13883_v1 = vcombine.high %v950_v55, %v954_v11  ;;  %5896 = vmatprep.subr.bf16.mxu1 %v14019_v60  ;;  %v13882_v10 = vcombine.low %v950_v55, %v954_v11  ;;  %v13340_v55 = vcombine.low %v407_v38, %v411_v41  ;;  %v487_v38 = vld [vmem:[#allocation2 + $0x3c8] sm:$0xff] }
 0x13e   :  { %v1082_v61 = vld [vmem:[#allocation2 + $0x1660] sm:$0xff]  ;;  %5897 = vmatpush2.bf16.msra.mxu1 %v14018_v0  ;;  %v395_v0 = vld [vmem:[#allocation2 + $0xe8] sm:$0xff] }
 0x13f   :  { %v942_v2 = vld [vmem:[#allocation2 + $0x1200] sm:$0xff]  ;;  %v14011_v6 = vcombine.high %v1078_v58, %v1082_v61  ;;  %5857 = vmatprep.subr.bf16.mxu0 %v13883_v1  ;;  %v14010_v12 = vcombine.low %v1078_v58, %v1082_v61  ;;  %v391_v61 = vld [vmem:[#allocation2 + $0xc8] sm:$0xff] }
 0x140   :  { %v946_v4 = vld [vmem:[#allocation2 + $0x1220] sm:$0xff]  ;;  %5858 = vmatpush2.bf16.msra.mxu0 %v13882_v10  ;;  %v13325_v8 = vcombine.high %v391_v61, %v395_v0  ;;  %v387_v10 = vld [vmem:[#allocation2 + $0xa8] sm:$0xff] }
 0x141   :  { %v1070_v5 = vld [vmem:[#allocation2 + $0x1600] sm:$0xff]  ;;  %v13875_v59 = vcombine.high %v942_v2, %v946_v4  ;;  %5898 = vmatprep.subr.bf16.mxu1 %v14011_v6  ;;  %v13874_v20 = vcombine.low %v942_v2, %v946_v4  ;;  %v13332_v2 = vcombine.low %v399_v50, %v403_v52  ;;  %v491_v41 = vld [vmem:[#allocation2 + $0x3e8] sm:$0xff] }
 0x142   :  { %v1074_v7 = vld [vmem:[#allocation2 + $0x1620] sm:$0xff]  ;;  %5899 = vmatpush2.bf16.msra.mxu1 %v14010_v12  ;;  %v479_v50 = vld [vmem:[#allocation2 + $0x388] sm:$0xff] }
 0x143   :  { %v1190_v14 = vld [vmem:[#allocation2 + $0x19c0] sm:$0xff]  ;;  %v14003_v17 = vcombine.high %v1070_v5, %v1074_v7  ;;  %5859 = vmatprep.subr.bf16.mxu0 %v13875_v59  ;;  %v14002_v21 = vcombine.low %v1070_v5, %v1074_v7  ;;  %v383_v7 = vld [vmem:[#allocation2 + $0x88] sm:$0xff]  ;;  %v13324_v59 = vcombine.low %v391_v61, %v395_v0 }
 0x144   :  { %v1194_v15 = vld [vmem:[#allocation2 + $0x19e0] sm:$0xff]  ;;  %5860 = vmatpush2.bf16.msra.mxu0 %v13874_v20  ;;  %v13317_v18 = vcombine.high %v383_v7, %v387_v10  ;;  %v379_v20 = vld [vmem:[#allocation2 + $0x68] sm:$0xff] }
 0x145   :  { %v14123_v23 = vcombine.high %v1190_v14, %v1194_v15  ;;  %v1182_v25 = vld [vmem:[#allocation2 + $0x1980] sm:$0xff]  ;;  %5900 = vmatprep.subr.bf16.mxu1 %v14003_v17  ;;  %v14122_v34 = vcombine.low %v1190_v14, %v1194_v15  ;;  %v375_v17 = vld [vmem:[#allocation2 + $0x48] sm:$0xff] }
 0x146   :  { %v1186_v26 = vld [vmem:[#allocation2 + $0x19a0] sm:$0xff]  ;;  %5901 = vmatpush2.bf16.msra.mxu1 %v14002_v21  ;;  %v13309_v29 = vcombine.high %v375_v17, %v379_v20  ;;  %v483_v52 = vld [vmem:[#allocation2 + $0x3a8] sm:$0xff] }
 0x147   :  { %5911 = vmatprep.subr.bf16.mxu0 %v14123_v23  ;;  %v14115_v35 = vcombine.high %v1182_v25, %v1186_v26  ;;  %v1174_v36 = vld [vmem:[#allocation2 + $0x1940] sm:$0xff]  ;;  %5952 = vmatprep.subr.bf16.mxu1 %v13357_v28  ;;  %v14114_v43 = vcombine.low %v1182_v25, %v1186_v26  ;;  %v13316_v23 = vcombine.low %v383_v7, %v387_v10  ;;  %v367_v28 = vld [vmem:[#allocation2 + $0x8] sm:$0xff] }
 0x148   :  { %v1178_v37 = vld [vmem:[#allocation2 + $0x1960] sm:$0xff]  ;;  %5862 = vmatmul.mubr.bf16.vlgmr.msra.gmra.mxu0 %v16173_v24  ;;  %v471_v61 = vld [vmem:[#allocation2 + $0x348] sm:$0xff] }
 0x149   :  { %5903 = vmatmul.mubr.bf16.vlgmr.msra.gmra.mxu1 %v16179_v32  ;;  %5912 = vmatpush1.bf16.msra.mxu0 %v14122_v34  ;;  %v14107_v46 = vcombine.high %v1174_v36, %v1178_v37  ;;  %v1166_v48 = vld [vmem:[#allocation2 + $0x1900] sm:$0xff]  ;;  %v14106_v54 = vcombine.low %v1174_v36, %v1178_v37  ;;  %v475_v0 = vld [vmem:[#allocation2 + $0x368] sm:$0xff] }
 0x14a   :  { %5953 = vmatpush1.bf16.msra.mxu1 %v13356_v33  ;;  %5913 = vmatprep.subr.bf16.mxu0 %v14115_v35  ;;  %v1170_v49 = vld [vmem:[#allocation2 + $0x1920] sm:$0xff]  ;;  %v13308_v33 = vcombine.low %v375_v17, %v379_v20  ;;  %v467_v10 = vld [vmem:[#allocation2 + $0x328] sm:$0xff] }
 0x14b   :  { %5954 = vmatprep.subr.bf16.mxu1 %v13349_v40  ;;  %14162 = vmatprep.mubr.msk.bf16.mxu0 %vm5661_vm0, %v16182_v42  ;;  %v14099_v11 = vcombine.high %v1166_v48, %v1170_v49  ;;  %v1158_v58 = vld [vmem:[#allocation2 + $0x18c0] sm:$0xff]  ;;  %v14098_v1 = vcombine.low %v1166_v48, %v1170_v49  ;;  %v13301_v40 = vcombine.high %v367_v28, %v371_v63  ;;  %v555_v17 = vld [vmem:[#allocation2 + $0x5e8] sm:$0xff] }
 0x14c   :  { %5984 = vmatprep.mubr.bf16.mxu1 %v16102_v9  ;;  %v1162_v60 = vld [vmem:[#allocation2 + $0x18e0] sm:$0xff]  ;;  %v459_v20 = vld [vmem:[#allocation2 + $0x2e8] sm:$0xff] }
 0x14d   :  { %5914 = vmatpush1.bf16.msra.mxu0 %v14114_v43  ;;  %v14091_v4 = vcombine.high %v1158_v58, %v1162_v60  ;;  %v1150_v5 = vld [vmem:[#allocation2 + $0x1880] sm:$0xff]  ;;  %v14090_v12 = vcombine.low %v1158_v58, %v1162_v60 }
 0x14e   :  { %5955 = vmatpush1.bf16.msra.mxu1 %v13348_v45  ;;  %5915 = vmatprep.subr.bf16.mxu0 %v14107_v46  ;;  %v1154_v6 = vld [vmem:[#allocation2 + $0x18a0] sm:$0xff]  ;;  %v13300_v45 = vcombine.low %v367_v28, %v371_v63  ;;  %v547_v28 = vld [vmem:[#allocation2 + $0x5a8] sm:$0xff] }
 0x14f   :  { %5956 = vmatprep.subr.bf16.mxu1 %v13341_v51  ;;  %v14083_v14 = vcombine.high %v1150_v5, %v1154_v6  ;;  %v1142_v15 = vld [vmem:[#allocation2 + $0x1840] sm:$0xff]  ;;  %v14082_v21 = vcombine.low %v1150_v5, %v1154_v6  ;;  %v13421_v51 = vcombine.high %v487_v38, %v491_v41  ;;  %v13405_v5 = vcombine.high %v471_v61, %v475_v0  ;;  %v447_v63 = vld [vmem:[#allocation2 + $0x288] sm:$0xff] }
 0x150   :  { %v1146_v16 = vld [vmem:[#allocation2 + $0x1860] sm:$0xff] }
 0x151   :  { %5916 = vmatpush1.bf16.msra.mxu0 %v14106_v54  ;;  %v14075_v25 = vcombine.high %v1142_v15, %v1146_v16  ;;  %v1134_v26 = vld [vmem:[#allocation2 + $0x1800] sm:$0xff]  ;;  %v14074_v34 = vcombine.low %v1142_v15, %v1146_v16  ;;  %v551_v16 = vld [vmem:[#allocation2 + $0x5c8] sm:$0xff] }
 0x152   :  { %5957 = vmatpush1.bf16.msra.mxu1 %v13340_v55  ;;  %5917 = vmatprep.subr.bf16.mxu0 %v14099_v11  ;;  %v1138_v27 = vld [vmem:[#allocation2 + $0x1820] sm:$0xff]  ;;  %v13420_v55 = vcombine.low %v487_v38, %v491_v41  ;;  %v535_v38 = vld [vmem:[#allocation2 + $0x548] sm:$0xff] }
 0x153   :  { %5958 = vmatprep.subr.bf16.mxu1 %v13333_v62  ;;  %v14067_v35 = vcombine.high %v1134_v26, %v1138_v27  ;;  %v1222_v36 = vld [vmem:[#allocation2 + $0x1ac0] sm:$0xff]  ;;  %v14066_v43 = vcombine.low %v1134_v26, %v1138_v27  ;;  %v13413_v62 = vcombine.high %v479_v50, %v483_v52  ;;  %v543_v27 = vld [vmem:[#allocation2 + $0x588] sm:$0xff] }
 0x154   :  { %v1226_v37 = vld [vmem:[#allocation2 + $0x1ae0] sm:$0xff]  ;;  %v439_v41 = vld [vmem:[#allocation2 + $0x248] sm:$0xff] }
 0x155   :  { %5918 = vmatpush1.bf16.msra.mxu0 %v14098_v1  ;;  %v14155_v46 = vcombine.high %v1222_v36, %v1226_v37  ;;  %v1214_v48 = vld [vmem:[#allocation2 + $0x1a80] sm:$0xff]  ;;  %v14154_v54 = vcombine.low %v1222_v36, %v1226_v37  ;;  %v13477_v36 = vcombine.high %v543_v27, %v547_v28 }
 0x156   :  { %5959 = vmatpush1.bf16.msra.mxu1 %v13332_v2  ;;  %5919 = vmatprep.subr.bf16.mxu0 %v14091_v4  ;;  %v1218_v49 = vld [vmem:[#allocation2 + $0x1aa0] sm:$0xff]  ;;  %v13412_v2 = vcombine.low %v479_v50, %v483_v52  ;;  %v431_v50 = vld [vmem:[#allocation2 + $0x208] sm:$0xff] }
 0x157   :  { %5960 = vmatprep.subr.bf16.mxu1 %v13325_v8  ;;  %v14147_v11 = vcombine.high %v1214_v48, %v1218_v49  ;;  %v1206_v58 = vld [vmem:[#allocation2 + $0x1a40] sm:$0xff]  ;;  %v14146_v1 = vcombine.low %v1214_v48, %v1218_v49  ;;  %v463_v8 = vld [vmem:[#allocation2 + $0x308] sm:$0xff] }
 0x158   :  { %v1210_v60 = vld [vmem:[#allocation2 + $0x1a60] sm:$0xff]  ;;  %v13397_v15 = vcombine.high %v463_v8, %v467_v10  ;;  %v527_v48 = vld [vmem:[#allocation2 + $0x508] sm:$0xff] }
 0x159   :  { %5920 = vmatpush1.bf16.msra.mxu0 %v14090_v12  ;;  %v14139_v4 = vcombine.high %v1206_v58, %v1210_v60  ;;  %v1198_v6 = vld [vmem:[#allocation2 + $0x1a00] sm:$0xff]  ;;  %v14138_v12 = vcombine.low %v1206_v58, %v1210_v60  ;;  %v531_v49 = vld [vmem:[#allocation2 + $0x528] sm:$0xff] }
 0x15a   :  { %5961 = vmatpush1.bf16.msra.mxu1 %v13324_v59  ;;  %5921 = vmatprep.subr.bf16.mxu0 %v14083_v14  ;;  %v1202_v7 = vld [vmem:[#allocation2 + $0x1a20] sm:$0xff]  ;;  %v13404_v59 = vcombine.low %v471_v61, %v475_v0  ;;  %v519_v58 = vld [vmem:[#allocation2 + $0x4c8] sm:$0xff]  ;;  %v13460_v0 = vcombine.low %v527_v48, %v531_v49 }
 0x15b   :  { %5962 = vmatprep.subr.bf16.mxu1 %v13317_v18  ;;  %v14131_v14 = vcombine.high %v1198_v6, %v1202_v7  ;;  %v455_v18 = vld [vmem:[#allocation2 + $0x2c8] sm:$0xff] }
 0x15c   :  { %v13389_v26 = vcombine.high %v455_v18, %v459_v20  ;;  %v523_v60 = vld [vmem:[#allocation2 + $0x4e8] sm:$0xff] }
 0x15d   :  { %5922 = vmatpush1.bf16.msra.mxu0 %v14082_v21  ;;  %v14130_v21 = vcombine.low %v1198_v6, %v1202_v7  ;;  %v679_v61 = vld [vmem:[#allocation2 + $0x9c8] sm:$0xff] }
 0x15e   :  { %5963 = vmatpush1.bf16.msra.mxu1 %v13316_v23  ;;  %5923 = vmatprep.subr.bf16.mxu0 %v14075_v25  ;;  %v13396_v23 = vcombine.low %v463_v8, %v467_v10  ;;  %v13485_v25 = vcombine.high %v551_v16, %v555_v17  ;;  %v515_v6 = vld [vmem:[#allocation2 + $0x4a8] sm:$0xff]  ;;  %v13452_v10 = vcombine.low %v519_v58, %v523_v60 }
 0x15f   :  { %5964 = vmatprep.subr.bf16.mxu1 %v13309_v29  ;;  %v16191_v29 = vrot.slane %v16169_v19, %v16088_v53  ;;  %v671_v7 = vld [vmem:[#allocation2 + $0x988] sm:$0xff] }
 0x160   :  { %v675_v8 = vld [vmem:[#allocation2 + $0x9a8] sm:$0xff] }
 0x161   :  { %5924 = vmatpush1.bf16.msra.mxu0 %v14074_v34  ;;  %v451_v34 = vld [vmem:[#allocation2 + $0x2a8] sm:$0xff] }
 0x162   :  { %5965 = vmatpush1.bf16.msra.mxu1 %v13308_v33  ;;  %5925 = vmatprep.subr.bf16.mxu0 %v14067_v35  ;;  %v13484_v33 = vcombine.low %v551_v16, %v555_v17  ;;  %v13388_v35 = vcombine.low %v455_v18, %v459_v20  ;;  %v13381_v37 = vcombine.high %v447_v63, %v451_v34  ;;  %v507_v16 = vld [vmem:[#allocation2 + $0x468] sm:$0xff] }
 0x163   :  { %5966 = vmatprep.subr.bf16.mxu1 %v13301_v40  ;;  %v539_v40 = vld [vmem:[#allocation2 + $0x568] sm:$0xff]  ;;  %v13380_v53 = vcombine.low %v447_v63, %v451_v34 }
 0x164   :  { %v13469_v19 = vcombine.high %v535_v38, %v539_v40  ;;  %v13468_v52 = vcombine.low %v535_v38, %v539_v40  ;;  %v663_v18 = vld [vmem:[#allocation2 + $0x948] sm:$0xff] }
 0x165   :  { %5926 = vmatpush1.bf16.msra.mxu0 %v14066_v43  ;;  %v443_v43 = vld [vmem:[#allocation2 + $0x268] sm:$0xff] }
 0x166   :  { %5967 = vmatpush1.bf16.msra.mxu1 %v13300_v45  ;;  %5935 = vmatprep.subr.bf16.mxu0 %v14155_v46  ;;  %v13476_v45 = vcombine.low %v543_v27, %v547_v28  ;;  %v13373_v46 = vcombine.high %v439_v41, %v443_v43  ;;  %v667_v20 = vld [vmem:[#allocation2 + $0x968] sm:$0xff]  ;;  %v13604_v27 = vcombine.low %v671_v7, %v675_v8 }
 0x167   :  { %5968 = vmatprep.subr.bf16.mxu1 %v13421_v51  ;;  %v435_v51 = vld [vmem:[#allocation2 + $0x228] sm:$0xff]  ;;  %v13597_v34 = vcombine.high %v663_v18, %v667_v20 }
 0x168   :  { %v659_v38 = vld [vmem:[#allocation2 + $0x928] sm:$0xff] }
 0x169   :  { %5936 = vmatpush2.bf16.msra.mxu0 %v14154_v54  ;;  %v13372_v54 = vcombine.low %v439_v41, %v443_v43 }
 0x16a   :  { %5969 = vmatpush2.bf16.msra.mxu1 %v13420_v55  ;;  %5937 = vmatprep.subr.bf16.mxu0 %v14147_v11  ;;  %v13461_v55 = vcombine.high %v527_v48, %v531_v49  ;;  %v13365_v11 = vcombine.high %v431_v50, %v435_v51  ;;  %v615_v48 = vld [vmem:[#allocation2 + $0x7c8] sm:$0xff] }
 0x16b   :  { %5970 = vmatprep.subr.bf16.mxu1 %v13413_v62  ;;  %v683_v62 = vld [vmem:[#allocation2 + $0x9e8] sm:$0xff] }
 0x16c   :  { %v619_v49 = vld [vmem:[#allocation2 + $0x7e8] sm:$0xff] }
 0x16d   :  { %5938 = vmatpush2.bf16.msra.mxu0 %v14146_v1  ;;  %v13364_v1 = vcombine.low %v431_v50, %v435_v51  ;;  %v647_v50 = vld [vmem:[#allocation2 + $0x8c8] sm:$0xff] }
 0x16e   :  { %5971 = vmatpush2.bf16.msra.mxu1 %v13412_v2  ;;  %5939 = vmatprep.subr.bf16.mxu0 %v14139_v4  ;;  %v13453_v2 = vcombine.high %v519_v58, %v523_v60  ;;  %v13613_v4 = vcombine.high %v679_v61, %v683_v62  ;;  %v651_v51 = vld [vmem:[#allocation2 + $0x8e8] sm:$0xff] }
 0x16f   :  { %5972 = vmatprep.subr.bf16.mxu1 %v13405_v5  ;;  %v511_v5 = vld [vmem:[#allocation2 + $0x488] sm:$0xff] }
 0x170   :  { %v607_v58 = vld [vmem:[#allocation2 + $0x788] sm:$0xff] }
 0x171   :  { %5940 = vmatpush2.bf16.msra.mxu0 %v14138_v12  ;;  %v13612_v12 = vcombine.low %v679_v61, %v683_v62  ;;  %v611_v60 = vld [vmem:[#allocation2 + $0x7a8] sm:$0xff] }
 0x172   :  { %5973 = vmatpush2.bf16.msra.mxu1 %v13404_v59  ;;  %5941 = vmatprep.subr.bf16.mxu0 %v14131_v14  ;;  %v13445_v59 = vcombine.high %v511_v5, %v515_v6  ;;  %v13605_v14 = vcombine.high %v671_v7, %v675_v8  ;;  %v639_v61 = vld [vmem:[#allocation2 + $0x888] sm:$0xff] }
 0x173   :  { %5974 = vmatprep.subr.bf16.mxu1 %v13397_v15  ;;  %v503_v15 = vld [vmem:[#allocation2 + $0x448] sm:$0xff] }
 0x174   :  { %v13437_v28 = vcombine.high %v503_v15, %v507_v16  ;;  %v13436_v41 = vcombine.low %v503_v15, %v507_v16  ;;  %v643_v62 = vld [vmem:[#allocation2 + $0x8a8] sm:$0xff] }
 0x175   :  { %5942 = vmatpush2.bf16.msra.mxu0 %v14130_v21  ;;  %v631_v7 = vld [vmem:[#allocation2 + $0x848] sm:$0xff] }
 0x176   :  { %5975 = vmatpush2.bf16.msra.mxu1 %v13396_v23  ;;  %5993 = vmatprep.subr.bf16.mxu0 %v13485_v25  ;;  %v13444_v23 = vcombine.low %v511_v5, %v515_v6  ;;  %v599_v5 = vld [vmem:[#allocation2 + $0x748] sm:$0xff] }
 0x177   :  { %5976 = vmatprep.subr.bf16.mxu1 %v13389_v26  ;;  %v603_v6 = vld [vmem:[#allocation2 + $0x768] sm:$0xff] }
 0x178   :  { %5944 = vmatmul.mubr.bf16.vlgmr.msra.gmra.mxu0 %v16191_v29  ;;  %v635_v8 = vld [vmem:[#allocation2 + $0x868] sm:$0xff] }
 0x179   :  { %5994 = vmatpush1.bf16.msra.mxu0 %v13484_v33  ;;  %6025 = vmatprep.mubr.bf16.mxu0 %v16107_v13  ;;  %v495_v33 = vld [vmem:[#allocation2 + $0x408] sm:$0xff] }
 0x17a   :  { %5977 = vmatpush2.bf16.msra.mxu1 %v13388_v35  ;;  %5995 = vmatprep.subr.bf16.mxu0 %v13477_v36  ;;  %v499_v35 = vld [vmem:[#allocation2 + $0x428] sm:$0xff] }
 0x17b   :  { %5978 = vmatprep.subr.bf16.mxu1 %v13381_v37  ;;  %v655_v37 = vld [vmem:[#allocation2 + $0x908] sm:$0xff] }
 0x17c   :  { %v591_v15 = vld [vmem:[#allocation2 + $0x708] sm:$0xff] }
 0x17d   :  { %5996 = vmatpush1.bf16.msra.mxu0 %v13476_v45  ;;  %v13596_v45 = vcombine.low %v663_v18, %v667_v20  ;;  %v595_v16 = vld [vmem:[#allocation2 + $0x728] sm:$0xff]  ;;  %v13532_v20 = vcombine.low %v599_v5, %v603_v6 }
 0x17e   :  { %5979 = vmatpush2.bf16.msra.mxu1 %v13380_v53  ;;  %5997 = vmatprep.subr.bf16.mxu0 %v13469_v19  ;;  %v13429_v53 = vcombine.high %v495_v33, %v499_v35  ;;  %v627_v18 = vld [vmem:[#allocation2 + $0x828] sm:$0xff] }
 0x17f   :  { %5980 = vmatprep.subr.bf16.mxu1 %v13373_v46  ;;  %v13589_v46 = vcombine.high %v655_v37, %v659_v38 }
 0x181   :  { %5998 = vmatpush1.bf16.msra.mxu0 %v13468_v52  ;;  %v13428_v52 = vcombine.low %v495_v33, %v499_v35  ;;  %v743_v33 = vld [vmem:[#allocation2 + $0xbc8] sm:$0xff] }
 0x182   :  { %5981 = vmatpush2.bf16.msra.mxu1 %v13372_v54  ;;  %5999 = vmatprep.subr.bf16.mxu0 %v13461_v55  ;;  %v13588_v54 = vcombine.low %v655_v37, %v659_v38  ;;  %v13549_v55 = vcombine.high %v615_v48, %v619_v49  ;;  %v747_v35 = vld [vmem:[#allocation2 + $0xbe8] sm:$0xff] }
 0x183   :  { %5982 = vmatprep.subr.bf16.mxu1 %v13365_v11  ;;  %v13581_v11 = vcombine.high %v647_v50, %v651_v51 }
 0x185   :  { %6000 = vmatpush1.bf16.msra.mxu0 %v13460_v0  ;;  %v13548_v0 = vcombine.low %v615_v48, %v619_v49 }
 0x186   :  { %5983 = vmatpush2.bf16.msra.mxu1 %v13364_v1  ;;  %6001 = vmatprep.subr.bf16.mxu0 %v13453_v2  ;;  %v13580_v1 = vcombine.low %v647_v50, %v651_v51  ;;  %v13541_v2 = vcombine.high %v607_v58, %v611_v60  ;;  %v567_v50 = vld [vmem:[#allocation2 + $0x648] sm:$0xff] }
 0x187   :  { %6034 = vmatprep.subr.bf16.mxu1 %v13613_v4  ;;  %v5699_v17 = vpop.f32.mrf.mxu0  ;;  %v13573_v4 = vcombine.high %v639_v61, %v643_v62  ;;  %v571_v51 = vld [vmem:[#allocation2 + $0x668] sm:$0xff] }
 0x189   :  { %v5740_v21 = vpop.f32.mrf.mxu1  ;;  %5985 = vmatmul.mubr.bf16.vlgmr.msra.gmra.mxu1 %v16119_v22  ;;  %6002 = vmatpush1.bf16.msra.mxu0 %v13452_v10  ;;  %v16198_v26 = vpop.f32.mrf.mxu0  ;;  %v13540_v10 = vcombine.low %v607_v58, %v611_v60  ;;  %v13501_v58 = vcombine.high %v567_v50, %v571_v51 }
 0x18a   :  { %v16196_v25 = vadd.f32 %v5740_v21, %v5699_v17  ;;  %6035 = vmatpush1.bf16.msra.mxu1 %v13612_v12  ;;  %6003 = vmatprep.subr.bf16.mxu0 %v13445_v59  ;;  %v13572_v12 = vcombine.low %v639_v61, %v643_v62  ;;  %v13533_v59 = vcombine.high %v599_v5, %v603_v6  ;;  %v623_v17 = vld [vmem:[#allocation2 + $0x808] sm:$0xff] }
 0x18b   :  { %v16200_v63 = vpop.f32.mrf.mxu1  ;;  %6036 = vmatprep.subr.bf16.mxu1 %v13605_v14  ;;  %6066 = vmatprep.mubr.bf16.mxu1 %v16122_v30  ;;  %v5703_v36 = vpop.f32.mrf.mxu0  ;;  %v13565_v14 = vcombine.high %v631_v7, %v635_v8  ;;  %v13564_v21 = vcombine.low %v631_v7, %v635_v8  ;;  %v13556_v37 = vcombine.low %v623_v17, %v627_v18  ;;  %v559_v61 = vld [vmem:[#allocation2 + $0x608] sm:$0xff] }
 0x18c   :  { %v13524_v36 = vcombine.low %v591_v15, %v595_v16  ;;  %v563_v62 = vld [vmem:[#allocation2 + $0x628] sm:$0xff] }
 0x18d   :  { %v5744_v40 = vpop.f32.mrf.mxu1  ;;  %6004 = vmatpush1.bf16.msra.mxu0 %v13444_v23  ;;  %v5704_v43 = vpop.f32.mrf.mxu0  ;;  %v13525_v23 = vcombine.high %v591_v15, %v595_v16  ;;  %v13493_v5 = vcombine.high %v559_v61, %v563_v62  ;;  %v807_v7 = vld [vmem:[#allocation2 + $0xdc8] sm:$0xff] }
 0x18e   :  { %6037 = vmatpush1.bf16.msra.mxu1 %v13604_v27  ;;  %6005 = vmatprep.subr.bf16.mxu0 %v13437_v28  ;;  %v13557_v27 = vcombine.high %v623_v17, %v627_v18  ;;  %v583_v28 = vld [vmem:[#allocation2 + $0x6c8] sm:$0xff]  ;;  %v13677_v40 = vcombine.high %v743_v33, %v747_v35 }
 0x18f   :  { %v5745_v19 = vpop.f32.mrf.mxu1  ;;  %6038 = vmatprep.subr.bf16.mxu1 %v13597_v34  ;;  %v587_v34 = vld [vmem:[#allocation2 + $0x6e8] sm:$0xff] }
 0x190   :  { %v13517_v38 = vcombine.high %v583_v28, %v587_v34  ;;  %v579_v43 = vld [vmem:[#allocation2 + $0x6a8] sm:$0xff]  ;;  %v13516_v19 = vcombine.low %v583_v28, %v587_v34 }
 0x191   :  { %6006 = vmatpush1.bf16.msra.mxu0 %v13436_v41  ;;  %v575_v41 = vld [vmem:[#allocation2 + $0x688] sm:$0xff] }
 0x192   :  { %6039 = vmatpush1.bf16.msra.mxu1 %v13596_v45  ;;  %6007 = vmatprep.subr.bf16.mxu0 %v13429_v53  ;;  %v735_v45 = vld [vmem:[#allocation2 + $0xb88] sm:$0xff]  ;;  %v13509_v48 = vcombine.high %v575_v41, %v579_v43 }
 0x193   :  { %6040 = vmatprep.subr.bf16.mxu1 %v13589_v46  ;;  %v739_v53 = vld [vmem:[#allocation2 + $0xba8] sm:$0xff]  ;;  %v13676_v46 = vcombine.low %v743_v33, %v747_v35 }
 0x194   :  { %v13669_v49 = vcombine.high %v735_v45, %v739_v53  ;;  %v811_v8 = vld [vmem:[#allocation2 + $0xde8] sm:$0xff] }
 0x195   :  { %6008 = vmatpush1.bf16.msra.mxu0 %v13428_v52  ;;  %v727_v52 = vld [vmem:[#allocation2 + $0xb48] sm:$0xff]  ;;  %v13741_v15 = vcombine.high %v807_v7, %v811_v8 }
 0x196   :  { %6041 = vmatpush1.bf16.msra.mxu1 %v13588_v54  ;;  %6009 = vmatprep.subr.bf16.mxu0 %v13549_v55  ;;  %v731_v54 = vld [vmem:[#allocation2 + $0xb68] sm:$0xff]  ;;  %v13508_v55 = vcombine.low %v575_v41, %v579_v43 }
 0x197   :  { %6042 = vmatprep.subr.bf16.mxu1 %v13581_v11  ;;  %v13668_v11 = vcombine.low %v735_v45, %v739_v53  ;;  %v13661_v60 = vcombine.high %v727_v52, %v731_v54  ;;  %v799_v17 = vld [vmem:[#allocation2 + $0xd88] sm:$0xff] }
 0x198   :  { %v803_v18 = vld [vmem:[#allocation2 + $0xda8] sm:$0xff] }
 0x199   :  { %6010 = vmatpush2.bf16.msra.mxu0 %v13548_v0  ;;  %v719_v0 = vld [vmem:[#allocation2 + $0xb08] sm:$0xff]  ;;  %v13733_v28 = vcombine.high %v799_v17, %v803_v18 }
 0x19a   :  { %6043 = vmatpush1.bf16.msra.mxu1 %v13580_v1  ;;  %6011 = vmatprep.subr.bf16.mxu0 %v13541_v2  ;;  %v723_v1 = vld [vmem:[#allocation2 + $0xb28] sm:$0xff]  ;;  %v13500_v2 = vcombine.low %v567_v50, %v571_v51 }
 0x19b   :  { %6044 = vmatprep.subr.bf16.mxu1 %v13573_v4  ;;  %v13660_v4 = vcombine.low %v727_v52, %v731_v54  ;;  %v13653_v6 = vcombine.high %v719_v0, %v723_v1  ;;  %v791_v33 = vld [vmem:[#allocation2 + $0xd48] sm:$0xff] }
 0x19c   :  { %v795_v35 = vld [vmem:[#allocation2 + $0xd68] sm:$0xff] }
 0x19d   :  { %6012 = vmatpush2.bf16.msra.mxu0 %v13540_v10  ;;  %v711_v10 = vld [vmem:[#allocation2 + $0xac8] sm:$0xff]  ;;  %v13725_v41 = vcombine.high %v791_v33, %v795_v35 }
 0x19e   :  { %6045 = vmatpush1.bf16.msra.mxu1 %v13572_v12  ;;  %6013 = vmatprep.subr.bf16.mxu0 %v13533_v59  ;;  %v715_v12 = vld [vmem:[#allocation2 + $0xae8] sm:$0xff]  ;;  %v13492_v59 = vcombine.low %v559_v61, %v563_v62 }
 0x19f   :  { %6046 = vmatprep.subr.bf16.mxu1 %v13565_v14  ;;  %v13652_v14 = vcombine.low %v719_v0, %v723_v1  ;;  %v13645_v16 = vcombine.high %v711_v10, %v715_v12  ;;  %v783_v45 = vld [vmem:[#allocation2 + $0xd08] sm:$0xff] }
 0x1a0   :  { %v787_v53 = vld [vmem:[#allocation2 + $0xd28] sm:$0xff] }
 0x1a1   :  { %6014 = vmatpush2.bf16.msra.mxu0 %v13532_v20  ;;  %v703_v20 = vld [vmem:[#allocation2 + $0xa88] sm:$0xff]  ;;  %v13717_v50 = vcombine.high %v783_v45, %v787_v53 }
 0x1a2   :  { %6047 = vmatpush1.bf16.msra.mxu1 %v13564_v21  ;;  %6015 = vmatprep.subr.bf16.mxu0 %v13525_v23  ;;  %v707_v21 = vld [vmem:[#allocation2 + $0xaa8] sm:$0xff]  ;;  %v13740_v23 = vcombine.low %v807_v7, %v811_v8 }
 0x1a3   :  { %6048 = vmatprep.subr.bf16.mxu1 %v13557_v27  ;;  %v13644_v27 = vcombine.low %v711_v10, %v715_v12  ;;  %v13637_v34 = vcombine.high %v703_v20, %v707_v21  ;;  %v775_v52 = vld [vmem:[#allocation2 + $0xcc8] sm:$0xff] }
 0x1a4   :  { %v779_v54 = vld [vmem:[#allocation2 + $0xce8] sm:$0xff] }
 0x1a5   :  { %6016 = vmatpush2.bf16.msra.mxu0 %v13524_v36  ;;  %v695_v36 = vld [vmem:[#allocation2 + $0xa48] sm:$0xff]  ;;  %v13709_v61 = vcombine.high %v775_v52, %v779_v54 }
 0x1a6   :  { %6049 = vmatpush1.bf16.msra.mxu1 %v13556_v37  ;;  %6017 = vmatprep.subr.bf16.mxu0 %v13517_v38  ;;  %v699_v37 = vld [vmem:[#allocation2 + $0xa68] sm:$0xff]  ;;  %v13732_v38 = vcombine.low %v799_v17, %v803_v18 }
 0x1a7   :  { %6050 = vmatprep.subr.bf16.mxu1 %v13677_v40  ;;  %v13636_v40 = vcombine.low %v703_v20, %v707_v21  ;;  %v13629_v43 = vcombine.high %v695_v36, %v699_v37  ;;  %v767_v0 = vld [vmem:[#allocation2 + $0xc88] sm:$0xff] }
 0x1a8   :  { %v771_v1 = vld [vmem:[#allocation2 + $0xca8] sm:$0xff] }
 0x1a9   :  { %6018 = vmatpush2.bf16.msra.mxu0 %v13516_v19  ;;  %v687_v19 = vld [vmem:[#allocation2 + $0xa08] sm:$0xff]  ;;  %v13701_v7 = vcombine.high %v767_v0, %v771_v1  ;;  %v13700_v18 = vcombine.low %v767_v0, %v771_v1 }
 0x1aa   :  { %6051 = vmatpush2.bf16.msra.mxu1 %v13676_v46  ;;  %6019 = vmatprep.subr.bf16.mxu0 %v13509_v48  ;;  %v691_v46 = vld [vmem:[#allocation2 + $0xa28] sm:$0xff]  ;;  %v13724_v48 = vcombine.low %v791_v33, %v795_v35 }
 0x1ab   :  { %6052 = vmatprep.subr.bf16.mxu1 %v13669_v49  ;;  %v13628_v49 = vcombine.low %v695_v36, %v699_v37  ;;  %v13621_v51 = vcombine.high %v687_v19, %v691_v46  ;;  %v759_v10 = vld [vmem:[#allocation2 + $0xc48] sm:$0xff] }
 0x1ac   :  { %v763_v12 = vld [vmem:[#allocation2 + $0xc68] sm:$0xff] }
 0x1ad   :  { %6020 = vmatpush2.bf16.msra.mxu0 %v13508_v55  ;;  %v935_v55 = vld [vmem:[#allocation2 + $0x11c8] sm:$0xff] }
 0x1ae   :  { %6053 = vmatpush2.bf16.msra.mxu1 %v13668_v11  ;;  %6021 = vmatprep.subr.bf16.mxu0 %v13501_v58  ;;  %v939_v11 = vld [vmem:[#allocation2 + $0x11e8] sm:$0xff]  ;;  %v13716_v58 = vcombine.low %v783_v45, %v787_v53 }
 0x1af   :  { %6054 = vmatprep.subr.bf16.mxu1 %v13661_v60  ;;  %v13620_v60 = vcombine.low %v687_v19, %v691_v46  ;;  %v13869_v62 = vcombine.high %v935_v55, %v939_v11  ;;  %v751_v33 = vld [vmem:[#allocation2 + $0xc08] sm:$0xff] }
 0x1b0   :  { %v755_v35 = vld [vmem:[#allocation2 + $0xc28] sm:$0xff] }
 0x1b1   :  { %6022 = vmatpush2.bf16.msra.mxu0 %v13500_v2  ;;  %v927_v2 = vld [vmem:[#allocation2 + $0x1188] sm:$0xff]  ;;  %v13685_v45 = vcombine.high %v751_v33, %v755_v35 }
 0x1b2   :  { %6055 = vmatpush2.bf16.msra.mxu1 %v13660_v4  ;;  %6023 = vmatprep.subr.bf16.mxu0 %v13493_v5  ;;  %v931_v4 = vld [vmem:[#allocation2 + $0x11a8] sm:$0xff]  ;;  %v13708_v5 = vcombine.low %v775_v52, %v779_v54 }
 0x1b3   :  { %6056 = vmatprep.subr.bf16.mxu1 %v13653_v6  ;;  %v13868_v6 = vcombine.low %v935_v55, %v939_v11  ;;  %v13861_v8 = vcombine.high %v927_v2, %v931_v4  ;;  %v13860_v21 = vcombine.low %v927_v2, %v931_v4  ;;  %v911_v36 = vld [vmem:[#allocation2 + $0x1108] sm:$0xff] }
 0x1b4   :  { %v915_v37 = vld [vmem:[#allocation2 + $0x1128] sm:$0xff] }
 0x1b5   :  { %6024 = vmatpush2.bf16.msra.mxu0 %v13492_v59  ;;  %v13845_v19 = vcombine.high %v911_v36, %v915_v37  ;;  %v871_v46 = vld [vmem:[#allocation2 + $0xfc8] sm:$0xff]  ;;  %v13844_v52 = vcombine.low %v911_v36, %v915_v37 }
 0x1b6   :  { %6057 = vmatpush2.bf16.msra.mxu1 %v13652_v14  ;;  %6075 = vmatprep.subr.bf16.mxu0 %v13741_v15  ;;  %v919_v14 = vld [vmem:[#allocation2 + $0x1148] sm:$0xff] }
 0x1b7   :  { %6058 = vmatprep.subr.bf16.mxu1 %v13645_v16  ;;  %v923_v15 = vld [vmem:[#allocation2 + $0x1168] sm:$0xff] }
 0x1b8   :  { %6026 = vmatmul.mubr.bf16.vlgmr.msra.gmra.mxu0 %v16126_v31  ;;  %v863_v11 = vld [vmem:[#allocation2 + $0xf88] sm:$0xff] }
 0x1b9   :  { %6076 = vmatpush1.bf16.msra.mxu0 %v13740_v23  ;;  %6107 = vmatprep.mubr.bf16.mxu0 %v16131_v39  ;;  %v13693_v23 = vcombine.high %v759_v10, %v763_v12  ;;  %v855_v4 = vld [vmem:[#allocation2 + $0xf48] sm:$0xff] }
 0x1ba   :  { %6059 = vmatpush2.bf16.msra.mxu1 %v13644_v27  ;;  %6077 = vmatprep.subr.bf16.mxu0 %v13733_v28  ;;  %v1003_v36 = vld [vmem:[#allocation2 + $0x13e8] sm:$0xff] }
 0x1bb   :  { %6060 = vmatprep.subr.bf16.mxu1 %v13637_v34  ;;  %v13853_v34 = vcombine.high %v919_v14, %v923_v15 }
 0x1bd   :  { %6078 = vmatpush1.bf16.msra.mxu0 %v13732_v38 }
 0x1be   :  { %6061 = vmatpush2.bf16.msra.mxu1 %v13636_v40  ;;  %6079 = vmatprep.subr.bf16.mxu0 %v13725_v41  ;;  %v13692_v40 = vcombine.low %v759_v10, %v763_v12 }
 0x1bf   :  { %6062 = vmatprep.subr.bf16.mxu1 %v13629_v43  ;;  %v13852_v43 = vcombine.low %v919_v14, %v923_v15  ;;  %v847_v14 = vld [vmem:[#allocation2 + $0xf08] sm:$0xff] }
 0x1c0   :  { %v851_v15 = vld [vmem:[#allocation2 + $0xf28] sm:$0xff] }
 0x1c1   :  { %6080 = vmatpush1.bf16.msra.mxu0 %v13724_v48  ;;  %v875_v48 = vld [vmem:[#allocation2 + $0xfe8] sm:$0xff]  ;;  %v13780_v37 = vcombine.low %v847_v14, %v851_v15 }
 0x1c2   :  { %6063 = vmatpush2.bf16.msra.mxu1 %v13628_v49  ;;  %6081 = vmatprep.subr.bf16.mxu0 %v13717_v50  ;;  %v903_v49 = vld [vmem:[#allocation2 + $0x10c8] sm:$0xff]  ;;  %v13805_v54 = vcombine.high %v871_v46, %v875_v48 }
 0x1c3   :  { %6064 = vmatprep.subr.bf16.mxu1 %v13621_v51  ;;  %v907_v50 = vld [vmem:[#allocation2 + $0x10e8] sm:$0xff]  ;;  %v13684_v51 = vcombine.low %v751_v33, %v755_v35 }
 0x1c4   :  { %v13837_v55 = vcombine.high %v903_v49, %v907_v50  ;;  %v13836_v0 = vcombine.low %v903_v49, %v907_v50  ;;  %v839_v33 = vld [vmem:[#allocation2 + $0xec8] sm:$0xff] }
 0x1c5   :  { %6082 = vmatpush1.bf16.msra.mxu0 %v13716_v58  ;;  %v867_v58 = vld [vmem:[#allocation2 + $0xfa8] sm:$0xff] }
 0x1c6   :  { %6065 = vmatpush2.bf16.msra.mxu1 %v13620_v60  ;;  %6083 = vmatprep.subr.bf16.mxu0 %v13709_v61  ;;  %v895_v60 = vld [vmem:[#allocation2 + $0x1088] sm:$0xff]  ;;  %v13797_v1 = vcombine.high %v863_v11, %v867_v58 }
 0x1c7   :  { %6116 = vmatprep.subr.bf16.mxu1 %v13869_v62  ;;  %v5781_v59 = vpop.f32.mrf.mxu0  ;;  %v899_v61 = vld [vmem:[#allocation2 + $0x10a8] sm:$0xff]  ;;  %v13804_v62 = vcombine.low %v871_v46, %v875_v48 }
 0x1c8   :  { %v5782_v16 = vadd.f32 %v5781_v59, %v16196_v25  ;;  %v13829_v2 = vcombine.high %v895_v60, %v899_v61  ;;  %v13828_v10 = vcombine.low %v895_v60, %v899_v61  ;;  %v843_v35 = vld [vmem:[#allocation2 + $0xee8] sm:$0xff] }
 0x1c9   :  { %v5822_v17 = vpop.f32.mrf.mxu1  ;;  %6067 = vmatmul.mubr.bf16.vlgmr.msra.gmra.mxu1 %v16149_v47  ;;  %6084 = vmatpush1.bf16.msra.mxu0 %v13708_v5  ;;  %v16207_v20 = vpop.f32.mrf.mxu0  ;;  %v859_v5 = vld [vmem:[#allocation2 + $0xf68] sm:$0xff]  ;;  %v13772_v46 = vcombine.low %v839_v33, %v843_v35 }
 0x1ca   :  { %6117 = vmatpush1.bf16.msra.mxu1 %v13868_v6  ;;  %6085 = vmatprep.subr.bf16.mxu0 %v13701_v7  ;;  %v16209_v27 = vadd.f32 %v5822_v17, %v5782_v16  ;;  %v887_v6 = vld [vmem:[#allocation2 + $0x1048] sm:$0xff]  ;;  %v13789_v12 = vcombine.high %v855_v4, %v859_v5 }
 0x1cb   :  { %v16211_v28 = vpop.f32.mrf.mxu1  ;;  %6118 = vmatprep.subr.bf16.mxu1 %v13861_v8  ;;  %6148 = vmatprep.mubr.bf16.mxu1 %v16152_v56  ;;  %v5785_v25 = vpop.f32.mrf.mxu0  ;;  %v891_v7 = vld [vmem:[#allocation2 + $0x1068] sm:$0xff]  ;;  %v13796_v8 = vcombine.low %v863_v11, %v867_v58 }
 0x1cc   :  { %v13821_v59 = vcombine.high %v887_v6, %v891_v7  ;;  %v879_v16 = vld [vmem:[#allocation2 + $0x1008] sm:$0xff] }
 0x1cd   :  { %v5826_v38 = vpop.f32.mrf.mxu1  ;;  %6086 = vmatpush1.bf16.msra.mxu0 %v13700_v18  ;;  %v5786_v41 = vpop.f32.mrf.mxu0  ;;  %v883_v17 = vld [vmem:[#allocation2 + $0x1028] sm:$0xff]  ;;  %v13788_v18 = vcombine.low %v855_v4, %v859_v5 }
 0x1ce   :  { %6119 = vmatpush1.bf16.msra.mxu1 %v13860_v21  ;;  %6087 = vmatprep.subr.bf16.mxu0 %v13693_v23  ;;  %v13820_v21 = vcombine.low %v887_v6, %v891_v7  ;;  %v13781_v23 = vcombine.high %v847_v14, %v851_v15  ;;  %v999_v25 = vld [vmem:[#allocation2 + $0x13c8] sm:$0xff]  ;;  %v13812_v38 = vcombine.low %v879_v16, %v883_v17 }
 0x1cf   :  { %v5827_v53 = vpop.f32.mrf.mxu1  ;;  %6120 = vmatprep.subr.bf16.mxu1 %v13853_v34  ;;  %v13813_v34 = vcombine.high %v879_v16, %v883_v17  ;;  %v13933_v41 = vcombine.high %v999_v25, %v1003_v36  ;;  %v13932_v48 = vcombine.low %v999_v25, %v1003_v36 }
 0x1d0   :  { %v991_v53 = vld [vmem:[#allocation2 + $0x1388] sm:$0xff] }
 0x1d1   :  { %6088 = vmatpush1.bf16.msra.mxu0 %v13692_v40  ;;  %v13773_v40 = vcombine.high %v839_v33, %v843_v35 }
 0x1d2   :  { %6121 = vmatpush1.bf16.msra.mxu1 %v13852_v43  ;;  %6089 = vmatprep.subr.bf16.mxu0 %v13685_v45  ;;  %v831_v43 = vld [vmem:[#allocation2 + $0xe88] sm:$0xff] }
 0x1d3   :  { %6122 = vmatprep.subr.bf16.mxu1 %v13845_v19  ;;  %v835_v45 = vld [vmem:[#allocation2 + $0xea8] sm:$0xff] }
 0x1d4   :  { %v995_v19 = vld [vmem:[#allocation2 + $0x13a8] sm:$0xff]  ;;  %v13765_v49 = vcombine.high %v831_v43, %v835_v45  ;;  %v13764_v11 = vcombine.low %v831_v43, %v835_v45 }
 0x1d5   :  { %6090 = vmatpush1.bf16.msra.mxu0 %v13684_v51  ;;  %v13925_v50 = vcombine.high %v991_v53, %v995_v19  ;;  %v823_v51 = vld [vmem:[#allocation2 + $0xe48] sm:$0xff]  ;;  %v13924_v58 = vcombine.low %v991_v53, %v995_v19 }
 0x1d6   :  { %6123 = vmatpush1.bf16.msra.mxu1 %v13844_v52  ;;  %6091 = vmatprep.subr.bf16.mxu0 %v13805_v54  ;;  %v827_v52 = vld [vmem:[#allocation2 + $0xe68] sm:$0xff] }
 0x1d7   :  { %6124 = vmatprep.subr.bf16.mxu1 %v13837_v55  ;;  %v983_v54 = vld [vmem:[#allocation2 + $0x1348] sm:$0xff]  ;;  %v13757_v60 = vcombine.high %v823_v51, %v827_v52  ;;  %v13756_v4 = vcombine.low %v823_v51, %v827_v52 }
 0x1d8   :  { %v987_v55 = vld [vmem:[#allocation2 + $0x1368] sm:$0xff] }
 0x1d9   :  { %6092 = vmatpush2.bf16.msra.mxu0 %v13804_v62  ;;  %v13917_v61 = vcombine.high %v983_v54, %v987_v55  ;;  %v815_v62 = vld [vmem:[#allocation2 + $0xe08] sm:$0xff]  ;;  %v13916_v5 = vcombine.low %v983_v54, %v987_v55 }
 0x1da   :  { %6125 = vmatpush1.bf16.msra.mxu1 %v13836_v0  ;;  %6093 = vmatprep.subr.bf16.mxu0 %v13797_v1  ;;  %v819_v0 = vld [vmem:[#allocation2 + $0xe28] sm:$0xff] }
 0x1db   :  { %6126 = vmatprep.subr.bf16.mxu1 %v13829_v2  ;;  %v975_v1 = vld [vmem:[#allocation2 + $0x1308] sm:$0xff]  ;;  %v13749_v6 = vcombine.high %v815_v62, %v819_v0  ;;  %v13748_v14 = vcombine.low %v815_v62, %v819_v0 }
 0x1dc   :  { %v979_v2 = vld [vmem:[#allocation2 + $0x1328] sm:$0xff] }
 0x1dd   :  { %6094 = vmatpush2.bf16.msra.mxu0 %v13796_v8  ;;  %v13909_v7 = vcombine.high %v975_v1, %v979_v2  ;;  %v1063_v8 = vld [vmem:[#allocation2 + $0x15c8] sm:$0xff]  ;;  %v13908_v15 = vcombine.low %v975_v1, %v979_v2  ;;  %v5743_v2 = vadd.f32 %v16200_v63, %v16198_v26 }
 0x1de   :  { %6127 = vmatpush1.bf16.msra.mxu1 %v13828_v10  ;;  %6095 = vmatprep.subr.bf16.mxu0 %v13789_v12  ;;  %v1067_v10 = vld [vmem:[#allocation2 + $0x15e8] sm:$0xff] }
 0x1df   :  { %6128 = vmatprep.subr.bf16.mxu1 %v13821_v59  ;;  %v967_v12 = vld [vmem:[#allocation2 + $0x12c8] sm:$0xff]  ;;  %v13997_v16 = vcombine.high %v1063_v8, %v1067_v10  ;;  %v13996_v33 = vcombine.low %v1063_v8, %v1067_v10  ;;  %v5784_v10 = vadd.f32 %v16207_v20, %v5743_v2 }
 0x1e0   :  { %v971_v59 = vld [vmem:[#allocation2 + $0x12e8] sm:$0xff] }
 0x1e1   :  { %6096 = vmatpush2.bf16.msra.mxu0 %v13788_v18  ;;  %v13901_v17 = vcombine.high %v967_v12, %v971_v59  ;;  %v1055_v18 = vld [vmem:[#allocation2 + $0x1588] sm:$0xff]  ;;  %v13900_v35 = vcombine.low %v967_v12, %v971_v59 }
 0x1e2   :  { %6129 = vmatpush1.bf16.msra.mxu1 %v13820_v21  ;;  %6097 = vmatprep.subr.bf16.mxu0 %v13781_v23  ;;  %v1059_v21 = vld [vmem:[#allocation2 + $0x15a8] sm:$0xff] }
 0x1e3   :  { %6130 = vmatprep.subr.bf16.mxu1 %v13813_v34  ;;  %v959_v23 = vld [vmem:[#allocation2 + $0x1288] sm:$0xff]  ;;  %v13989_v25 = vcombine.high %v1055_v18, %v1059_v21  ;;  %v13988_v43 = vcombine.low %v1055_v18, %v1059_v21  ;;  %v5825_v21 = vadd.f32 %v16211_v28, %v5784_v10 }
 0x1e4   :  { %v963_v34 = vld [vmem:[#allocation2 + $0x12a8] sm:$0xff] }
 0x1e5   :  { %6098 = vmatpush2.bf16.msra.mxu0 %v13780_v37  ;;  %v13893_v36 = vcombine.high %v959_v23, %v963_v34  ;;  %v1047_v37 = vld [vmem:[#allocation2 + $0x1548] sm:$0xff]  ;;  %v13892_v45 = vcombine.low %v959_v23, %v963_v34 }
 0x1e6   :  { %6131 = vmatpush1.bf16.msra.mxu1 %v13812_v38  ;;  %6099 = vmatprep.subr.bf16.mxu0 %v13773_v40  ;;  %v1051_v38 = vld [vmem:[#allocation2 + $0x1568] sm:$0xff] }
 0x1e7   :  { %6132 = vmatprep.subr.bf16.mxu1 %v13933_v41  ;;  %v951_v40 = vld [vmem:[#allocation2 + $0x1248] sm:$0xff]  ;;  %v13981_v53 = vcombine.high %v1047_v37, %v1051_v38  ;;  %v13980_v51 = vcombine.low %v1047_v37, %v1051_v38 }
 0x1e8   :  { %v955_v41 = vld [vmem:[#allocation2 + $0x1268] sm:$0xff] }
 0x1e9   :  { %6100 = vmatpush2.bf16.msra.mxu0 %v13772_v46  ;;  %v13885_v19 = vcombine.high %v951_v40, %v955_v41  ;;  %v1039_v46 = vld [vmem:[#allocation2 + $0x1508] sm:$0xff]  ;;  %v13884_v52 = vcombine.low %v951_v40, %v955_v41 }
 0x1ea   :  { %6133 = vmatpush2.bf16.msra.mxu1 %v13932_v48  ;;  %6101 = vmatprep.subr.bf16.mxu0 %v13765_v49  ;;  %v1043_v48 = vld [vmem:[#allocation2 + $0x1528] sm:$0xff] }
 0x1eb   :  { %6134 = vmatprep.subr.bf16.mxu1 %v13925_v50  ;;  %v943_v49 = vld [vmem:[#allocation2 + $0x1208] sm:$0xff]  ;;  %v13973_v54 = vcombine.high %v1039_v46, %v1043_v48  ;;  %v13972_v62 = vcombine.low %v1039_v46, %v1043_v48 }
 0x1ec   :  { %v947_v50 = vld [vmem:[#allocation2 + $0x1228] sm:$0xff] }
 0x1ed   :  { %6102 = vmatpush2.bf16.msra.mxu0 %v13764_v11  ;;  %v13877_v55 = vcombine.high %v943_v49, %v947_v50  ;;  %v1031_v11 = vld [vmem:[#allocation2 + $0x14c8] sm:$0xff]  ;;  %v13876_v0 = vcombine.low %v943_v49, %v947_v50 }
 0x1ee   :  { %6135 = vmatpush2.bf16.msra.mxu1 %v13924_v58  ;;  %6103 = vmatprep.subr.bf16.mxu0 %v13757_v60  ;;  %v1035_v58 = vld [vmem:[#allocation2 + $0x14e8] sm:$0xff] }
 0x1ef   :  { %6136 = vmatprep.subr.bf16.mxu1 %v13917_v61  ;;  %v1191_v60 = vld [vmem:[#allocation2 + $0x19c8] sm:$0xff]  ;;  %v13965_v1 = vcombine.high %v1031_v11, %v1035_v58  ;;  %v13964_v12 = vcombine.low %v1031_v11, %v1035_v58 }
 0x1f0   :  { %v1195_v61 = vld [vmem:[#allocation2 + $0x19e8] sm:$0xff] }
 0x1f1   :  { %6104 = vmatpush2.bf16.msra.mxu0 %v13756_v4  ;;  %v14125_v4 = vcombine.high %v1191_v60, %v1195_v61  ;;  %v1187_v8 = vld [vmem:[#allocation2 + $0x19a8] sm:$0xff]  ;;  %v14124_v59 = vcombine.low %v1191_v60, %v1195_v61 }
 0x1f2   :  { %6137 = vmatpush2.bf16.msra.mxu1 %v13916_v5  ;;  %6105 = vmatprep.subr.bf16.mxu0 %v13749_v6  ;;  %v1023_v5 = vld [vmem:[#allocation2 + $0x1488] sm:$0xff] }
 0x1f3   :  { %6138 = vmatprep.subr.bf16.mxu1 %v13909_v7  ;;  %v1027_v6 = vld [vmem:[#allocation2 + $0x14a8] sm:$0xff] }
 0x1f4   :  { %v1183_v7 = vld [vmem:[#allocation2 + $0x1988] sm:$0xff]  ;;  %v13956_v20 = vcombine.low %v1023_v5, %v1027_v6 }
 0x1f5   :  { %6106 = vmatpush2.bf16.msra.mxu0 %v13748_v14  ;;  %v13957_v14 = vcombine.high %v1023_v5, %v1027_v6  ;;  %v1175_v26 = vld [vmem:[#allocation2 + $0x1948] sm:$0xff] }
 0x1f6   :  { %6139 = vmatpush2.bf16.msra.mxu1 %v13908_v15  ;;  %6157 = vmatprep.subr.bf16.mxu0 %v13997_v16  ;;  %v14117_v15 = vcombine.high %v1183_v7, %v1187_v8  ;;  %v1015_v16 = vld [vmem:[#allocation2 + $0x1448] sm:$0xff] }
 0x1f7   :  { %6140 = vmatprep.subr.bf16.mxu1 %v13901_v17  ;;  %v1019_v17 = vld [vmem:[#allocation2 + $0x1468] sm:$0xff] }
 0x1f8   :  { %6108 = vmatmul.mubr.bf16.vlgmr.msra.gmra.mxu0 %v16156_v57  ;;  %v1179_v63 = vld [vmem:[#allocation2 + $0x1968] sm:$0xff]  ;;  %v13948_v46 = vcombine.low %v1015_v16, %v1019_v17 }
 0x1f9   :  { %6158 = vmatpush1.bf16.msra.mxu0 %v13996_v33  ;;  %6189 = vmatprep.mubr.bf16.mxu0 %v16161_v3  ;;  %v14109_v40 = vcombine.high %v1175_v26, %v1179_v63  ;;  %v1007_v41 = vld [vmem:[#allocation2 + $0x1408] sm:$0xff]  ;;  %v14108_v49 = vcombine.low %v1175_v26, %v1179_v63 }
 0x1fa   :  { %6141 = vmatpush2.bf16.msra.mxu1 %v13900_v35  ;;  %6159 = vmatprep.subr.bf16.mxu0 %v13989_v25  ;;  %v14116_v35 = vcombine.low %v1183_v7, %v1187_v8  ;;  %v13949_v25 = vcombine.high %v1015_v16, %v1019_v17  ;;  %v1011_v28 = vld [vmem:[#allocation2 + $0x1428] sm:$0xff] }
 0x1fb   :  { %6142 = vmatprep.subr.bf16.mxu1 %v13893_v36  ;;  %v13941_v50 = vcombine.high %v1007_v41, %v1011_v28  ;;  %v1159_v11 = vld [vmem:[#allocation2 + $0x18c8] sm:$0xff]  ;;  %v13940_v60 = vcombine.low %v1007_v41, %v1011_v28 }
 0x1fc   :  { %v1163_v58 = vld [vmem:[#allocation2 + $0x18e8] sm:$0xff] }
 0x1fd   :  { %6160 = vmatpush1.bf16.msra.mxu0 %v13988_v43  ;;  %v1167_v43 = vld [vmem:[#allocation2 + $0x1908] sm:$0xff]  ;;  %v14092_v7 = vcombine.low %v1159_v11, %v1163_v58 }
 0x1fe   :  { %6143 = vmatpush2.bf16.msra.mxu1 %v13892_v45  ;;  %6161 = vmatprep.subr.bf16.mxu0 %v13981_v53  ;;  %v1171_v45 = vld [vmem:[#allocation2 + $0x1928] sm:$0xff] }
 0x1ff   :  { %6144 = vmatprep.subr.bf16.mxu1 %v13885_v19  ;;  %v14100_v61 = vcombine.low %v1167_v43, %v1171_v45  ;;  %v1123_v2 = vld [vmem:[#allocation2 + $0x17a8] sm:$0xff] }
 0x200   :  { %v1155_v5 = vld [vmem:[#allocation2 + $0x18a8] sm:$0xff] }
 0x201   :  { %6162 = vmatpush1.bf16.msra.mxu0 %v13980_v51  ;;  %v1103_v63 = vld [vmem:[#allocation2 + $0x1708] sm:$0xff] }
 0x202   :  { %6145 = vmatpush2.bf16.msra.mxu1 %v13884_v52  ;;  %6163 = vmatprep.subr.bf16.mxu0 %v13973_v54  ;;  %v14101_v52 = vcombine.high %v1167_v43, %v1171_v45  ;;  %v1127_v54 = vld [vmem:[#allocation2 + $0x17c8] sm:$0xff] }
 0x203   :  { %6146 = vmatprep.subr.bf16.mxu1 %v13877_v55  ;;  %v1131_v55 = vld [vmem:[#allocation2 + $0x17e8] sm:$0xff] }
 0x204   :  { %v14060_v6 = vcombine.low %v1127_v54, %v1131_v55  ;;  %v1227_v41 = vld [vmem:[#allocation2 + $0x1ae8] sm:$0xff] }
 0x205   :  { %6164 = vmatpush1.bf16.msra.mxu0 %v13972_v62  ;;  %v14061_v62 = vcombine.high %v1127_v54, %v1131_v55  ;;  %v1079_v55 = vld [vmem:[#allocation2 + $0x1648] sm:$0xff] }
 0x206   :  { %6147 = vmatpush2.bf16.msra.mxu1 %v13876_v0  ;;  %6165 = vmatprep.subr.bf16.mxu0 %v13965_v1  ;;  %v14093_v0 = vcombine.high %v1159_v11, %v1163_v58  ;;  %v1119_v1 = vld [vmem:[#allocation2 + $0x1788] sm:$0xff] }
 0x207   :  { %6198 = vmatprep.subr.bf16.mxu1 %v14125_v4  ;;  %v1151_v4 = vld [vmem:[#allocation2 + $0x1888] sm:$0xff]  ;;  %v14053_v8 = vcombine.high %v1119_v1, %v1123_v2  ;;  %v14052_v16 = vcombine.low %v1119_v1, %v1123_v2 }
 0x208   :  { %v5863_v18 = vpop.f32.mrf.mxu0  ;;  %v14085_v10 = vcombine.high %v1151_v4, %v1155_v5  ;;  %v14084_v17 = vcombine.low %v1151_v4, %v1155_v5  ;;  %v1083_v11 = vld [vmem:[#allocation2 + $0x1668] sm:$0xff] }
 0x209   :  { %v5864_v23 = vadd.f32 %v5863_v18, %v16209_v27  ;;  %v5904_v34 = vpop.f32.mrf.mxu1  ;;  %6149 = vmatmul.mubr.bf16.vlgmr.msra.gmra.mxu1 %v16173_v24  ;;  %6166 = vmatpush1.bf16.msra.mxu0 %v13964_v12  ;;  %v1111_v12 = vld [vmem:[#allocation2 + $0x1748] sm:$0xff] }
 0x20a   :  { %6199 = vmatpush1.bf16.msra.mxu1 %v14124_v59  ;;  %v5865_v33 = vpop.f32.mrf.mxu0  ;;  %6167 = vmatprep.subr.bf16.mxu0 %v13957_v14  ;;  %v1115_v59 = vld [vmem:[#allocation2 + $0x1768] sm:$0xff] }
 0x20b   :  { %v16222_v36 = vadd.f32 %v5904_v34, %v5864_v23  ;;  %v5866_v37 = vadd.f32 %v5865_v33, %v5825_v21  ;;  %v5906_v38 = vpop.f32.mrf.mxu1  ;;  %6200 = vmatprep.subr.bf16.mxu1 %v14117_v15  ;;  %14163 = vmatprep.mubr.msk.bf16.mxu1 %vm5661_vm0, %v16182_v42  ;;  %v1143_v14 = vld [vmem:[#allocation2 + $0x1848] sm:$0xff]  ;;  %v14045_v18 = vcombine.high %v1111_v12, %v1115_v59 }
 0x20c   :  { %v5867_v27 = vpop.f32.mrf.mxu0  ;;  %v1147_v15 = vld [vmem:[#allocation2 + $0x1868] sm:$0xff] }
 0x20d   :  { %v16226_v53 = vadd.f32 %v5906_v38, %v5866_v37  ;;  %v5908_v19 = vpop.f32.mrf.mxu1  ;;  %6168 = vmatpush1.bf16.msra.mxu0 %v13956_v20  ;;  %v14077_v26 = vcombine.high %v1143_v14, %v1147_v15  ;;  %v1107_v21 = vld [vmem:[#allocation2 + $0x1728] sm:$0xff]  ;;  %v14044_v20 = vcombine.low %v1111_v12, %v1115_v59  ;;  %v14076_v33 = vcombine.low %v1143_v14, %v1147_v15  ;;  %v424_v59 = vld [vmem:[#allocation2 + $0x1d0] sm:$0xff] }
 0x20e   :  { %6201 = vmatpush1.bf16.msra.mxu1 %v14116_v35  ;;  %v5868_v48 = vpop.f32.mrf.mxu0  ;;  %6169 = vmatprep.subr.bf16.mxu0 %v13949_v25  ;;  %v1135_v23 = vld [vmem:[#allocation2 + $0x1808] sm:$0xff]  ;;  %v14037_v35 = vcombine.high %v1103_v63, %v1107_v21  ;;  %v14036_v28 = vcombine.low %v1103_v63, %v1107_v21  ;;  %v428_v14 = vld [vmem:[#allocation2 + $0x1f0] sm:$0xff] }
 0x20f   :  { %v5909_v51 = vpop.f32.mrf.mxu1  ;;  %6202 = vmatprep.subr.bf16.mxu1 %v14109_v40  ;;  %v1139_v34 = vld [vmem:[#allocation2 + $0x1828] sm:$0xff]  ;;  %v552_v15 = vld [vmem:[#allocation2 + $0x5d0] sm:$0xff] }
 0x210   :  { %v14069_v25 = vcombine.high %v1135_v23, %v1139_v34  ;;  %v1095_v37 = vld [vmem:[#allocation2 + $0x16c8] sm:$0xff]  ;;  %v14068_v27 = vcombine.low %v1135_v23, %v1139_v34  ;;  %v416_v21 = vld [vmem:[#allocation2 + $0x190] sm:$0xff] }
 0x211   :  { %6170 = vmatpush1.bf16.msra.mxu0 %v13948_v46  ;;  %v1099_v38 = vld [vmem:[#allocation2 + $0x16e8] sm:$0xff]  ;;  %v420_v23 = vld [vmem:[#allocation2 + $0x1b0] sm:$0xff] }
 0x212   :  { %6203 = vmatpush1.bf16.msra.mxu1 %v14108_v49  ;;  %6171 = vmatprep.subr.bf16.mxu0 %v13941_v50  ;;  %v1223_v40 = vld [vmem:[#allocation2 + $0x1ac8] sm:$0xff]  ;;  %v14029_v43 = vcombine.high %v1095_v37, %v1099_v38  ;;  %v14028_v50 = vcombine.low %v1095_v37, %v1099_v38  ;;  %v544_v34 = vld [vmem:[#allocation2 + $0x590] sm:$0xff] }
 0x213   :  { %6204 = vmatprep.subr.bf16.mxu1 %v14101_v52  ;;  %v14157_v45 = vcombine.high %v1223_v40, %v1227_v41  ;;  %v1087_v19 = vld [vmem:[#allocation2 + $0x1688] sm:$0xff]  ;;  %v14156_v51 = vcombine.low %v1223_v40, %v1227_v41  ;;  %v408_v38 = vld [vmem:[#allocation2 + $0x150] sm:$0xff] }
 0x214   :  { %v1091_v46 = vld [vmem:[#allocation2 + $0x16a8] sm:$0xff]  ;;  %v412_v40 = vld [vmem:[#allocation2 + $0x170] sm:$0xff] }
 0x215   :  { %6172 = vmatpush1.bf16.msra.mxu0 %v13940_v60  ;;  %v1215_v48 = vld [vmem:[#allocation2 + $0x1a88] sm:$0xff]  ;;  %v14021_v52 = vcombine.high %v1087_v19, %v1091_v46 }
 0x216   :  { %6205 = vmatpush1.bf16.msra.mxu1 %v14100_v61  ;;  %6173 = vmatprep.subr.bf16.mxu0 %v14061_v62  ;;  %v1219_v49 = vld [vmem:[#allocation2 + $0x1aa8] sm:$0xff]  ;;  %v14020_v61 = vcombine.low %v1087_v19, %v1091_v46 }
 0x217   :  { %6206 = vmatprep.subr.bf16.mxu1 %v14093_v0  ;;  %v14149_v54 = vcombine.high %v1215_v48, %v1219_v49  ;;  %v1207_v58 = vld [vmem:[#allocation2 + $0x1a48] sm:$0xff]  ;;  %v14148_v62 = vcombine.low %v1215_v48, %v1219_v49  ;;  %v14013_v0 = vcombine.high %v1079_v55, %v1083_v11  ;;  %v13343_v48 = vcombine.high %v408_v38, %v412_v40 }
 0x218   :  { %v1211_v60 = vld [vmem:[#allocation2 + $0x1a68] sm:$0xff] }
 0x219   :  { %6174 = vmatpush2.bf16.msra.mxu0 %v14060_v6  ;;  %v14141_v1 = vcombine.high %v1207_v58, %v1211_v60  ;;  %v1071_v2 = vld [vmem:[#allocation2 + $0x1608] sm:$0xff] }
 0x21a   :  { %6207 = vmatpush1.bf16.msra.mxu1 %v14092_v7  ;;  %6175 = vmatprep.subr.bf16.mxu0 %v14053_v8  ;;  %v1075_v4 = vld [vmem:[#allocation2 + $0x1628] sm:$0xff]  ;;  %v14012_v7 = vcombine.low %v1079_v55, %v1083_v11  ;;  %v14140_v8 = vcombine.low %v1207_v58, %v1211_v60  ;;  %v13342_v55 = vcombine.low %v408_v38, %v412_v40  ;;  %v372_v38 = vld [vmem:[#allocation2 + $0x30] sm:$0xff] }
 0x21b   :  { %6208 = vmatprep.subr.bf16.mxu1 %v14085_v10  ;;  %v1199_v5 = vld [vmem:[#allocation2 + $0x1a08] sm:$0xff]  ;;  %v14005_v10 = vcombine.high %v1071_v2, %v1075_v4  ;;  %v496_v40 = vld [vmem:[#allocation2 + $0x410] sm:$0xff] }
 0x21c   :  { %v1203_v6 = vld [vmem:[#allocation2 + $0x1a28] sm:$0xff] }
 0x21d   :  { %6176 = vmatpush2.bf16.msra.mxu0 %v14052_v16  ;;  %v14133_v12 = vcombine.high %v1199_v5, %v1203_v6  ;;  %v556_v16 = vld [vmem:[#allocation2 + $0x5f0] sm:$0xff] }
 0x21e   :  { %6209 = vmatpush1.bf16.msra.mxu1 %v14084_v17  ;;  %6177 = vmatprep.subr.bf16.mxu0 %v14045_v18  ;;  %v14004_v17 = vcombine.low %v1071_v2, %v1075_v4  ;;  %v14132_v18 = vcombine.low %v1199_v5, %v1203_v6  ;;  %v13487_v63 = vcombine.high %v552_v15, %v556_v16  ;;  %v524_v2 = vld [vmem:[#allocation2 + $0x4f0] sm:$0xff] }
 0x21f   :  { %6210 = vmatprep.subr.bf16.mxu1 %v14077_v26  ;;  %v13359_v26 = vcombine.high %v424_v59, %v428_v14 }
 0x221   :  { %6178 = vmatpush2.bf16.msra.mxu0 %v14044_v20  ;;  %v548_v20 = vld [vmem:[#allocation2 + $0x5b0] sm:$0xff] }
 0x222   :  { %6211 = vmatpush1.bf16.msra.mxu1 %v14076_v33  ;;  %6179 = vmatprep.subr.bf16.mxu0 %v14037_v35  ;;  %v13358_v33 = vcombine.low %v424_v59, %v428_v14  ;;  %v13486_v35 = vcombine.low %v552_v15, %v556_v16  ;;  %v13479_v37 = vcombine.high %v544_v34, %v548_v20  ;;  %v516_v59 = vld [vmem:[#allocation2 + $0x4b0] sm:$0xff] }
 0x223   :  { %6212 = vmatprep.subr.bf16.mxu1 %v14069_v25  ;;  %v13351_v25 = vcombine.high %v416_v21, %v420_v23  ;;  %v13478_v46 = vcombine.low %v544_v34, %v548_v20 }
 0x225   :  { %6180 = vmatpush2.bf16.msra.mxu0 %v14036_v28  ;;  %v536_v28 = vld [vmem:[#allocation2 + $0x550] sm:$0xff] }
 0x226   :  { %6213 = vmatpush1.bf16.msra.mxu1 %v14068_v27  ;;  %6181 = vmatprep.subr.bf16.mxu0 %v14029_v43  ;;  %v540_v27 = vld [vmem:[#allocation2 + $0x570] sm:$0xff] }
 0x227   :  { %6222 = vmatprep.subr.bf16.mxu1 %v14157_v45  ;;  %v13350_v45 = vcombine.low %v416_v21, %v420_v23  ;;  %v13471_v49 = vcombine.high %v536_v28, %v540_v27  ;;  %v13470_v58 = vcombine.low %v536_v28, %v540_v27  ;;  %v508_v21 = vld [vmem:[#allocation2 + $0x470] sm:$0xff] }
 0x229   :  { %6182 = vmatpush2.bf16.msra.mxu0 %v14028_v50  ;;  %v400_v50 = vld [vmem:[#allocation2 + $0x110] sm:$0xff] }
 0x22a   :  { %6223 = vmatpush2.bf16.msra.mxu1 %v14156_v51  ;;  %6183 = vmatprep.subr.bf16.mxu0 %v14021_v52  ;;  %v404_v51 = vld [vmem:[#allocation2 + $0x130] sm:$0xff] }
 0x22b   :  { %6224 = vmatprep.subr.bf16.mxu1 %v14149_v54  ;;  %v528_v54 = vld [vmem:[#allocation2 + $0x510] sm:$0xff]  ;;  %v13335_v60 = vcombine.high %v400_v50, %v404_v51  ;;  %v13334_v4 = vcombine.low %v400_v50, %v404_v51 }
 0x22c   :  { %v488_v50 = vld [vmem:[#allocation2 + $0x3d0] sm:$0xff] }
 0x22d   :  { %6184 = vmatpush2.bf16.msra.mxu0 %v14020_v61  ;;  %v492_v51 = vld [vmem:[#allocation2 + $0x3f0] sm:$0xff] }
 0x22e   :  { %6225 = vmatpush2.bf16.msra.mxu1 %v14148_v62  ;;  %6185 = vmatprep.subr.bf16.mxu0 %v14013_v0  ;;  %v392_v62 = vld [vmem:[#allocation2 + $0xd0] sm:$0xff] }
 0x22f   :  { %6226 = vmatprep.subr.bf16.mxu1 %v14141_v1  ;;  %v396_v0 = vld [vmem:[#allocation2 + $0xf0] sm:$0xff] }
 0x230   :  { %v520_v1 = vld [vmem:[#allocation2 + $0x4d0] sm:$0xff]  ;;  %v13327_v6 = vcombine.high %v392_v62, %v396_v0  ;;  %v13326_v14 = vcombine.low %v392_v62, %v396_v0 }
 0x231   :  { %6186 = vmatpush2.bf16.msra.mxu0 %v14012_v7  ;;  %v13455_v7 = vcombine.high %v520_v1, %v524_v2  ;;  %v13454_v15 = vcombine.low %v520_v1, %v524_v2  ;;  %v608_v62 = vld [vmem:[#allocation2 + $0x790] sm:$0xff]  ;;  %v13422_v1 = vcombine.low %v488_v50, %v492_v51 }
 0x232   :  { %6227 = vmatpush2.bf16.msra.mxu1 %v14140_v8  ;;  %6187 = vmatprep.subr.bf16.mxu0 %v14005_v10  ;;  %v384_v8 = vld [vmem:[#allocation2 + $0x90] sm:$0xff] }
 0x233   :  { %6228 = vmatprep.subr.bf16.mxu1 %v14133_v12  ;;  %v388_v10 = vld [vmem:[#allocation2 + $0xb0] sm:$0xff] }
 0x234   :  { %v512_v12 = vld [vmem:[#allocation2 + $0x490] sm:$0xff]  ;;  %v13319_v16 = vcombine.high %v384_v8, %v388_v10  ;;  %v13318_v34 = vcombine.low %v384_v8, %v388_v10 }
 0x235   :  { %6188 = vmatpush2.bf16.msra.mxu0 %v14004_v17  ;;  %v13447_v17 = vcombine.high %v512_v12, %v516_v59  ;;  %v13446_v20 = vcombine.low %v512_v12, %v516_v59  ;;  %v612_v0 = vld [vmem:[#allocation2 + $0x7b0] sm:$0xff] }
 0x236   :  { %6229 = vmatpush2.bf16.msra.mxu1 %v14132_v18  ;;  %6239 = vmatprep.subr.bf16.mxu0 %v13359_v26  ;;  %v376_v18 = vld [vmem:[#allocation2 + $0x50] sm:$0xff]  ;;  %v13542_v59 = vcombine.low %v608_v62, %v612_v0 }
 0x237   :  { %6280 = vmatprep.subr.bf16.mxu1 %v13487_v63  ;;  %v380_v26 = vld [vmem:[#allocation2 + $0x70] sm:$0xff] }
 0x238   :  { %v5945_v41 = vpop.f32.mrf.mxu0  ;;  %6190 = vmatmul.mubr.bf16.vlgmr.msra.gmra.mxu0 %v16179_v32  ;;  %v504_v63 = vld [vmem:[#allocation2 + $0x450] sm:$0xff]  ;;  %v13310_v27 = vcombine.low %v376_v18, %v380_v26 }
 0x239   :  { %v16230_v43 = vadd.f32 %v5945_v41, %v16222_v36  ;;  %6231 = vmatmul.mubr.bf16.vlgmr.msra.gmra.mxu1 %v16191_v29  ;;  %6240 = vmatpush1.bf16.msra.mxu0 %v13358_v33  ;;  %v532_v36 = vld [vmem:[#allocation2 + $0x530] sm:$0xff]  ;;  %v13311_v33 = vcombine.high %v376_v18, %v380_v26 }
 0x23a   :  { %6281 = vmatpush1.bf16.msra.mxu1 %v13486_v35  ;;  %v16233_v19 = vpop.f32.mrf.mxu0  ;;  %6241 = vmatprep.subr.bf16.mxu0 %v13351_v25  ;;  %v13463_v61 = vcombine.high %v528_v54, %v532_v36  ;;  %v13462_v5 = vcombine.low %v528_v54, %v532_v36  ;;  %v13439_v25 = vcombine.high %v504_v63, %v508_v21  ;;  %v500_v41 = vld [vmem:[#allocation2 + $0x430] sm:$0xff] }
 0x23b   :  { %19487 = vst [vmem:[#allocation25_spill] sm:$0xff] %v16230_v43  ;;  %6282 = vmatprep.subr.bf16.mxu1 %v13479_v37  ;;  %6271 = vmatprep.mubr.bf16.mxu0 %v16102_v9  ;;  %v368_v37 = vld [vmem:[#allocation2 + $0x10] sm:$0xff] }
 0x23c   :  { %v5949_v52 = vpop.f32.mrf.mxu0  ;;  %6312 = vmatprep.mubr.bf16.mxu1 %v16107_v13  ;;  %v620_v54 = vld [vmem:[#allocation2 + $0x7f0] sm:$0xff]  ;;  %v13302_v36 = vcombine.low %v368_v37, %v372_v38 }
 0x23d   :  { %6242 = vmatpush1.bf16.msra.mxu0 %v13350_v45  ;;  %v13438_v45 = vcombine.low %v504_v63, %v508_v21  ;;  %v616_v52 = vld [vmem:[#allocation2 + $0x7d0] sm:$0xff] }
 0x23e   :  { %6283 = vmatpush1.bf16.msra.mxu1 %v13478_v46  ;;  %v5950_v11 = vpop.f32.mrf.mxu0  ;;  %6243 = vmatprep.subr.bf16.mxu0 %v13343_v48  ;;  %v13303_v46 = vcombine.high %v368_v37, %v372_v38  ;;  %v13550_v2 = vcombine.low %v616_v52, %v620_v54  ;;  %v600_v8 = vld [vmem:[#allocation2 + $0x750] sm:$0xff] }
 0x23f   :  { %6284 = vmatprep.subr.bf16.mxu1 %v13471_v49  ;;  %v13431_v49 = vcombine.high %v496_v40, %v500_v41  ;;  %v13423_v11 = vcombine.high %v488_v50, %v492_v51  ;;  %v604_v10 = vld [vmem:[#allocation2 + $0x770] sm:$0xff] }
 0x240   :  { %v592_v18 = vld [vmem:[#allocation2 + $0x710] sm:$0xff]  ;;  %v13534_v21 = vcombine.low %v600_v8, %v604_v10 }
 0x241   :  { %6244 = vmatpush1.bf16.msra.mxu0 %v13342_v55  ;;  %v13430_v55 = vcombine.low %v496_v40, %v500_v41  ;;  %v596_v26 = vld [vmem:[#allocation2 + $0x730] sm:$0xff] }
 0x242   :  { %6285 = vmatpush1.bf16.msra.mxu1 %v13470_v58  ;;  %6245 = vmatprep.subr.bf16.mxu0 %v13335_v60  ;;  %v13551_v58 = vcombine.high %v616_v52, %v620_v54  ;;  %v480_v60 = vld [vmem:[#allocation2 + $0x390] sm:$0xff]  ;;  %v13526_v41 = vcombine.low %v592_v18, %v596_v26 }
 0x243   :  { %6286 = vmatprep.subr.bf16.mxu1 %v13463_v61  ;;  %v484_v61 = vld [vmem:[#allocation2 + $0x3b0] sm:$0xff] }
 0x244   :  { %v13414_v12 = vcombine.low %v480_v60, %v484_v61  ;;  %v584_v37 = vld [vmem:[#allocation2 + $0x6d0] sm:$0xff] }
 0x245   :  { %6246 = vmatpush1.bf16.msra.mxu0 %v13334_v4  ;;  %v13415_v4 = vcombine.high %v480_v60, %v484_v61  ;;  %v588_v38 = vld [vmem:[#allocation2 + $0x6f0] sm:$0xff] }
 0x246   :  { %6287 = vmatpush1.bf16.msra.mxu1 %v13462_v5  ;;  %6247 = vmatprep.subr.bf16.mxu0 %v13327_v6  ;;  %v13543_v5 = vcombine.high %v608_v62, %v612_v0  ;;  %v472_v6 = vld [vmem:[#allocation2 + $0x350] sm:$0xff]  ;;  %v13518_v51 = vcombine.low %v584_v37, %v588_v38 }
 0x247   :  { %6288 = vmatprep.subr.bf16.mxu1 %v13455_v7  ;;  %v476_v7 = vld [vmem:[#allocation2 + $0x370] sm:$0xff] }
 0x248   :  { %v13406_v63 = vcombine.low %v472_v6, %v476_v7 }
 0x249   :  { %v16237_v23 = vpop.f32.mrf.mxu1  ;;  %6248 = vmatpush1.bf16.msra.mxu0 %v13326_v14  ;;  %v13407_v14 = vcombine.high %v472_v6, %v476_v7 }
 0x24a   :  { %6289 = vmatpush1.bf16.msra.mxu1 %v13454_v15  ;;  %6249 = vmatprep.subr.bf16.mxu0 %v13319_v16  ;;  %v13535_v15 = vcombine.high %v600_v8, %v604_v10  ;;  %v464_v16 = vld [vmem:[#allocation2 + $0x310] sm:$0xff] }
 0x24b   :  { %v16239_v35 = vpop.f32.mrf.mxu1  ;;  %6290 = vmatprep.subr.bf16.mxu1 %v13447_v17  ;;  %v468_v17 = vld [vmem:[#allocation2 + $0x330] sm:$0xff] }
 0x24c   :  { %v13398_v40 = vcombine.low %v464_v16, %v468_v17 }
 0x24d   :  { %v5990_v28 = vpop.f32.mrf.mxu1  ;;  %6250 = vmatpush1.bf16.msra.mxu0 %v13318_v34  ;;  %v13399_v34 = vcombine.high %v464_v16, %v468_v17 }
 0x24e   :  { %6291 = vmatpush1.bf16.msra.mxu1 %v13446_v20  ;;  %6251 = vmatprep.subr.bf16.mxu0 %v13311_v33  ;;  %v13527_v20 = vcombine.high %v592_v18, %v596_v26  ;;  %v456_v33 = vld [vmem:[#allocation2 + $0x2d0] sm:$0xff] }
 0x24f   :  { %v5991_v48 = vpop.f32.mrf.mxu1  ;;  %6292 = vmatprep.subr.bf16.mxu1 %v13439_v25  ;;  %v460_v25 = vld [vmem:[#allocation2 + $0x2f0] sm:$0xff] }
 0x250   :  { %v13391_v28 = vcombine.high %v456_v33, %v460_v25  ;;  %v576_v48 = vld [vmem:[#allocation2 + $0x690] sm:$0xff]  ;;  %v13390_v50 = vcombine.low %v456_v33, %v460_v25 }
 0x251   :  { %6252 = vmatpush1.bf16.msra.mxu0 %v13310_v27  ;;  %v13519_v27 = vcombine.high %v584_v37, %v588_v38 }
 0x252   :  { %6293 = vmatpush1.bf16.msra.mxu1 %v13438_v45  ;;  %6253 = vmatprep.subr.bf16.mxu0 %v13303_v46  ;;  %v448_v45 = vld [vmem:[#allocation2 + $0x290] sm:$0xff] }
 0x253   :  { %6294 = vmatprep.subr.bf16.mxu1 %v13431_v49  ;;  %v452_v46 = vld [vmem:[#allocation2 + $0x2b0] sm:$0xff] }
 0x254   :  { %v580_v49 = vld [vmem:[#allocation2 + $0x6b0] sm:$0xff]  ;;  %v13383_v52 = vcombine.high %v448_v45, %v452_v46  ;;  %v13382_v60 = vcombine.low %v448_v45, %v452_v46 }
 0x255   :  { %6254 = vmatpush1.bf16.msra.mxu0 %v13302_v36  ;;  %v13511_v54 = vcombine.high %v576_v48, %v580_v49  ;;  %v440_v36 = vld [vmem:[#allocation2 + $0x250] sm:$0xff]  ;;  %v13510_v61 = vcombine.low %v576_v48, %v580_v49 }
 0x256   :  { %6295 = vmatpush1.bf16.msra.mxu1 %v13430_v55  ;;  %6255 = vmatprep.subr.bf16.mxu0 %v13423_v11  ;;  %v444_v55 = vld [vmem:[#allocation2 + $0x270] sm:$0xff] }
 0x257   :  { %6296 = vmatprep.subr.bf16.mxu1 %v13551_v58  ;;  %v568_v11 = vld [vmem:[#allocation2 + $0x650] sm:$0xff]  ;;  %v13375_v62 = vcombine.high %v440_v36, %v444_v55  ;;  %v13374_v6 = vcombine.low %v440_v36, %v444_v55 }
 0x258   :  { %v572_v58 = vld [vmem:[#allocation2 + $0x670] sm:$0xff] }
 0x259   :  { %6256 = vmatpush2.bf16.msra.mxu0 %v13422_v1  ;;  %v13503_v0 = vcombine.high %v568_v11, %v572_v58  ;;  %v432_v1 = vld [vmem:[#allocation2 + $0x210] sm:$0xff]  ;;  %v13502_v7 = vcombine.low %v568_v11, %v572_v58 }
 0x25a   :  { %6297 = vmatpush2.bf16.msra.mxu1 %v13550_v2  ;;  %6257 = vmatprep.subr.bf16.mxu0 %v13415_v4  ;;  %v436_v2 = vld [vmem:[#allocation2 + $0x230] sm:$0xff] }
 0x25b   :  { %6298 = vmatprep.subr.bf16.mxu1 %v13543_v5  ;;  %v560_v4 = vld [vmem:[#allocation2 + $0x610] sm:$0xff]  ;;  %v13367_v8 = vcombine.high %v432_v1, %v436_v2  ;;  %v13366_v16 = vcombine.low %v432_v1, %v436_v2 }
 0x25c   :  { %v564_v5 = vld [vmem:[#allocation2 + $0x630] sm:$0xff] }
 0x25d   :  { %6258 = vmatpush2.bf16.msra.mxu0 %v13414_v12  ;;  %v13495_v10 = vcombine.high %v560_v4, %v564_v5  ;;  %v680_v12 = vld [vmem:[#allocation2 + $0x9d0] sm:$0xff]  ;;  %v13494_v17 = vcombine.low %v560_v4, %v564_v5 }
 0x25e   :  { %6299 = vmatpush2.bf16.msra.mxu1 %v13542_v59  ;;  %6259 = vmatprep.subr.bf16.mxu0 %v13407_v14  ;;  %v684_v59 = vld [vmem:[#allocation2 + $0x9f0] sm:$0xff] }
 0x25f   :  { %6300 = vmatprep.subr.bf16.mxu1 %v13535_v15  ;;  %v808_v14 = vld [vmem:[#allocation2 + $0xdd0] sm:$0xff]  ;;  %v13615_v18 = vcombine.high %v680_v12, %v684_v59  ;;  %v13614_v33 = vcombine.low %v680_v12, %v684_v59 }
 0x260   :  { %v812_v15 = vld [vmem:[#allocation2 + $0xdf0] sm:$0xff] }
 0x261   :  { %6260 = vmatpush2.bf16.msra.mxu0 %v13406_v63  ;;  %v13743_v26 = vcombine.high %v808_v14, %v812_v15  ;;  %v672_v63 = vld [vmem:[#allocation2 + $0x990] sm:$0xff]  ;;  %v13742_v25 = vcombine.low %v808_v14, %v812_v15 }
 0x262   :  { %6301 = vmatpush2.bf16.msra.mxu1 %v13534_v21  ;;  %6261 = vmatprep.subr.bf16.mxu0 %v13399_v34  ;;  %v676_v21 = vld [vmem:[#allocation2 + $0x9b0] sm:$0xff] }
 0x263   :  { %6302 = vmatprep.subr.bf16.mxu1 %v13527_v20  ;;  %v800_v34 = vld [vmem:[#allocation2 + $0xd90] sm:$0xff]  ;;  %v13607_v37 = vcombine.high %v672_v63, %v676_v21  ;;  %v13606_v48 = vcombine.low %v672_v63, %v676_v21 }
 0x264   :  { %v804_v20 = vld [vmem:[#allocation2 + $0xdb0] sm:$0xff] }
 0x265   :  { %6262 = vmatpush2.bf16.msra.mxu0 %v13398_v40  ;;  %v13735_v38 = vcombine.high %v800_v34, %v804_v20  ;;  %v664_v40 = vld [vmem:[#allocation2 + $0x950] sm:$0xff] }
 0x266   :  { %6303 = vmatpush2.bf16.msra.mxu1 %v13526_v41  ;;  %6263 = vmatprep.subr.bf16.mxu0 %v13391_v28  ;;  %v668_v41 = vld [vmem:[#allocation2 + $0x970] sm:$0xff] }
 0x267   :  { %6304 = vmatprep.subr.bf16.mxu1 %v13519_v27  ;;  %v792_v27 = vld [vmem:[#allocation2 + $0xd50] sm:$0xff] }
 0x268   :  { %v796_v45 = vld [vmem:[#allocation2 + $0xd70] sm:$0xff] }
 0x269   :  { %6264 = vmatpush2.bf16.msra.mxu0 %v13390_v50  ;;  %v13734_v50 = vcombine.low %v800_v34, %v804_v20  ;;  %v660_v36 = vld [vmem:[#allocation2 + $0x930] sm:$0xff] }
 0x26a   :  { %6305 = vmatpush2.bf16.msra.mxu1 %v13518_v51  ;;  %6265 = vmatprep.subr.bf16.mxu0 %v13383_v52  ;;  %v13599_v51 = vcombine.high %v664_v40, %v668_v41  ;;  %v13727_v52 = vcombine.high %v792_v27, %v796_v45  ;;  %v784_v11 = vld [vmem:[#allocation2 + $0xd10] sm:$0xff] }
 0x26b   :  { %6306 = vmatprep.subr.bf16.mxu1 %v13511_v54  ;;  %v656_v54 = vld [vmem:[#allocation2 + $0x910] sm:$0xff] }
 0x26c   :  { %v788_v58 = vld [vmem:[#allocation2 + $0xd30] sm:$0xff] }
 0x26d   :  { %6266 = vmatpush2.bf16.msra.mxu0 %v13382_v60  ;;  %v648_v1 = vld [vmem:[#allocation2 + $0x8d0] sm:$0xff] }
 0x26e   :  { %6307 = vmatpush2.bf16.msra.mxu1 %v13510_v61  ;;  %6267 = vmatprep.subr.bf16.mxu0 %v13375_v62  ;;  %v13726_v61 = vcombine.low %v792_v27, %v796_v45  ;;  %v13591_v62 = vcombine.high %v656_v54, %v660_v36  ;;  %v652_v2 = vld [vmem:[#allocation2 + $0x8f0] sm:$0xff] }
 0x26f   :  { %6308 = vmatprep.subr.bf16.mxu1 %v13503_v0  ;;  %v13719_v0 = vcombine.high %v784_v11, %v788_v58  ;;  %v776_v4 = vld [vmem:[#allocation2 + $0xcd0] sm:$0xff] }
 0x270   :  { %v780_v5 = vld [vmem:[#allocation2 + $0xcf0] sm:$0xff] }
 0x271   :  { %6268 = vmatpush2.bf16.msra.mxu0 %v13374_v6  ;;  %v13590_v6 = vcombine.low %v656_v54, %v660_v36  ;;  %v640_v12 = vld [vmem:[#allocation2 + $0x890] sm:$0xff] }
 0x272   :  { %6309 = vmatpush2.bf16.msra.mxu1 %v13502_v7  ;;  %6269 = vmatprep.subr.bf16.mxu0 %v13367_v8  ;;  %v13718_v7 = vcombine.low %v784_v11, %v788_v58  ;;  %v13583_v8 = vcombine.high %v648_v1, %v652_v2  ;;  %v644_v59 = vld [vmem:[#allocation2 + $0x8b0] sm:$0xff] }
 0x273   :  { %6310 = vmatprep.subr.bf16.mxu1 %v13495_v10  ;;  %v13711_v10 = vcombine.high %v776_v4, %v780_v5  ;;  %v768_v14 = vld [vmem:[#allocation2 + $0xc90] sm:$0xff] }
 0x274   :  { %v772_v15 = vld [vmem:[#allocation2 + $0xcb0] sm:$0xff] }
 0x275   :  { %6270 = vmatpush2.bf16.msra.mxu0 %v13366_v16  ;;  %v13582_v16 = vcombine.low %v648_v1, %v652_v2  ;;  %v632_v63 = vld [vmem:[#allocation2 + $0x850] sm:$0xff] }
 0x276   :  { %6311 = vmatpush2.bf16.msra.mxu1 %v13494_v17  ;;  %6321 = vmatprep.subr.bf16.mxu0 %v13615_v18  ;;  %v13710_v17 = vcombine.low %v776_v4, %v780_v5  ;;  %v13575_v18 = vcombine.high %v640_v12, %v644_v59  ;;  %v636_v21 = vld [vmem:[#allocation2 + $0x870] sm:$0xff] }
 0x277   :  { %6362 = vmatprep.subr.bf16.mxu1 %v13743_v26  ;;  %v13703_v26 = vcombine.high %v768_v14, %v772_v15  ;;  %v760_v34 = vld [vmem:[#allocation2 + $0xc50] sm:$0xff]  ;;  %v13566_v36 = vcombine.low %v632_v63, %v636_v21 }
 0x278   :  { %v6027_v28 = vpop.f32.mrf.mxu0  ;;  %6272 = vmatmul.mubr.bf16.vlgmr.msra.gmra.mxu0 %v16119_v22  ;;  %v764_v20 = vld [vmem:[#allocation2 + $0xc70] sm:$0xff] }
 0x279   :  { %v6028_v46 = vadd.f32 %v6027_v28, %v16237_v23  ;;  %6313 = vmatmul.mubr.bf16.vlgmr.msra.gmra.mxu1 %v16126_v31  ;;  %6322 = vmatpush1.bf16.msra.mxu0 %v13614_v33  ;;  %v13598_v23 = vcombine.low %v664_v40, %v668_v41  ;;  %v13567_v41 = vcombine.high %v632_v63, %v636_v21  ;;  %v624_v45 = vld [vmem:[#allocation2 + $0x810] sm:$0xff] }
 0x27a   :  { %6363 = vmatpush1.bf16.msra.mxu1 %v13742_v25  ;;  %v6029_v49 = vpop.f32.mrf.mxu0  ;;  %6323 = vmatprep.subr.bf16.mxu0 %v13607_v37  ;;  %v13574_v25 = vcombine.low %v640_v12, %v644_v59  ;;  %v13702_v37 = vcombine.low %v768_v14, %v772_v15  ;;  %v13695_v27 = vcombine.high %v760_v34, %v764_v20  ;;  %v744_v11 = vld [vmem:[#allocation2 + $0xbd0] sm:$0xff] }
 0x27b   :  { %6364 = vmatprep.subr.bf16.mxu1 %v13735_v38  ;;  %6353 = vmatprep.mubr.bf16.mxu0 %v16122_v30  ;;  %v6030_v38 = vadd.f32 %v6029_v49, %v16239_v35  ;;  %v13694_v35 = vcombine.low %v760_v34, %v764_v20  ;;  %v748_v58 = vld [vmem:[#allocation2 + $0xbf0] sm:$0xff] }
 0x27c   :  { %v6031_v55 = vpop.f32.mrf.mxu0  ;;  %6394 = vmatprep.mubr.bf16.mxu1 %v16131_v39  ;;  %v736_v2 = vld [vmem:[#allocation2 + $0xb90] sm:$0xff] }
 0x27d   :  { %6324 = vmatpush1.bf16.msra.mxu0 %v13606_v48  ;;  %v628_v48 = vld [vmem:[#allocation2 + $0x830] sm:$0xff] }
 0x27e   :  { %6365 = vmatpush1.bf16.msra.mxu1 %v13734_v50  ;;  %v6032_v60 = vpop.f32.mrf.mxu0  ;;  %6325 = vmatprep.subr.bf16.mxu0 %v13599_v51  ;;  %v752_v51 = vld [vmem:[#allocation2 + $0xc10] sm:$0xff] }
 0x27f   :  { %6366 = vmatprep.subr.bf16.mxu1 %v13727_v52  ;;  %v756_v52 = vld [vmem:[#allocation2 + $0xc30] sm:$0xff] }
 0x280   :  { %v13687_v55 = vcombine.high %v752_v51, %v756_v52  ;;  %v876_v60 = vld [vmem:[#allocation2 + $0xff0] sm:$0xff] }
 0x281   :  { %6326 = vmatpush1.bf16.msra.mxu0 %v13598_v23  ;;  %v872_v23 = vld [vmem:[#allocation2 + $0xfd0] sm:$0xff] }
 0x282   :  { %6367 = vmatpush1.bf16.msra.mxu1 %v13726_v61  ;;  %6327 = vmatprep.subr.bf16.mxu0 %v13591_v62  ;;  %v13558_v61 = vcombine.low %v624_v45, %v628_v48  ;;  %v13686_v62 = vcombine.low %v752_v51, %v756_v52  ;;  %v13807_v1 = vcombine.high %v872_v23, %v876_v60  ;;  %v740_v4 = vld [vmem:[#allocation2 + $0xbb0] sm:$0xff] }
 0x283   :  { %6368 = vmatprep.subr.bf16.mxu1 %v13719_v0  ;;  %v13679_v0 = vcombine.high %v744_v11, %v748_v58  ;;  %v864_v5 = vld [vmem:[#allocation2 + $0xf90] sm:$0xff] }
 0x284   :  { %v728_v59 = vld [vmem:[#allocation2 + $0xb50] sm:$0xff] }
 0x285   :  { %6328 = vmatpush1.bf16.msra.mxu0 %v13590_v6  ;;  %v868_v6 = vld [vmem:[#allocation2 + $0xfb0] sm:$0xff] }
 0x286   :  { %6369 = vmatpush1.bf16.msra.mxu1 %v13718_v7  ;;  %6329 = vmatprep.subr.bf16.mxu0 %v13583_v8  ;;  %v13678_v7 = vcombine.low %v744_v11, %v748_v58  ;;  %v13806_v8 = vcombine.low %v872_v23, %v876_v60  ;;  %v13799_v12 = vcombine.high %v864_v5, %v868_v6  ;;  %v732_v14 = vld [vmem:[#allocation2 + $0xb70] sm:$0xff] }
 0x287   :  { %6370 = vmatprep.subr.bf16.mxu1 %v13711_v10  ;;  %v13671_v10 = vcombine.high %v736_v2, %v740_v4  ;;  %v856_v15 = vld [vmem:[#allocation2 + $0xf50] sm:$0xff] }
 0x288   :  { %v720_v21 = vld [vmem:[#allocation2 + $0xb10] sm:$0xff] }
 0x289   :  { %v6068_v33 = vpop.f32.mrf.mxu1  ;;  %6330 = vmatpush1.bf16.msra.mxu0 %v13582_v16  ;;  %v860_v16 = vld [vmem:[#allocation2 + $0xf70] sm:$0xff] }
 0x28a   :  { %v16247_v40 = vadd.f32 %v6068_v33, %v6028_v46  ;;  %6371 = vmatpush1.bf16.msra.mxu1 %v13710_v17  ;;  %6331 = vmatprep.subr.bf16.mxu0 %v13575_v18  ;;  %v13559_v46 = vcombine.high %v624_v45, %v628_v48  ;;  %v13670_v17 = vcombine.low %v736_v2, %v740_v4  ;;  %v724_v34 = vld [vmem:[#allocation2 + $0xb30] sm:$0xff] }
 0x28b   :  { %v6070_v28 = vpop.f32.mrf.mxu1  ;;  %6372 = vmatprep.subr.bf16.mxu1 %v13703_v26  ;;  %v13798_v18 = vcombine.low %v864_v5, %v868_v6  ;;  %v13663_v26 = vcombine.high %v728_v59, %v732_v14  ;;  %v13791_v63 = vcombine.high %v856_v15, %v860_v16  ;;  %v848_v20 = vld [vmem:[#allocation2 + $0xf10] sm:$0xff]  ;;  %v13654_v51 = vcombine.low %v720_v21, %v724_v34 }
 0x28c   :  { %v16249_v50 = vadd.f32 %v6070_v28, %v6030_v38  ;;  %v852_v33 = vld [vmem:[#allocation2 + $0xf30] sm:$0xff]  ;;  %v13655_v38 = vcombine.high %v720_v21, %v724_v34 }
 0x28d   :  { %v6072_v54 = vpop.f32.mrf.mxu1  ;;  %6332 = vmatpush1.bf16.msra.mxu0 %v13574_v25  ;;  %v13662_v25 = vcombine.low %v728_v59, %v732_v14  ;;  %v712_v28 = vld [vmem:[#allocation2 + $0xad0] sm:$0xff]  ;;  %v13782_v52 = vcombine.low %v848_v20, %v852_v33 }
 0x28e   :  { %6373 = vmatpush1.bf16.msra.mxu1 %v13702_v37  ;;  %6333 = vmatprep.subr.bf16.mxu0 %v13567_v41  ;;  %v13790_v37 = vcombine.low %v856_v15, %v860_v16  ;;  %v13783_v41 = vcombine.high %v848_v20, %v852_v33  ;;  %v840_v45 = vld [vmem:[#allocation2 + $0xed0] sm:$0xff] }
 0x28f   :  { %v6073_v49 = vpop.f32.mrf.mxu1  ;;  %6374 = vmatprep.subr.bf16.mxu1 %v13695_v27  ;;  %v716_v27 = vld [vmem:[#allocation2 + $0xaf0] sm:$0xff] }
 0x290   :  { %v844_v48 = vld [vmem:[#allocation2 + $0xef0] sm:$0xff]  ;;  %v13647_v54 = vcombine.high %v712_v28, %v716_v27  ;;  %v13646_v11 = vcombine.low %v712_v28, %v716_v27 }
 0x291   :  { %6334 = vmatpush1.bf16.msra.mxu0 %v13566_v36  ;;  %v13775_v36 = vcombine.high %v840_v45, %v844_v48  ;;  %v832_v49 = vld [vmem:[#allocation2 + $0xe90] sm:$0xff]  ;;  %v13774_v58 = vcombine.low %v840_v45, %v844_v48 }
 0x292   :  { %6375 = vmatpush1.bf16.msra.mxu1 %v13694_v35  ;;  %6335 = vmatprep.subr.bf16.mxu0 %v13559_v46  ;;  %v704_v35 = vld [vmem:[#allocation2 + $0xa90] sm:$0xff] }
 0x293   :  { %6376 = vmatprep.subr.bf16.mxu1 %v13687_v55  ;;  %v708_v46 = vld [vmem:[#allocation2 + $0xab0] sm:$0xff] }
 0x294   :  { %v836_v55 = vld [vmem:[#allocation2 + $0xeb0] sm:$0xff]  ;;  %v13639_v23 = vcombine.high %v704_v35, %v708_v46  ;;  %v13638_v2 = vcombine.low %v704_v35, %v708_v46 }
 0x295   :  { %6336 = vmatpush1.bf16.msra.mxu0 %v13558_v61  ;;  %v13767_v60 = vcombine.high %v832_v49, %v836_v55  ;;  %v696_v61 = vld [vmem:[#allocation2 + $0xa50] sm:$0xff]  ;;  %v13766_v4 = vcombine.low %v832_v49, %v836_v55 }
 0x296   :  { %6377 = vmatpush1.bf16.msra.mxu1 %v13686_v62  ;;  %6337 = vmatprep.subr.bf16.mxu0 %v13679_v0  ;;  %v700_v62 = vld [vmem:[#allocation2 + $0xa70] sm:$0xff] }
 0x297   :  { %6378 = vmatprep.subr.bf16.mxu1 %v13807_v1  ;;  %v824_v0 = vld [vmem:[#allocation2 + $0xe50] sm:$0xff]  ;;  %v13631_v5 = vcombine.high %v696_v61, %v700_v62  ;;  %v13630_v59 = vcombine.low %v696_v61, %v700_v62 }
 0x298   :  { %v828_v1 = vld [vmem:[#allocation2 + $0xe70] sm:$0xff] }
 0x299   :  { %6338 = vmatpush2.bf16.msra.mxu0 %v13678_v7  ;;  %v13759_v6 = vcombine.high %v824_v0, %v828_v1  ;;  %v688_v7 = vld [vmem:[#allocation2 + $0xa10] sm:$0xff]  ;;  %v13758_v14 = vcombine.low %v824_v0, %v828_v1 }
 0x29a   :  { %6379 = vmatpush2.bf16.msra.mxu1 %v13806_v8  ;;  %6339 = vmatprep.subr.bf16.mxu0 %v13671_v10  ;;  %v692_v8 = vld [vmem:[#allocation2 + $0xa30] sm:$0xff] }
 0x29b   :  { %6380 = vmatprep.subr.bf16.mxu1 %v13799_v12  ;;  %v816_v10 = vld [vmem:[#allocation2 + $0xe10] sm:$0xff]  ;;  %v13623_v15 = vcombine.high %v688_v7, %v692_v8  ;;  %v13622_v21 = vcombine.low %v688_v7, %v692_v8 }
 0x29c   :  { %v820_v12 = vld [vmem:[#allocation2 + $0xe30] sm:$0xff] }
 0x29d   :  { %6340 = vmatpush2.bf16.msra.mxu0 %v13670_v17  ;;  %v13751_v16 = vcombine.high %v816_v10, %v820_v12  ;;  %v936_v17 = vld [vmem:[#allocation2 + $0x11d0] sm:$0xff]  ;;  %v13750_v34 = vcombine.low %v816_v10, %v820_v12 }
 0x29e   :  { %6381 = vmatpush2.bf16.msra.mxu1 %v13798_v18  ;;  %6341 = vmatprep.subr.bf16.mxu0 %v13663_v26  ;;  %v940_v18 = vld [vmem:[#allocation2 + $0x11f0] sm:$0xff] }
 0x29f   :  { %6382 = vmatprep.subr.bf16.mxu1 %v13791_v63  ;;  %v1064_v26 = vld [vmem:[#allocation2 + $0x15d0] sm:$0xff]  ;;  %v13871_v20 = vcombine.high %v936_v17, %v940_v18  ;;  %v13870_v28 = vcombine.low %v936_v17, %v940_v18 }
 0x2a0   :  { %v1068_v63 = vld [vmem:[#allocation2 + $0x15f0] sm:$0xff] }
 0x2a1   :  { %6342 = vmatpush2.bf16.msra.mxu0 %v13662_v25  ;;  %v13999_v33 = vcombine.high %v1064_v26, %v1068_v63  ;;  %v928_v25 = vld [vmem:[#allocation2 + $0x1190] sm:$0xff]  ;;  %v13998_v27 = vcombine.low %v1064_v26, %v1068_v63 }
 0x2a2   :  { %6383 = vmatpush2.bf16.msra.mxu1 %v13790_v37  ;;  %6343 = vmatprep.subr.bf16.mxu0 %v13655_v38  ;;  %v932_v37 = vld [vmem:[#allocation2 + $0x11b0] sm:$0xff] }
 0x2a3   :  { %6384 = vmatprep.subr.bf16.mxu1 %v13783_v41  ;;  %v1056_v38 = vld [vmem:[#allocation2 + $0x1590] sm:$0xff]  ;;  %v13863_v45 = vcombine.high %v928_v25, %v932_v37  ;;  %v13862_v49 = vcombine.low %v928_v25, %v932_v37 }
 0x2a4   :  { %v1060_v41 = vld [vmem:[#allocation2 + $0x15b0] sm:$0xff] }
 0x2a5   :  { %6344 = vmatpush2.bf16.msra.mxu0 %v13654_v51  ;;  %v13991_v48 = vcombine.high %v1056_v38, %v1060_v41  ;;  %v920_v51 = vld [vmem:[#allocation2 + $0x1150] sm:$0xff] }
 0x2a6   :  { %6385 = vmatpush2.bf16.msra.mxu1 %v13782_v52  ;;  %6345 = vmatprep.subr.bf16.mxu0 %v13647_v54  ;;  %v924_v52 = vld [vmem:[#allocation2 + $0x1170] sm:$0xff] }
 0x2a7   :  { %6386 = vmatprep.subr.bf16.mxu1 %v13775_v36  ;;  %v1048_v36 = vld [vmem:[#allocation2 + $0x1550] sm:$0xff] }
 0x2a8   :  { %v1052_v35 = vld [vmem:[#allocation2 + $0x1570] sm:$0xff] }
 0x2a9   :  { %6346 = vmatpush2.bf16.msra.mxu0 %v13646_v11  ;;  %v13990_v11 = vcombine.low %v1056_v38, %v1060_v41  ;;  %v916_v61 = vld [vmem:[#allocation2 + $0x1130] sm:$0xff] }
 0x2aa   :  { %6387 = vmatpush2.bf16.msra.mxu1 %v13774_v58  ;;  %6347 = vmatprep.subr.bf16.mxu0 %v13639_v23  ;;  %v13855_v58 = vcombine.high %v920_v51, %v924_v52  ;;  %v13983_v23 = vcombine.high %v1048_v36, %v1052_v35  ;;  %v1040_v0 = vld [vmem:[#allocation2 + $0x1510] sm:$0xff] }
 0x2ab   :  { %6388 = vmatprep.subr.bf16.mxu1 %v13767_v60  ;;  %v912_v60 = vld [vmem:[#allocation2 + $0x1110] sm:$0xff] }
 0x2ac   :  { %v1044_v1 = vld [vmem:[#allocation2 + $0x1530] sm:$0xff] }
 0x2ad   :  { %6348 = vmatpush2.bf16.msra.mxu0 %v13638_v2  ;;  %v904_v7 = vld [vmem:[#allocation2 + $0x10d0] sm:$0xff] }
 0x2ae   :  { %6389 = vmatpush2.bf16.msra.mxu1 %v13766_v4  ;;  %6349 = vmatprep.subr.bf16.mxu0 %v13631_v5  ;;  %v13982_v4 = vcombine.low %v1048_v36, %v1052_v35  ;;  %v13847_v5 = vcombine.high %v912_v60, %v916_v61  ;;  %v908_v8 = vld [vmem:[#allocation2 + $0x10f0] sm:$0xff] }
 0x2af   :  { %6390 = vmatprep.subr.bf16.mxu1 %v13759_v6  ;;  %v13975_v6 = vcombine.high %v1040_v0, %v1044_v1  ;;  %v1032_v10 = vld [vmem:[#allocation2 + $0x14d0] sm:$0xff] }
 0x2b0   :  { %v1036_v12 = vld [vmem:[#allocation2 + $0x14f0] sm:$0xff] }
 0x2b1   :  { %6350 = vmatpush2.bf16.msra.mxu0 %v13630_v59  ;;  %v13846_v59 = vcombine.low %v912_v60, %v916_v61  ;;  %v896_v17 = vld [vmem:[#allocation2 + $0x1090] sm:$0xff] }
 0x2b2   :  { %6391 = vmatpush2.bf16.msra.mxu1 %v13758_v14  ;;  %6351 = vmatprep.subr.bf16.mxu0 %v13623_v15  ;;  %v13974_v14 = vcombine.low %v1040_v0, %v1044_v1  ;;  %v13839_v15 = vcombine.high %v904_v7, %v908_v8  ;;  %v900_v18 = vld [vmem:[#allocation2 + $0x10b0] sm:$0xff] }
 0x2b3   :  { %6392 = vmatprep.subr.bf16.mxu1 %v13751_v16  ;;  %v13967_v16 = vcombine.high %v1032_v10, %v1036_v12  ;;  %v1024_v26 = vld [vmem:[#allocation2 + $0x1490] sm:$0xff] }
 0x2b4   :  { %v1028_v63 = vld [vmem:[#allocation2 + $0x14b0] sm:$0xff] }
 0x2b5   :  { %6352 = vmatpush2.bf16.msra.mxu0 %v13622_v21  ;;  %v13838_v21 = vcombine.low %v904_v7, %v908_v8  ;;  %v888_v25 = vld [vmem:[#allocation2 + $0x1050] sm:$0xff] }
 0x2b6   :  { %6393 = vmatpush2.bf16.msra.mxu1 %v13750_v34  ;;  %6403 = vmatprep.subr.bf16.mxu0 %v13871_v20  ;;  %v13966_v34 = vcombine.low %v1032_v10, %v1036_v12  ;;  %v13831_v20 = vcombine.high %v896_v17, %v900_v18  ;;  %v892_v37 = vld [vmem:[#allocation2 + $0x1070] sm:$0xff] }
 0x2b7   :  { %6444 = vmatprep.subr.bf16.mxu1 %v13999_v33  ;;  %v13959_v33 = vcombine.high %v1024_v26, %v1028_v63  ;;  %v1016_v38 = vld [vmem:[#allocation2 + $0x1450] sm:$0xff] }
 0x2b8   :  { %v6109_v54 = vpop.f32.mrf.mxu0  ;;  %6354 = vmatmul.mubr.bf16.vlgmr.msra.gmra.mxu0 %v16149_v47  ;;  %v1020_v41 = vld [vmem:[#allocation2 + $0x1470] sm:$0xff] }
 0x2b9   :  { %v6110_v46 = vadd.f32 %v6109_v54, %v16247_v40  ;;  %6395 = vmatmul.mubr.bf16.vlgmr.msra.gmra.mxu1 %v16156_v57  ;;  %6404 = vmatpush1.bf16.msra.mxu0 %v13870_v28  ;;  %v13854_v40 = vcombine.low %v920_v51, %v924_v52  ;;  %v13823_v51 = vcombine.high %v888_v25, %v892_v37  ;;  %v880_v36 = vld [vmem:[#allocation2 + $0x1010] sm:$0xff] }
 0x2ba   :  { %6445 = vmatpush1.bf16.msra.mxu1 %v13998_v27  ;;  %v16254_v55 = vpop.f32.mrf.mxu0  ;;  %6405 = vmatprep.subr.bf16.mxu0 %v13863_v45  ;;  %v13830_v27 = vcombine.low %v896_v17, %v900_v18  ;;  %v13951_v54 = vcombine.high %v1016_v38, %v1020_v41  ;;  %v884_v35 = vld [vmem:[#allocation2 + $0x1030] sm:$0xff]  ;;  %v13950_v60 = vcombine.low %v1016_v38, %v1020_v41 }
 0x2bb   :  { %6446 = vmatprep.subr.bf16.mxu1 %v13991_v48  ;;  %6435 = vmatprep.mubr.bf16.mxu0 %v16152_v56  ;;  %v13958_v48 = vcombine.low %v1024_v26, %v1028_v63  ;;  %v1000_v0 = vld [vmem:[#allocation2 + $0x13d0] sm:$0xff] }
 0x2bc   :  { %v6113_v62 = vpop.f32.mrf.mxu0  ;;  %6476 = vmatprep.mubr.bf16.mxu1 %v16161_v3  ;;  %v1004_v1 = vld [vmem:[#allocation2 + $0x13f0] sm:$0xff] }
 0x2bd   :  { %6406 = vmatpush1.bf16.msra.mxu0 %v13862_v49  ;;  %v1008_v49 = vld [vmem:[#allocation2 + $0x1410] sm:$0xff] }
 0x2be   :  { %6447 = vmatpush1.bf16.msra.mxu1 %v13990_v11  ;;  %v6114_v2 = vpop.f32.mrf.mxu0  ;;  %6407 = vmatprep.subr.bf16.mxu0 %v13855_v58  ;;  %v1012_v11 = vld [vmem:[#allocation2 + $0x1430] sm:$0xff] }
 0x2bf   :  { %6448 = vmatprep.subr.bf16.mxu1 %v13983_v23  ;;  %v13822_v23 = vcombine.low %v888_v25, %v892_v37  ;;  %v13943_v62 = vcombine.high %v1008_v49, %v1012_v11  ;;  %v1132_v2 = vld [vmem:[#allocation2 + $0x17f0] sm:$0xff] }
 0x2c0   :  { %v992_v8 = vld [vmem:[#allocation2 + $0x1390] sm:$0xff] }
 0x2c1   :  { %6408 = vmatpush1.bf16.msra.mxu0 %v13854_v40  ;;  %v1128_v40 = vld [vmem:[#allocation2 + $0x17d0] sm:$0xff] }
 0x2c2   :  { %6449 = vmatpush1.bf16.msra.mxu1 %v13982_v4  ;;  %6409 = vmatprep.subr.bf16.mxu0 %v13847_v5  ;;  %v13814_v4 = vcombine.low %v880_v36, %v884_v35  ;;  %v13942_v5 = vcombine.low %v1008_v49, %v1012_v11  ;;  %v14063_v7 = vcombine.high %v1128_v40, %v1132_v2  ;;  %v996_v10 = vld [vmem:[#allocation2 + $0x13b0] sm:$0xff] }
 0x2c3   :  { %6450 = vmatprep.subr.bf16.mxu1 %v13975_v6  ;;  %v13935_v6 = vcombine.high %v1000_v0, %v1004_v1  ;;  %v1120_v12 = vld [vmem:[#allocation2 + $0x1790] sm:$0xff] }
 0x2c4   :  { %v984_v18 = vld [vmem:[#allocation2 + $0x1350] sm:$0xff] }
 0x2c5   :  { %6410 = vmatpush1.bf16.msra.mxu0 %v13846_v59  ;;  %v1124_v59 = vld [vmem:[#allocation2 + $0x17b0] sm:$0xff] }
 0x2c6   :  { %6451 = vmatpush1.bf16.msra.mxu1 %v13974_v14  ;;  %6411 = vmatprep.subr.bf16.mxu0 %v13839_v15  ;;  %v13934_v14 = vcombine.low %v1000_v0, %v1004_v1  ;;  %v14062_v15 = vcombine.low %v1128_v40, %v1132_v2  ;;  %v14055_v17 = vcombine.high %v1120_v12, %v1124_v59  ;;  %v988_v26 = vld [vmem:[#allocation2 + $0x1370] sm:$0xff] }
 0x2c7   :  { %6452 = vmatprep.subr.bf16.mxu1 %v13967_v16  ;;  %v13927_v16 = vcombine.high %v992_v8, %v996_v10  ;;  %v1112_v63 = vld [vmem:[#allocation2 + $0x1750] sm:$0xff] }
 0x2c8   :  { %v976_v37 = vld [vmem:[#allocation2 + $0x1310] sm:$0xff] }
 0x2c9   :  { %v6150_v28 = vpop.f32.mrf.mxu1  ;;  %6412 = vmatpush1.bf16.msra.mxu0 %v13838_v21  ;;  %v1116_v21 = vld [vmem:[#allocation2 + $0x1770] sm:$0xff] }
 0x2ca   :  { %v16258_v45 = vadd.f32 %v6150_v28, %v6110_v46  ;;  %6453 = vmatpush1.bf16.msra.mxu1 %v13966_v34  ;;  %6413 = vmatprep.subr.bf16.mxu0 %v13831_v20  ;;  %v13815_v46 = vcombine.high %v880_v36, %v884_v35  ;;  %v13926_v34 = vcombine.low %v992_v8, %v996_v10  ;;  %v980_v38 = vld [vmem:[#allocation2 + $0x1330] sm:$0xff] }
 0x2cb   :  { %v16260_v52 = vpop.f32.mrf.mxu1  ;;  %6454 = vmatprep.subr.bf16.mxu1 %v13959_v33  ;;  %v14054_v20 = vcombine.low %v1120_v12, %v1124_v59  ;;  %v13919_v33 = vcombine.high %v984_v18, %v988_v26  ;;  %v14047_v25 = vcombine.high %v1112_v63, %v1116_v21  ;;  %v1104_v41 = vld [vmem:[#allocation2 + $0x1710] sm:$0xff] }
 0x2cc   :  { %v1108_v28 = vld [vmem:[#allocation2 + $0x1730] sm:$0xff] }
 0x2cd   :  { %v6154_v58 = vpop.f32.mrf.mxu1  ;;  %6414 = vmatpush1.bf16.msra.mxu0 %v13830_v27  ;;  %v13918_v27 = vcombine.low %v984_v18, %v988_v26  ;;  %v968_v36 = vld [vmem:[#allocation2 + $0x12d0] sm:$0xff] }
 0x2ce   :  { %6455 = vmatpush1.bf16.msra.mxu1 %v13958_v48  ;;  %6415 = vmatprep.subr.bf16.mxu0 %v13823_v51  ;;  %v14046_v48 = vcombine.low %v1112_v63, %v1116_v21  ;;  %v13911_v51 = vcombine.high %v976_v37, %v980_v38  ;;  %v972_v35 = vld [vmem:[#allocation2 + $0x12f0] sm:$0xff]  ;;  %v13910_v58 = vcombine.low %v976_v37, %v980_v38  ;;  %v425_v37 = vld [vmem:[#allocation2 + $0x1d8] sm:$0xff] }
 0x2cf   :  { %v6155_v61 = vpop.f32.mrf.mxu1  ;;  %6456 = vmatprep.subr.bf16.mxu1 %v13951_v54  ;;  %v14039_v54 = vcombine.high %v1104_v41, %v1108_v28  ;;  %v1096_v49 = vld [vmem:[#allocation2 + $0x16d0] sm:$0xff]  ;;  %v13902_v40 = vcombine.low %v968_v36, %v972_v35  ;;  %v429_v38 = vld [vmem:[#allocation2 + $0x1f8] sm:$0xff] }
 0x2d0   :  { %v1100_v11 = vld [vmem:[#allocation2 + $0x16f0] sm:$0xff] }
 0x2d1   :  { %6416 = vmatpush1.bf16.msra.mxu0 %v13822_v23  ;;  %v14038_v23 = vcombine.low %v1104_v41, %v1108_v28  ;;  %v960_v61 = vld [vmem:[#allocation2 + $0x1290] sm:$0xff]  ;;  %v14030_v2 = vcombine.low %v1096_v49, %v1100_v11 }
 0x2d2   :  { %6457 = vmatpush1.bf16.msra.mxu1 %v13950_v60  ;;  %6417 = vmatprep.subr.bf16.mxu0 %v13815_v46  ;;  %v13903_v60 = vcombine.high %v968_v36, %v972_v35  ;;  %v14031_v46 = vcombine.high %v1096_v49, %v1100_v11  ;;  %v1088_v0 = vld [vmem:[#allocation2 + $0x1690] sm:$0xff]  ;;  %v417_v36 = vld [vmem:[#allocation2 + $0x198] sm:$0xff]  ;;  %v13360_v11 = vcombine.low %v425_v37, %v429_v38 }
 0x2d3   :  { %6458 = vmatprep.subr.bf16.mxu1 %v13943_v62  ;;  %v964_v62 = vld [vmem:[#allocation2 + $0x12b0] sm:$0xff]  ;;  %v421_v35 = vld [vmem:[#allocation2 + $0x1b8] sm:$0xff] }
 0x2d4   :  { %v1092_v1 = vld [vmem:[#allocation2 + $0x16b0] sm:$0xff]  ;;  %v13894_v12 = vcombine.low %v960_v61, %v964_v62 }
 0x2d5   :  { %6418 = vmatpush1.bf16.msra.mxu0 %v13814_v4  ;;  %v13895_v4 = vcombine.high %v960_v61, %v964_v62  ;;  %v1080_v8 = vld [vmem:[#allocation2 + $0x1650] sm:$0xff]  ;;  %v14022_v59 = vcombine.low %v1088_v0, %v1092_v1  ;;  %v409_v62 = vld [vmem:[#allocation2 + $0x158] sm:$0xff] }
 0x2d6   :  { %6459 = vmatpush1.bf16.msra.mxu1 %v13942_v5  ;;  %6419 = vmatprep.subr.bf16.mxu0 %v13935_v6  ;;  %v14023_v5 = vcombine.high %v1088_v0, %v1092_v1  ;;  %v952_v6 = vld [vmem:[#allocation2 + $0x1250] sm:$0xff]  ;;  %v413_v0 = vld [vmem:[#allocation2 + $0x178] sm:$0xff] }
 0x2d7   :  { %6460 = vmatprep.subr.bf16.mxu1 %v14063_v7  ;;  %v956_v7 = vld [vmem:[#allocation2 + $0x1270] sm:$0xff] }
 0x2d8   :  { %v1084_v10 = vld [vmem:[#allocation2 + $0x1670] sm:$0xff]  ;;  %v13886_v63 = vcombine.low %v952_v6, %v956_v7 }
 0x2d9   :  { %6420 = vmatpush2.bf16.msra.mxu0 %v13934_v14  ;;  %v13887_v14 = vcombine.high %v952_v6, %v956_v7  ;;  %v1072_v18 = vld [vmem:[#allocation2 + $0x1610] sm:$0xff]  ;;  %v14014_v21 = vcombine.low %v1080_v8, %v1084_v10 }
 0x2da   :  { %6461 = vmatpush2.bf16.msra.mxu1 %v14062_v15  ;;  %6421 = vmatprep.subr.bf16.mxu0 %v13927_v16  ;;  %v14015_v15 = vcombine.high %v1080_v8, %v1084_v10  ;;  %v944_v16 = vld [vmem:[#allocation2 + $0x1210] sm:$0xff]  ;;  %v13345_v10 = vcombine.high %v409_v62, %v413_v0 }
 0x2db   :  { %6462 = vmatprep.subr.bf16.mxu1 %v14055_v17  ;;  %v948_v17 = vld [vmem:[#allocation2 + $0x1230] sm:$0xff] }
 0x2dc   :  { %v1076_v26 = vld [vmem:[#allocation2 + $0x1630] sm:$0xff]  ;;  %v13878_v41 = vcombine.low %v944_v16, %v948_v17 }
 0x2dd   :  { %6422 = vmatpush2.bf16.msra.mxu0 %v13926_v34  ;;  %v13879_v34 = vcombine.high %v944_v16, %v948_v17  ;;  %v14006_v28 = vcombine.low %v1072_v18, %v1076_v26 }
 0x2de   :  { %6463 = vmatpush2.bf16.msra.mxu1 %v14054_v20  ;;  %6423 = vmatprep.subr.bf16.mxu0 %v13919_v33  ;;  %v14007_v20 = vcombine.high %v1072_v18, %v1076_v26  ;;  %v1192_v33 = vld [vmem:[#allocation2 + $0x19d0] sm:$0xff]  ;;  %v13344_v26 = vcombine.low %v409_v62, %v413_v0 }
 0x2df   :  { %6464 = vmatprep.subr.bf16.mxu1 %v14047_v25  ;;  %v1196_v25 = vld [vmem:[#allocation2 + $0x19f0] sm:$0xff] }
 0x2e0   :  { %v14126_v49 = vcombine.low %v1192_v33, %v1196_v25 }
 0x2e1   :  { %6424 = vmatpush2.bf16.msra.mxu0 %v13918_v27  ;;  %v14127_v27 = vcombine.high %v1192_v33, %v1196_v25  ;;  %v1164_v33 = vld [vmem:[#allocation2 + $0x18f0] sm:$0xff]  ;;  %v393_v25 = vld [vmem:[#allocation2 + $0xd8] sm:$0xff] }
 0x2e2   :  { %6465 = vmatpush2.bf16.msra.mxu1 %v14046_v48  ;;  %6425 = vmatprep.subr.bf16.mxu0 %v13911_v51  ;;  %v13361_v48 = vcombine.high %v425_v37, %v429_v38  ;;  %v1184_v51 = vld [vmem:[#allocation2 + $0x1990] sm:$0xff]  ;;  %v397_v37 = vld [vmem:[#allocation2 + $0xf8] sm:$0xff] }
 0x2e3   :  { %6466 = vmatprep.subr.bf16.mxu1 %v14039_v54  ;;  %v1188_v54 = vld [vmem:[#allocation2 + $0x19b0] sm:$0xff] }
 0x2e5   :  { %6426 = vmatpush2.bf16.msra.mxu0 %v13910_v58  ;;  %v14119_v58 = vcombine.high %v1184_v51, %v1188_v54 }
 0x2e6   :  { %6467 = vmatpush2.bf16.msra.mxu1 %v14038_v23  ;;  %6427 = vmatprep.subr.bf16.mxu0 %v13903_v60  ;;  %v13353_v23 = vcombine.high %v417_v36, %v421_v35  ;;  %v1176_v60 = vld [vmem:[#allocation2 + $0x1950] sm:$0xff] }
 0x2e7   :  { %6468 = vmatprep.subr.bf16.mxu1 %v14031_v46  ;;  %v1180_v46 = vld [vmem:[#allocation2 + $0x1970] sm:$0xff] }
 0x2e8   :  { %v14111_v6 = vcombine.high %v1176_v60, %v1180_v46  ;;  %v14110_v17 = vcombine.low %v1176_v60, %v1180_v46  ;;  %v377_v60 = vld [vmem:[#allocation2 + $0x58] sm:$0xff] }
 0x2e9   :  { %6428 = vmatpush2.bf16.msra.mxu0 %v13902_v40  ;;  %v381_v46 = vld [vmem:[#allocation2 + $0x78] sm:$0xff] }
 0x2ea   :  { %6469 = vmatpush2.bf16.msra.mxu1 %v14030_v2  ;;  %6429 = vmatprep.subr.bf16.mxu0 %v13895_v4  ;;  %v14118_v2 = vcombine.low %v1184_v51, %v1188_v54  ;;  %v385_v51 = vld [vmem:[#allocation2 + $0x98] sm:$0xff] }
 0x2eb   :  { %6470 = vmatprep.subr.bf16.mxu1 %v14023_v5  ;;  %v13352_v5 = vcombine.low %v417_v36, %v421_v35  ;;  %v389_v54 = vld [vmem:[#allocation2 + $0xb8] sm:$0xff]  ;;  %v13328_v35 = vcombine.low %v393_v25, %v397_v37 }
 0x2ec   :  { %v13320_v62 = vcombine.low %v385_v51, %v389_v54 }
 0x2ed   :  { %6430 = vmatpush2.bf16.msra.mxu0 %v13894_v12  ;;  %v1168_v12 = vld [vmem:[#allocation2 + $0x1910] sm:$0xff] }
 0x2ee   :  { %6471 = vmatpush2.bf16.msra.mxu1 %v14022_v59  ;;  %6431 = vmatprep.subr.bf16.mxu0 %v13887_v14  ;;  %v1172_v59 = vld [vmem:[#allocation2 + $0x1930] sm:$0xff]  ;;  %v401_v14 = vld [vmem:[#allocation2 + $0x118] sm:$0xff] }
 0x2ef   :  { %6472 = vmatprep.subr.bf16.mxu1 %v14015_v15  ;;  %v405_v15 = vld [vmem:[#allocation2 + $0x138] sm:$0xff]  ;;  %v14102_v38 = vcombine.low %v1168_v12, %v1172_v59 }
 0x2f1   :  { %6432 = vmatpush2.bf16.msra.mxu0 %v13886_v63  ;;  %v14103_v63 = vcombine.high %v1168_v12, %v1172_v59  ;;  %v13312_v12 = vcombine.low %v377_v60, %v381_v46 }
 0x2f2   :  { %6473 = vmatpush2.bf16.msra.mxu1 %v14014_v21  ;;  %6433 = vmatprep.subr.bf16.mxu0 %v13879_v34  ;;  %v13337_v34 = vcombine.high %v401_v14, %v405_v15 }
 0x2f3   :  { %6474 = vmatprep.subr.bf16.mxu1 %v14007_v20  ;;  %v1160_v20 = vld [vmem:[#allocation2 + $0x18d0] sm:$0xff] }
 0x2f4   :  { %v14094_v36 = vcombine.low %v1160_v20, %v1164_v33 }
 0x2f5   :  { %6434 = vmatpush2.bf16.msra.mxu0 %v13878_v41  ;;  %v14095_v41 = vcombine.high %v1160_v20, %v1164_v33  ;;  %v1220_v20 = vld [vmem:[#allocation2 + $0x1ab0] sm:$0xff]  ;;  %v481_v33 = vld [vmem:[#allocation2 + $0x398] sm:$0xff] }
 0x2f6   :  { %6475 = vmatpush2.bf16.msra.mxu1 %v14006_v28  ;;  %6485 = vmatprep.subr.bf16.mxu0 %v14127_v27  ;;  %v13329_v28 = vcombine.high %v393_v25, %v397_v37  ;;  %v1152_v27 = vld [vmem:[#allocation2 + $0x1890] sm:$0xff]  ;;  %v485_v25 = vld [vmem:[#allocation2 + $0x3b8] sm:$0xff] }
 0x2f7   :  { %6526 = vmatprep.subr.bf16.mxu1 %v13361_v48  ;;  %v1156_v48 = vld [vmem:[#allocation2 + $0x18b0] sm:$0xff] }
 0x2f8   :  { %v6191_v61 = vpop.f32.mrf.mxu0  ;;  %6436 = vmatmul.mubr.bf16.vlgmr.msra.gmra.mxu0 %v16173_v24 }
 0x2f9   :  { %v6192_v1 = vadd.f32 %v6191_v61, %v16258_v45  ;;  %v6232_v40 = vpop.f32.mrf.mxu1  ;;  %6477 = vmatmul.mubr.bf16.vlgmr.msra.gmra.mxu1 %v16179_v32  ;;  %6486 = vmatpush1.bf16.msra.mxu0 %v14126_v49  ;;  %v14087_v49 = vcombine.high %v1152_v27, %v1156_v48  ;;  %v14086_v61 = vcombine.low %v1152_v27, %v1156_v48  ;;  %v1212_v27 = vld [vmem:[#allocation2 + $0x1a70] sm:$0xff]  ;;  %v473_v48 = vld [vmem:[#allocation2 + $0x358] sm:$0xff] }
 0x2fa   :  { %6527 = vmatpush1.bf16.msra.mxu1 %v13360_v11  ;;  %v16265_v4 = vpop.f32.mrf.mxu0  ;;  %6487 = vmatprep.subr.bf16.mxu0 %v14119_v58  ;;  %v13321_v11 = vcombine.high %v385_v51, %v389_v54  ;;  %v1144_v58 = vld [vmem:[#allocation2 + $0x1850] sm:$0xff]  ;;  %v477_v51 = vld [vmem:[#allocation2 + $0x378] sm:$0xff] }
 0x2fb   :  { %v16267_v7 = vadd.f32 %v6232_v40, %v6192_v1  ;;  %v16269_v8 = vpop.f32.mrf.mxu1  ;;  %6528 = vmatprep.subr.bf16.mxu1 %v13353_v23  ;;  %14164 = vmatprep.mubr.msk.bf16.mxu0 %vm5661_vm0, %v16182_v42  ;;  %v1148_v23 = vld [vmem:[#allocation2 + $0x1870] sm:$0xff]  ;;  %v13313_v1 = vcombine.high %v377_v60, %v381_v46  ;;  %v469_v60 = vld [vmem:[#allocation2 + $0x338] sm:$0xff] }
 0x2fc   :  { %v6195_v45 = vpop.f32.mrf.mxu0  ;;  %6558 = vmatprep.mubr.bf16.mxu1 %v16102_v9  ;;  %v13336_v9 = vcombine.low %v401_v14, %v405_v15  ;;  %v14079_v0 = vcombine.high %v1144_v58, %v1148_v23  ;;  %v1136_v40 = vld [vmem:[#allocation2 + $0x1810] sm:$0xff] }
 0x2fd   :  { %19488 = vst [vmem:[#allocation26_spill] sm:$0xff] %v16267_v7  ;;  %v6236_v16 = vpop.f32.mrf.mxu1  ;;  %6488 = vmatpush1.bf16.msra.mxu0 %v14118_v2  ;;  %v1140_v2 = vld [vmem:[#allocation2 + $0x1830] sm:$0xff] }
 0x2fe   :  { %6529 = vmatpush1.bf16.msra.mxu1 %v13352_v5  ;;  %v6196_v18 = vpop.f32.mrf.mxu0  ;;  %6489 = vmatprep.subr.bf16.mxu0 %v14111_v6  ;;  %v369_v5 = vld [vmem:[#allocation2 + $0x18] sm:$0xff]  ;;  %v14071_v59 = vcombine.high %v1136_v40, %v1140_v2  ;;  %v1224_v14 = vld [vmem:[#allocation2 + $0x1ad0] sm:$0xff] }
 0x2ff   :  { %v6237_v21 = vpop.f32.mrf.mxu1  ;;  %6530 = vmatprep.subr.bf16.mxu1 %v13345_v10  ;;  %v373_v6 = vld [vmem:[#allocation2 + $0x38] sm:$0xff]  ;;  %v14078_v10 = vcombine.low %v1144_v58, %v1148_v23  ;;  %v1228_v15 = vld [vmem:[#allocation2 + $0x1af0] sm:$0xff]  ;;  %v14070_v18 = vcombine.low %v1136_v40, %v1140_v2 }
 0x300   :  { %v13305_v45 = vcombine.high %v369_v5, %v373_v6  ;;  %v489_v16 = vld [vmem:[#allocation2 + $0x3d8] sm:$0xff]  ;;  %v14158_v37 = vcombine.low %v1224_v14, %v1228_v15  ;;  %v1204_v58 = vld [vmem:[#allocation2 + $0x1a30] sm:$0xff] }
 0x301   :  { %6490 = vmatpush1.bf16.msra.mxu0 %v14110_v17  ;;  %v493_v17 = vld [vmem:[#allocation2 + $0x3f8] sm:$0xff] }
 0x302   :  { %6531 = vmatpush1.bf16.msra.mxu1 %v13344_v26  ;;  %6491 = vmatprep.subr.bf16.mxu0 %v14103_v63  ;;  %v13304_v26 = vcombine.low %v369_v5, %v373_v6  ;;  %v14159_v63 = vcombine.high %v1224_v14, %v1228_v15  ;;  %v13425_v21 = vcombine.high %v489_v16, %v493_v17  ;;  %v465_v23 = vld [vmem:[#allocation2 + $0x318] sm:$0xff] }
 0x303   :  { %6532 = vmatprep.subr.bf16.mxu1 %v13337_v34  ;;  %v1216_v34 = vld [vmem:[#allocation2 + $0x1a90] sm:$0xff]  ;;  %v557_v40 = vld [vmem:[#allocation2 + $0x5f8] sm:$0xff] }
 0x304   :  { %v14150_v54 = vcombine.low %v1216_v34, %v1220_v20  ;;  %v457_v2 = vld [vmem:[#allocation2 + $0x2d8] sm:$0xff] }
 0x305   :  { %6492 = vmatpush1.bf16.msra.mxu0 %v14102_v38  ;;  %v13424_v38 = vcombine.low %v489_v16, %v493_v17  ;;  %v461_v5 = vld [vmem:[#allocation2 + $0x2f8] sm:$0xff] }
 0x306   :  { %6533 = vmatpush1.bf16.msra.mxu1 %v13336_v9  ;;  %6493 = vmatprep.subr.bf16.mxu0 %v14095_v41  ;;  %v14151_v9 = vcombine.high %v1216_v34, %v1220_v20  ;;  %v13417_v41 = vcombine.high %v481_v33, %v485_v25  ;;  %v549_v14 = vld [vmem:[#allocation2 + $0x5b8] sm:$0xff] }
 0x307   :  { %6534 = vmatprep.subr.bf16.mxu1 %v13329_v28  ;;  %v1208_v28 = vld [vmem:[#allocation2 + $0x1a50] sm:$0xff]  ;;  %v449_v15 = vld [vmem:[#allocation2 + $0x298] sm:$0xff] }
 0x308   :  { %v14142_v46 = vcombine.low %v1208_v28, %v1212_v27  ;;  %v453_v16 = vld [vmem:[#allocation2 + $0x2b8] sm:$0xff] }
 0x309   :  { %6494 = vmatpush1.bf16.msra.mxu0 %v14094_v36  ;;  %v13416_v36 = vcombine.low %v481_v33, %v485_v25  ;;  %v541_v34 = vld [vmem:[#allocation2 + $0x578] sm:$0xff] }
 0x30a   :  { %6535 = vmatpush1.bf16.msra.mxu1 %v13328_v35  ;;  %6495 = vmatprep.subr.bf16.mxu0 %v14087_v49  ;;  %v14143_v35 = vcombine.high %v1208_v28, %v1212_v27  ;;  %v13409_v49 = vcombine.high %v473_v48, %v477_v51  ;;  %v441_v20 = vld [vmem:[#allocation2 + $0x258] sm:$0xff] }
 0x30b   :  { %6536 = vmatprep.subr.bf16.mxu1 %v13321_v11  ;;  %v1200_v11 = vld [vmem:[#allocation2 + $0x1a10] sm:$0xff]  ;;  %v445_v33 = vld [vmem:[#allocation2 + $0x278] sm:$0xff] }
 0x30c   :  { %v14134_v6 = vcombine.low %v1200_v11, %v1204_v58  ;;  %v533_v28 = vld [vmem:[#allocation2 + $0x538] sm:$0xff] }
 0x30d   :  { %6496 = vmatpush1.bf16.msra.mxu0 %v14086_v61  ;;  %v13408_v61 = vcombine.low %v473_v48, %v477_v51  ;;  %v433_v27 = vld [vmem:[#allocation2 + $0x218] sm:$0xff] }
 0x30e   :  { %6537 = vmatpush1.bf16.msra.mxu1 %v13320_v62  ;;  %6497 = vmatprep.subr.bf16.mxu0 %v14079_v0  ;;  %v14135_v62 = vcombine.high %v1200_v11, %v1204_v58  ;;  %v13401_v0 = vcombine.high %v465_v23, %v469_v60  ;;  %v437_v48 = vld [vmem:[#allocation2 + $0x238] sm:$0xff] }
 0x30f   :  { %6538 = vmatprep.subr.bf16.mxu1 %v13313_v1  ;;  %v553_v1 = vld [vmem:[#allocation2 + $0x5d8] sm:$0xff] }
 0x310   :  { %v13488_v17 = vcombine.low %v553_v1, %v557_v40  ;;  %v681_v11 = vld [vmem:[#allocation2 + $0x9d8] sm:$0xff] }
 0x311   :  { %6498 = vmatpush1.bf16.msra.mxu0 %v14078_v10  ;;  %v13400_v10 = vcombine.low %v465_v23, %v469_v60  ;;  %v685_v58 = vld [vmem:[#allocation2 + $0x9f8] sm:$0xff]  ;;  %v13368_v60 = vcombine.low %v433_v27, %v437_v48 }
 0x312   :  { %6539 = vmatpush1.bf16.msra.mxu1 %v13312_v12  ;;  %6499 = vmatprep.subr.bf16.mxu0 %v14071_v59  ;;  %v13489_v12 = vcombine.high %v553_v1, %v557_v40  ;;  %v13393_v59 = vcombine.high %v457_v2, %v461_v5  ;;  %v673_v1 = vld [vmem:[#allocation2 + $0x998] sm:$0xff] }
 0x313   :  { %6540 = vmatprep.subr.bf16.mxu1 %v13305_v45  ;;  %v545_v45 = vld [vmem:[#allocation2 + $0x598] sm:$0xff] }
 0x314   :  { %v13480_v25 = vcombine.low %v545_v45, %v549_v14  ;;  %v677_v40 = vld [vmem:[#allocation2 + $0x9b8] sm:$0xff] }
 0x315   :  { %6500 = vmatpush1.bf16.msra.mxu0 %v14070_v18  ;;  %v13392_v18 = vcombine.low %v457_v2, %v461_v5  ;;  %v13616_v5 = vcombine.low %v681_v11, %v685_v58 }
 0x316   :  { %6541 = vmatpush1.bf16.msra.mxu1 %v13304_v26  ;;  %6509 = vmatprep.subr.bf16.mxu0 %v14159_v63  ;;  %v13481_v26 = vcombine.high %v545_v45, %v549_v14  ;;  %v13385_v63 = vcombine.high %v449_v15, %v453_v16  ;;  %v665_v14 = vld [vmem:[#allocation2 + $0x958] sm:$0xff] }
 0x317   :  { %6542 = vmatprep.subr.bf16.mxu1 %v13425_v21  ;;  %v537_v21 = vld [vmem:[#allocation2 + $0x558] sm:$0xff] }
 0x318   :  { %v13472_v51 = vcombine.low %v537_v21, %v541_v34 }
 0x319   :  { %6510 = vmatpush2.bf16.msra.mxu0 %v14158_v37  ;;  %v13384_v37 = vcombine.low %v449_v15, %v453_v16  ;;  %v669_v15 = vld [vmem:[#allocation2 + $0x978] sm:$0xff] }
 0x31a   :  { %6543 = vmatpush2.bf16.msra.mxu1 %v13424_v38  ;;  %6511 = vmatprep.subr.bf16.mxu0 %v14151_v9  ;;  %v13473_v38 = vcombine.high %v537_v21, %v541_v34  ;;  %v13377_v9 = vcombine.high %v441_v20, %v445_v33 }
 0x31b   :  { %6544 = vmatprep.subr.bf16.mxu1 %v13417_v41  ;;  %v529_v41 = vld [vmem:[#allocation2 + $0x518] sm:$0xff] }
 0x31c   :  { %v13464_v23 = vcombine.low %v529_v41, %v533_v28 }
 0x31d   :  { %6512 = vmatpush2.bf16.msra.mxu0 %v14150_v54  ;;  %v13376_v54 = vcombine.low %v441_v20, %v445_v33  ;;  %v13601_v20 = vcombine.high %v665_v14, %v669_v15  ;;  %v497_v33 = vld [vmem:[#allocation2 + $0x418] sm:$0xff] }
 0x31e   :  { %6545 = vmatpush2.bf16.msra.mxu1 %v13416_v36  ;;  %6513 = vmatprep.subr.bf16.mxu0 %v14143_v35  ;;  %v13465_v36 = vcombine.high %v529_v41, %v533_v28  ;;  %v13369_v35 = vcombine.high %v433_v27, %v437_v48  ;;  %v13600_v48 = vcombine.low %v665_v14, %v669_v15 }
 0x31f   :  { %6546 = vmatprep.subr.bf16.mxu1 %v13409_v49  ;;  %v521_v49 = vld [vmem:[#allocation2 + $0x4d8] sm:$0xff] }
 0x321   :  { %6514 = vmatpush2.bf16.msra.mxu0 %v14142_v46 }
 0x322   :  { %6547 = vmatpush2.bf16.msra.mxu1 %v13408_v61  ;;  %6515 = vmatprep.subr.bf16.mxu0 %v14135_v62  ;;  %v13617_v61 = vcombine.high %v681_v11, %v685_v58  ;;  %v513_v62 = vld [vmem:[#allocation2 + $0x498] sm:$0xff] }
 0x323   :  { %6548 = vmatprep.subr.bf16.mxu1 %v13401_v0  ;;  %v517_v0 = vld [vmem:[#allocation2 + $0x4b8] sm:$0xff] }
 0x325   :  { %6516 = vmatpush2.bf16.msra.mxu0 %v14134_v6  ;;  %v13449_v6 = vcombine.high %v513_v62, %v517_v0 }
 0x326   :  { %6549 = vmatpush2.bf16.msra.mxu1 %v13400_v10  ;;  %6567 = vmatprep.subr.bf16.mxu0 %v13489_v12  ;;  %v13609_v10 = vcombine.high %v673_v1, %v677_v40  ;;  %v505_v12 = vld [vmem:[#allocation2 + $0x458] sm:$0xff] }
 0x327   :  { %6550 = vmatprep.subr.bf16.mxu1 %v13393_v59  ;;  %v509_v59 = vld [vmem:[#allocation2 + $0x478] sm:$0xff] }
 0x328   :  { %6518 = vmatmul.mubr.bf16.vlgmr.msra.gmra.mxu0 %v16191_v29  ;;  %v13441_v21 = vcombine.high %v505_v12, %v509_v59  ;;  %v13440_v28 = vcombine.low %v505_v12, %v509_v59  ;;  %v633_v12 = vld [vmem:[#allocation2 + $0x858] sm:$0xff] }
 0x329   :  { %6568 = vmatpush1.bf16.msra.mxu0 %v13488_v17  ;;  %6599 = vmatprep.mubr.bf16.mxu0 %v16107_v13  ;;  %v525_v13 = vld [vmem:[#allocation2 + $0x4f8] sm:$0xff]  ;;  %v13448_v17 = vcombine.low %v513_v62, %v517_v0 }
 0x32a   :  { %6551 = vmatpush2.bf16.msra.mxu1 %v13392_v18  ;;  %6569 = vmatprep.subr.bf16.mxu0 %v13481_v26  ;;  %v13457_v46 = vcombine.high %v521_v49, %v525_v13  ;;  %v13456_v2 = vcombine.low %v521_v49, %v525_v13  ;;  %v621_v49 = vld [vmem:[#allocation2 + $0x7f8] sm:$0xff] }
 0x32b   :  { %6552 = vmatprep.subr.bf16.mxu1 %v13385_v63  ;;  %v13608_v63 = vcombine.low %v673_v1, %v677_v40  ;;  %v649_v13 = vld [vmem:[#allocation2 + $0x8d8] sm:$0xff] }
 0x32c   :  { %v641_v62 = vld [vmem:[#allocation2 + $0x898] sm:$0xff] }
 0x32d   :  { %6570 = vmatpush1.bf16.msra.mxu0 %v13480_v25  ;;  %v501_v25 = vld [vmem:[#allocation2 + $0x438] sm:$0xff] }
 0x32e   :  { %6553 = vmatpush2.bf16.msra.mxu1 %v13384_v37  ;;  %6571 = vmatprep.subr.bf16.mxu0 %v13473_v38  ;;  %v13432_v11 = vcombine.low %v497_v33, %v501_v25  ;;  %v645_v0 = vld [vmem:[#allocation2 + $0x8b8] sm:$0xff] }
 0x32f   :  { %6554 = vmatprep.subr.bf16.mxu1 %v13377_v9  ;;  %v661_v9 = vld [vmem:[#allocation2 + $0x938] sm:$0xff]  ;;  %v13576_v14 = vcombine.low %v641_v62, %v645_v0 }
 0x330   :  { %v637_v59 = vld [vmem:[#allocation2 + $0x878] sm:$0xff] }
 0x331   :  { %6572 = vmatpush1.bf16.msra.mxu0 %v13472_v51  ;;  %v13433_v51 = vcombine.high %v497_v33, %v501_v25 }
 0x332   :  { %6555 = vmatpush2.bf16.msra.mxu1 %v13376_v54  ;;  %6573 = vmatprep.subr.bf16.mxu0 %v13465_v36 }
 0x333   :  { %6556 = vmatprep.subr.bf16.mxu1 %v13369_v35  ;;  %v617_v35 = vld [vmem:[#allocation2 + $0x7d8] sm:$0xff] }
 0x334   :  { %v13552_v1 = vcombine.low %v617_v35, %v621_v49 }
 0x335   :  { %6574 = vmatpush1.bf16.msra.mxu0 %v13464_v23  ;;  %v13553_v23 = vcombine.high %v617_v35, %v621_v49  ;;  %v737_v35 = vld [vmem:[#allocation2 + $0xb98] sm:$0xff] }
 0x336   :  { %6557 = vmatpush2.bf16.msra.mxu1 %v13368_v60  ;;  %6575 = vmatprep.subr.bf16.mxu0 %v13457_v46  ;;  %v609_v46 = vld [vmem:[#allocation2 + $0x798] sm:$0xff] }
 0x337   :  { %6608 = vmatprep.subr.bf16.mxu1 %v13617_v61  ;;  %v613_v61 = vld [vmem:[#allocation2 + $0x7b8] sm:$0xff] }
 0x338   :  { %v6273_v45 = vpop.f32.mrf.mxu0  ;;  %v741_v49 = vld [vmem:[#allocation2 + $0xbb8] sm:$0xff] }
 0x339   :  { %v6314_v16 = vpop.f32.mrf.mxu1  ;;  %6559 = vmatmul.mubr.bf16.vlgmr.msra.gmra.mxu1 %v16119_v22  ;;  %6576 = vmatpush1.bf16.msra.mxu0 %v13456_v2  ;;  %v657_v22 = vld [vmem:[#allocation2 + $0x918] sm:$0xff]  ;;  %v13545_v2 = vcombine.high %v609_v46, %v613_v61 }
 0x33a   :  { %v16277_v18 = vadd.f32 %v6314_v16, %v6273_v45  ;;  %6609 = vmatpush1.bf16.msra.mxu1 %v13616_v5  ;;  %v6275_v26 = vpop.f32.mrf.mxu0  ;;  %6577 = vmatprep.subr.bf16.mxu0 %v13449_v6  ;;  %v13593_v36 = vcombine.high %v657_v22, %v661_v9  ;;  %v13592_v58 = vcombine.low %v657_v22, %v661_v9  ;;  %v601_v6 = vld [vmem:[#allocation2 + $0x758] sm:$0xff] }
 0x33b   :  { %v6316_v34 = vpop.f32.mrf.mxu1  ;;  %6610 = vmatprep.subr.bf16.mxu1 %v13609_v10  ;;  %6640 = vmatprep.mubr.bf16.mxu1 %v16122_v30  ;;  %v653_v30 = vld [vmem:[#allocation2 + $0x8f8] sm:$0xff]  ;;  %v13577_v5 = vcombine.high %v641_v62, %v645_v0  ;;  %v13544_v45 = vcombine.low %v609_v46, %v613_v61  ;;  %v13569_v16 = vcombine.high %v633_v12, %v637_v59 }
 0x33c   :  { %v16280_v37 = vadd.f32 %v6316_v34, %v6275_v26  ;;  %v6277_v38 = vpop.f32.mrf.mxu0  ;;  %v13585_v60 = vcombine.high %v649_v13, %v653_v30  ;;  %v13584_v40 = vcombine.low %v649_v13, %v653_v30  ;;  %v605_v10 = vld [vmem:[#allocation2 + $0x778] sm:$0xff]  ;;  %v13672_v0 = vcombine.low %v737_v35, %v741_v49 }
 0x33d   :  { %v6318_v41 = vpop.f32.mrf.mxu1  ;;  %6578 = vmatpush1.bf16.msra.mxu0 %v13448_v17  ;;  %v13537_v15 = vcombine.high %v601_v6, %v605_v10  ;;  %v593_v17 = vld [vmem:[#allocation2 + $0x718] sm:$0xff]  ;;  %v13536_v34 = vcombine.low %v601_v6, %v605_v10 }
 0x33e   :  { %6611 = vmatpush1.bf16.msra.mxu1 %v13608_v63  ;;  %v6278_v27 = vpop.f32.mrf.mxu0  ;;  %6579 = vmatprep.subr.bf16.mxu0 %v13441_v21  ;;  %v597_v26 = vld [vmem:[#allocation2 + $0x738] sm:$0xff] }
 0x33f   :  { %v6319_v54 = vpop.f32.mrf.mxu1  ;;  %6612 = vmatprep.subr.bf16.mxu1 %v13601_v20  ;;  %v625_v63 = vld [vmem:[#allocation2 + $0x818] sm:$0xff]  ;;  %v13568_v20 = vcombine.low %v633_v12, %v637_v59  ;;  %v13529_v33 = vcombine.high %v593_v17, %v597_v26 }
 0x340   :  { %v629_v21 = vld [vmem:[#allocation2 + $0x838] sm:$0xff] }
 0x341   :  { %6580 = vmatpush1.bf16.msra.mxu0 %v13440_v28  ;;  %v13561_v25 = vcombine.high %v625_v63, %v629_v21  ;;  %v585_v38 = vld [vmem:[#allocation2 + $0x6d8] sm:$0xff]  ;;  %v13528_v28 = vcombine.low %v593_v17, %v597_v26  ;;  %v13560_v27 = vcombine.low %v625_v63, %v629_v21 }
 0x342   :  { %6613 = vmatpush1.bf16.msra.mxu1 %v13600_v48  ;;  %6581 = vmatprep.subr.bf16.mxu0 %v13433_v51  ;;  %v589_v22 = vld [vmem:[#allocation2 + $0x6f8] sm:$0xff] }
 0x343   :  { %6614 = vmatprep.subr.bf16.mxu1 %v13593_v36  ;;  %v745_v9 = vld [vmem:[#allocation2 + $0xbd8] sm:$0xff]  ;;  %v13521_v48 = vcombine.high %v585_v38, %v589_v22  ;;  %v13520_v13 = vcombine.low %v585_v38, %v589_v22 }
 0x344   :  { %v749_v41 = vld [vmem:[#allocation2 + $0xbf8] sm:$0xff] }
 0x345   :  { %6582 = vmatpush1.bf16.msra.mxu0 %v13432_v11  ;;  %v13681_v51 = vcombine.high %v745_v9, %v749_v41  ;;  %v577_v54 = vld [vmem:[#allocation2 + $0x698] sm:$0xff]  ;;  %v13680_v30 = vcombine.low %v745_v9, %v749_v41 }
 0x346   :  { %6615 = vmatpush1.bf16.msra.mxu1 %v13592_v58  ;;  %6583 = vmatprep.subr.bf16.mxu0 %v13553_v23  ;;  %v581_v36 = vld [vmem:[#allocation2 + $0x6b8] sm:$0xff]  ;;  %v13673_v58 = vcombine.high %v737_v35, %v741_v49 }
 0x347   :  { %6616 = vmatprep.subr.bf16.mxu1 %v13585_v60  ;;  %v13513_v11 = vcombine.high %v577_v54, %v581_v36  ;;  %v569_v23 = vld [vmem:[#allocation2 + $0x658] sm:$0xff]  ;;  %v13512_v62 = vcombine.low %v577_v54, %v581_v36 }
 0x348   :  { %v573_v60 = vld [vmem:[#allocation2 + $0x678] sm:$0xff] }
 0x349   :  { %6584 = vmatpush2.bf16.msra.mxu0 %v13552_v1  ;;  %v729_v46 = vld [vmem:[#allocation2 + $0xb58] sm:$0xff]  ;;  %v13505_v1 = vcombine.high %v569_v23, %v573_v60  ;;  %v13504_v12 = vcombine.low %v569_v23, %v573_v60 }
 0x34a   :  { %6617 = vmatpush1.bf16.msra.mxu1 %v13584_v40  ;;  %6585 = vmatprep.subr.bf16.mxu0 %v13545_v2  ;;  %v733_v61 = vld [vmem:[#allocation2 + $0xb78] sm:$0xff] }
 0x34b   :  { %6618 = vmatprep.subr.bf16.mxu1 %v13577_v5  ;;  %v13665_v40 = vcombine.high %v729_v46, %v733_v61  ;;  %v561_v2 = vld [vmem:[#allocation2 + $0x618] sm:$0xff]  ;;  %v13664_v59 = vcombine.low %v729_v46, %v733_v61 }
 0x34c   :  { %v565_v5 = vld [vmem:[#allocation2 + $0x638] sm:$0xff] }
 0x34d   :  { %6586 = vmatpush2.bf16.msra.mxu0 %v13544_v45  ;;  %v721_v6 = vld [vmem:[#allocation2 + $0xb18] sm:$0xff]  ;;  %v13497_v45 = vcombine.high %v561_v2, %v565_v5  ;;  %v13496_v63 = vcombine.low %v561_v2, %v565_v5 }
 0x34e   :  { %6619 = vmatpush1.bf16.msra.mxu1 %v13576_v14  ;;  %6587 = vmatprep.subr.bf16.mxu0 %v13537_v15  ;;  %v725_v10 = vld [vmem:[#allocation2 + $0xb38] sm:$0xff] }
 0x34f   :  { %6620 = vmatprep.subr.bf16.mxu1 %v13569_v16  ;;  %v13657_v14 = vcombine.high %v721_v6, %v725_v10  ;;  %v809_v15 = vld [vmem:[#allocation2 + $0xdd8] sm:$0xff]  ;;  %v13656_v21 = vcombine.low %v721_v6, %v725_v10 }
 0x350   :  { %v813_v16 = vld [vmem:[#allocation2 + $0xdf8] sm:$0xff] }
 0x351   :  { %6588 = vmatpush2.bf16.msra.mxu0 %v13536_v34  ;;  %v713_v17 = vld [vmem:[#allocation2 + $0xad8] sm:$0xff]  ;;  %v13745_v34 = vcombine.high %v809_v15, %v813_v16  ;;  %v13744_v9 = vcombine.low %v809_v15, %v813_v16 }
 0x352   :  { %6621 = vmatpush1.bf16.msra.mxu1 %v13568_v20  ;;  %6589 = vmatprep.subr.bf16.mxu0 %v13529_v33  ;;  %v717_v26 = vld [vmem:[#allocation2 + $0xaf8] sm:$0xff] }
 0x353   :  { %6622 = vmatprep.subr.bf16.mxu1 %v13561_v25  ;;  %v13649_v20 = vcombine.high %v713_v17, %v717_v26  ;;  %v801_v33 = vld [vmem:[#allocation2 + $0xd98] sm:$0xff]  ;;  %v13648_v41 = vcombine.low %v713_v17, %v717_v26 }
 0x354   :  { %v805_v25 = vld [vmem:[#allocation2 + $0xdb8] sm:$0xff] }
 0x355   :  { %6590 = vmatpush2.bf16.msra.mxu0 %v13528_v28  ;;  %v705_v38 = vld [vmem:[#allocation2 + $0xa98] sm:$0xff]  ;;  %v13737_v28 = vcombine.high %v801_v33, %v805_v25  ;;  %v13736_v35 = vcombine.low %v801_v33, %v805_v25 }
 0x356   :  { %6623 = vmatpush1.bf16.msra.mxu1 %v13560_v27  ;;  %6591 = vmatprep.subr.bf16.mxu0 %v13521_v48  ;;  %v709_v22 = vld [vmem:[#allocation2 + $0xab8] sm:$0xff] }
 0x357   :  { %6624 = vmatprep.subr.bf16.mxu1 %v13681_v51  ;;  %v13641_v27 = vcombine.high %v705_v38, %v709_v22  ;;  %v793_v48 = vld [vmem:[#allocation2 + $0xd58] sm:$0xff]  ;;  %v13640_v49 = vcombine.low %v705_v38, %v709_v22 }
 0x358   :  { %v797_v51 = vld [vmem:[#allocation2 + $0xd78] sm:$0xff] }
 0x359   :  { %6592 = vmatpush2.bf16.msra.mxu0 %v13520_v13  ;;  %v697_v54 = vld [vmem:[#allocation2 + $0xa58] sm:$0xff]  ;;  %v13729_v13 = vcombine.high %v793_v48, %v797_v51  ;;  %v13728_v46 = vcombine.low %v793_v48, %v797_v51 }
 0x35a   :  { %6625 = vmatpush2.bf16.msra.mxu1 %v13680_v30  ;;  %6593 = vmatprep.subr.bf16.mxu0 %v13513_v11  ;;  %v701_v36 = vld [vmem:[#allocation2 + $0xa78] sm:$0xff] }
 0x35b   :  { %6626 = vmatprep.subr.bf16.mxu1 %v13673_v58  ;;  %v13633_v30 = vcombine.high %v697_v54, %v701_v36  ;;  %v785_v11 = vld [vmem:[#allocation2 + $0xd18] sm:$0xff] }
 0x35c   :  { %v789_v58 = vld [vmem:[#allocation2 + $0xd38] sm:$0xff] }
 0x35d   :  { %6594 = vmatpush2.bf16.msra.mxu0 %v13512_v62  ;;  %v689_v23 = vld [vmem:[#allocation2 + $0xa18] sm:$0xff]  ;;  %v13721_v61 = vcombine.high %v785_v11, %v789_v58  ;;  %v13720_v2 = vcombine.low %v785_v11, %v789_v58 }
 0x35e   :  { %6627 = vmatpush2.bf16.msra.mxu1 %v13672_v0  ;;  %6595 = vmatprep.subr.bf16.mxu0 %v13505_v1  ;;  %v693_v60 = vld [vmem:[#allocation2 + $0xa38] sm:$0xff] }
 0x35f   :  { %6628 = vmatprep.subr.bf16.mxu1 %v13665_v40  ;;  %v13625_v62 = vcombine.high %v689_v23, %v693_v60  ;;  %v777_v0 = vld [vmem:[#allocation2 + $0xcd8] sm:$0xff]  ;;  %v13624_v5 = vcombine.low %v689_v23, %v693_v60 }
 0x360   :  { %v937_v1 = vld [vmem:[#allocation2 + $0x11d8] sm:$0xff] }
 0x361   :  { %6596 = vmatpush2.bf16.msra.mxu0 %v13504_v12  ;;  %v941_v40 = vld [vmem:[#allocation2 + $0x11f8] sm:$0xff] }
 0x362   :  { %6629 = vmatpush2.bf16.msra.mxu1 %v13664_v59  ;;  %6597 = vmatprep.subr.bf16.mxu0 %v13497_v45  ;;  %v13873_v10 = vcombine.high %v937_v1, %v941_v40  ;;  %v769_v12 = vld [vmem:[#allocation2 + $0xc98] sm:$0xff]  ;;  %v13872_v16 = vcombine.low %v937_v1, %v941_v40 }
 0x363   :  { %6630 = vmatprep.subr.bf16.mxu1 %v13657_v14  ;;  %v773_v59 = vld [vmem:[#allocation2 + $0xcb8] sm:$0xff] }
 0x364   :  { %v929_v45 = vld [vmem:[#allocation2 + $0x1198] sm:$0xff]  ;;  %v13705_v17 = vcombine.high %v769_v12, %v773_v59  ;;  %v13704_v22 = vcombine.low %v769_v12, %v773_v59 }
 0x365   :  { %6598 = vmatpush2.bf16.msra.mxu0 %v13496_v63  ;;  %v933_v14 = vld [vmem:[#allocation2 + $0x11b8] sm:$0xff] }
 0x366   :  { %6631 = vmatpush2.bf16.msra.mxu1 %v13656_v21  ;;  %6649 = vmatprep.subr.bf16.mxu0 %v13745_v34  ;;  %v13865_v26 = vcombine.high %v929_v45, %v933_v14  ;;  %v761_v63 = vld [vmem:[#allocation2 + $0xc58] sm:$0xff] }
 0x367   :  { %6632 = vmatprep.subr.bf16.mxu1 %v13649_v20  ;;  %v765_v21 = vld [vmem:[#allocation2 + $0xc78] sm:$0xff] }
 0x368   :  { %6600 = vmatmul.mubr.bf16.vlgmr.msra.gmra.mxu0 %v16126_v31  ;;  %v13632_v31 = vcombine.low %v697_v54, %v701_v36  ;;  %v921_v20 = vld [vmem:[#allocation2 + $0x1158] sm:$0xff]  ;;  %v13696_v11 = vcombine.low %v761_v63, %v765_v21 }
 0x369   :  { %6650 = vmatpush1.bf16.msra.mxu0 %v13744_v9  ;;  %6681 = vmatprep.mubr.bf16.mxu0 %v16131_v39  ;;  %v781_v39 = vld [vmem:[#allocation2 + $0xcf8] sm:$0xff] }
 0x36a   :  { %6633 = vmatpush2.bf16.msra.mxu1 %v13648_v41  ;;  %6651 = vmatprep.subr.bf16.mxu0 %v13737_v28  ;;  %v13713_v6 = vcombine.high %v777_v0, %v781_v39  ;;  %v13712_v15 = vcombine.low %v777_v0, %v781_v39  ;;  %v925_v33 = vld [vmem:[#allocation2 + $0x1178] sm:$0xff]  ;;  %v13864_v41 = vcombine.low %v929_v45, %v933_v14 }
 0x36b   :  { %6634 = vmatprep.subr.bf16.mxu1 %v13641_v27  ;;  %v13697_v28 = vcombine.high %v761_v63, %v765_v21  ;;  %v13857_v54 = vcombine.high %v921_v20, %v925_v33  ;;  %v753_v36 = vld [vmem:[#allocation2 + $0xc18] sm:$0xff]  ;;  %v13856_v23 = vcombine.low %v921_v20, %v925_v33 }
 0x36c   :  { %v849_v33 = vld [vmem:[#allocation2 + $0xf18] sm:$0xff] }
 0x36d   :  { %6652 = vmatpush1.bf16.msra.mxu0 %v13736_v35  ;;  %v757_v35 = vld [vmem:[#allocation2 + $0xc38] sm:$0xff] }
 0x36e   :  { %6635 = vmatpush2.bf16.msra.mxu1 %v13640_v49  ;;  %6653 = vmatprep.subr.bf16.mxu0 %v13729_v13  ;;  %v917_v49 = vld [vmem:[#allocation2 + $0x1138] sm:$0xff]  ;;  %v13688_v0 = vcombine.low %v753_v36, %v757_v35 }
 0x36f   :  { %6636 = vmatprep.subr.bf16.mxu1 %v13633_v30 }
 0x371   :  { %6654 = vmatpush1.bf16.msra.mxu0 %v13728_v46 }
 0x372   :  { %6637 = vmatpush2.bf16.msra.mxu1 %v13632_v31  ;;  %6655 = vmatprep.subr.bf16.mxu0 %v13721_v61  ;;  %v873_v31 = vld [vmem:[#allocation2 + $0xfd8] sm:$0xff] }
 0x373   :  { %6638 = vmatprep.subr.bf16.mxu1 %v13625_v62  ;;  %v877_v61 = vld [vmem:[#allocation2 + $0xff8] sm:$0xff] }
 0x374   :  { %v905_v62 = vld [vmem:[#allocation2 + $0x10d8] sm:$0xff]  ;;  %v13809_v1 = vcombine.high %v873_v31, %v877_v61  ;;  %v13808_v12 = vcombine.low %v873_v31, %v877_v61 }
 0x375   :  { %6656 = vmatpush1.bf16.msra.mxu0 %v13720_v2  ;;  %v865_v2 = vld [vmem:[#allocation2 + $0xf98] sm:$0xff] }
 0x376   :  { %6639 = vmatpush2.bf16.msra.mxu1 %v13624_v5  ;;  %6657 = vmatprep.subr.bf16.mxu0 %v13713_v6  ;;  %v869_v5 = vld [vmem:[#allocation2 + $0xfb8] sm:$0xff] }
 0x377   :  { %6690 = vmatprep.subr.bf16.mxu1 %v13873_v10  ;;  %v897_v6 = vld [vmem:[#allocation2 + $0x1098] sm:$0xff]  ;;  %v13801_v45 = vcombine.high %v865_v2, %v869_v5  ;;  %v13800_v63 = vcombine.low %v865_v2, %v869_v5 }
 0x378   :  { %v6355_v34 = vpop.f32.mrf.mxu0  ;;  %v901_v10 = vld [vmem:[#allocation2 + $0x10b8] sm:$0xff] }
 0x379   :  { %v6356_v25 = vadd.f32 %v6355_v34, %v16277_v18  ;;  %v6396_v38 = vpop.f32.mrf.mxu1  ;;  %6641 = vmatmul.mubr.bf16.vlgmr.msra.gmra.mxu1 %v16149_v47  ;;  %6658 = vmatpush1.bf16.msra.mxu0 %v13712_v15  ;;  %v913_v47 = vld [vmem:[#allocation2 + $0x1118] sm:$0xff]  ;;  %v13833_v14 = vcombine.high %v897_v6, %v901_v10  ;;  %v13832_v21 = vcombine.low %v897_v6, %v901_v10 }
 0x37a   :  { %6691 = vmatpush1.bf16.msra.mxu1 %v13872_v16  ;;  %v6357_v9 = vpop.f32.mrf.mxu0  ;;  %6659 = vmatprep.subr.bf16.mxu0 %v13705_v17  ;;  %v13849_v46 = vcombine.high %v913_v47, %v917_v49  ;;  %v13848_v39 = vcombine.low %v913_v47, %v917_v49  ;;  %v857_v15 = vld [vmem:[#allocation2 + $0xf58] sm:$0xff] }
 0x37b   :  { %v16286_v27 = vadd.f32 %v6396_v38, %v6356_v25  ;;  %v6358_v48 = vadd.f32 %v6357_v9, %v16280_v37  ;;  %v6398_v51 = vpop.f32.mrf.mxu1  ;;  %6692 = vmatprep.subr.bf16.mxu1 %v13865_v26  ;;  %6722 = vmatprep.mubr.bf16.mxu1 %v16152_v56  ;;  %v13689_v37 = vcombine.high %v753_v36, %v757_v35  ;;  %v909_v56 = vld [vmem:[#allocation2 + $0x10f8] sm:$0xff] }
 0x37c   :  { %v6359_v18 = vpop.f32.mrf.mxu0  ;;  %v13841_v40 = vcombine.high %v905_v62, %v909_v56  ;;  %v13840_v59 = vcombine.low %v905_v62, %v909_v56  ;;  %v861_v16 = vld [vmem:[#allocation2 + $0xf78] sm:$0xff] }
 0x37d   :  { %v16290_v13 = vadd.f32 %v6398_v51, %v6358_v48  ;;  %v6400_v30 = vpop.f32.mrf.mxu1  ;;  %6660 = vmatpush1.bf16.msra.mxu0 %v13704_v22  ;;  %v889_v17 = vld [vmem:[#allocation2 + $0x1058] sm:$0xff]  ;;  %v13793_v34 = vcombine.high %v857_v15, %v861_v16  ;;  %v13792_v9 = vcombine.low %v857_v15, %v861_v16 }
 0x37e   :  { %6693 = vmatpush1.bf16.msra.mxu1 %v13864_v41  ;;  %v6360_v58 = vpop.f32.mrf.mxu0  ;;  %6661 = vmatprep.subr.bf16.mxu0 %v13697_v28  ;;  %v893_v26 = vld [vmem:[#allocation2 + $0x1078] sm:$0xff] }
 0x37f   :  { %v6401_v60 = vpop.f32.mrf.mxu1  ;;  %6694 = vmatprep.subr.bf16.mxu1 %v13857_v54  ;;  %v13825_v20 = vcombine.high %v889_v17, %v893_v26  ;;  %v853_v25 = vld [vmem:[#allocation2 + $0xf38] sm:$0xff]  ;;  %v13824_v41 = vcombine.low %v889_v17, %v893_v26 }
 0x380   :  { %v881_v38 = vld [vmem:[#allocation2 + $0x1018] sm:$0xff]  ;;  %v13785_v28 = vcombine.high %v849_v33, %v853_v25  ;;  %v13784_v18 = vcombine.low %v849_v33, %v853_v25 }
 0x381   :  { %6662 = vmatpush1.bf16.msra.mxu0 %v13696_v11  ;;  %v885_v22 = vld [vmem:[#allocation2 + $0x1038] sm:$0xff] }
 0x382   :  { %6695 = vmatpush1.bf16.msra.mxu1 %v13856_v23  ;;  %6663 = vmatprep.subr.bf16.mxu0 %v13689_v37  ;;  %v13817_v48 = vcombine.high %v881_v38, %v885_v22  ;;  %v841_v51 = vld [vmem:[#allocation2 + $0xed8] sm:$0xff]  ;;  %v13816_v47 = vcombine.low %v881_v38, %v885_v22 }
 0x383   :  { %6696 = vmatprep.subr.bf16.mxu1 %v13849_v46  ;;  %v845_v54 = vld [vmem:[#allocation2 + $0xef8] sm:$0xff] }
 0x384   :  { %v1001_v36 = vld [vmem:[#allocation2 + $0x13d8] sm:$0xff]  ;;  %v13777_v49 = vcombine.high %v841_v51, %v845_v54  ;;  %v13776_v60 = vcombine.low %v841_v51, %v845_v54 }
 0x385   :  { %6664 = vmatpush1.bf16.msra.mxu0 %v13688_v0  ;;  %v1005_v35 = vld [vmem:[#allocation2 + $0x13f8] sm:$0xff] }
 0x386   :  { %6697 = vmatpush1.bf16.msra.mxu1 %v13848_v39  ;;  %6665 = vmatprep.subr.bf16.mxu0 %v13809_v1  ;;  %v13937_v30 = vcombine.high %v1001_v36, %v1005_v35  ;;  %v833_v11 = vld [vmem:[#allocation2 + $0xe98] sm:$0xff]  ;;  %v13936_v46 = vcombine.low %v1001_v36, %v1005_v35 }
 0x387   :  { %6698 = vmatprep.subr.bf16.mxu1 %v13841_v40  ;;  %v837_v58 = vld [vmem:[#allocation2 + $0xeb8] sm:$0xff] }
 0x388   :  { %v993_v23 = vld [vmem:[#allocation2 + $0x1398] sm:$0xff]  ;;  %v13769_v31 = vcombine.high %v833_v11, %v837_v58  ;;  %v13768_v1 = vcombine.low %v833_v11, %v837_v58 }
 0x389   :  { %6666 = vmatpush2.bf16.msra.mxu0 %v13808_v12  ;;  %v997_v37 = vld [vmem:[#allocation2 + $0x13b8] sm:$0xff] }
 0x38a   :  { %6699 = vmatpush1.bf16.msra.mxu1 %v13840_v59  ;;  %6667 = vmatprep.subr.bf16.mxu0 %v13801_v45  ;;  %v13929_v61 = vcombine.high %v993_v23, %v997_v37  ;;  %v825_v62 = vld [vmem:[#allocation2 + $0xe58] sm:$0xff]  ;;  %v13928_v40 = vcombine.low %v993_v23, %v997_v37 }
 0x38b   :  { %6700 = vmatprep.subr.bf16.mxu1 %v13833_v14  ;;  %v829_v56 = vld [vmem:[#allocation2 + $0xe78] sm:$0xff] }
 0x38c   :  { %v985_v0 = vld [vmem:[#allocation2 + $0x1358] sm:$0xff]  ;;  %v13761_v2 = vcombine.high %v825_v62, %v829_v56  ;;  %v13760_v45 = vcombine.low %v825_v62, %v829_v56 }
 0x38d   :  { %6668 = vmatpush2.bf16.msra.mxu0 %v13800_v63  ;;  %v989_v39 = vld [vmem:[#allocation2 + $0x1378] sm:$0xff] }
 0x38e   :  { %6701 = vmatpush1.bf16.msra.mxu1 %v13832_v21  ;;  %6669 = vmatprep.subr.bf16.mxu0 %v13793_v34  ;;  %v13921_v5 = vcombine.high %v985_v0, %v989_v39  ;;  %v817_v6 = vld [vmem:[#allocation2 + $0xe18] sm:$0xff]  ;;  %v13920_v14 = vcombine.low %v985_v0, %v989_v39 }
 0x38f   :  { %6702 = vmatprep.subr.bf16.mxu1 %v13825_v20  ;;  %v821_v10 = vld [vmem:[#allocation2 + $0xe38] sm:$0xff] }
 0x390   :  { %v977_v12 = vld [vmem:[#allocation2 + $0x1318] sm:$0xff]  ;;  %v13753_v15 = vcombine.high %v817_v6, %v821_v10  ;;  %v13752_v34 = vcombine.low %v817_v6, %v821_v10 }
 0x391   :  { %6670 = vmatpush2.bf16.msra.mxu0 %v13792_v9  ;;  %v981_v59 = vld [vmem:[#allocation2 + $0x1338] sm:$0xff] }
 0x392   :  { %6703 = vmatpush1.bf16.msra.mxu1 %v13824_v41  ;;  %6671 = vmatprep.subr.bf16.mxu0 %v13785_v28  ;;  %v13913_v16 = vcombine.high %v977_v12, %v981_v59  ;;  %v1065_v17 = vld [vmem:[#allocation2 + $0x15d8] sm:$0xff]  ;;  %v13912_v20 = vcombine.low %v977_v12, %v981_v59 }
 0x393   :  { %6704 = vmatprep.subr.bf16.mxu1 %v13817_v48  ;;  %v1069_v26 = vld [vmem:[#allocation2 + $0x15f8] sm:$0xff] }
 0x394   :  { %v969_v63 = vld [vmem:[#allocation2 + $0x12d8] sm:$0xff]  ;;  %v14001_v33 = vcombine.high %v1065_v17, %v1069_v26  ;;  %v14000_v28 = vcombine.low %v1065_v17, %v1069_v26 }
 0x395   :  { %6672 = vmatpush2.bf16.msra.mxu0 %v13784_v18  ;;  %v973_v21 = vld [vmem:[#allocation2 + $0x12f8] sm:$0xff] }
 0x396   :  { %6705 = vmatpush1.bf16.msra.mxu1 %v13816_v47  ;;  %6673 = vmatprep.subr.bf16.mxu0 %v13777_v49  ;;  %v13905_v25 = vcombine.high %v969_v63, %v973_v21  ;;  %v1057_v38 = vld [vmem:[#allocation2 + $0x1598] sm:$0xff]  ;;  %v13904_v48 = vcombine.low %v969_v63, %v973_v21 }
 0x397   :  { %6706 = vmatprep.subr.bf16.mxu1 %v13937_v30  ;;  %v1061_v22 = vld [vmem:[#allocation2 + $0x15b8] sm:$0xff] }
 0x398   :  { %v961_v9 = vld [vmem:[#allocation2 + $0x1298] sm:$0xff]  ;;  %v13993_v51 = vcombine.high %v1057_v38, %v1061_v22  ;;  %v13992_v49 = vcombine.low %v1057_v38, %v1061_v22 }
 0x399   :  { %6674 = vmatpush2.bf16.msra.mxu0 %v13776_v60  ;;  %v965_v41 = vld [vmem:[#allocation2 + $0x12b8] sm:$0xff] }
 0x39a   :  { %6707 = vmatpush2.bf16.msra.mxu1 %v13936_v46  ;;  %6675 = vmatprep.subr.bf16.mxu0 %v13769_v31  ;;  %v13897_v54 = vcombine.high %v961_v9, %v965_v41  ;;  %v1049_v36 = vld [vmem:[#allocation2 + $0x1558] sm:$0xff]  ;;  %v13896_v30 = vcombine.low %v961_v9, %v965_v41 }
 0x39b   :  { %6708 = vmatprep.subr.bf16.mxu1 %v13929_v61  ;;  %v1053_v35 = vld [vmem:[#allocation2 + $0x1578] sm:$0xff] }
 0x39c   :  { %v953_v18 = vld [vmem:[#allocation2 + $0x1258] sm:$0xff]  ;;  %v13985_v11 = vcombine.high %v1049_v36, %v1053_v35  ;;  %v13984_v31 = vcombine.low %v1049_v36, %v1053_v35 }
 0x39d   :  { %6676 = vmatpush2.bf16.msra.mxu0 %v13768_v1  ;;  %v957_v47 = vld [vmem:[#allocation2 + $0x1278] sm:$0xff] }
 0x39e   :  { %6709 = vmatpush2.bf16.msra.mxu1 %v13928_v40  ;;  %6677 = vmatprep.subr.bf16.mxu0 %v13761_v2  ;;  %v13889_v58 = vcombine.high %v953_v18, %v957_v47  ;;  %v1041_v23 = vld [vmem:[#allocation2 + $0x1518] sm:$0xff] }
 0x39f   :  { %6710 = vmatprep.subr.bf16.mxu1 %v13921_v5  ;;  %v1045_v37 = vld [vmem:[#allocation2 + $0x1538] sm:$0xff] }
 0x3a0   :  { %v945_v60 = vld [vmem:[#allocation2 + $0x1218] sm:$0xff]  ;;  %v13977_v61 = vcombine.high %v1041_v23, %v1045_v37  ;;  %v13976_v1 = vcombine.low %v1041_v23, %v1045_v37 }
 0x3a1   :  { %6678 = vmatpush2.bf16.msra.mxu0 %v13760_v45  ;;  %v949_v46 = vld [vmem:[#allocation2 + $0x1238] sm:$0xff] }
 0x3a2   :  { %6711 = vmatpush2.bf16.msra.mxu1 %v13920_v14  ;;  %6679 = vmatprep.subr.bf16.mxu0 %v13753_v15  ;;  %v13881_v62 = vcombine.high %v945_v60, %v949_v46  ;;  %v1033_v56 = vld [vmem:[#allocation2 + $0x14d8] sm:$0xff]  ;;  %v13880_v40 = vcombine.low %v945_v60, %v949_v46 }
 0x3a3   :  { %6712 = vmatprep.subr.bf16.mxu1 %v13913_v16  ;;  %v1193_v0 = vld [vmem:[#allocation2 + $0x19d8] sm:$0xff] }
 0x3a4   :  { %v1197_v39 = vld [vmem:[#allocation2 + $0x19f8] sm:$0xff] }
 0x3a5   :  { %6680 = vmatpush2.bf16.msra.mxu0 %v13752_v34  ;;  %v14129_v5 = vcombine.high %v1193_v0, %v1197_v39  ;;  %v1025_v6 = vld [vmem:[#allocation2 + $0x1498] sm:$0xff]  ;;  %v14128_v14 = vcombine.low %v1193_v0, %v1197_v39 }
 0x3a6   :  { %6713 = vmatpush2.bf16.msra.mxu1 %v13912_v20  ;;  %6731 = vmatprep.subr.bf16.mxu0 %v14001_v33  ;;  %v1029_v10 = vld [vmem:[#allocation2 + $0x14b8] sm:$0xff] }
 0x3a7   :  { %6714 = vmatprep.subr.bf16.mxu1 %v13905_v25  ;;  %v1185_v12 = vld [vmem:[#allocation2 + $0x1998] sm:$0xff]  ;;  %v13961_v15 = vcombine.high %v1025_v6, %v1029_v10  ;;  %v13960_v25 = vcombine.low %v1025_v6, %v1029_v10 }
 0x3a8   :  { %6682 = vmatmul.mubr.bf16.vlgmr.msra.gmra.mxu0 %v16156_v57  ;;  %v13888_v57 = vcombine.low %v953_v18, %v957_v47  ;;  %v1189_v59 = vld [vmem:[#allocation2 + $0x19b8] sm:$0xff] }
 0x3a9   :  { %6732 = vmatpush1.bf16.msra.mxu0 %v14000_v28  ;;  %6763 = vmatprep.mubr.bf16.mxu0 %v16161_v3  ;;  %v1037_v3 = vld [vmem:[#allocation2 + $0x14f8] sm:$0xff]  ;;  %v14121_v16 = vcombine.high %v1185_v12, %v1189_v59  ;;  %v14120_v22 = vcombine.low %v1185_v12, %v1189_v59 }
 0x3aa   :  { %6715 = vmatpush2.bf16.msra.mxu1 %v13904_v48  ;;  %6733 = vmatprep.subr.bf16.mxu0 %v13993_v51  ;;  %v13969_v2 = vcombine.high %v1033_v56, %v1037_v3  ;;  %v13968_v45 = vcombine.low %v1033_v56, %v1037_v3  ;;  %v1017_v17 = vld [vmem:[#allocation2 + $0x1458] sm:$0xff] }
 0x3ab   :  { %6716 = vmatprep.subr.bf16.mxu1 %v13897_v54  ;;  %v1021_v26 = vld [vmem:[#allocation2 + $0x1478] sm:$0xff] }
 0x3ac   :  { %v1177_v21 = vld [vmem:[#allocation2 + $0x1958] sm:$0xff]  ;;  %v13953_v9 = vcombine.high %v1017_v17, %v1021_v26  ;;  %v13952_v18 = vcombine.low %v1017_v17, %v1021_v26 }
 0x3ad   :  { %6734 = vmatpush1.bf16.msra.mxu0 %v13992_v49  ;;  %v1181_v34 = vld [vmem:[#allocation2 + $0x1978] sm:$0xff] }
 0x3ae   :  { %6717 = vmatpush2.bf16.msra.mxu1 %v13896_v30  ;;  %6735 = vmatprep.subr.bf16.mxu0 %v13985_v11  ;;  %v14113_v48 = vcombine.high %v1177_v21, %v1181_v34  ;;  %v1009_v51 = vld [vmem:[#allocation2 + $0x1418] sm:$0xff]  ;;  %v14112_v49 = vcombine.low %v1177_v21, %v1181_v34  ;;  %v16310_v34 = vadd.f32 %v16233_v19, %v16226_v53 }
 0x3af   :  { %6718 = vmatprep.subr.bf16.mxu1 %v13889_v58  ;;  %v1013_v54 = vld [vmem:[#allocation2 + $0x1438] sm:$0xff] }
 0x3b0   :  { %v1173_v36 = vld [vmem:[#allocation2 + $0x1938] sm:$0xff]  ;;  %v13945_v30 = vcombine.high %v1009_v51, %v1013_v54  ;;  %19489 = vst [vmem:[#allocation27_spill] sm:$0xff] %v16310_v34  ;;  %v6823_v53 = vsel %vm6815_vm1, %v16310_v34, 0.0 }
 0x3b1   :  { %6736 = vmatpush1.bf16.msra.mxu0 %v13984_v31  ;;  %v1129_v23 = vld [vmem:[#allocation2 + $0x17d8] sm:$0xff] }
 0x3b2   :  { %6719 = vmatpush2.bf16.msra.mxu1 %v13888_v57  ;;  %6737 = vmatprep.subr.bf16.mxu0 %v13977_v61  ;;  %v1133_v37 = vld [vmem:[#allocation2 + $0x17f8] sm:$0xff] }
 0x3b3   :  { %6720 = vmatprep.subr.bf16.mxu1 %v13881_v62  ;;  %v1161_v60 = vld [vmem:[#allocation2 + $0x18d8] sm:$0xff]  ;;  %v14065_v57 = vcombine.high %v1129_v23, %v1133_v37  ;;  %v14064_v39 = vcombine.low %v1129_v23, %v1133_v37 }
 0x3b4   :  { %v1165_v46 = vld [vmem:[#allocation2 + $0x18f8] sm:$0xff] }
 0x3b5   :  { %6738 = vmatpush1.bf16.msra.mxu0 %v13976_v1  ;;  %v14097_v61 = vcombine.high %v1161_v60, %v1165_v46  ;;  %v1121_v62 = vld [vmem:[#allocation2 + $0x1798] sm:$0xff]  ;;  %v6112_v1 = vadd.f32 %v16254_v55, %v16249_v50 }
 0x3b6   :  { %6721 = vmatpush2.bf16.msra.mxu1 %v13880_v40  ;;  %6739 = vmatprep.subr.bf16.mxu0 %v13969_v2  ;;  %v1125_v56 = vld [vmem:[#allocation2 + $0x17b8] sm:$0xff]  ;;  %v14096_v40 = vcombine.low %v1161_v60, %v1165_v46 }
 0x3b7   :  { %6772 = vmatprep.subr.bf16.mxu1 %v14129_v5  ;;  %v1153_v3 = vld [vmem:[#allocation2 + $0x1898] sm:$0xff]  ;;  %v14057_v2 = vcombine.high %v1121_v62, %v1125_v56  ;;  %v6153_v12 = vadd.f32 %v16260_v52, %v6112_v1 }
 0x3b8   :  { %v6437_v63 = vpop.f32.mrf.mxu0  ;;  %v1157_v0 = vld [vmem:[#allocation2 + $0x18b8] sm:$0xff] }
 0x3b9   :  { %v6438_v20 = vadd.f32 %v6437_v63, %v16286_v27  ;;  %v6478_v33 = vpop.f32.mrf.mxu1  ;;  %6723 = vmatmul.mubr.bf16.vlgmr.msra.gmra.mxu1 %v16173_v24  ;;  %6740 = vmatpush1.bf16.msra.mxu0 %v13968_v45  ;;  %v1169_v27 = vld [vmem:[#allocation2 + $0x1918] sm:$0xff]  ;;  %v14089_v5 = vcombine.high %v1153_v3, %v1157_v0 }
 0x3ba   :  { %6773 = vmatpush1.bf16.msra.mxu1 %v14128_v14  ;;  %v16296_v38 = vpop.f32.mrf.mxu0  ;;  %6741 = vmatprep.subr.bf16.mxu0 %v13961_v15  ;;  %v14105_v58 = vcombine.high %v1169_v27, %v1173_v36  ;;  %v14104_v31 = vcombine.low %v1169_v27, %v1173_v36  ;;  %v1113_v6 = vld [vmem:[#allocation2 + $0x1758] sm:$0xff]  ;;  %v14056_v14 = vcombine.low %v1121_v62, %v1125_v56 }
 0x3bb   :  { %v16298_v41 = vadd.f32 %v6478_v33, %v6438_v20  ;;  %v16300_v28 = vpop.f32.mrf.mxu1  ;;  %6774 = vmatprep.subr.bf16.mxu1 %v14121_v16  ;;  %14165 = vmatprep.mubr.msk.bf16.mxu1 %vm5661_vm0, %v16182_v42  ;;  %v13944_v42 = vcombine.low %v1009_v51, %v1013_v54  ;;  %v1117_v10 = vld [vmem:[#allocation2 + $0x1778] sm:$0xff]  ;;  %v6194_v15 = vadd.f32 %v16265_v4, %v6153_v12 }
 0x3bc   :  { %v6441_v24 = vpop.f32.mrf.mxu0  ;;  %v1145_v59 = vld [vmem:[#allocation2 + $0x1858] sm:$0xff]  ;;  %v14088_v16 = vcombine.low %v1153_v3, %v1157_v0  ;;  %v14049_v50 = vcombine.high %v1113_v6, %v1117_v10  ;;  %v14048_v52 = vcombine.low %v1113_v6, %v1117_v10 }
 0x3bd   :  { %v6482_v35 = vpop.f32.mrf.mxu1  ;;  %6742 = vmatpush1.bf16.msra.mxu0 %v13960_v25  ;;  %v1149_v45 = vld [vmem:[#allocation2 + $0x1878] sm:$0xff]  ;;  %v16313_v20 = vadd.f32 %v16269_v8, %v6194_v15 }
 0x3be   :  { %6775 = vmatpush1.bf16.msra.mxu1 %v14120_v22  ;;  %v6442_v47 = vpop.f32.mrf.mxu0  ;;  %6743 = vmatprep.subr.bf16.mxu0 %v13953_v9  ;;  %v14081_v55 = vcombine.high %v1145_v59, %v1149_v45  ;;  %v1105_v17 = vld [vmem:[#allocation2 + $0x1718] sm:$0xff]  ;;  %v14080_v4 = vcombine.low %v1145_v59, %v1149_v45 }
 0x3bf   :  { %v6483_v11 = vpop.f32.mrf.mxu1  ;;  %6776 = vmatprep.subr.bf16.mxu1 %v14113_v48  ;;  %v1109_v26 = vld [vmem:[#allocation2 + $0x1738] sm:$0xff]  ;;  %19490 = vst [vmem:[#allocation28_spill] sm:$0xff] %v16313_v20  ;;  %v6837_v8 = vsel %vm6815_vm1, %v16313_v20, 0.0 }
 0x3c0   :  { %v1137_v63 = vld [vmem:[#allocation2 + $0x1818] sm:$0xff]  ;;  %v14041_v33 = vcombine.high %v1105_v17, %v1109_v26  ;;  %v14040_v19 = vcombine.low %v1105_v17, %v1109_v26 }
 0x3c1   :  { %6744 = vmatpush1.bf16.msra.mxu0 %v13952_v18  ;;  %v1141_v21 = vld [vmem:[#allocation2 + $0x1838] sm:$0xff]  ;;  %v6824_v18 = vrot.slane %v6823_v53, 4 }
 0x3c2   :  { %6777 = vmatpush1.bf16.msra.mxu1 %v14112_v49  ;;  %6745 = vmatprep.subr.bf16.mxu0 %v13945_v30  ;;  %v14073_v25 = vcombine.high %v1137_v63, %v1141_v21  ;;  %v1097_v22 = vld [vmem:[#allocation2 + $0x16d8] sm:$0xff]  ;;  %v14072_v54 = vcombine.low %v1137_v63, %v1141_v21  ;;  %v6838_v30 = vrot.slane %v6837_v8, 4 }
 0x3c3   :  { %6778 = vmatprep.subr.bf16.mxu1 %v14105_v58  ;;  %v1101_v9 = vld [vmem:[#allocation2 + $0x16f8] sm:$0xff] }
 0x3c4   :  { %v1225_v48 = vld [vmem:[#allocation2 + $0x1ad8] sm:$0xff]  ;;  %v14033_v24 = vcombine.high %v1097_v22, %v1101_v9  ;;  %v14032_v11 = vcombine.low %v1097_v22, %v1101_v9  ;;  %v16349_v22 = vld [vmem:[%s19239_s4 + $0xf0] sm:$0xff] }
 0x3c5   :  { %6746 = vmatpush1.bf16.msra.mxu0 %v13944_v42  ;;  %v1229_v51 = vld [vmem:[#allocation2 + $0x1af8] sm:$0xff]  ;;  %v6825_v42 = vadd.f32 %v6824_v18, %v6823_v53  ;;  %v16383_v53 = vld [vmem:[%s19239_s4 + $0x68] sm:$0xff]  ;;  %v16417_v18 = vld [vmem:[%s19239_s4 + $0x160] sm:$0xff] }
 0x3c6   :  { %6779 = vmatpush1.bf16.msra.mxu1 %v14104_v31  ;;  %6747 = vmatprep.subr.bf16.mxu0 %v14065_v57  ;;  %v14161_v27 = vcombine.high %v1225_v48, %v1229_v51  ;;  %v1089_v36 = vld [vmem:[#allocation2 + $0x1698] sm:$0xff]  ;;  %v14160_v58 = vcombine.low %v1225_v48, %v1229_v51  ;;  %v16356_v48 = vld [vmem:[%s19239_s4 + $0x1f0] sm:$0xff]  ;;  %v16378_v51 = vld [vmem:[%s19239_s4 + $0x1e8] sm:$0xff] }
 0x3c7   :  { %6780 = vmatprep.subr.bf16.mxu1 %v14097_v61  ;;  %v1093_v35 = vld [vmem:[#allocation2 + $0x16b8] sm:$0xff]  ;;  %v6839_v61 = vadd.f32 %v6838_v30, %v6837_v8 }
 0x3c8   :  { %v1217_v47 = vld [vmem:[#allocation2 + $0x1a98] sm:$0xff]  ;;  %v14025_v23 = vcombine.high %v1089_v36, %v1093_v35  ;;  %v14024_v62 = vcombine.low %v1089_v36, %v1093_v35 }
 0x3c9   :  { %6748 = vmatpush2.bf16.msra.mxu0 %v14064_v39  ;;  %v1221_v49 = vld [vmem:[#allocation2 + $0x1ab8] sm:$0xff]  ;;  %v6840_v10 = vrot.slane %v6839_v61, 2 }
 0x3ca   :  { %6781 = vmatpush1.bf16.msra.mxu1 %v14096_v40  ;;  %6749 = vmatprep.subr.bf16.mxu0 %v14057_v2  ;;  %v14153_v37 = vcombine.high %v1217_v47, %v1221_v49  ;;  %v1081_v60 = vld [vmem:[#allocation2 + $0x1658] sm:$0xff]  ;;  %v14152_v56 = vcombine.low %v1217_v47, %v1221_v49 }
 0x3cb   :  { %6782 = vmatprep.subr.bf16.mxu1 %v14089_v5  ;;  %v1085_v46 = vld [vmem:[#allocation2 + $0x1678] sm:$0xff]  ;;  %v6826_v5 = vrot.slane %v6825_v42, 2 }
 0x3cc   :  { %v1209_v31 = vld [vmem:[#allocation2 + $0x1a58] sm:$0xff]  ;;  %v14017_v3 = vcombine.high %v1081_v60, %v1085_v46  ;;  %v14016_v6 = vcombine.low %v1081_v60, %v1085_v46  ;;  %v16457_v60 = vld [vmem:[%s19239_s4 + $0x1d0] sm:$0xff] }
 0x3cd   :  { %6750 = vmatpush2.bf16.msra.mxu0 %v14056_v14  ;;  %v1213_v57 = vld [vmem:[#allocation2 + $0x1a78] sm:$0xff]  ;;  %v6827_v14 = vadd.f32 %v6826_v5, %v6825_v42  ;;  %v16462_v46 = vld [vmem:[%s19239_s4 + $0x50] sm:$0xff]  ;;  %v16519_v5 = vld [vmem:[%s19239_s4 + $0x140] sm:$0xff] }
 0x3ce   :  { %6783 = vmatpush1.bf16.msra.mxu1 %v14088_v16  ;;  %6751 = vmatprep.subr.bf16.mxu0 %v14049_v50  ;;  %v14145_v0 = vcombine.high %v1209_v31, %v1213_v57  ;;  %v1073_v39 = vld [vmem:[#allocation2 + $0x1618] sm:$0xff]  ;;  %v14144_v12 = vcombine.low %v1209_v31, %v1213_v57  ;;  %v6841_v16 = vadd.f32 %v6840_v10, %v6839_v61  ;;  %v16471_v31 = vld [vmem:[%s19239_s4 + $0x150] sm:$0xff]  ;;  %v16476_v57 = vld [vmem:[%s19239_s4 + $0xc8] sm:$0xff] }
 0x3cf   :  { %6784 = vmatprep.subr.bf16.mxu1 %v14081_v55  ;;  %v1077_v1 = vld [vmem:[#allocation2 + $0x1638] sm:$0xff]  ;;  %v6828_v26 = vrot.slane %v6827_v14, 1 }
 0x3d0   :  { %v1201_v40 = vld [vmem:[#allocation2 + $0x1a18] sm:$0xff]  ;;  %v14009_v59 = vcombine.high %v1073_v39, %v1077_v1  ;;  %v14008_v15 = vcombine.low %v1073_v39, %v1077_v1  ;;  %v6842_v63 = vrot.slane %v6841_v16, 1  ;;  %v16500_v39 = vld [vmem:[%s19239_s4 + $0xc0] sm:$0xff] }
 0x3d1   :  { %6752 = vmatpush2.bf16.msra.mxu0 %v14048_v52  ;;  %v1205_v2 = vld [vmem:[#allocation2 + $0x1a38] sm:$0xff] }
 0x3d2   :  { %6785 = vmatpush1.bf16.msra.mxu1 %v14080_v4  ;;  %6753 = vmatprep.subr.bf16.mxu0 %v14041_v33  ;;  %v14137_v45 = vcombine.high %v1201_v40, %v1205_v2  ;;  %v14136_v50 = vcombine.low %v1201_v40, %v1205_v2  ;;  %v16322_v55 = vld [vmem:[%s19239_s4 + $0xf8] sm:$0xff]  ;;  %v6440_v4 = vadd.f32 %v16296_v38, %v16290_v13  ;;  %v16372_v38 = vld [vmem:[%s19239_s4 + $0xe8] sm:$0xff]  ;;  %v16507_v40 = vld [vmem:[%s19239_s4 + $0x1c0] sm:$0xff] }
 0x3d3   :  { %6786 = vmatprep.subr.bf16.mxu1 %v14073_v25  ;;  %v16327_v17 = vld [vmem:[%s19239_s4 + $0x1f8] sm:$0xff]  ;;  %v6829_v25 = vadd.f32 %v6828_v26, %v6827_v14  ;;  %v6843_v9 = vadd.f32 %v6842_v63, %v6841_v16  ;;  %v16512_v2 = vld [vmem:[%s19239_s4 + $0x40] sm:$0xff]  ;;  %v16557_v26 = vld [vmem:[%s19239_s4 + $0x1b0] sm:$0xff] }
 0x3d4   :  { %v16333_v21 = vld [vmem:[%s19239_s4 + $0x78] sm:$0xff]  ;;  %v16562_v63 = vld [vmem:[%s19239_s4 + $0x30] sm:$0xff] }
 0x3d5   :  { %6754 = vmatpush2.bf16.msra.mxu0 %v14040_v19  ;;  %v16339_v52 = vld [vmem:[%s19239_s4 + $0x178] sm:$0xff]  ;;  %v6481_v19 = vadd.f32 %v16300_v28, %v6440_v4  ;;  %v16403_v28 = vld [vmem:[%s19239_s4 + $0x1e0] sm:$0xff]  ;;  %v16569_v4 = vld [vmem:[%s19239_s4 + $0x130] sm:$0xff] }
 0x3d6   :  { %6787 = vmatpush1.bf16.msra.mxu1 %v14072_v54  ;;  %6755 = vmatprep.subr.bf16.mxu0 %v14033_v24  ;;  %v16391_v54 = vld [vmem:[%s19239_s4 + $0x168] sm:$0xff]  ;;  %v16396_v24 = vld [vmem:[%s19239_s4 + $0xe0] sm:$0xff]  ;;  %v16422_v47 = vld [vmem:[%s19239_s4 + $0xd8] sm:$0xff] }
 0x3d7   :  { %6796 = vmatprep.subr.bf16.mxu1 %v14161_v27  ;;  %v16408_v27 = vld [vmem:[%s19239_s4 + $0x60] sm:$0xff]  ;;  %v16429_v49 = vld [vmem:[%s19239_s4 + $0x1d8] sm:$0xff] }
 0x3d8   :  { %v16434_v30 = vld [vmem:[%s19239_s4 + $0x58] sm:$0xff] }
 0x3d9   :  { %6756 = vmatpush2.bf16.msra.mxu0 %v14032_v11  ;;  %v6816_v11 = vsel %vm6815_vm1, %v16230_v43, 0.0  ;;  %v16543_v14 = vld [vmem:[%s19239_s4 + $0x138] sm:$0xff] }
 0x3da   :  { %6797 = vmatpush2.bf16.msra.mxu1 %v14160_v58  ;;  %6757 = vmatprep.subr.bf16.mxu0 %v14025_v23  ;;  %v16443_v58 = vld [vmem:[%s19239_s4 + $0x158] sm:$0xff]  ;;  %v16448_v23 = vld [vmem:[%s19239_s4 + $0xd0] sm:$0xff]  ;;  %v6817_v61 = vrot.slane %v6816_v11, 4 }
 0x3db   :  { %6798 = vmatprep.subr.bf16.mxu1 %v14153_v37  ;;  %v6830_v37 = vsel %vm6815_vm1, %v16267_v7, 0.0  ;;  %v16631_v7 = vld [vmem:[%s19239_s4 + $0x198] sm:$0xff] }
 0x3dc   :  { %v6818_v10 = vadd.f32 %v6817_v61, %v6816_v11  ;;  %v16595_v11 = vld [vmem:[%s19239_s4 + $0x128] sm:$0xff]  ;;  %v16607_v61 = vld [vmem:[%s19239_s4 + $0x1a0] sm:$0xff]  ;;  %19499 = vst [vmem:[#allocation37_spill] sm:$0xff] %v16631_v7  ;;  %v16636_v43 = vld [vmem:[%s19239_s4 + $0x18] sm:$0xff] }
 0x3dd   :  { %6758 = vmatpush2.bf16.msra.mxu0 %v14024_v62  ;;  %v16483_v62 = vld [vmem:[%s19239_s4 + $0x1c8] sm:$0xff]  ;;  %19493 = vst [vmem:[#allocation31_spill] sm:$0xff] %v16595_v11  ;;  %19495 = vst [vmem:[#allocation33_spill] sm:$0xff] %v16607_v61 }
 0x3de   :  { %6799 = vmatpush2.bf16.msra.mxu1 %v14152_v56  ;;  %6759 = vmatprep.subr.bf16.mxu0 %v14017_v3  ;;  %v16488_v56 = vld [vmem:[%s19239_s4 + $0x48] sm:$0xff]  ;;  %v6831_v3 = vrot.slane %v6830_v37, 4  ;;  %19500 = vst [vmem:[#allocation38_spill] sm:$0xff] %v16636_v43 }
 0x3df   :  { %6800 = vmatprep.subr.bf16.mxu1 %v14145_v0  ;;  %v16495_v0 = vld [vmem:[%s19239_s4 + $0x148] sm:$0xff] }
 0x3e1   :  { %6760 = vmatpush2.bf16.msra.mxu0 %v14016_v6  ;;  %v16524_v6 = vld [vmem:[%s19239_s4 + $0xb8] sm:$0xff] }
 0x3e2   :  { %6801 = vmatpush2.bf16.msra.mxu1 %v14144_v12  ;;  %6761 = vmatprep.subr.bf16.mxu0 %v14009_v59  ;;  %v16531_v12 = vld [vmem:[%s19239_s4 + $0x1b8] sm:$0xff] }
 0x3e3   :  { %6802 = vmatprep.subr.bf16.mxu1 %v14137_v45  ;;  %v16536_v59 = vld [vmem:[%s19239_s4 + $0x38] sm:$0xff]  ;;  %v6832_v45 = vadd.f32 %v6831_v3, %v6830_v37  ;;  %v16600_v37 = vld [vmem:[%s19239_s4 + $0xa0] sm:$0xff] }
 0x3e4   :  { %19494 = vst [vmem:[#allocation32_spill] sm:$0xff] %v16600_v37  ;;  %v16612_v3 = vld [vmem:[%s19239_s4 + $0x20] sm:$0xff] }
 0x3e5   :  { %6762 = vmatpush2.bf16.msra.mxu0 %v14008_v15  ;;  %v16548_v15 = vld [vmem:[%s19239_s4 + $0xb0] sm:$0xff]  ;;  %19496 = vst [vmem:[#allocation34_spill] sm:$0xff] %v16612_v3 }
 0x3e6   :  { %6803 = vmatpush2.bf16.msra.mxu1 %v14136_v50  ;;  %14452 = vmatprep.subr.mxu0 %v16322_v55 }
 0x3e7   :  { %14487 = vmatprep.subr.mxu1 %v16327_v17 }
 0x3e8   :  { %v16343_v33 = vpop.f32.mrf.mxu0  ;;  %6764 = vmatmul.mubr.bf16.vlgmr.msra.gmra.mxu0 %v16179_v32  ;;  %v16361_v32 = vld [vmem:[%s19239_s4 + $0x70] sm:$0xff] }
 0x3e9   :  { %6805 = vmatmul.mubr.bf16.vlgmr.msra.gmra.mxu1 %v16191_v29  ;;  %14453 = vmatpush3.msra.mxu0 %v16333_v21  ;;  %v16367_v29 = vld [vmem:[%s19239_s4 + $0x170] sm:$0xff] }
 0x3ea   :  { %6936 = vmatprep.mubr.f32.mxu0 %v6829_v25  ;;  %14488 = vmatpush3.msra.mxu1 %v16339_v52  ;;  %v6521_v13 = vpop.f32.mrf.mxu0  ;;  %v16574_v25 = vld [vmem:[%s19239_s4 + $0xa8] sm:$0xff] }
 0x3eb   :  { %7006 = vmatprep.mubr.f32.mxu1 %v6843_v9  ;;  %14454 = vmatprep.subr.mxu0 %v16349_v22  ;;  %v16410_v36 = vadd.f32 %v6521_v13, %v6481_v19  ;;  %v6819_v9 = vrot.slane %v6818_v10, 2  ;;  %v16583_v19 = vld [vmem:[%s19239_s4 + $0x1a8] sm:$0xff] }
 0x3ec   :  { %14489 = vmatprep.subr.mxu1 %v16356_v48  ;;  %14455 = vmatpush3.msra.mxu0 %v16361_v32  ;;  %v6523_v8 = vpop.f32.mrf.mxu0 }
 0x3ed   :  { %14490 = vmatpush3.msra.mxu1 %v16367_v29  ;;  %14456 = vmatprep.subr.mxu0 %v16372_v38  ;;  %19491 = vst [vmem:[#allocation29_spill] sm:$0xff] %v16410_v36  ;;  %v6851_v42 = vsel %vm6815_vm1, %v16410_v36, 0.0  ;;  %v16588_v8 = vld [vmem:[%s19239_s4 + $0x28] sm:$0xff]  ;;  %v16624_v36 = vld [vmem:[%s19239_s4 + $0x98] sm:$0xff]  ;;  %v6820_v20 = vadd.f32 %v6819_v9, %v6818_v10  ;;  %v16648_v10 = vld [vmem:[%s19239_s4 + $0x90] sm:$0xff] }
 0x3ee   :  { %14491 = vmatprep.subr.mxu1 %v16378_v51  ;;  %14457 = vmatpush3.msra.mxu0 %v16383_v53  ;;  %v6524_v35 = vpop.f32.mrf.mxu0  ;;  %v6852_v1 = vrot.slane %v6851_v42, 4  ;;  %19492 = vst [vmem:[#allocation30_spill] sm:$0xff] %v16588_v8  ;;  %19498 = vst [vmem:[#allocation36_spill] sm:$0xff] %v16624_v36  ;;  %v16660_v9 = vld [vmem:[%s19239_s4 + $0x10] sm:$0xff] }
 0x3ef   :  { %14492 = vmatpush3.msra.mxu1 %v16391_v54  ;;  %14458 = vmatprep.subr.mxu0 %v16396_v24  ;;  %v6833_v35 = vrot.slane %v6832_v45, 2  ;;  %19502 = vst [vmem:[#allocation40_spill] sm:$0xff] %v16648_v10  ;;  %19504 = vst [vmem:[#allocation42_spill] sm:$0xff] %v16660_v9 }
 0x3f0   :  { %14493 = vmatprep.subr.mxu1 %v16403_v28  ;;  %14459 = vmatpush3.msra.mxu0 %v16408_v27  ;;  %v6853_v16 = vadd.f32 %v6852_v1, %v6851_v42 }
 0x3f1   :  { %14494 = vmatpush3.msra.mxu1 %v16417_v18  ;;  %14460 = vmatprep.subr.mxu0 %v16422_v47  ;;  %v6834_v44 = vadd.f32 %v6833_v35, %v6832_v45  ;;  %v16655_v45 = vld [vmem:[%s19239_s4 + $0x190] sm:$0xff] }
 0x3f2   :  { %14495 = vmatprep.subr.mxu1 %v16429_v49  ;;  %14461 = vmatpush3.msra.mxu0 %v16434_v30  ;;  %v6854_v1 = vrot.slane %v6853_v16, 2  ;;  %19503 = vst [vmem:[#allocation41_spill] sm:$0xff] %v16655_v45 }
 0x3f3   :  { %14496 = vmatpush3.msra.mxu1 %v16443_v58  ;;  %14462 = vmatprep.subr.mxu0 %v16448_v23 }
 0x3f4   :  { %14497 = vmatprep.subr.mxu1 %v16457_v60  ;;  %14463 = vmatpush3.msra.mxu0 %v16462_v46  ;;  %v6855_v35 = vadd.f32 %v6854_v1, %v6853_v16  ;;  %v16679_v16 = vld [vmem:[%s19239_s4 + $0x188] sm:$0xff] }
 0x3f5   :  { %14498 = vmatpush3.msra.mxu1 %v16471_v31  ;;  %14464 = vmatprep.subr.mxu0 %v16476_v57  ;;  %19507 = vst [vmem:[#allocation45_spill] sm:$0xff] %v16679_v16  ;;  %v16684_v1 = vld [vmem:[%s19239_s4 + $0x8] sm:$0xff] }
 0x3f6   :  { %14499 = vmatprep.subr.mxu1 %v16483_v62  ;;  %14465 = vmatpush3.msra.mxu0 %v16488_v56  ;;  %19508 = vst [vmem:[#allocation46_spill] sm:$0xff] %v16684_v1 }
 0x3f7   :  { %14500 = vmatpush3.msra.mxu1 %v16495_v0  ;;  %14466 = vmatprep.subr.mxu0 %v16500_v39 }
 0x3f8   :  { %14501 = vmatprep.subr.mxu1 %v16507_v40  ;;  %14467 = vmatpush3.msra.mxu0 %v16512_v2 }
 0x3f9   :  { %14502 = vmatpush3.msra.mxu1 %v16519_v5  ;;  %v16551_v50 = vpop.f32.mrf.mxu1  ;;  %14468 = vmatprep.subr.mxu0 %v16524_v6 }
 0x3fa   :  { %14503 = vmatprep.subr.mxu1 %v16531_v12  ;;  %14469 = vmatpush3.msra.mxu0 %v16536_v59 }
 0x3fb   :  { %14504 = vmatpush3.msra.mxu1 %v16543_v14  ;;  %v16577_v13 = vpop.f32.mrf.mxu1  ;;  %14470 = vmatprep.subr.mxu0 %v16548_v15 }
 0x3fc   :  { %14505 = vmatprep.subr.mxu1 %v16557_v26  ;;  %14471 = vmatpush3.msra.mxu0 %v16562_v63 }
 0x3fd   :  { %14506 = vmatpush3.msra.mxu1 %v16569_v4  ;;  %v6564_v42 = vpop.f32.mrf.mxu1  ;;  %14472 = vmatprep.subr.mxu0 %v16574_v25 }
 0x3fe   :  { %14507 = vmatprep.subr.mxu1 %v16583_v19  ;;  %14473 = vmatpush3.msra.mxu0 %v16588_v8  ;;  %v16619_v42 = vld [vmem:[%s19239_s4 + $0x120] sm:$0xff] }
 0x3ff   :  { %19497 = vst [vmem:[#allocation35_spill] sm:$0xff] %v16619_v42  ;;  %14508 = vmatpush3.msra.mxu1 %v16595_v11  ;;  %v6565_v34 = vpop.f32.mrf.mxu1  ;;  %14474 = vmatprep.subr.mxu0 %v16600_v37 }
 0x400   :  { %14509 = vmatprep.subr.mxu1 %v16607_v61  ;;  %14475 = vmatpush3.msra.mxu0 %v16612_v3  ;;  %v16643_v34 = vld [vmem:[%s19239_s4 + $0x118] sm:$0xff]  ;;  %v6856_v3 = vrot.slane %v6855_v35, 1 }
 0x401   :  { %19501 = vst [vmem:[#allocation39_spill] sm:$0xff] %v16643_v34  ;;  %14510 = vmatpush3.msra.mxu1 %v16619_v42  ;;  %14476 = vmatprep.subr.mxu0 %v16624_v36  ;;  %v16667_v42 = vld [vmem:[%s19239_s4 + $0x110] sm:$0xff]  ;;  %v16672_v36 = vld [vmem:[%s19239_s4 + $0x88] sm:$0xff]  ;;  %v16722_v61 = vld [vmem:[%s19239_s4 + $0x2f8] sm:$0xff] }
 0x402   :  { %14511 = vmatprep.subr.mxu1 %v16631_v7  ;;  %14477 = vmatpush3.msra.mxu0 %v16636_v43  ;;  %19505 = vst [vmem:[#allocation43_spill] sm:$0xff] %v16667_v42  ;;  %19506 = vst [vmem:[#allocation44_spill] sm:$0xff] %v16672_v36  ;;  %v6821_v43 = vrot.slane %v6820_v20, 1  ;;  %v6835_v7 = vrot.slane %v6834_v44, 1 }
 0x403   :  { %14512 = vmatpush3.msra.mxu1 %v16643_v34  ;;  %14478 = vmatprep.subr.mxu0 %v16648_v10  ;;  %v16691_v34 = vld [vmem:[%s19239_s4 + $0x108] sm:$0xff]  ;;  %v16696_v10 = vld [vmem:[%s19239_s4 + $0x80] sm:$0xff]  ;;  %19514 = vst [vmem:[#allocation52_spill] sm:$0xff] %v16722_v61 }
 0x404   :  { %14513 = vmatprep.subr.mxu1 %v16655_v45  ;;  %14479 = vmatpush3.msra.mxu0 %v16660_v9  ;;  %19509 = vst [vmem:[#allocation47_spill] sm:$0xff] %v16691_v34  ;;  %19510 = vst [vmem:[#allocation48_spill] sm:$0xff] %v16696_v10  ;;  %v16703_v45 = vld [vmem:[%s19239_s4 + $0x180] sm:$0xff] }
 0x405   :  { %14514 = vmatpush3.msra.mxu1 %v16667_v42  ;;  %14480 = vmatprep.subr.mxu0 %v16672_v36  ;;  %19511 = vst [vmem:[#allocation49_spill] sm:$0xff] %v16703_v45  ;;  %v16708_v9 = vld [vmem:[%s19239_s4] sm:$0xff]  ;;  %v6822_v36 = vadd.f32 %v6821_v43, %v6820_v20  ;;  %v16735_v43 = vld [vmem:[%s19239_s4 + $0x2f0] sm:$0xff]  ;;  %v16740_v20 = vld [vmem:[%s19239_s4 + $0x3f8] sm:$0xff] }
 0x406   :  { %19512 = vst [vmem:[#allocation50_spill] sm:$0xff] %v16708_v9  ;;  %14515 = vmatprep.subr.mxu1 %v16679_v16  ;;  %14481 = vmatpush3.msra.mxu0 %v16684_v1  ;;  %v16715_v42 = vld [vmem:[%s19239_s4 + $0x100] sm:$0xff]  ;;  %v6836_v1 = vadd.f32 %v6835_v7, %v6834_v44  ;;  %v16729_v16 = vld [vmem:[%s19239_s4 + $0x278] sm:$0xff]  ;;  %19516 = vst [vmem:[#allocation54_spill] sm:$0xff] %v16735_v43 }
 0x407   :  { %19513 = vst [vmem:[#allocation51_spill] sm:$0xff] %v16715_v42  ;;  %14516 = vmatpush3.msra.mxu1 %v16691_v34  ;;  %14482 = vmatprep.subr.mxu0 %v16696_v10  ;;  %19515 = vst [vmem:[#allocation53_spill] sm:$0xff] %v16729_v16  ;;  %v6857_v10 = vadd.f32 %v6856_v3, %v6855_v35  ;;  %v16746_v44 = vld [vmem:[%s19239_s4 + $0x270] sm:$0xff]  ;;  %v16751_v7 = vld [vmem:[%s19239_s4 + $0x378] sm:$0xff] }
 0x408   :  { %14517 = vmatprep.subr.mxu1 %v16703_v45  ;;  %14483 = vmatpush3.msra.mxu0 %v16708_v9  ;;  %19517 = vst [vmem:[#allocation55_spill] sm:$0xff] %v16740_v20  ;;  %19518 = vst [vmem:[#allocation56_spill] sm:$0xff] %v16746_v44  ;;  %v16762_v3 = vld [vmem:[%s19239_s4 + $0x3f0] sm:$0xff]  ;;  %v16768_v35 = vld [vmem:[%s19239_s4 + $0x268] sm:$0xff] }
 0x409   :  { %14518 = vmatpush3.msra.mxu1 %v16715_v42  ;;  %6937 = vmatmul.mubr.f32.vlgmr.msra.gmra.mxu0 %v6822_v36  ;;  %19519 = vst [vmem:[#allocation57_spill] sm:$0xff] %v16751_v7  ;;  %v16757_v36 = vld [vmem:[%s19239_s4 + $0x2e8] sm:$0xff]  ;;  %19521 = vst [vmem:[#allocation59_spill] sm:$0xff] %v16762_v3 }
 0x40a   :  { %7007 = vmatmul.mubr.f32.vlgmr.msra.gmra.mxu1 %v6836_v1  ;;  %14522 = vmatprep.subr.mxu0 %v16722_v61  ;;  %19520 = vst [vmem:[#allocation58_spill] sm:$0xff] %v16757_v36  ;;  %19522 = vst [vmem:[#allocation60_spill] sm:$0xff] %v16768_v35  ;;  %v16778_v1 = vadd.f32 %v16343_v33, %v16298_v41  ;;  %v16796_v41 = vld [vmem:[%s19239_s4 + $0x260] sm:$0xff]  ;;  %v16802_v33 = vld [vmem:[%s19239_s4 + $0x368] sm:$0xff] }
 0x40b   :  { %14523 = vmatpush3.msra.mxu0 %v16729_v16  ;;  %7076 = vmatprep.mubr.f32.mxu0 %v6857_v10  ;;  %v16774_v10 = vld [vmem:[%s19239_s4 + $0x370] sm:$0xff]  ;;  %v16790_v16 = vld [vmem:[%s19239_s4 + $0x3e8] sm:$0xff]  ;;  %19527 = vst [vmem:[#allocation65_spill] sm:$0xff] %v16796_v41  ;;  %19528 = vst [vmem:[#allocation66_spill] sm:$0xff] %v16802_v33 }
 0x40c   :  { %14524 = vmatprep.subr.mxu0 %v16735_v43  ;;  %14557 = vmatprep.subr.mxu1 %v16740_v20  ;;  %19523 = vst [vmem:[#allocation61_spill] sm:$0xff] %v16774_v10  ;;  %19524 = vst [vmem:[#allocation62_spill] sm:$0xff] %v16778_v1  ;;  %v16784_v43 = vld [vmem:[%s19239_s4 + $0x2e0] sm:$0xff] }
 0x40d   :  { %14525 = vmatpush3.msra.mxu0 %v16746_v44  ;;  %19525 = vst [vmem:[#allocation63_spill] sm:$0xff] %v16784_v43  ;;  %14558 = vmatpush3.msra.mxu1 %v16751_v7  ;;  %19526 = vst [vmem:[#allocation64_spill] sm:$0xff] %v16790_v16  ;;  %v16808_v44 = vld [vmem:[%s19239_s4 + $0x2d8] sm:$0xff]  ;;  %v16846_v7 = vld [vmem:[%s19239_s4 + $0x250] sm:$0xff] }
 0x40e   :  { %14526 = vmatprep.subr.mxu0 %v16757_v36  ;;  %14559 = vmatprep.subr.mxu1 %v16762_v3  ;;  %19529 = vst [vmem:[#allocation67_spill] sm:$0xff] %v16808_v44  ;;  %v16814_v36 = vld [vmem:[%s19239_s4 + $0x3e0] sm:$0xff]  ;;  %v16820_v3 = vld [vmem:[%s19239_s4 + $0x258] sm:$0xff]  ;;  %19535 = vst [vmem:[#allocation73_spill] sm:$0xff] %v16846_v7 }
 0x40f   :  { %14527 = vmatpush3.msra.mxu0 %v16768_v35  ;;  %14560 = vmatpush3.msra.mxu1 %v16774_v10  ;;  %19530 = vst [vmem:[#allocation68_spill] sm:$0xff] %v16814_v36  ;;  %19531 = vst [vmem:[#allocation69_spill] sm:$0xff] %v16820_v3  ;;  %v16826_v35 = vld [vmem:[%s19239_s4 + $0x360] sm:$0xff]  ;;  %v6844_v10 = vsel %vm6815_vm1, %v16778_v1, 0.0  ;;  %v16870_v1 = vld [vmem:[%s19239_s4 + $0x248] sm:$0xff] }
 0x410   :  { %14528 = vmatprep.subr.mxu0 %v16784_v43  ;;  %14561 = vmatprep.subr.mxu1 %v16790_v16  ;;  %19532 = vst [vmem:[#allocation70_spill] sm:$0xff] %v16826_v35  ;;  %v16834_v43 = vld [vmem:[%s19239_s4 + $0x2d0] sm:$0xff]  ;;  %v16840_v16 = vld [vmem:[%s19239_s4 + $0x3d8] sm:$0xff]  ;;  %19539 = vst [vmem:[#allocation77_spill] sm:$0xff] %v16870_v1 }
 0x411   :  { %14529 = vmatpush3.msra.mxu0 %v16796_v41  ;;  %19533 = vst [vmem:[#allocation71_spill] sm:$0xff] %v16834_v43  ;;  %14562 = vmatpush3.msra.mxu1 %v16802_v33  ;;  %19534 = vst [vmem:[#allocation72_spill] sm:$0xff] %v16840_v16  ;;  %v16852_v41 = vld [vmem:[%s19239_s4 + $0x358] sm:$0xff]  ;;  %v16858_v33 = vld [vmem:[%s19239_s4 + $0x2c8] sm:$0xff] }
 0x412   :  { %14530 = vmatprep.subr.mxu0 %v16808_v44  ;;  %14563 = vmatprep.subr.mxu1 %v16814_v36  ;;  %19536 = vst [vmem:[#allocation74_spill] sm:$0xff] %v16852_v41  ;;  %19537 = vst [vmem:[#allocation75_spill] sm:$0xff] %v16858_v33  ;;  %v16864_v44 = vld [vmem:[%s19239_s4 + $0x3d0] sm:$0xff]  ;;  %v6845_v36 = vrot.slane %v6844_v10, 4 }
 0x413   :  { %14531 = vmatpush3.msra.mxu0 %v16820_v3  ;;  %14564 = vmatpush3.msra.mxu1 %v16826_v35  ;;  %19538 = vst [vmem:[#allocation76_spill] sm:$0xff] %v16864_v44  ;;  %v16877_v3 = vld [vmem:[%s19239_s4 + $0x2c0] sm:$0xff] }
 0x414   :  { %14532 = vmatprep.subr.mxu0 %v16834_v43  ;;  %14565 = vmatprep.subr.mxu1 %v16840_v16  ;;  %19540 = vst [vmem:[#allocation78_spill] sm:$0xff] %v16877_v3  ;;  %v16884_v43 = vld [vmem:[%s19239_s4 + $0x240] sm:$0xff]  ;;  %v6846_v16 = vadd.f32 %v6845_v36, %v6844_v10  ;;  %v16909_v36 = vld [vmem:[%s19239_s4 + $0x230] sm:$0xff]  ;;  %v16915_v10 = vld [vmem:[%s19239_s4 + $0x2a8] sm:$0xff] }
 0x415   :  { %14533 = vmatpush3.msra.mxu0 %v16846_v7  ;;  %14566 = vmatpush3.msra.mxu1 %v16852_v41  ;;  %19541 = vst [vmem:[#allocation79_spill] sm:$0xff] %v16884_v43  ;;  %v16891_v7 = vld [vmem:[%s19239_s4 + $0x2b8] sm:$0xff]  ;;  %19545 = vst [vmem:[#allocation83_spill] sm:$0xff] %v16909_v36  ;;  %v16990_v41 = vld [vmem:[%s19239_s4 + $0x350] sm:$0xff] }
 0x416   :  { %14534 = vmatprep.subr.mxu0 %v16858_v33  ;;  %14567 = vmatprep.subr.mxu1 %v16864_v44  ;;  %19542 = vst [vmem:[#allocation80_spill] sm:$0xff] %v16891_v7  ;;  %v16897_v33 = vld [vmem:[%s19239_s4 + $0x238] sm:$0xff]  ;;  %v16903_v44 = vld [vmem:[%s19239_s4 + $0x2b0] sm:$0xff]  ;;  %19546 = vst [vmem:[#allocation84_spill] sm:$0xff] %v16915_v10 }
 0x417   :  { %14535 = vmatpush3.msra.mxu0 %v16870_v1  ;;  %19543 = vst [vmem:[#allocation81_spill] sm:$0xff] %v16897_v33  ;;  %19544 = vst [vmem:[#allocation82_spill] sm:$0xff] %v16903_v44  ;;  %v16945_v1 = vld [vmem:[%s19239_s4 + $0x218] sm:$0xff]  ;;  %14568 = vmatpush3.msra.mxu1 %v16990_v41 }
 0x418   :  { %14536 = vmatprep.subr.mxu0 %v16877_v3  ;;  %v16921_v3 = vld [vmem:[%s19239_s4 + $0x228] sm:$0xff]  ;;  %19551 = vst [vmem:[#allocation89_spill] sm:$0xff] %v16945_v1  ;;  %19558 = vst [vmem:[#allocation96_spill] sm:$0xff] %v16990_v41 }
 0x419   :  { %14537 = vmatpush3.msra.mxu0 %v16884_v43  ;;  %v6847_v43 = vrot.slane %v6846_v16, 2  ;;  %19547 = vst [vmem:[#allocation85_spill] sm:$0xff] %v16921_v3 }
 0x41a   :  { %14538 = vmatprep.subr.mxu0 %v16891_v7  ;;  %v16927_v7 = vld [vmem:[%s19239_s4 + $0x2a0] sm:$0xff] }
 0x41b   :  { %14539 = vmatpush3.msra.mxu0 %v16897_v33  ;;  %19548 = vst [vmem:[#allocation86_spill] sm:$0xff] %v16927_v7  ;;  %v16933_v33 = vld [vmem:[%s19239_s4 + $0x220] sm:$0xff] }
 0x41c   :  { %14540 = vmatprep.subr.mxu0 %v16903_v44  ;;  %19549 = vst [vmem:[#allocation87_spill] sm:$0xff] %v16933_v33  ;;  %v16939_v44 = vld [vmem:[%s19239_s4 + $0x298] sm:$0xff] }
 0x41d   :  { %14541 = vmatpush3.msra.mxu0 %v16909_v36  ;;  %19550 = vst [vmem:[#allocation88_spill] sm:$0xff] %v16939_v44  ;;  %v6848_v36 = vadd.f32 %v6847_v43, %v6846_v16  ;;  %v16957_v16 = vld [vmem:[%s19239_s4 + $0x210] sm:$0xff]  ;;  %v16963_v43 = vld [vmem:[%s19239_s4 + $0x288] sm:$0xff] }
 0x41e   :  { %14542 = vmatprep.subr.mxu0 %v16915_v10  ;;  %v16951_v10 = vld [vmem:[%s19239_s4 + $0x290] sm:$0xff]  ;;  %19553 = vst [vmem:[#allocation91_spill] sm:$0xff] %v16957_v16  ;;  %19554 = vst [vmem:[#allocation92_spill] sm:$0xff] %v16963_v43 }
 0x41f   :  { %14543 = vmatpush3.msra.mxu0 %v16921_v3  ;;  %19552 = vst [vmem:[#allocation90_spill] sm:$0xff] %v16951_v10 }
 0x420   :  { %14544 = vmatprep.subr.mxu0 %v16927_v7  ;;  %v16975_v7 = vld [vmem:[%s19239_s4 + $0x280] sm:$0xff] }
 0x421   :  { %14545 = vmatpush3.msra.mxu0 %v16933_v33  ;;  %v16969_v33 = vld [vmem:[%s19239_s4 + $0x208] sm:$0xff]  ;;  %19556 = vst [vmem:[#allocation94_spill] sm:$0xff] %v16975_v7 }
 0x422   :  { %14546 = vmatprep.subr.mxu0 %v16939_v44  ;;  %19555 = vst [vmem:[#allocation93_spill] sm:$0xff] %v16969_v33  ;;  %v6849_v44 = vrot.slane %v6848_v36, 1 }
 0x423   :  { %14547 = vmatpush3.msra.mxu0 %v16945_v1  ;;  %v16981_v1 = vld [vmem:[%s19239_s4 + $0x200] sm:$0xff] }
 0x424   :  { %14548 = vmatprep.subr.mxu0 %v16951_v10  ;;  %19557 = vst [vmem:[#allocation95_spill] sm:$0xff] %v16981_v1  ;;  %v6850_v3 = vadd.f32 %v6849_v44, %v6848_v36 }
 0x425   :  { %14549 = vmatpush3.msra.mxu0 %v16957_v16 }
 0x426   :  { %14550 = vmatprep.subr.mxu0 %v16963_v43 }
 0x427   :  { %14551 = vmatpush3.msra.mxu0 %v16969_v33  ;;  %v16996_v33 = vld [vmem:[%s19239_s4 + $0x3c8] sm:$0xff] }
 0x428   :  { %14552 = vmatprep.subr.mxu0 %v16975_v7  ;;  %v6601_v10 = vpop.f32.mrf.mxu0  ;;  %19559 = vst [vmem:[#allocation97_spill] sm:$0xff] %v16996_v33  ;;  %14569 = vmatprep.subr.mxu1 %v16996_v33  ;;  %v17045_v7 = vld [vmem:[%s19239_s4 + $0x3a8] sm:$0xff] }
 0x429   :  { %14553 = vmatpush3.msra.mxu0 %v16981_v1  ;;  %v6602_v16 = vadd.f32 %v6601_v10, %v16551_v50  ;;  %v17003_v50 = vld [vmem:[%s19239_s4 + $0x348] sm:$0xff]  ;;  %v17039_v1 = vld [vmem:[%s19239_s4 + $0x330] sm:$0xff]  ;;  %19567 = vst [vmem:[#allocation105_spill] sm:$0xff] %v17045_v7 }
 0x42a   :  { %7077 = vmatmul.mubr.f32.vlgmr.msra.gmra.mxu0 %v6850_v3  ;;  %v6603_v43 = vpop.f32.mrf.mxu0  ;;  %19560 = vst [vmem:[#allocation98_spill] sm:$0xff] %v17003_v50  ;;  %14570 = vmatpush3.msra.mxu1 %v17003_v50  ;;  %v17009_v3 = vld [vmem:[%s19239_s4 + $0x3c0] sm:$0xff]  ;;  %19566 = vst [vmem:[#allocation104_spill] sm:$0xff] %v17039_v1 }
 0x42b   :  { %v6604_v44 = vadd.f32 %v6603_v43, %v16577_v13  ;;  %19561 = vst [vmem:[#allocation99_spill] sm:$0xff] %v17009_v3  ;;  %14571 = vmatprep.subr.mxu1 %v17009_v3  ;;  %v17015_v13 = vld [vmem:[%s19239_s4 + $0x340] sm:$0xff]  ;;  %v17021_v43 = vld [vmem:[%s19239_s4 + $0x3b8] sm:$0xff]  ;;  %v17097_v3 = vld [vmem:[%s19239_s4 + $0x308] sm:$0xff] }
 0x42c   :  { %v6605_v36 = vpop.f32.mrf.mxu0  ;;  %19562 = vst [vmem:[#allocation100_spill] sm:$0xff] %v17015_v13  ;;  %14572 = vmatpush3.msra.mxu1 %v17015_v13  ;;  %19563 = vst [vmem:[#allocation101_spill] sm:$0xff] %v17021_v43  ;;  %v17085_v13 = vld [vmem:[%s19239_s4 + $0x310] sm:$0xff] }
 0x42d   :  { %14573 = vmatprep.subr.mxu1 %v17021_v43  ;;  %v17027_v36 = vld [vmem:[%s19239_s4 + $0x338] sm:$0xff]  ;;  %v17079_v43 = vld [vmem:[%s19239_s4 + $0x390] sm:$0xff]  ;;  %19574 = vst [vmem:[#allocation112_spill] sm:$0xff] %v17085_v13  ;;  %19576 = vst [vmem:[#allocation114_spill] sm:$0xff] %v17097_v3 }
 0x42e   :  { %v6606_v10 = vpop.f32.mrf.mxu0  ;;  %19564 = vst [vmem:[#allocation102_spill] sm:$0xff] %v17027_v36  ;;  %14574 = vmatpush3.msra.mxu1 %v17027_v36  ;;  %v17051_v36 = vld [vmem:[%s19239_s4 + $0x328] sm:$0xff]  ;;  %19573 = vst [vmem:[#allocation111_spill] sm:$0xff] %v17079_v43 }
 0x42f   :  { %v17033_v10 = vld [vmem:[%s19239_s4 + $0x3b0] sm:$0xff]  ;;  %19568 = vst [vmem:[#allocation106_spill] sm:$0xff] %v17051_v36 }
 0x430   :  { %19565 = vst [vmem:[#allocation103_spill] sm:$0xff] %v17033_v10  ;;  %14575 = vmatprep.subr.mxu1 %v17033_v10  ;;  %v17057_v10 = vld [vmem:[%s19239_s4 + $0x3a0] sm:$0xff] }
 0x431   :  { %14576 = vmatpush3.msra.mxu1 %v17039_v1  ;;  %19569 = vst [vmem:[#allocation107_spill] sm:$0xff] %v17057_v10  ;;  %v17062_v1 = vld [vmem:[%s19239_s4 + $0x320] sm:$0xff] }
 0x432   :  { %14577 = vmatprep.subr.mxu1 %v17045_v7  ;;  %19570 = vst [vmem:[#allocation108_spill] sm:$0xff] %v17062_v1  ;;  %v17067_v7 = vld [vmem:[%s19239_s4 + $0x398] sm:$0xff] }
 0x433   :  { %14578 = vmatpush3.msra.mxu1 %v17051_v36  ;;  %19571 = vst [vmem:[#allocation109_spill] sm:$0xff] %v17067_v7  ;;  %v17073_v36 = vld [vmem:[%s19239_s4 + $0x318] sm:$0xff] }
 0x434   :  { %14579 = vmatprep.subr.mxu1 %v17057_v10  ;;  %19572 = vst [vmem:[#allocation110_spill] sm:$0xff] %v17073_v36  ;;  %v17091_v10 = vld [vmem:[%s19239_s4 + $0x388] sm:$0xff] }
 0x435   :  { %14580 = vmatpush3.msra.mxu1 %v17062_v1  ;;  %19575 = vst [vmem:[#allocation113_spill] sm:$0xff] %v17091_v10 }
 0x436   :  { %14581 = vmatprep.subr.mxu1 %v17067_v7 }
 0x437   :  { %14582 = vmatpush3.msra.mxu1 %v17073_v36  ;;  %v17103_v36 = vld [vmem:[%s19239_s4 + $0x380] sm:$0xff] }
 0x438   :  { %14583 = vmatprep.subr.mxu1 %v17079_v43  ;;  %19577 = vst [vmem:[#allocation115_spill] sm:$0xff] %v17103_v36  ;;  %v17109_v43 = vld [vmem:[%s19239_s4 + $0x300] sm:$0xff] }
 0x439   :  { %v6642_v1 = vpop.f32.mrf.mxu1  ;;  %14584 = vmatpush3.msra.mxu1 %v17085_v13  ;;  %19578 = vst [vmem:[#allocation116_spill] sm:$0xff] %v17109_v43 }
 0x43a   :  { %v6643_v7 = vadd.f32 %v6642_v1, %v6602_v16  ;;  %14585 = vmatprep.subr.mxu1 %v17091_v10 }
 0x43b   :  { %v6644_v50 = vpop.f32.mrf.mxu1  ;;  %14586 = vmatpush3.msra.mxu1 %v17097_v3 }
 0x43c   :  { %v6645_v33 = vadd.f32 %v6644_v50, %v6604_v44  ;;  %14587 = vmatprep.subr.mxu1 %v17103_v36 }
 0x43d   :  { %v6646_v41 = vpop.f32.mrf.mxu1  ;;  %14588 = vmatpush3.msra.mxu1 %v17109_v43 }
 0x43f   :  { %v6647_v1 = vpop.f32.mrf.mxu1 }
 0x468   :  { %v6683_v16 = vpop.f32.mrf.mxu0 }
 0x469   :  { %v6684_v45 = vadd.f32 %v6683_v16, %v6643_v7 }
 0x46a   :  { %v6685_v13 = vpop.f32.mrf.mxu0 }
 0x46b   :  { %v6686_v34 = vadd.f32 %v6685_v13, %v6645_v33 }
 0x46c   :  { %v6687_v35 = vpop.f32.mrf.mxu0 }
 0x46e   :  { %v6688_v20 = vpop.f32.mrf.mxu0 }
 0x479   :  { %v6724_v61 = vpop.f32.mrf.mxu1 }
 0x47a   :  { %v6725_v37 = vadd.f32 %v6724_v61, %v6684_v45 }
 0x47b   :  { %v6726_v10 = vpop.f32.mrf.mxu1 }
 0x47c   :  { %v6727_v50 = vadd.f32 %v6726_v10, %v6686_v34 }
 0x47d   :  { %v6728_v42 = vpop.f32.mrf.mxu1 }
 0x47f   :  { %v6729_v9 = vpop.f32.mrf.mxu1 }
 0x4a8   :  { %v6765_v44 = vpop.f32.mrf.mxu0 }
 0x4a9   :  { %v6766_v3 = vadd.f32 %v6765_v44, %v6725_v37  ;;  %v6806_v41 = vpop.f32.mrf.mxu1 }
 0x4aa   :  { %v6767_v11 = vpop.f32.mrf.mxu0 }
 0x4ab   :  { %v17114_v36 = vadd.f32 %v6806_v41, %v6766_v3  ;;  %v6768_v43 = vadd.f32 %v6767_v11, %v6727_v50  ;;  %v6808_v1 = vpop.f32.mrf.mxu1  ;;  %v17124_v41 = vld [vmem:[#allocation6 + $0x58] sm:$0xff] }
 0x4ac   :  { %v6769_v8 = vpop.f32.mrf.mxu0  ;;  %19580 = vst [vmem:[#allocation118_spill] sm:$0xff] %v17124_v41  ;;  %7257 = vmatprep.subr.mxu1 %v17124_v41  ;;  %v17160_v41 = vld [vmem:[#allocation6 + $0x28] sm:$0xff] }
 0x4ad   :  { %v6858_v20 = vsel %vm6815_vm1, %v17114_v36, 0.0  ;;  %v17118_v35 = vadd.f32 %v6808_v1, %v6768_v43  ;;  %v6810_v42 = vpop.f32.mrf.mxu1  ;;  %v17122_v43 = vld [vmem:[#allocation6 + $0x48] sm:$0xff]  ;;  %v17128_v1 = vld [vmem:[#allocation6 + $0x40] sm:$0xff] }
 0x4ae   :  { %v6859_v9 = vrot.slane %v6858_v20, 4  ;;  %v6770_v7 = vpop.f32.mrf.mxu0  ;;  %19579 = vst [vmem:[#allocation117_spill] sm:$0xff] %v17122_v43  ;;  %7186 = vmatprep.subr.mxu0 %v17122_v43  ;;  %19581 = vst [vmem:[#allocation119_spill] sm:$0xff] %v17128_v1  ;;  %v17132_v42 = vld [vmem:[#allocation6 + $0x8] sm:$0xff]  ;;  %v17162_v43 = vld [vmem:[#allocation6 + $0x38] sm:$0xff] }
 0x4af   :  { %v6865_v61 = vsel %vm6815_vm1, %v17118_v35, 0.0  ;;  %v6811_v34 = vpop.f32.mrf.mxu1  ;;  %19583 = vst [vmem:[#allocation121_spill] sm:$0xff] %v17132_v42  ;;  %7187 = vmatpush1.msra.mxu0 %v17128_v1  ;;  %v17138_v7 = vld [vmem:[#allocation6] sm:$0xff] }
 0x4b0   :  { %v6860_v37 = vadd.f32 %v6859_v9, %v6858_v20  ;;  %v6866_v45 = vrot.slane %v6865_v61, 4  ;;  %v17130_v20 = vld [vmem:[#allocation6 + $0x50] sm:$0xff]  ;;  %v17136_v9 = vld [vmem:[#allocation6 + $0x18] sm:$0xff]  ;;  %19585 = vst [vmem:[#allocation123_spill] sm:$0xff] %v17138_v7  ;;  %7188 = vmatprep.subr.mxu0 %v17132_v42  ;;  %v17144_v34 = vld [vmem:[#allocation6 + $0x68] sm:$0xff] }
 0x4b1   :  { %19582 = vst [vmem:[#allocation120_spill] sm:$0xff] %v17130_v20  ;;  %19584 = vst [vmem:[#allocation122_spill] sm:$0xff] %v17136_v9  ;;  %7189 = vmatpush1.msra.mxu0 %v17138_v7 }
 0x4b2   :  { %v6861_v33 = vrot.slane %v6860_v37, 2  ;;  %v6867_v3 = vadd.f32 %v6866_v45, %v6865_v61  ;;  %v17140_v61 = vld [vmem:[#allocation6 + $0x10] sm:$0xff]  ;;  %19587 = vst [vmem:[#allocation125_spill] sm:$0xff] %v17144_v34  ;;  %v19362_v45 = vmov 0.0   ;;  %7328 = vmatprep.subr.mxu0 %v17144_v34  ;;  %v17156_v34 = vld [vmem:[#allocation6 + $0x60] sm:$0xff] }
 0x4b3   :  { %19586 = vst [vmem:[#allocation124_spill] sm:$0xff] %v17140_v61  ;;  %7222 = vmatprep.mubr.f32.mxu0 %v19362_v45 }
 0x4b4   :  { %v6862_v13 = vadd.f32 %v6861_v33, %v6860_v37  ;;  %v6868_v11 = vrot.slane %v6867_v3, 2  ;;  %v17146_v37 = vld [vmem:[#allocation6 + $0x78] sm:$0xff] }
 0x4b5   :  { %19588 = vst [vmem:[#allocation126_spill] sm:$0xff] %v17146_v37 }
 0x4b6   :  { %v6869_v10 = vadd.f32 %v6868_v11, %v6867_v3  ;;  %v6863_v8 = vrot.slane %v6862_v13, 1 }
 0x4b8   :  { %v6870_v16 = vrot.slane %v6869_v10, 1  ;;  %v6864_v50 = vadd.f32 %v6863_v8, %v6862_v13 }
 0x4ba   :  { %v6871_v44 = vadd.f32 %v6870_v16, %v6869_v10 }
 0x4bc   :  { %7146 = vmatprep.mubr.f32.mxu1 %v6871_v44 }
 0x4bd   :  { %7147 = vmatmul.mubr.f32.vlgmr.msra.gmra.mxu1 %v6864_v50 }
 0x4be   :  { %7258 = vmatpush1.msra.mxu1 %v17130_v20  ;;  %7293 = vmatprep.mubr.f32.mxu1 %v19362_v45 }
 0x4bf   :  { %7259 = vmatprep.subr.mxu1 %v17136_v9 }
 0x4c0   :  { %7260 = vmatpush1.msra.mxu1 %v17140_v61 }
 0x4c1   :  { %7399 = vmatprep.subr.mxu1 %v17146_v37  ;;  %v17158_v37 = vld [vmem:[#allocation6 + $0x70] sm:$0xff] }
 0x4c9   :  { %v14484_v33 = vpop.f32.mrf.mxu0 }
 0x4ca   :  { %v14519_v3 = vpop.f32.mrf.mxu1 }
 0x4cb   :  { %v14485_v13 = vpop.f32.mrf.mxu0 }
 0x4cc   :  { %v14520_v10 = vpop.f32.mrf.mxu1  ;;  %v14486_v16 = vadd.f32 %v14485_v13, %v14484_v33 }
 0x4cd   :  { %v14521_v44 = vadd.f32 %v14520_v10, %v14519_v3 }
 0x4cf   :  { %v7009_v9 = vadd.f32 %v14521_v44, %v14486_v16 }
 0x4ea   :  { %v14554_v11 = vpop.f32.mrf.mxu0 }
 0x4ec   :  { %v14555_v8 = vpop.f32.mrf.mxu0 }
 0x4ed   :  { %v14556_v50 = vadd.f32 %v14555_v8, %v14554_v11 }
 0x4ef   :  { %v7079_v20 = vadd.f32 %v14556_v50, %v7009_v9  ;;  %v17168_v9 = vld [vmem:[#allocation6 + $0x20] sm:$0xff] }
 0x57d   :  { %v14589_v7 = vpop.f32.mrf.mxu1 }
 0x57f   :  { %v14590_v42 = vpop.f32.mrf.mxu1 }
 0x580   :  { %v14591_v61 = vadd.f32 %v14590_v42, %v14589_v7  ;;  %v19619_v42 = vld [vmem:[#allocation28_spill] sm:$0xff] }
 0x582   :  { %v7149_v1 = vadd.f32 %v14591_v61, %v7079_v20  ;;  %v19589_v20 = vmov 0.0  }
 0x584   :  { %v17154_v45 = vmul.f32 0.0078125, %v7149_v1  ;;  %v17172_v1 = vld [vmem:[#allocation6 + $0x30] sm:$0xff] }
 0x586   :  { %14166 = vmatmul.mubr.msk.f32.vlgmr.msra.gmra.mxu0 %vm7154_vm2, %v17154_v45  ;;  %14167 = vmatmul.mubr.msk.f32.vlgmr.msra.gmra.mxu1 %vm7154_vm2, %v17154_v45 }
 0x587   :  { %7329 = vmatpush1.msra.mxu0 %v17156_v34  ;;  %7400 = vmatpush1.msra.mxu1 %v17158_v37 }
 0x588   :  { %7330 = vmatprep.subr.mxu0 %v17160_v41  ;;  %7401 = vmatprep.subr.mxu1 %v17162_v43 }
 0x589   :  { %7331 = vmatpush1.msra.mxu0 %v17168_v9  ;;  %7364 = vmatprep.mubr.f32.mxu0 %v19589_v20 }
 0x58a   :  { %7402 = vmatpush1.msra.mxu1 %v17172_v1  ;;  %7435 = vmatprep.mubr.f32.mxu1 %v19589_v20 }
 0x58b   :  { %14168 = vmatmul.mubr.msk.f32.vlgmr.msra.gmra.mxu0 %vm7154_vm2, %v17154_v45  ;;  %14169 = vmatmul.mubr.msk.f32.vlgmr.msra.gmra.mxu1 %vm7154_vm2, %v17154_v45 }
 0x58c   :  { %14592 = vmatprep.subr.mxu0 %v16322_v55  ;;  %14627 = vmatprep.subr.mxu1 %v16327_v17  ;;  %v19590_v55 = vld [vmem:[#allocation30_spill] sm:$0xff]  ;;  %v19591_v17 = vld [vmem:[#allocation31_spill] sm:$0xff] }
 0x58d   :  { %14593 = vmatpush3.msra.mxu0 %v16333_v21  ;;  %14628 = vmatpush3.msra.mxu1 %v16339_v52  ;;  %v19592_v21 = vld [vmem:[#allocation32_spill] sm:$0xff]  ;;  %v19593_v52 = vld [vmem:[#allocation33_spill] sm:$0xff] }
 0x58e   :  { %14594 = vmatprep.subr.mxu0 %v16349_v22  ;;  %14629 = vmatprep.subr.mxu1 %v16356_v48  ;;  %v19594_v22 = vld [vmem:[#allocation34_spill] sm:$0xff]  ;;  %v19595_v48 = vld [vmem:[#allocation35_spill] sm:$0xff] }
 0x58f   :  { %14595 = vmatpush3.msra.mxu0 %v16361_v32  ;;  %14630 = vmatpush3.msra.mxu1 %v16367_v29  ;;  %v19596_v32 = vld [vmem:[#allocation36_spill] sm:$0xff]  ;;  %v19597_v29 = vld [vmem:[#allocation37_spill] sm:$0xff] }
 0x590   :  { %14596 = vmatprep.subr.mxu0 %v16372_v38  ;;  %14631 = vmatprep.subr.mxu1 %v16378_v51  ;;  %v19598_v38 = vld [vmem:[#allocation38_spill] sm:$0xff]  ;;  %v19599_v51 = vld [vmem:[#allocation39_spill] sm:$0xff] }
 0x591   :  { %14597 = vmatpush3.msra.mxu0 %v16383_v53  ;;  %14632 = vmatpush3.msra.mxu1 %v16391_v54  ;;  %v19600_v53 = vld [vmem:[#allocation40_spill] sm:$0xff]  ;;  %v19601_v54 = vld [vmem:[#allocation41_spill] sm:$0xff] }
 0x592   :  { %14598 = vmatprep.subr.mxu0 %v16396_v24  ;;  %14633 = vmatprep.subr.mxu1 %v16403_v28  ;;  %v19602_v24 = vld [vmem:[#allocation42_spill] sm:$0xff]  ;;  %v19603_v28 = vld [vmem:[#allocation43_spill] sm:$0xff] }
 0x593   :  { %14599 = vmatpush3.msra.mxu0 %v16408_v27  ;;  %14634 = vmatpush3.msra.mxu1 %v16417_v18  ;;  %v19604_v27 = vld [vmem:[#allocation44_spill] sm:$0xff]  ;;  %v19605_v18 = vld [vmem:[#allocation45_spill] sm:$0xff] }
 0x594   :  { %14600 = vmatprep.subr.mxu0 %v16422_v47  ;;  %14635 = vmatprep.subr.mxu1 %v16429_v49  ;;  %v19606_v47 = vld [vmem:[#allocation46_spill] sm:$0xff]  ;;  %v19607_v49 = vld [vmem:[#allocation47_spill] sm:$0xff] }
 0x595   :  { %14601 = vmatpush3.msra.mxu0 %v16434_v30  ;;  %14636 = vmatpush3.msra.mxu1 %v16443_v58  ;;  %v19608_v30 = vld [vmem:[#allocation48_spill] sm:$0xff]  ;;  %v19609_v58 = vld [vmem:[#allocation49_spill] sm:$0xff] }
 0x596   :  { %14602 = vmatprep.subr.mxu0 %v16448_v23  ;;  %14637 = vmatprep.subr.mxu1 %v16457_v60  ;;  %v19610_v23 = vld [vmem:[#allocation50_spill] sm:$0xff]  ;;  %v19611_v60 = vld [vmem:[#allocation51_spill] sm:$0xff] }
 0x597   :  { %14603 = vmatpush3.msra.mxu0 %v16462_v46  ;;  %14638 = vmatpush3.msra.mxu1 %v16471_v31  ;;  %v19612_v46 = vld [vmem:[#allocation52_spill] sm:$0xff]  ;;  %v19613_v31 = vld [vmem:[#allocation55_spill] sm:$0xff] }
 0x598   :  { %14604 = vmatprep.subr.mxu0 %v16476_v57  ;;  %14639 = vmatprep.subr.mxu1 %v16483_v62  ;;  %v19614_v57 = vld [vmem:[#allocation24_spill] sm:$0xff] }
 0x599   :  { %14605 = vmatpush3.msra.mxu0 %v16488_v56  ;;  %14640 = vmatpush3.msra.mxu1 %v16495_v0  ;;  %v17251_v62 = vsub.s32 0, %v19614_v57 }
 0x59a   :  { %14606 = vmatprep.subr.mxu0 %v16500_v39  ;;  %14641 = vmatprep.subr.mxu1 %v16507_v40 }
 0x59b   :  { %14607 = vmatpush3.msra.mxu0 %v16512_v2  ;;  %14642 = vmatpush3.msra.mxu1 %v16519_v5  ;;  %19615 = vst [vmem:[#allocation30_spill] sm:$0xff] %v17251_v62 }
 0x59c   :  { %14608 = vmatprep.subr.mxu0 %v16524_v6  ;;  %14643 = vmatprep.subr.mxu1 %v16531_v12  ;;  %v19616_v6 = vld [vmem:[#allocation25_spill] sm:$0xff] }
 0x59d   :  { %14609 = vmatpush3.msra.mxu0 %v16536_v59  ;;  %14644 = vmatpush3.msra.mxu1 %v16543_v14  ;;  %v19617_v59 = vld [vmem:[#allocation26_spill] sm:$0xff] }
 0x59e   :  { %14610 = vmatprep.subr.mxu0 %v16548_v15  ;;  %14645 = vmatprep.subr.mxu1 %v16557_v26 }
 0x59f   :  { %14611 = vmatpush3.msra.mxu0 %v16562_v63  ;;  %14646 = vmatpush3.msra.mxu1 %v16569_v4 }
 0x5a0   :  { %14612 = vmatprep.subr.mxu0 %v16574_v25  ;;  %14647 = vmatprep.subr.mxu1 %v16583_v19  ;;  %v19618_v25 = vld [vmem:[#allocation27_spill] sm:$0xff] }
 0x5a1   :  { %14613 = vmatpush3.msra.mxu0 %v19590_v55  ;;  %14648 = vmatpush3.msra.mxu1 %v19591_v17 }
 0x5a2   :  { %14614 = vmatprep.subr.mxu0 %v19592_v21  ;;  %14649 = vmatprep.subr.mxu1 %v19593_v52 }
 0x5a3   :  { %14615 = vmatpush3.msra.mxu0 %v19594_v22  ;;  %14650 = vmatpush3.msra.mxu1 %v19595_v48 }
 0x5a4   :  { %14616 = vmatprep.subr.mxu0 %v19596_v32  ;;  %14651 = vmatprep.subr.mxu1 %v19597_v29 }
 0x5a5   :  { %14617 = vmatpush3.msra.mxu0 %v19598_v38  ;;  %14652 = vmatpush3.msra.mxu1 %v19599_v51  ;;  %v19620_v38 = vld [vmem:[#allocation29_spill] sm:$0xff] }
 0x5a6   :  { %14618 = vmatprep.subr.mxu0 %v19600_v53  ;;  %14653 = vmatprep.subr.mxu1 %v19601_v54 }
 0x5a7   :  { %14619 = vmatpush3.msra.mxu0 %v19602_v24  ;;  %14654 = vmatpush3.msra.mxu1 %v19603_v28 }
 0x5a8   :  { %14620 = vmatprep.subr.mxu0 %v19604_v27  ;;  %14655 = vmatprep.subr.mxu1 %v19605_v18 }
 0x5a9   :  { %14621 = vmatpush3.msra.mxu0 %v19606_v47  ;;  %14656 = vmatpush3.msra.mxu1 %v19607_v49 }
 0x5aa   :  { %14622 = vmatprep.subr.mxu0 %v19608_v30  ;;  %14657 = vmatprep.subr.mxu1 %v19609_v58 }
 0x5ab   :  { %14623 = vmatpush3.msra.mxu0 %v19610_v23  ;;  %14658 = vmatpush3.msra.mxu1 %v19611_v60 }
 0x5ac   :  { %14662 = vmatprep.subr.mxu0 %v19612_v46  ;;  %14697 = vmatprep.subr.mxu1 %v19613_v31 }
 0x646   :  { %v7224_v56 = vpop.f32.mrf.mxu0  ;;  %v7295_v0 = vpop.f32.mrf.mxu1 }
 0x647   :  { %v7445_v39 = vrot.slane %v7224_v56, %v17251_v62  ;;  %v7453_v40 = vrot.slane %v7295_v0, %v17251_v62 }
 0x648   :  { %v7226_v2 = vpop.f32.mrf.mxu0  ;;  %v7297_v5 = vpop.f32.mrf.mxu1 }
 0x649   :  { %v7474_v12 = vsub.f32 %v19616_v6, %v7445_v39  ;;  %v7476_v14 = vsub.f32 %v19617_v59, %v7453_v40  ;;  %v7449_v15 = vrot.slane %v7226_v2, %v17251_v62  ;;  %v7457_v26 = vrot.slane %v7297_v5, %v17251_v62 }
 0x64b   :  { %v7482_v63 = vmul.f32 %v7474_v12, %v7474_v12  ;;  %v7484_v4 = vmul.f32 %v7476_v14, %v7476_v14  ;;  %v7475_v19 = vsub.f32 %v19618_v25, %v7449_v15  ;;  %v7477_v7 = vsub.f32 %v19619_v42, %v7457_v26  ;;  %v7366_v61 = vpop.f32.mrf.mxu0  ;;  %v7437_v33 = vpop.f32.mrf.mxu1 }
 0x64c   :  { %v7461_v26 = vrot.slane %v7366_v61, %v17251_v62 }
 0x64d   :  { %v7490_v3 = vsel %vm6815_vm1, %v7482_v63, 0.0  ;;  %v7504_v13 = vsel %vm6815_vm1, %v7484_v4, 0.0  ;;  %v7483_v11 = vmul.f32 %v7475_v19, %v7475_v19  ;;  %v7485_v10 = vmul.f32 %v7477_v7, %v7477_v7  ;;  %v7368_v8 = vpop.f32.mrf.mxu0  ;;  %v7439_v16 = vpop.f32.mrf.mxu1 }
 0x64e   :  { %v7491_v44 = vrot.slane %v7490_v3, 4  ;;  %v7505_v50 = vrot.slane %v7504_v13, 4  ;;  %v7465_v21 = vrot.slane %v7368_v8, %v17251_v62  ;;  %v7473_v52 = vrot.slane %v7439_v16, %v17251_v62  ;;  %v19621_v16 = vld [vmem:[#allocation62_spill] sm:$0xff] }
 0x64f   :  { %v7497_v55 = vsel %vm6815_vm1, %v7483_v11, 0.0  ;;  %v7511_v17 = vsel %vm6815_vm1, %v7485_v10, 0.0  ;;  %v7469_v63 = vrot.slane %v7437_v33, %v17251_v62  ;;  %v19623_v33 = vld [vmem:[#allocation57_spill] sm:$0xff] }
 0x650   :  { %v7492_v22 = vadd.f32 %v7491_v44, %v7490_v3  ;;  %v7506_v48 = vadd.f32 %v7505_v50, %v7504_v13  ;;  %v7498_v32 = vrot.slane %v7497_v55, 4  ;;  %v7512_v29 = vrot.slane %v7511_v17, 4 }
 0x651   :  { %v7479_v51 = vsub.f32 %v19620_v38, %v7465_v21  ;;  %v7481_v53 = vsub.f32 %v17118_v35, %v7473_v52  ;;  %v7478_v44 = vsub.f32 %v19621_v16, %v7461_v26  ;;  %v7480_v50 = vsub.f32 %v17114_v36, %v7469_v63  ;;  %v19624_v21 = vld [vmem:[#allocation54_spill] sm:$0xff]  ;;  %v19625_v52 = vld [vmem:[#allocation59_spill] sm:$0xff]  ;;  %v19646_v26 = vld [vmem:[#allocation77_spill] sm:$0xff] }
 0x652   :  { %v7493_v54 = vrot.slane %v7492_v22, 2  ;;  %v7507_v24 = vrot.slane %v7506_v48, 2  ;;  %v7499_v28 = vadd.f32 %v7498_v32, %v7497_v55  ;;  %v7513_v27 = vadd.f32 %v7512_v29, %v7511_v17  ;;  %v19622_v17 = vld [vmem:[#allocation53_spill] sm:$0xff]  ;;  %v19626_v32 = vld [vmem:[#allocation56_spill] sm:$0xff]  ;;  %v19647_v63 = vld [vmem:[#allocation98_spill] sm:$0xff] }
 0x653   :  { %v7487_v18 = vmul.f32 %v7479_v51, %v7479_v51  ;;  %v7489_v47 = vmul.f32 %v7481_v53, %v7481_v53  ;;  %v19627_v29 = vld [vmem:[#allocation61_spill] sm:$0xff]  ;;  %v7486_v51 = vmul.f32 %v7478_v44, %v7478_v44  ;;  %v7488_v53 = vmul.f32 %v7480_v50, %v7480_v50  ;;  %v19655_v50 = vld [vmem:[#allocation102_spill] sm:$0xff] }
 0x654   :  { %v7494_v49 = vadd.f32 %v7493_v54, %v7492_v22  ;;  %v7508_v30 = vadd.f32 %v7507_v24, %v7506_v48  ;;  %v7500_v60 = vrot.slane %v7499_v28, 2  ;;  %v7514_v46 = vrot.slane %v7513_v27, 2  ;;  %v19628_v54 = vld [vmem:[#allocation58_spill] sm:$0xff]  ;;  %v19629_v24 = vld [vmem:[#allocation64_spill] sm:$0xff]  ;;  %v19654_v44 = vld [vmem:[#allocation81_spill] sm:$0xff] }
 0x655   :  { %v7525_v58 = vsel %vm6815_vm1, %v7487_v18, 0.0  ;;  %v7539_v23 = vsel %vm6815_vm1, %v7489_v47, 0.0  ;;  %v19632_v18 = vld [vmem:[#allocation63_spill] sm:$0xff]  ;;  %v19633_v47 = vld [vmem:[#allocation68_spill] sm:$0xff] }
 0x656   :  { %v7526_v31 = vrot.slane %v7525_v58, 4  ;;  %v7540_v56 = vrot.slane %v7539_v23, 4  ;;  %v7501_v0 = vadd.f32 %v7500_v60, %v7499_v28  ;;  %v7515_v39 = vadd.f32 %v7514_v46, %v7513_v27  ;;  %v19630_v28 = vld [vmem:[#allocation60_spill] sm:$0xff]  ;;  %v19631_v27 = vld [vmem:[#allocation66_spill] sm:$0xff]  ;;  %v19636_v60 = vld [vmem:[#allocation67_spill] sm:$0xff] }
 0x657   :  { %v7495_v5 = vrot.slane %v7494_v49, 1  ;;  %v7509_v12 = vrot.slane %v7508_v30, 1  ;;  %v19637_v46 = vld [vmem:[#allocation72_spill] sm:$0xff] }
 0x658   :  { %v7527_v40 = vadd.f32 %v7526_v31, %v7525_v58  ;;  %v7541_v2 = vadd.f32 %v7540_v56, %v7539_v23  ;;  %v7502_v14 = vrot.slane %v7501_v0, 1  ;;  %v7516_v15 = vrot.slane %v7515_v39, 1  ;;  %v19634_v58 = vld [vmem:[#allocation65_spill] sm:$0xff]  ;;  %v19635_v23 = vld [vmem:[#allocation70_spill] sm:$0xff] }
 0x659   :  { %v7496_v13 = vadd.f32 %v7495_v5, %v7494_v49  ;;  %v7510_v11 = vadd.f32 %v7509_v12, %v7508_v30  ;;  %v7518_v49 = vsel %vm6815_vm1, %v7486_v51, 0.0  ;;  %v7532_v30 = vsel %vm6815_vm1, %v7488_v53, 0.0  ;;  %v19638_v31 = vld [vmem:[#allocation69_spill] sm:$0xff]  ;;  %v19639_v56 = vld [vmem:[#allocation74_spill] sm:$0xff]  ;;  %v19643_v12 = vld [vmem:[#allocation96_spill] sm:$0xff] }
 0x65a   :  { %v7528_v4 = vrot.slane %v7527_v40, 2  ;;  %v7542_v19 = vrot.slane %v7541_v2, 2  ;;  %v7503_v7 = vadd.f32 %v7502_v14, %v7501_v0  ;;  %v7517_v3 = vadd.f32 %v7516_v15, %v7515_v39  ;;  %v19642_v5 = vld [vmem:[#allocation73_spill] sm:$0xff]  ;;  %v19644_v14 = vld [vmem:[#allocation75_spill] sm:$0xff] }
 0x65b   :  { %v7519_v0 = vrot.slane %v7518_v49, 4  ;;  %v7533_v39 = vrot.slane %v7532_v30, 4  ;;  %v19645_v15 = vld [vmem:[#allocation97_spill] sm:$0xff] }
 0x65c   :  { %v7529_v10 = vadd.f32 %v7528_v4, %v7527_v40  ;;  %v7543_v8 = vadd.f32 %v7542_v19, %v7541_v2  ;;  %7610 = vmatprep.mubr.f32.mxu0 %v7503_v7  ;;  %7680 = vmatprep.mubr.f32.mxu1 %v7517_v3  ;;  %v19640_v40 = vld [vmem:[#allocation71_spill] sm:$0xff]  ;;  %v19641_v2 = vld [vmem:[#allocation76_spill] sm:$0xff]  ;;  %v19648_v7 = vld [vmem:[#allocation78_spill] sm:$0xff] }
 0x65d   :  { %7611 = vmatmul.mubr.f32.vlgmr.msra.gmra.mxu0 %v7496_v13  ;;  %7681 = vmatmul.mubr.f32.vlgmr.msra.gmra.mxu1 %v7510_v11  ;;  %v7520_v4 = vadd.f32 %v7519_v0, %v7518_v49  ;;  %v7534_v19 = vadd.f32 %v7533_v39, %v7532_v30  ;;  %v19649_v3 = vld [vmem:[#allocation99_spill] sm:$0xff]  ;;  %v19651_v11 = vld [vmem:[#allocation100_spill] sm:$0xff]  ;;  %v19670_v49 = vld [vmem:[#allocation89_spill] sm:$0xff] }
 0x65e   :  { %v7530_v55 = vrot.slane %v7529_v10, 1  ;;  %v7544_v61 = vrot.slane %v7543_v8, 1  ;;  %14663 = vmatpush3.msra.mxu0 %v19622_v17  ;;  %14698 = vmatpush3.msra.mxu1 %v19623_v33  ;;  %v19650_v13 = vld [vmem:[#allocation79_spill] sm:$0xff]  ;;  %v19656_v17 = vld [vmem:[#allocation82_spill] sm:$0xff]  ;;  %v19676_v0 = vld [vmem:[#allocation92_spill] sm:$0xff] }
 0x65f   :  { %14664 = vmatprep.subr.mxu0 %v19624_v21  ;;  %14699 = vmatprep.subr.mxu1 %v19625_v52  ;;  %v19657_v33 = vld [vmem:[#allocation103_spill] sm:$0xff]  ;;  %v19659_v52 = vld [vmem:[#allocation104_spill] sm:$0xff]  ;;  %v19671_v30 = vld [vmem:[#allocation110_spill] sm:$0xff] }
 0x660   :  { %v7531_v22 = vadd.f32 %v7530_v55, %v7529_v10  ;;  %v7545_v48 = vadd.f32 %v7544_v61, %v7543_v8  ;;  %14665 = vmatpush3.msra.mxu0 %v19626_v32  ;;  %14700 = vmatpush3.msra.mxu1 %v19627_v29  ;;  %v19652_v10 = vld [vmem:[#allocation80_spill] sm:$0xff]  ;;  %v19653_v8 = vld [vmem:[#allocation101_spill] sm:$0xff]  ;;  %v7521_v55 = vrot.slane %v7520_v4, 2  ;;  %v7535_v61 = vrot.slane %v7534_v19, 2  ;;  %v19658_v21 = vld [vmem:[#allocation83_spill] sm:$0xff] }
 0x661   :  { %14666 = vmatprep.subr.mxu0 %v19628_v54  ;;  %14701 = vmatprep.subr.mxu1 %v19629_v24  ;;  %v19662_v32 = vld [vmem:[#allocation85_spill] sm:$0xff]  ;;  %v19663_v29 = vld [vmem:[#allocation106_spill] sm:$0xff]  ;;  %v19665_v24 = vld [vmem:[#allocation107_spill] sm:$0xff] }
 0x662   :  { %7750 = vmatprep.mubr.f32.mxu0 %v7531_v22  ;;  %7820 = vmatprep.mubr.f32.mxu1 %v7545_v48  ;;  %v19660_v22 = vld [vmem:[#allocation84_spill] sm:$0xff]  ;;  %v19661_v48 = vld [vmem:[#allocation105_spill] sm:$0xff]  ;;  %v7522_v51 = vadd.f32 %v7521_v55, %v7520_v4  ;;  %v7536_v53 = vadd.f32 %v7535_v61, %v7534_v19  ;;  %v19664_v54 = vld [vmem:[#allocation86_spill] sm:$0xff] }
 0x663   :  { %14667 = vmatpush3.msra.mxu0 %v19630_v28  ;;  %14702 = vmatpush3.msra.mxu1 %v19631_v27  ;;  %v19666_v28 = vld [vmem:[#allocation87_spill] sm:$0xff]  ;;  %v19667_v27 = vld [vmem:[#allocation108_spill] sm:$0xff]  ;;  %v19677_v39 = vld [vmem:[#allocation113_spill] sm:$0xff] }
 0x664   :  { %14668 = vmatprep.subr.mxu0 %v19632_v18  ;;  %14703 = vmatprep.subr.mxu1 %v19633_v47  ;;  %v19668_v18 = vld [vmem:[#allocation88_spill] sm:$0xff]  ;;  %v19669_v47 = vld [vmem:[#allocation109_spill] sm:$0xff]  ;;  %v19685_v19 = vld [vmem:[#allocation118_spill] sm:$0xff] }
 0x665   :  { %14669 = vmatpush3.msra.mxu0 %v19634_v58  ;;  %14704 = vmatpush3.msra.mxu1 %v19635_v23  ;;  %v19672_v58 = vld [vmem:[#allocation90_spill] sm:$0xff]  ;;  %v19673_v23 = vld [vmem:[#allocation111_spill] sm:$0xff]  ;;  %v19684_v4 = vld [vmem:[#allocation117_spill] sm:$0xff] }
 0x666   :  { %14670 = vmatprep.subr.mxu0 %v19636_v60  ;;  %14705 = vmatprep.subr.mxu1 %v19637_v46  ;;  %v7523_v60 = vrot.slane %v7522_v51, 1  ;;  %v7537_v46 = vrot.slane %v7536_v53, 1 }
 0x667   :  { %14671 = vmatpush3.msra.mxu0 %v19638_v31  ;;  %14706 = vmatpush3.msra.mxu1 %v19639_v56  ;;  %v19674_v31 = vld [vmem:[#allocation91_spill] sm:$0xff]  ;;  %v19675_v56 = vld [vmem:[#allocation112_spill] sm:$0xff] }
 0x668   :  { %14672 = vmatprep.subr.mxu0 %v19640_v40  ;;  %14707 = vmatprep.subr.mxu1 %v19641_v2  ;;  %v19678_v40 = vld [vmem:[#allocation93_spill] sm:$0xff]  ;;  %v19679_v2 = vld [vmem:[#allocation114_spill] sm:$0xff] }
 0x669   :  { %14673 = vmatpush3.msra.mxu0 %v19642_v5  ;;  %14708 = vmatpush3.msra.mxu1 %v19643_v12  ;;  %v19680_v5 = vld [vmem:[#allocation94_spill] sm:$0xff]  ;;  %v19681_v12 = vld [vmem:[#allocation115_spill] sm:$0xff] }
 0x66a   :  { %14674 = vmatprep.subr.mxu0 %v19644_v14  ;;  %14709 = vmatprep.subr.mxu1 %v19645_v15  ;;  %v7524_v14 = vadd.f32 %v7523_v60, %v7522_v51  ;;  %v7538_v15 = vadd.f32 %v7537_v46, %v7536_v53  ;;  %v15366_v46 = vld [vmem:[%s19237_s2 + $0x22c] ss:$12 sps:$4 sm:$0xff]  }
 0x66b   :  { %14675 = vmatpush3.msra.mxu0 %v19646_v26  ;;  %14710 = vmatpush3.msra.mxu1 %v19647_v63  ;;  %v19682_v26 = vld [vmem:[#allocation95_spill] sm:$0xff]  ;;  %v19683_v63 = vld [vmem:[#allocation116_spill] sm:$0xff] }
 0x66c   :  { %14676 = vmatprep.subr.mxu0 %v19648_v7  ;;  %14711 = vmatprep.subr.mxu1 %v19649_v3  ;;  %v19686_v7 = vld [vmem:[#allocation119_spill] sm:$0xff]  ;;  %v19687_v3 = vld [vmem:[#allocation120_spill] sm:$0xff] }
 0x66d   :  { %14677 = vmatpush3.msra.mxu0 %v19650_v13  ;;  %14712 = vmatpush3.msra.mxu1 %v19651_v11  ;;  %v19688_v13 = vld [vmem:[#allocation121_spill] sm:$0xff]  ;;  %v19689_v11 = vld [vmem:[#allocation122_spill] sm:$0xff] }
 0x66e   :  { %14678 = vmatprep.subr.mxu0 %v19652_v10  ;;  %14713 = vmatprep.subr.mxu1 %v19653_v8  ;;  %v19690_v10 = vld [vmem:[#allocation123_spill] sm:$0xff]  ;;  %v19691_v8 = vld [vmem:[#allocation124_spill] sm:$0xff] }
 0x66f   :  { %14679 = vmatpush3.msra.mxu0 %v19654_v44  ;;  %14714 = vmatpush3.msra.mxu1 %v19655_v50  ;;  %v19692_v44 = vld [vmem:[#allocation125_spill] sm:$0xff]  ;;  %v19693_v50 = vld [vmem:[#allocation126_spill] sm:$0xff] }
 0x670   :  { %14680 = vmatprep.subr.mxu0 %v19656_v17  ;;  %14715 = vmatprep.subr.mxu1 %v19657_v33 }
 0x671   :  { %14681 = vmatpush3.msra.mxu0 %v19658_v21  ;;  %14716 = vmatpush3.msra.mxu1 %v19659_v52 }
 0x672   :  { %14682 = vmatprep.subr.mxu0 %v19660_v22  ;;  %14717 = vmatprep.subr.mxu1 %v19661_v48 }
 0x673   :  { %14683 = vmatpush3.msra.mxu0 %v19662_v32  ;;  %14718 = vmatpush3.msra.mxu1 %v19663_v29 }
 0x674   :  { %14684 = vmatprep.subr.mxu0 %v19664_v54  ;;  %14719 = vmatprep.subr.mxu1 %v19665_v24 }
 0x675   :  { %14685 = vmatpush3.msra.mxu0 %v19666_v28  ;;  %14720 = vmatpush3.msra.mxu1 %v19667_v27 }
 0x676   :  { %14686 = vmatprep.subr.mxu0 %v19668_v18  ;;  %14721 = vmatprep.subr.mxu1 %v19669_v47  ;;  %v6813_v47 = vld [vmem:[#allocation9] sm:$0x1] }
 0x677   :  { %14687 = vmatpush3.msra.mxu0 %v19670_v49  ;;  %14722 = vmatpush3.msra.mxu1 %v19671_v30 }
 0x678   :  { %14688 = vmatprep.subr.mxu0 %v19672_v58  ;;  %14723 = vmatprep.subr.mxu1 %v19673_v23  ;;  %v6814_v23 = vld [vmem:[#allocation10] sm:$0x1] }
 0x679   :  { %14689 = vmatpush3.msra.mxu0 %v19674_v31  ;;  %14724 = vmatpush3.msra.mxu1 %v19675_v56  ;;  %v15375_v31 = vld [vmem:[%s19237_s2 + $0x7c] ss:$12 sps:$4 sm:$0xff]  }
 0x67a   :  { %14690 = vmatprep.subr.mxu0 %v19676_v0  ;;  %14725 = vmatprep.subr.mxu1 %v19677_v39  ;;  %v15378_v56 = vld [vmem:[%s19237_s2 + $0x1fc] ss:$12 sps:$4 sm:$0xff]   ;;  %v15373_v0 = vld [vmem:[%s19237_s2 + $0x78] ss:$12 sps:$4 sm:$0xff]  }
 0x67b   :  { %14691 = vmatpush3.msra.mxu0 %v19678_v40  ;;  %14726 = vmatpush3.msra.mxu1 %v19679_v2  ;;  %v15376_v39 = vld [vmem:[%s19237_s2 + $0x1f8] ss:$12 sps:$4 sm:$0xff]  }
 0x67c   :  { %14692 = vmatprep.subr.mxu0 %v19680_v5  ;;  %14727 = vmatprep.subr.mxu1 %v19681_v12  ;;  %v15381_v40 = vld [vmem:[%s19237_s2 + $0x64] ss:$12 sps:$4 sm:$0xff]   ;;  %v15379_v5 = vld [vmem:[%s19237_s2 + $0x60] ss:$12 sps:$4 sm:$0xff]  }
 0x67d   :  { %14693 = vmatpush3.msra.mxu0 %v19682_v26  ;;  %14728 = vmatpush3.msra.mxu1 %v19683_v63  ;;  %v15384_v2 = vld [vmem:[%s19237_s2 + $0x1e4] ss:$12 sps:$4 sm:$0xff]   ;;  %v15382_v12 = vld [vmem:[%s19237_s2 + $0x1e0] ss:$12 sps:$4 sm:$0xff]   ;;  %v15385_v26 = vld [vmem:[%s19237_s2 + $0x48] ss:$12 sps:$4 sm:$0xff]  }
 0x67e   :  { %7751 = vmatmul.mubr.f32.vlgmr.msra.gmra.mxu0 %v7524_v14  ;;  %7821 = vmatmul.mubr.f32.vlgmr.msra.gmra.mxu1 %v7538_v15  ;;  %v15387_v14 = vld [vmem:[%s19237_s2 + $0x4c] ss:$12 sps:$4 sm:$0xff]   ;;  %v15388_v63 = vld [vmem:[%s19237_s2 + $0x1c8] ss:$12 sps:$4 sm:$0xff]  }
 0x67f   :  { %7863 = vmatprep.subr.mxu0 %v19684_v4  ;;  %7934 = vmatprep.subr.mxu1 %v19685_v19  ;;  %v15390_v15 = vld [vmem:[%s19237_s2 + $0x1cc] ss:$12 sps:$4 sm:$0xff]  }
 0x680   :  { %7864 = vmatpush1.msra.mxu0 %v19686_v7  ;;  %7935 = vmatpush1.msra.mxu1 %v19687_v3 }
 0x681   :  { %7865 = vmatprep.subr.mxu0 %v19688_v13  ;;  %7936 = vmatprep.subr.mxu1 %v19689_v11 }
 0x682   :  { %7866 = vmatpush1.msra.mxu0 %v19690_v10  ;;  %7899 = vmatprep.mubr.f32.mxu0 %v19589_v20 }
 0x683   :  { %7937 = vmatpush1.msra.mxu1 %v19691_v8  ;;  %7970 = vmatprep.mubr.f32.mxu1 %v19589_v20 }
 0x684   :  { %8005 = vmatprep.subr.mxu0 %v19692_v44  ;;  %8076 = vmatprep.subr.mxu1 %v19693_v50 }
 0x71d   :  { %v14624_v55 = vpop.f32.mrf.mxu0  ;;  %v14659_v61 = vpop.f32.mrf.mxu1 }
 0x71f   :  { %v14625_v17 = vpop.f32.mrf.mxu0  ;;  %v14660_v33 = vpop.f32.mrf.mxu1 }
 0x720   :  { %v14626_v21 = vadd.f32 %v14625_v17, %v14624_v55  ;;  %v14661_v52 = vadd.f32 %v14660_v33, %v14659_v61  ;;  %v15403_v55 = vld [vmem:[%s19237_s2] ss:$12 sps:$4 sm:$0xff]  }
 0x721   :  { %v15406_v61 = vld [vmem:[%s19237_s2 + $0x180] ss:$12 sps:$4 sm:$0xff]  }
 0x722   :  { %v7683_v51 = vadd.f32 %v14661_v52, %v14626_v21  ;;  %v15411_v17 = vld [vmem:[%s19237_s2 + $0x16c] ss:$12 sps:$4 sm:$0xff]   ;;  %v15409_v21 = vld [vmem:[%s19237_s2 + $0x168] ss:$12 sps:$4 sm:$0xff]  }
 0x723   :  { %v15414_v33 = vld [vmem:[%s19237_s2 + $0x2ec] ss:$12 sps:$4 sm:$0xff]   ;;  %v15412_v52 = vld [vmem:[%s19237_s2 + $0x2e8] ss:$12 sps:$4 sm:$0xff]  }
 0x73e   :  { %v14694_v22 = vpop.f32.mrf.mxu0  ;;  %v14729_v48 = vpop.f32.mrf.mxu1 }
 0x740   :  { %v14695_v32 = vpop.f32.mrf.mxu0  ;;  %v14730_v29 = vpop.f32.mrf.mxu1 }
 0x741   :  { %v14696_v53 = vadd.f32 %v14695_v32, %v14694_v22  ;;  %v14731_v24 = vadd.f32 %v14730_v29, %v14729_v48  ;;  %v15417_v22 = vld [vmem:[%s19237_s2 + $0x154] ss:$12 sps:$4 sm:$0xff]   ;;  %v15415_v32 = vld [vmem:[%s19237_s2 + $0x150] ss:$12 sps:$4 sm:$0xff]  }
 0x742   :  { %v15420_v48 = vld [vmem:[%s19237_s2 + $0x2d4] ss:$12 sps:$4 sm:$0xff]   ;;  %v15418_v29 = vld [vmem:[%s19237_s2 + $0x2d0] ss:$12 sps:$4 sm:$0xff]  }
 0x743   :  { %v7753_v54 = vadd.f32 %v14696_v53, %v7683_v51  ;;  %v15423_v51 = vld [vmem:[%s19237_s2 + $0x13c] ss:$12 sps:$4 sm:$0xff]  }
 0x744   :  { %v15426_v53 = vld [vmem:[%s19237_s2 + $0x2bc] ss:$12 sps:$4 sm:$0xff]  }
 0x745   :  { %v7823_v28 = vadd.f32 %v14731_v24, %v7753_v54  ;;  %v15421_v54 = vld [vmem:[%s19237_s2 + $0x138] ss:$12 sps:$4 sm:$0xff]  }
 0x746   :  { %v15424_v24 = vld [vmem:[%s19237_s2 + $0x2b8] ss:$12 sps:$4 sm:$0xff]  }
 0x747   :  { %v7826_v27 = vmul.f32 0.0078125, %v7823_v28  ;;  %v15429_v28 = vld [vmem:[%s19237_s2 + $0x124] ss:$12 sps:$4 sm:$0xff]  }
 0x749   :  { %v7827_v18 = vadd.f32 0.001, %v7826_v27  ;;  %v15432_v27 = vld [vmem:[%s19237_s2 + $0x2a4] ss:$12 sps:$4 sm:$0xff]  }
 0x74b   :  { %15689 = vrsqrt.f32 %v7827_v18  ;;  %v15427_v18 = vld [vmem:[%s19237_s2 + $0x120] ss:$12 sps:$4 sm:$0xff]  }
 0x758   :  { %v15690_v49 = vpop.eup %15689 }
 0x759   :  { %v7829_v30 = vmul.f32 %v15690_v49, %v6813_v47  ;;  %v15430_v47 = vld [vmem:[%s19237_s2 + $0x2a0] ss:$12 sps:$4 sm:$0xff]   ;;  %v15433_v49 = vld [vmem:[%s19237_s2 + $0x108] ss:$12 sps:$4 sm:$0xff]  }
 0x75b   :  { %14170 = vmatmul.mubr.msk.f32.vlgmr.msra.gmra.mxu0 %vm7154_vm2, %v7829_v30  ;;  %14171 = vmatmul.mubr.msk.f32.vlgmr.msra.gmra.mxu1 %vm7154_vm2, %v7829_v30  ;;  %v7830_v58 = vmul.f32 %v7829_v30, %v17154_v45  ;;  %v15363_v45 = vld [vmem:[%s19237_s2 + $0xac] ss:$12 sps:$4 sm:$0xff]  }
 0x75c   :  { %8006 = vmatpush1.msra.mxu0 %v17156_v34  ;;  %8077 = vmatpush1.msra.mxu1 %v17158_v37 }
 0x75d   :  { %8007 = vmatprep.subr.mxu0 %v17160_v41  ;;  %8078 = vmatprep.subr.mxu1 %v17162_v43  ;;  %v7831_v60 = vsub.f32 %v6814_v23, %v7830_v58  ;;  %v15436_v58 = vld [vmem:[%s19237_s2 + $0x288] ss:$12 sps:$4 sm:$0xff]   ;;  %v15438_v23 = vld [vmem:[%s19237_s2 + $0x28c] ss:$12 sps:$4 sm:$0xff]  }
 0x75e   :  { %8008 = vmatpush1.msra.mxu0 %v17168_v9  ;;  %8041 = vmatprep.mubr.f32.mxu0 %v19589_v20 }
 0x75f   :  { %8079 = vmatpush1.msra.mxu1 %v17172_v1  ;;  %8112 = vmatprep.mubr.f32.mxu1 %v19589_v20 }
 0x760   :  { %14172 = vmatmul.mubr.msk.f32.vlgmr.msra.gmra.mxu0 %vm7154_vm2, %v7829_v30  ;;  %14173 = vmatmul.mubr.msk.f32.vlgmr.msra.gmra.mxu1 %vm7154_vm2, %v7829_v30  ;;  %v15435_v30 = vld [vmem:[%s19237_s2 + $0x10c] ss:$12 sps:$4 sm:$0xff]  }
 0x761   :  { %8150 = vmatprep.subr.mxu0 %v19684_v4  ;;  %8221 = vmatprep.subr.mxu1 %v19685_v19  ;;  %v15393_v4 = vld [vmem:[%s19237_s2 + $0x34] ss:$12 sps:$4 sm:$0xff]  }
 0x762   :  { %8151 = vmatpush1.msra.mxu0 %v19686_v7  ;;  %8222 = vmatpush1.msra.mxu1 %v19687_v3  ;;  %v15396_v19 = vld [vmem:[%s19237_s2 + $0x1b4] ss:$12 sps:$4 sm:$0xff]   ;;  %v15391_v7 = vld [vmem:[%s19237_s2 + $0x30] ss:$12 sps:$4 sm:$0xff]  }
 0x763   :  { %8152 = vmatprep.subr.mxu0 %v19688_v13  ;;  %8223 = vmatprep.subr.mxu1 %v19689_v11  ;;  %v15394_v3 = vld [vmem:[%s19237_s2 + $0x1b0] ss:$12 sps:$4 sm:$0xff]  }
 0x764   :  { %8153 = vmatpush1.msra.mxu0 %v19690_v10  ;;  %8186 = vmatprep.mubr.f32.mxu0 %v19589_v20  ;;  %v15399_v13 = vld [vmem:[%s19237_s2 + $0x1c] ss:$12 sps:$4 sm:$0xff]   ;;  %v15397_v10 = vld [vmem:[%s19237_s2 + $0x18] ss:$12 sps:$4 sm:$0xff]  }
 0x765   :  { %8224 = vmatpush1.msra.mxu1 %v19691_v8  ;;  %8257 = vmatprep.mubr.f32.mxu1 %v19589_v20  ;;  %v15402_v11 = vld [vmem:[%s19237_s2 + $0x19c] ss:$12 sps:$4 sm:$0xff]   ;;  %v15400_v8 = vld [vmem:[%s19237_s2 + $0x198] ss:$12 sps:$4 sm:$0xff]  }
 0x766   :  { %14174 = vmatmul.mubr.msk.f32.vlgmr.msra.gmra.mxu0 %vm7154_vm2, %v7831_v60  ;;  %14175 = vmatmul.mubr.msk.f32.vlgmr.msra.gmra.mxu1 %vm7154_vm2, %v7831_v60 }
 0x767   :  { %8292 = vmatprep.subr.mxu0 %v19692_v44  ;;  %8363 = vmatprep.subr.mxu1 %v19693_v50  ;;  %v15405_v44 = vld [vmem:[%s19237_s2 + $0x4] ss:$12 sps:$4 sm:$0xff]  }
 0x768   :  { %8293 = vmatpush1.msra.mxu0 %v17156_v34  ;;  %8364 = vmatpush1.msra.mxu1 %v17158_v37  ;;  %v15361_v34 = vld [vmem:[%s19237_s2 + $0xa8] ss:$12 sps:$4 sm:$0xff]   ;;  %v15408_v50 = vld [vmem:[%s19237_s2 + $0x184] ss:$12 sps:$4 sm:$0xff]  }
 0x769   :  { %8294 = vmatprep.subr.mxu0 %v17160_v41  ;;  %8365 = vmatprep.subr.mxu1 %v17162_v43  ;;  %v15364_v43 = vld [vmem:[%s19237_s2 + $0x228] ss:$12 sps:$4 sm:$0xff]  }
 0x76a   :  { %8295 = vmatpush1.msra.mxu0 %v17168_v9  ;;  %8328 = vmatprep.mubr.f32.mxu0 %v19589_v20  ;;  %v15369_v41 = vld [vmem:[%s19237_s2 + $0x94] ss:$12 sps:$4 sm:$0xff]   ;;  %v15367_v9 = vld [vmem:[%s19237_s2 + $0x90] ss:$12 sps:$4 sm:$0xff]  }
 0x76b   :  { %8366 = vmatpush1.msra.mxu1 %v17172_v1  ;;  %8399 = vmatprep.mubr.f32.mxu1 %v19589_v20  ;;  %v15372_v37 = vld [vmem:[%s19237_s2 + $0x214] ss:$12 sps:$4 sm:$0xff]   ;;  %v15370_v1 = vld [vmem:[%s19237_s2 + $0x210] ss:$12 sps:$4 sm:$0xff]  }
 0x76c   :  { %14176 = vmatmul.mubr.msk.f32.vlgmr.msra.gmra.mxu0 %vm7154_vm2, %v7831_v60  ;;  %14177 = vmatmul.mubr.msk.f32.vlgmr.msra.gmra.mxu1 %vm7154_vm2, %v7831_v60  ;;  %v15439_v60 = vld [vmem:[%s19237_s2 + $0xf0] ss:$12 sps:$4 sm:$0xff]  }
 0x76d   :  { %9782 = vmatprep.subr.bf16.mxu0 %v15363_v45  ;;  %9823 = vmatprep.subr.bf16.mxu1 %v15366_v46  ;;  %v15441_v45 = vld [vmem:[%s19237_s2 + $0xf4] ss:$12 sps:$4 sm:$0xff]   ;;  %v15442_v46 = vld [vmem:[%s19237_s2 + $0x270] ss:$12 sps:$4 sm:$0xff]  }
 0x76e   :  { %9783 = vmatpush1.bf16.msra.mxu0 %v15361_v34  ;;  %9824 = vmatpush1.bf16.msra.mxu1 %v15364_v43  ;;  %v15444_v34 = vld [vmem:[%s19237_s2 + $0x274] ss:$12 sps:$4 sm:$0xff]   ;;  %v15447_v43 = vld [vmem:[%s19237_s2 + $0xdc] ss:$12 sps:$4 sm:$0xff]  }
 0x76f   :  { %9784 = vmatprep.subr.bf16.mxu0 %v15369_v41  ;;  %9825 = vmatprep.subr.bf16.mxu1 %v15372_v37  ;;  %v15450_v41 = vld [vmem:[%s19237_s2 + $0x25c] ss:$12 sps:$4 sm:$0xff]   ;;  %v15445_v37 = vld [vmem:[%s19237_s2 + $0xd8] ss:$12 sps:$4 sm:$0xff]  }
 0x772   :  { %9785 = vmatpush1.bf16.msra.mxu0 %v15367_v9  ;;  %9826 = vmatpush1.bf16.msra.mxu1 %v15370_v1  ;;  %v15448_v9 = vld [vmem:[%s19237_s2 + $0x258] ss:$12 sps:$4 sm:$0xff]  }
 0x773   :  { %9786 = vmatprep.subr.bf16.mxu0 %v15375_v31  ;;  %9827 = vmatprep.subr.bf16.mxu1 %v15378_v56  ;;  %v15453_v1 = vld [vmem:[%s19237_s2 + $0xc4] ss:$12 sps:$4 sm:$0xff]   ;;  %v15451_v56 = vld [vmem:[%s19237_s2 + $0xc0] ss:$12 sps:$4 sm:$0xff]  }
 0x774   :  { %v15456_v31 = vld [vmem:[%s19237_s2 + $0x244] ss:$12 sps:$4 sm:$0xff]  }
 0x776   :  { %9787 = vmatpush1.bf16.msra.mxu0 %v15373_v0  ;;  %9828 = vmatpush1.bf16.msra.mxu1 %v15376_v39  ;;  %v15454_v0 = vld [vmem:[%s19237_s2 + $0x240] ss:$12 sps:$4 sm:$0xff]  }
 0x777   :  { %9788 = vmatprep.subr.bf16.mxu0 %v15381_v40  ;;  %9829 = vmatprep.subr.bf16.mxu1 %v15384_v2  ;;  %v15459_v39 = vld [vmem:[%s19237_s2 + $0x3ac] ss:$12 sps:$4 sm:$0xff]  }
 0x778   :  { %v15462_v40 = vld [vmem:[%s19237_s2 + $0x52c] ss:$12 sps:$4 sm:$0xff]  }
 0x77a   :  { %9789 = vmatpush1.bf16.msra.mxu0 %v15379_v5  ;;  %9830 = vmatpush1.bf16.msra.mxu1 %v15382_v12 }
 0x77b   :  { %9790 = vmatprep.subr.bf16.mxu0 %v15387_v14  ;;  %9831 = vmatprep.subr.bf16.mxu1 %v15390_v15 }
 0x77e   :  { %9791 = vmatpush1.bf16.msra.mxu0 %v15385_v26  ;;  %9832 = vmatpush1.bf16.msra.mxu1 %v15388_v63 }
 0x77f   :  { %9792 = vmatprep.subr.bf16.mxu0 %v15393_v4  ;;  %9833 = vmatprep.subr.bf16.mxu1 %v15396_v19 }
 0x782   :  { %9793 = vmatpush1.bf16.msra.mxu0 %v15391_v7  ;;  %9834 = vmatpush1.bf16.msra.mxu1 %v15394_v3 }
 0x783   :  { %9794 = vmatprep.subr.bf16.mxu0 %v15399_v13  ;;  %9835 = vmatprep.subr.bf16.mxu1 %v15402_v11 }
 0x786   :  { %9795 = vmatpush1.bf16.msra.mxu0 %v15397_v10  ;;  %9836 = vmatpush1.bf16.msra.mxu1 %v15400_v8 }
 0x787   :  { %9796 = vmatprep.subr.bf16.mxu0 %v15405_v44  ;;  %9837 = vmatprep.subr.bf16.mxu1 %v15408_v50 }
 0x78a   :  { %9797 = vmatpush1.bf16.msra.mxu0 %v15403_v55  ;;  %9838 = vmatpush1.bf16.msra.mxu1 %v15406_v61 }
 0x78b   :  { %9798 = vmatprep.subr.bf16.mxu0 %v15411_v17  ;;  %9839 = vmatprep.subr.bf16.mxu1 %v15414_v33 }
 0x78e   :  { %9799 = vmatpush2.bf16.msra.mxu0 %v15409_v21  ;;  %9840 = vmatpush2.bf16.msra.mxu1 %v15412_v52 }
 0x78f   :  { %9800 = vmatprep.subr.bf16.mxu0 %v15417_v22  ;;  %9841 = vmatprep.subr.bf16.mxu1 %v15420_v48 }
 0x792   :  { %9801 = vmatpush2.bf16.msra.mxu0 %v15415_v32  ;;  %9842 = vmatpush2.bf16.msra.mxu1 %v15418_v29 }
 0x793   :  { %9802 = vmatprep.subr.bf16.mxu0 %v15423_v51  ;;  %9843 = vmatprep.subr.bf16.mxu1 %v15426_v53 }
 0x796   :  { %9803 = vmatpush2.bf16.msra.mxu0 %v15421_v54  ;;  %9844 = vmatpush2.bf16.msra.mxu1 %v15424_v24 }
 0x797   :  { %9804 = vmatprep.subr.bf16.mxu0 %v15429_v28  ;;  %9845 = vmatprep.subr.bf16.mxu1 %v15432_v27 }
 0x79a   :  { %9805 = vmatpush2.bf16.msra.mxu0 %v15427_v18  ;;  %9846 = vmatpush2.bf16.msra.mxu1 %v15430_v47 }
 0x79b   :  { %9806 = vmatprep.subr.bf16.mxu0 %v15435_v30  ;;  %9847 = vmatprep.subr.bf16.mxu1 %v15438_v23 }
 0x79e   :  { %9807 = vmatpush2.bf16.msra.mxu0 %v15433_v49  ;;  %9848 = vmatpush2.bf16.msra.mxu1 %v15436_v58 }
 0x79f   :  { %9808 = vmatprep.subr.bf16.mxu0 %v15441_v45  ;;  %9849 = vmatprep.subr.bf16.mxu1 %v15444_v34  ;;  %v15457_v45 = vld [vmem:[%s19237_s2 + $0x3a8] ss:$12 sps:$4 sm:$0xff]  }
 0x7a0   :  { %v15465_v34 = vld [vmem:[%s19237_s2 + $0x394] ss:$12 sps:$4 sm:$0xff]  }
 0x7a2   :  { %9809 = vmatpush2.bf16.msra.mxu0 %v15439_v60  ;;  %9850 = vmatpush2.bf16.msra.mxu1 %v15442_v46 }
 0x7a3   :  { %9810 = vmatprep.subr.bf16.mxu0 %v15447_v43  ;;  %9851 = vmatprep.subr.bf16.mxu1 %v15450_v41  ;;  %v15468_v43 = vld [vmem:[%s19237_s2 + $0x514] ss:$12 sps:$4 sm:$0xff]  }
 0x7a6   :  { %9811 = vmatpush2.bf16.msra.mxu0 %v15445_v37  ;;  %9852 = vmatpush2.bf16.msra.mxu1 %v15448_v9 }
 0x7a7   :  { %9812 = vmatprep.subr.bf16.mxu0 %v15453_v1  ;;  %9853 = vmatprep.subr.bf16.mxu1 %v15456_v31  ;;  %v15463_v31 = vld [vmem:[%s19237_s2 + $0x390] ss:$12 sps:$4 sm:$0xff]  }
 0x7aa   :  { %9813 = vmatpush2.bf16.msra.mxu0 %v15451_v56  ;;  %9854 = vmatpush2.bf16.msra.mxu1 %v15454_v0  ;;  %v15466_v56 = vld [vmem:[%s19237_s2 + $0x510] ss:$12 sps:$4 sm:$0xff]  }
 0x7ab   :  { %9864 = vmatprep.subr.bf16.mxu0 %v15459_v39  ;;  %9905 = vmatprep.subr.bf16.mxu1 %v15462_v40  ;;  %v15471_v40 = vld [vmem:[%s19237_s2 + $0x37c] ss:$12 sps:$4 sm:$0xff]  }
 0x81b   :  { %v7901_v2 = vpop.f32.mrf.mxu0  ;;  %v7972_v5 = vpop.f32.mrf.mxu1 }
 0x81c   :  { %v8409_v19 = vrot.slane %v7901_v2, %v17251_v62  ;;  %v8417_v7 = vrot.slane %v7972_v5, %v17251_v62  ;;  %v15474_v2 = vld [vmem:[%s19237_s2 + $0x4fc] ss:$12 sps:$4 sm:$0xff]   ;;  %v15469_v5 = vld [vmem:[%s19237_s2 + $0x378] ss:$12 sps:$4 sm:$0xff]  }
 0x81d   :  { %v7903_v12 = vpop.f32.mrf.mxu0  ;;  %v7974_v14 = vpop.f32.mrf.mxu1 }
 0x81e   :  { %v8413_v3 = vrot.slane %v7903_v12, %v17251_v62  ;;  %v8421_v13 = vrot.slane %v7974_v14, %v17251_v62  ;;  %v8438_v8 = vmul.f32 %v8409_v19, %v19616_v6  ;;  %v8440_v44 = vmul.f32 %v8417_v7, %v19617_v59  ;;  %v15472_v12 = vld [vmem:[%s19237_s2 + $0x4f8] ss:$12 sps:$4 sm:$0xff]   ;;  %v15478_v19 = vld [vmem:[%s19237_s2 + $0x4e0] ss:$12 sps:$4 sm:$0xff]  }
 0x81f   :  { %v15477_v14 = vld [vmem:[%s19237_s2 + $0x364] ss:$12 sps:$4 sm:$0xff]   ;;  %v15483_v7 = vld [vmem:[%s19237_s2 + $0x34c] ss:$12 sps:$4 sm:$0xff]  }
 0x820   :  { %v17586_v15 = vpop.f32.mrf.mxu0  ;;  %v17588_v26 = vpop.f32.mrf.mxu1  ;;  %v8439_v61 = vmul.f32 %v8413_v3, %v19618_v25  ;;  %v8441_v17 = vmul.f32 %v8421_v13, %v19619_v42  ;;  %v15486_v3 = vld [vmem:[%s19237_s2 + $0x4cc] ss:$12 sps:$4 sm:$0xff]   ;;  %v15481_v13 = vld [vmem:[%s19237_s2 + $0x348] ss:$12 sps:$4 sm:$0xff]  }
 0x822   :  { %v8045_v63 = vpop.f32.mrf.mxu0  ;;  %v8116_v4 = vpop.f32.mrf.mxu1 }
 0x823   :  { %v8429_v6 = vrot.slane %v8045_v63, %v17251_v62  ;;  %v8437_v59 = vrot.slane %v8116_v4, %v17251_v62  ;;  %v15480_v63 = vld [vmem:[%s19237_s2 + $0x4e4] ss:$12 sps:$4 sm:$0xff]   ;;  %v15475_v4 = vld [vmem:[%s19237_s2 + $0x360] ss:$12 sps:$4 sm:$0xff]  }
 0x825   :  { %v8443_v27 = vmul.f32 %v8429_v6, %v19620_v38  ;;  %v8445_v18 = vmul.f32 %v8437_v59, %v17118_v35  ;;  %v15460_v38 = vld [vmem:[%s19237_s2 + $0x528] ss:$12 sps:$4 sm:$0xff]   ;;  %v15510_v6 = vld [vmem:[%s19237_s2 + $0x5ec] ss:$12 sps:$4 sm:$0xff]  }
 0x826   :  { %v8188_v11 = vpop.f32.mrf.mxu0  ;;  %v8259_v10 = vpop.f32.mrf.mxu1  ;;  %v15505_v59 = vld [vmem:[%s19237_s2 + $0x468] ss:$12 sps:$4 sm:$0xff]  }
 0x827   :  { %v8449_v50 = vrot.slane %v8188_v11, %v17251_v62  ;;  %v8457_v55 = vrot.slane %v8259_v10, %v17251_v62  ;;  %v15484_v11 = vld [vmem:[%s19237_s2 + $0x4c8] ss:$12 sps:$4 sm:$0xff]  }
 0x828   :  { %v8190_v33 = vpop.f32.mrf.mxu0  ;;  %v8261_v21 = vpop.f32.mrf.mxu1  ;;  %v15489_v10 = vld [vmem:[%s19237_s2 + $0x334] ss:$12 sps:$4 sm:$0xff]  }
 0x829   :  { %v8478_v52 = vadd.f32 %v8449_v50, %v8438_v8  ;;  %v8480_v22 = vadd.f32 %v8457_v55, %v8440_v44  ;;  %v8453_v48 = vrot.slane %v8190_v33, %v17251_v62  ;;  %v8461_v32 = vrot.slane %v8261_v21, %v17251_v62  ;;  %v15492_v8 = vld [vmem:[%s19237_s2 + $0x4b4] ss:$12 sps:$4 sm:$0xff]   ;;  %v15487_v44 = vld [vmem:[%s19237_s2 + $0x330] ss:$12 sps:$4 sm:$0xff]   ;;  %v15496_v33 = vld [vmem:[%s19237_s2 + $0x498] ss:$12 sps:$4 sm:$0xff]  }
 0x82a   :  { %v15490_v50 = vld [vmem:[%s19237_s2 + $0x4b0] ss:$12 sps:$4 sm:$0xff]  }
 0x82b   :  { %v8479_v29 = vadd.f32 %v8453_v48, %v8439_v61  ;;  %v8481_v51 = vadd.f32 %v8461_v32, %v8441_v17  ;;  %v8486_v53 = vmax.f32 %v8478_v52, 0.0  ;;  %v8488_v54 = vmax.f32 %v8480_v22, 0.0  ;;  %v15495_v55 = vld [vmem:[%s19237_s2 + $0x31c] ss:$12 sps:$4 sm:$0xff]   ;;  %v15493_v17 = vld [vmem:[%s19237_s2 + $0x318] ss:$12 sps:$4 sm:$0xff]  }
 0x82c   :  { %v17604_v24 = vpop.f32.mrf.mxu0  ;;  %v17606_v25 = vpop.f32.mrf.mxu1  ;;  %v15498_v61 = vld [vmem:[%s19237_s2 + $0x49c] ss:$12 sps:$4 sm:$0xff]   ;;  %v15501_v21 = vld [vmem:[%s19237_s2 + $0x304] ss:$12 sps:$4 sm:$0xff]   ;;  %v15499_v22 = vld [vmem:[%s19237_s2 + $0x300] ss:$12 sps:$4 sm:$0xff]  }
 0x82d   :  { %v8487_v42 = vmax.f32 %v8479_v29, 0.0  ;;  %v8489_v28 = vmax.f32 %v8481_v51, 0.0  ;;  %v17622_v46 = vpack.c.bf16 %v8486_v53, %v8486_v53  ;;  %v17624_v35 = vpack.c.bf16 %v8488_v54, %v8488_v54  ;;  %v15504_v52 = vld [vmem:[%s19237_s2 + $0x484] ss:$12 sps:$4 sm:$0xff]   ;;  %v15502_v48 = vld [vmem:[%s19237_s2 + $0x480] ss:$12 sps:$4 sm:$0xff]  }
 0x82e   :  { %v8332_v47 = vpop.f32.mrf.mxu0  ;;  %v8403_v49 = vpop.f32.mrf.mxu1  ;;  %v15507_v32 = vld [vmem:[%s19237_s2 + $0x46c] ss:$12 sps:$4 sm:$0xff]   ;;  %v15508_v29 = vld [vmem:[%s19237_s2 + $0x5e8] ss:$12 sps:$4 sm:$0xff]   ;;  %v15511_v54 = vld [vmem:[%s19237_s2 + $0x450] ss:$12 sps:$4 sm:$0xff]  }
 0x82f   :  { %v17610_v30 = vpack.c.bf16 %v8487_v42, %v8487_v42  ;;  %v17612_v58 = vpack.c.bf16 %v8489_v28, %v8489_v28  ;;  %v8469_v23 = vrot.slane %v8332_v47, %v17251_v62  ;;  %v8477_v60 = vrot.slane %v8403_v49, %v17251_v62  ;;  %v15513_v51 = vld [vmem:[%s19237_s2 + $0x454] ss:$12 sps:$4 sm:$0xff]   ;;  %v15514_v42 = vld [vmem:[%s19237_s2 + $0x5d0] ss:$12 sps:$4 sm:$0xff]   ;;  %v15520_v47 = vld [vmem:[%s19237_s2 + $0x5b8] ss:$12 sps:$4 sm:$0xff]  }
 0x830   :  { %v15516_v53 = vld [vmem:[%s19237_s2 + $0x5d4] ss:$12 sps:$4 sm:$0xff]   ;;  %v15519_v28 = vld [vmem:[%s19237_s2 + $0x43c] ss:$12 sps:$4 sm:$0xff]   ;;  %v15525_v49 = vld [vmem:[%s19237_s2 + $0x424] ss:$12 sps:$4 sm:$0xff]  }
 0x831   :  { %v8483_v41 = vadd.f32 %v8469_v23, %v8443_v27  ;;  %v8485_v37 = vadd.f32 %v8477_v60, %v8445_v18  ;;  %9814 = vmatprep.mubr.bf16.mxu0 %v17610_v30  ;;  %9855 = vmatprep.mubr.bf16.mxu1 %v17612_v58  ;;  %v15522_v27 = vld [vmem:[%s19237_s2 + $0x5bc] ss:$12 sps:$4 sm:$0xff]   ;;  %v15517_v18 = vld [vmem:[%s19237_s2 + $0x438] ss:$12 sps:$4 sm:$0xff]   ;;  %v15523_v60 = vld [vmem:[%s19237_s2 + $0x420] ss:$12 sps:$4 sm:$0xff]  }
 0x832   :  { %9815 = vmatmul.mubr.bf16.vlgmr.msra.gmra.mxu0 %v17622_v46  ;;  %9856 = vmatmul.mubr.bf16.vlgmr.msra.gmra.mxu1 %v17624_v35  ;;  %v15528_v23 = vld [vmem:[%s19237_s2 + $0x5a4] ss:$12 sps:$4 sm:$0xff]  }
 0x833   :  { %v8491_v9 = vmax.f32 %v8483_v41, 0.0  ;;  %v8493_v1 = vmax.f32 %v8485_v37, 0.0  ;;  %9865 = vmatpush1.bf16.msra.mxu0 %v15457_v45  ;;  %9906 = vmatpush1.bf16.msra.mxu1 %v15460_v38  ;;  %v15526_v45 = vld [vmem:[%s19237_s2 + $0x5a0] ss:$12 sps:$4 sm:$0xff]   ;;  %v15532_v41 = vld [vmem:[%s19237_s2 + $0x588] ss:$12 sps:$4 sm:$0xff]  }
 0x834   :  { %9866 = vmatprep.subr.bf16.mxu0 %v15465_v34  ;;  %9907 = vmatprep.subr.bf16.mxu1 %v15468_v43  ;;  %v15531_v38 = vld [vmem:[%s19237_s2 + $0x40c] ss:$12 sps:$4 sm:$0xff]   ;;  %v15529_v43 = vld [vmem:[%s19237_s2 + $0x408] ss:$12 sps:$4 sm:$0xff]  }
 0x835   :  { %v17642_v0 = vpack.c.bf16 %v8491_v9, %v8491_v9  ;;  %v17644_v39 = vpack.c.bf16 %v8493_v1, %v8493_v1  ;;  %v15534_v34 = vld [vmem:[%s19237_s2 + $0x58c] ss:$12 sps:$4 sm:$0xff]   ;;  %v15537_v37 = vld [vmem:[%s19237_s2 + $0x3f4] ss:$12 sps:$4 sm:$0xff]   ;;  %v8425_v1 = vrot.slane %v17586_v15, %v17251_v62  ;;  %v15543_v15 = vld [vmem:[%s19237_s2 + $0x3dc] ss:$12 sps:$4 sm:$0xff]  }
 0x836   :  { %v15540_v9 = vld [vmem:[%s19237_s2 + $0x574] ss:$12 sps:$4 sm:$0xff]  }
 0x837   :  { %9896 = vmatprep.mubr.bf16.mxu0 %v17642_v0  ;;  %9937 = vmatprep.mubr.bf16.mxu1 %v17644_v39 }
 0x838   :  { %9867 = vmatpush1.bf16.msra.mxu0 %v15463_v31  ;;  %9908 = vmatpush1.bf16.msra.mxu1 %v15466_v56  ;;  %v8433_v31 = vrot.slane %v17588_v26, %v17251_v62  ;;  %v15535_v56 = vld [vmem:[%s19237_s2 + $0x3f0] ss:$12 sps:$4 sm:$0xff]  }
 0x839   :  { %9868 = vmatprep.subr.bf16.mxu0 %v15471_v40  ;;  %9909 = vmatprep.subr.bf16.mxu1 %v15474_v2  ;;  %v15538_v40 = vld [vmem:[%s19237_s2 + $0x570] ss:$12 sps:$4 sm:$0xff]   ;;  %v8465_v2 = vrot.slane %v17604_v24, %v17251_v62  ;;  %v15541_v24 = vld [vmem:[%s19237_s2 + $0x3d8] ss:$12 sps:$4 sm:$0xff]  }
 0x83a   :  { %v15546_v26 = vld [vmem:[%s19237_s2 + $0x55c] ss:$12 sps:$4 sm:$0xff]  }
 0x83c   :  { %9869 = vmatpush1.bf16.msra.mxu0 %v15469_v5  ;;  %9910 = vmatpush1.bf16.msra.mxu1 %v15472_v12  ;;  %v8473_v5 = vrot.slane %v17606_v25, %v17251_v62  ;;  %v8442_v12 = vmul.f32 %v8425_v1, %v19621_v16  ;;  %v15544_v25 = vld [vmem:[%s19237_s2 + $0x558] ss:$12 sps:$4 sm:$0xff]   ;;  %v15588_v1 = vld [vmem:[%s19237_s2 + $0x530] ss:$12 sps:$4 sm:$0xff]  }
 0x83d   :  { %9870 = vmatprep.subr.bf16.mxu0 %v15477_v14  ;;  %9911 = vmatprep.subr.bf16.mxu1 %v15480_v63  ;;  %v8444_v14 = vmul.f32 %v8433_v31, %v17114_v36  ;;  %v15549_v16 = vld [vmem:[%s19237_s2 + $0x3c4] ss:$12 sps:$4 sm:$0xff]  }
 0x83e   :  { %v8482_v63 = vadd.f32 %v8465_v2, %v8442_v12  ;;  %v15552_v36 = vld [vmem:[%s19237_s2 + $0x544] ss:$12 sps:$4 sm:$0xff]   ;;  %v15600_v12 = vld [vmem:[%s19237_s2 + $0x4e8] ss:$12 sps:$4 sm:$0xff]  }
 0x83f   :  { %v15589_v31 = vld [vmem:[%s19237_s2 + $0x458] ss:$12 sps:$4 sm:$0xff]  }
 0x840   :  { %9871 = vmatpush1.bf16.msra.mxu0 %v15475_v4  ;;  %9912 = vmatpush1.bf16.msra.mxu1 %v15478_v19  ;;  %v8484_v4 = vadd.f32 %v8473_v5, %v8444_v14  ;;  %v15547_v19 = vld [vmem:[%s19237_s2 + $0x3c0] ss:$12 sps:$4 sm:$0xff]   ;;  %v15592_v2 = vld [vmem:[%s19237_s2 + $0x518] ss:$12 sps:$4 sm:$0xff]   ;;  %v15601_v14 = vld [vmem:[%s19237_s2 + $0x410] ss:$12 sps:$4 sm:$0xff]  }
 0x841   :  { %9872 = vmatprep.subr.bf16.mxu0 %v15483_v7  ;;  %9913 = vmatprep.subr.bf16.mxu1 %v15486_v3  ;;  %v15550_v7 = vld [vmem:[%s19237_s2 + $0x540] ss:$12 sps:$4 sm:$0xff]   ;;  %v8490_v3 = vmax.f32 %v8482_v63, 0.0  ;;  %v15604_v63 = vld [vmem:[%s19237_s2 + $0x4d0] ss:$12 sps:$4 sm:$0xff]  }
 0x842   :  { %v15596_v5 = vld [vmem:[%s19237_s2 + $0x500] ss:$12 sps:$4 sm:$0xff]  }
 0x844   :  { %9873 = vmatpush1.bf16.msra.mxu0 %v15481_v13  ;;  %9914 = vmatpush1.bf16.msra.mxu1 %v15484_v11  ;;  %v8492_v13 = vmax.f32 %v8484_v4, 0.0  ;;  %v15553_v11 = vld [vmem:[%s19237_s2 + $0x170] ss:$12 sps:$4 sm:$0xff]   ;;  %v15605_v4 = vld [vmem:[%s19237_s2 + $0x3f8] ss:$12 sps:$4 sm:$0xff]  }
 0x845   :  { %9874 = vmatprep.subr.bf16.mxu0 %v15489_v10  ;;  %9915 = vmatprep.subr.bf16.mxu1 %v15492_v8  ;;  %v15554_v10 = vld [vmem:[%s19237_s2 + $0x2f0] ss:$12 sps:$4 sm:$0xff]  }
 0x846   :  { %v15555_v8 = vld [vmem:[%s19237_s2 + $0xb0] ss:$12 sps:$4 sm:$0xff]  }
 0x848   :  { %9875 = vmatpush1.bf16.msra.mxu0 %v15487_v44  ;;  %9916 = vmatpush1.bf16.msra.mxu1 %v15490_v50  ;;  %v17835_v44 = vpack.c.bf16 %v8490_v3, %v8490_v3  ;;  %v17837_v50 = vpack.c.bf16 %v8492_v13, %v8492_v13  ;;  %v15610_v3 = vld [vmem:[%s19237_s2 + $0x560] ss:$12 sps:$4 sm:$0xff]  }
 0x849   :  { %9876 = vmatprep.subr.bf16.mxu0 %v15495_v55  ;;  %9917 = vmatprep.subr.bf16.mxu1 %v15498_v61  ;;  %v15556_v55 = vld [vmem:[%s19237_s2 + $0x230] ss:$12 sps:$4 sm:$0xff]   ;;  %v15557_v61 = vld [vmem:[%s19237_s2 + $0x158] ss:$12 sps:$4 sm:$0xff]   ;;  %v15611_v13 = vld [vmem:[%s19237_s2 + $0x320] ss:$12 sps:$4 sm:$0xff]  }
 0x84c   :  { %9877 = vmatpush1.bf16.msra.mxu0 %v15493_v17  ;;  %9918 = vmatpush1.bf16.msra.mxu1 %v15496_v33  ;;  %v15558_v17 = vld [vmem:[%s19237_s2 + $0x2d8] ss:$12 sps:$4 sm:$0xff]  }
 0x84d   :  { %9878 = vmatprep.subr.bf16.mxu0 %v15501_v21  ;;  %9919 = vmatprep.subr.bf16.mxu1 %v15504_v52  ;;  %v15559_v33 = vld [vmem:[%s19237_s2 + $0x98] ss:$12 sps:$4 sm:$0xff]   ;;  %v15561_v52 = vld [vmem:[%s19237_s2 + $0x140] ss:$12 sps:$4 sm:$0xff]  }
 0x84e   :  { %v15560_v21 = vld [vmem:[%s19237_s2 + $0x218] ss:$12 sps:$4 sm:$0xff]  }
 0x850   :  { %9879 = vmatpush1.bf16.msra.mxu0 %v15499_v22  ;;  %9920 = vmatpush1.bf16.msra.mxu1 %v15502_v48  ;;  %v15563_v22 = vld [vmem:[%s19237_s2 + $0x80] ss:$12 sps:$4 sm:$0xff]   ;;  %v15565_v48 = vld [vmem:[%s19237_s2 + $0x128] ss:$12 sps:$4 sm:$0xff]  }
 0x851   :  { %9880 = vmatprep.subr.bf16.mxu0 %v15507_v32  ;;  %9921 = vmatprep.subr.bf16.mxu1 %v15510_v6  ;;  %v15566_v32 = vld [vmem:[%s19237_s2 + $0x2a8] ss:$12 sps:$4 sm:$0xff]  }
 0x852   :  { %v15567_v6 = vld [vmem:[%s19237_s2 + $0x68] ss:$12 sps:$4 sm:$0xff]  }
 0x854   :  { %9881 = vmatpush2.bf16.msra.mxu0 %v15505_v59  ;;  %9922 = vmatpush2.bf16.msra.mxu1 %v15508_v29  ;;  %v15568_v59 = vld [vmem:[%s19237_s2 + $0x1e8] ss:$12 sps:$4 sm:$0xff]   ;;  %v15569_v29 = vld [vmem:[%s19237_s2 + $0x110] ss:$12 sps:$4 sm:$0xff]  }
 0x855   :  { %9882 = vmatprep.subr.bf16.mxu0 %v15513_v51  ;;  %9923 = vmatprep.subr.bf16.mxu1 %v15516_v53  ;;  %v15570_v51 = vld [vmem:[%s19237_s2 + $0x290] ss:$12 sps:$4 sm:$0xff]  }
 0x856   :  { %v15571_v53 = vld [vmem:[%s19237_s2 + $0x50] ss:$12 sps:$4 sm:$0xff]  }
 0x858   :  { %9883 = vmatpush2.bf16.msra.mxu0 %v15511_v54  ;;  %9924 = vmatpush2.bf16.msra.mxu1 %v15514_v42  ;;  %v15572_v54 = vld [vmem:[%s19237_s2 + $0x1d0] ss:$12 sps:$4 sm:$0xff]   ;;  %v15573_v42 = vld [vmem:[%s19237_s2 + $0xf8] ss:$12 sps:$4 sm:$0xff]  }
 0x859   :  { %9884 = vmatprep.subr.bf16.mxu0 %v15519_v28  ;;  %9925 = vmatprep.subr.bf16.mxu1 %v15522_v27  ;;  %v15574_v28 = vld [vmem:[%s19237_s2 + $0x278] ss:$12 sps:$4 sm:$0xff]  }
 0x85a   :  { %v15575_v27 = vld [vmem:[%s19237_s2 + $0x38] ss:$12 sps:$4 sm:$0xff]  }
 0x85c   :  { %9885 = vmatpush2.bf16.msra.mxu0 %v15517_v18  ;;  %9926 = vmatpush2.bf16.msra.mxu1 %v15520_v47  ;;  %v15576_v18 = vld [vmem:[%s19237_s2 + $0x1b8] ss:$12 sps:$4 sm:$0xff]   ;;  %v15577_v47 = vld [vmem:[%s19237_s2 + $0xe0] ss:$12 sps:$4 sm:$0xff]  }
 0x85d   :  { %9886 = vmatprep.subr.bf16.mxu0 %v15525_v49  ;;  %9927 = vmatprep.subr.bf16.mxu1 %v15528_v23  ;;  %v15578_v49 = vld [vmem:[%s19237_s2 + $0x260] ss:$12 sps:$4 sm:$0xff]  }
 0x85e   :  { %v15579_v23 = vld [vmem:[%s19237_s2 + $0x20] ss:$12 sps:$4 sm:$0xff]  }
 0x860   :  { %9887 = vmatpush2.bf16.msra.mxu0 %v15523_v60  ;;  %9928 = vmatpush2.bf16.msra.mxu1 %v15526_v45  ;;  %v15580_v60 = vld [vmem:[%s19237_s2 + $0x1a0] ss:$12 sps:$4 sm:$0xff]   ;;  %v15581_v45 = vld [vmem:[%s19237_s2 + $0xc8] ss:$12 sps:$4 sm:$0xff]  }
 0x861   :  { %9888 = vmatprep.subr.bf16.mxu0 %v15531_v38  ;;  %9929 = vmatprep.subr.bf16.mxu1 %v15534_v34  ;;  %v15582_v38 = vld [vmem:[%s19237_s2 + $0x248] ss:$12 sps:$4 sm:$0xff]  }
 0x862   :  { %v15583_v34 = vld [vmem:[%s19237_s2 + $0x8] ss:$12 sps:$4 sm:$0xff]  }
 0x864   :  { %9889 = vmatpush2.bf16.msra.mxu0 %v15529_v43  ;;  %9930 = vmatpush2.bf16.msra.mxu1 %v15532_v41  ;;  %v15584_v43 = vld [vmem:[%s19237_s2 + $0x188] ss:$12 sps:$4 sm:$0xff]   ;;  %v15585_v41 = vld [vmem:[%s19237_s2 + $0x470] ss:$12 sps:$4 sm:$0xff]  }
 0x865   :  { %9890 = vmatprep.subr.bf16.mxu0 %v15537_v37  ;;  %9931 = vmatprep.subr.bf16.mxu1 %v15540_v9  ;;  %v15586_v37 = vld [vmem:[%s19237_s2 + $0x5f0] ss:$12 sps:$4 sm:$0xff]  }
 0x866   :  { %v15587_v9 = vld [vmem:[%s19237_s2 + $0x3b0] ss:$12 sps:$4 sm:$0xff]  }
 0x868   :  { %9891 = vmatpush2.bf16.msra.mxu0 %v15535_v56  ;;  %9932 = vmatpush2.bf16.msra.mxu1 %v15538_v40  ;;  %v15590_v56 = vld [vmem:[%s19237_s2 + $0x5d8] ss:$12 sps:$4 sm:$0xff]  }
 0x869   :  { %9892 = vmatprep.subr.bf16.mxu0 %v15543_v15  ;;  %9933 = vmatprep.subr.bf16.mxu1 %v15546_v26  ;;  %v15591_v40 = vld [vmem:[%s19237_s2 + $0x398] ss:$12 sps:$4 sm:$0xff]   ;;  %v15598_v15 = vld [vmem:[%s19237_s2 + $0x5a8] ss:$12 sps:$4 sm:$0xff]  }
 0x86a   :  { %v15599_v26 = vld [vmem:[%s19237_s2 + $0x368] ss:$12 sps:$4 sm:$0xff]  }
 0x86c   :  { %9893 = vmatpush2.bf16.msra.mxu0 %v15541_v24  ;;  %9934 = vmatpush2.bf16.msra.mxu1 %v15544_v25  ;;  %v15602_v24 = vld [vmem:[%s19237_s2 + $0x590] ss:$12 sps:$4 sm:$0xff]  }
 0x86d   :  { %9894 = vmatprep.subr.bf16.mxu0 %v15549_v16  ;;  %9935 = vmatprep.subr.bf16.mxu1 %v15552_v36  ;;  %v15603_v25 = vld [vmem:[%s19237_s2 + $0x350] ss:$12 sps:$4 sm:$0xff]   ;;  %v15606_v16 = vld [vmem:[%s19237_s2 + $0x578] ss:$12 sps:$4 sm:$0xff]  }
 0x86e   :  { %v15607_v36 = vld [vmem:[%s19237_s2 + $0x338] ss:$12 sps:$4 sm:$0xff]  }
 0x870   :  { %9895 = vmatpush2.bf16.msra.mxu0 %v15547_v19  ;;  %9936 = vmatpush2.bf16.msra.mxu1 %v15550_v7  ;;  %v15608_v19 = vld [vmem:[%s19237_s2 + $0x4b8] ss:$12 sps:$4 sm:$0xff]   ;;  %v15609_v7 = vld [vmem:[%s19237_s2 + $0x3e0] ss:$12 sps:$4 sm:$0xff]  }
 0x871   :  { %14732 = vmatprep.subr.bf16.mxu0 %v15553_v11  ;;  %14754 = vmatprep.subr.bf16.mxu1 %v15554_v10  ;;  %v15612_v11 = vld [vmem:[%s19237_s2 + $0x4a0] ss:$12 sps:$4 sm:$0xff]   ;;  %v15613_v10 = vld [vmem:[%s19237_s2 + $0x3c8] ss:$12 sps:$4 sm:$0xff]  }
 0x873   :  { %9897 = vmatmul.mubr.bf16.vlgmr.msra.gmra.mxu0 %v17835_v44  ;;  %9938 = vmatmul.mubr.bf16.vlgmr.msra.gmra.mxu1 %v17837_v50 }
 0x874   :  { %14733 = vmatpush3.bf16.msra.mxu0 %v15555_v8  ;;  %9978 = vmatprep.mubr.bf16.mxu0 %v17610_v30  ;;  %v15562_v30 = vld [vmem:[%s19237_s2 + $0x2c0] ss:$12 sps:$4 sm:$0xff]   ;;  %v15614_v8 = vld [vmem:[%s19237_s2 + $0x548] ss:$12 sps:$4 sm:$0xff]  }
 0x875   :  { %14755 = vmatpush3.bf16.msra.mxu1 %v15556_v55  ;;  %10018 = vmatprep.mubr.bf16.mxu1 %v17612_v58  ;;  %v15564_v58 = vld [vmem:[%s19237_s2 + $0x200] ss:$12 sps:$4 sm:$0xff]   ;;  %v15615_v55 = vld [vmem:[%s19237_s2 + $0x308] ss:$12 sps:$4 sm:$0xff]  }
 0x876   :  { %14734 = vmatprep.subr.bf16.mxu0 %v15557_v61  ;;  %14756 = vmatprep.subr.bf16.mxu1 %v15558_v17  ;;  %v15616_v61 = vld [vmem:[%s19237_s2 + $0x488] ss:$12 sps:$4 sm:$0xff]   ;;  %v18033_v17 = vld [vmem:[%s19241_s6 + $0xf8] sm:$0xff] }
 0x878   :  { %14735 = vmatpush3.bf16.msra.mxu0 %v15559_v33  ;;  %v18039_v33 = vld [vmem:[%s19241_s6 + $0x78] sm:$0xff] }
 0x879   :  { %14757 = vmatpush3.bf16.msra.mxu1 %v15560_v21  ;;  %14736 = vmatprep.subr.bf16.mxu0 %v15561_v52  ;;  %v18044_v21 = vld [vmem:[%s19241_s6 + $0xf0] sm:$0xff] }
 0x87a   :  { %14758 = vmatprep.subr.bf16.mxu1 %v15562_v30  ;;  %v18051_v52 = vld [vmem:[%s19241_s6 + $0x70] sm:$0xff]  ;;  %v18058_v30 = vld [vmem:[%s19241_s6 + $0xe8] sm:$0xff] }
 0x87c   :  { %14737 = vmatpush3.bf16.msra.mxu0 %v15563_v22  ;;  %v18076_v22 = vld [vmem:[%s19241_s6 + $0x60] sm:$0xff] }
 0x87d   :  { %14759 = vmatpush3.bf16.msra.mxu1 %v15564_v58  ;;  %14738 = vmatprep.subr.bf16.mxu0 %v15565_v48  ;;  %v18082_v58 = vld [vmem:[%s19241_s6 + $0xd8] sm:$0xff] }
 0x87e   :  { %14760 = vmatprep.subr.bf16.mxu1 %v15566_v32  ;;  %v18088_v48 = vld [vmem:[%s19241_s6 + $0x58] sm:$0xff]  ;;  %v18094_v32 = vld [vmem:[%s19241_s6 + $0xd0] sm:$0xff] }
 0x880   :  { %14739 = vmatpush3.bf16.msra.mxu0 %v15567_v6  ;;  %v18100_v6 = vld [vmem:[%s19241_s6 + $0x50] sm:$0xff] }
 0x881   :  { %14761 = vmatpush3.bf16.msra.mxu1 %v15568_v59  ;;  %14740 = vmatprep.subr.bf16.mxu0 %v15569_v29  ;;  %v18106_v59 = vld [vmem:[%s19241_s6 + $0xc8] sm:$0xff] }
 0x882   :  { %14762 = vmatprep.subr.bf16.mxu1 %v15570_v51  ;;  %v18112_v29 = vld [vmem:[%s19241_s6 + $0x48] sm:$0xff]  ;;  %v18118_v51 = vld [vmem:[%s19241_s6 + $0xc0] sm:$0xff] }
 0x884   :  { %14741 = vmatpush3.bf16.msra.mxu0 %v15571_v53  ;;  %v18124_v53 = vld [vmem:[%s19241_s6 + $0x40] sm:$0xff] }
 0x885   :  { %14763 = vmatpush3.bf16.msra.mxu1 %v15572_v54  ;;  %14742 = vmatprep.subr.bf16.mxu0 %v15573_v42  ;;  %v18130_v54 = vld [vmem:[%s19241_s6 + $0xb8] sm:$0xff] }
 0x886   :  { %14764 = vmatprep.subr.bf16.mxu1 %v15574_v28  ;;  %v18136_v42 = vld [vmem:[%s19241_s6 + $0x38] sm:$0xff]  ;;  %v18142_v28 = vld [vmem:[%s19241_s6 + $0xb0] sm:$0xff] }
 0x888   :  { %14743 = vmatpush3.bf16.msra.mxu0 %v15575_v27  ;;  %v18148_v27 = vld [vmem:[%s19241_s6 + $0x30] sm:$0xff] }
 0x889   :  { %14765 = vmatpush3.bf16.msra.mxu1 %v15576_v18  ;;  %14744 = vmatprep.subr.bf16.mxu0 %v15577_v47  ;;  %v18154_v18 = vld [vmem:[%s19241_s6 + $0xa8] sm:$0xff] }
 0x88a   :  { %14766 = vmatprep.subr.bf16.mxu1 %v15578_v49  ;;  %19694 = vst [vmem:[#allocation31_spill] sm:$0xff] %v18154_v18  ;;  %v18160_v47 = vld [vmem:[%s19241_s6 + $0x28] sm:$0xff]  ;;  %v18166_v49 = vld [vmem:[%s19241_s6 + $0xa0] sm:$0xff] }
 0x88b   :  { %19695 = vst [vmem:[#allocation32_spill] sm:$0xff] %v18160_v47  ;;  %19696 = vst [vmem:[#allocation33_spill] sm:$0xff] %v18166_v49 }
 0x88c   :  { %14745 = vmatpush3.bf16.msra.mxu0 %v15579_v23  ;;  %v18172_v23 = vld [vmem:[%s19241_s6 + $0x20] sm:$0xff] }
 0x88d   :  { %14767 = vmatpush3.bf16.msra.mxu1 %v15580_v60  ;;  %14746 = vmatprep.subr.bf16.mxu0 %v15581_v45  ;;  %19697 = vst [vmem:[#allocation34_spill] sm:$0xff] %v18172_v23  ;;  %v18178_v60 = vld [vmem:[%s19241_s6 + $0x98] sm:$0xff] }
 0x88e   :  { %14768 = vmatprep.subr.bf16.mxu1 %v15582_v38  ;;  %19698 = vst [vmem:[#allocation35_spill] sm:$0xff] %v18178_v60  ;;  %v18184_v45 = vld [vmem:[%s19241_s6 + $0x18] sm:$0xff]  ;;  %v18190_v38 = vld [vmem:[%s19241_s6 + $0x90] sm:$0xff] }
 0x88f   :  { %19699 = vst [vmem:[#allocation36_spill] sm:$0xff] %v18184_v45  ;;  %19700 = vst [vmem:[#allocation37_spill] sm:$0xff] %v18190_v38 }
 0x890   :  { %14747 = vmatpush3.bf16.msra.mxu0 %v15583_v34  ;;  %v18196_v34 = vld [vmem:[%s19241_s6 + $0x10] sm:$0xff] }
 0x891   :  { %14769 = vmatpush3.bf16.msra.mxu1 %v15584_v43  ;;  %14776 = vmatprep.subr.bf16.mxu0 %v15585_v41  ;;  %19701 = vst [vmem:[#allocation38_spill] sm:$0xff] %v18196_v34  ;;  %v18202_v43 = vld [vmem:[%s19241_s6 + $0x88] sm:$0xff] }
 0x892   :  { %14798 = vmatprep.subr.bf16.mxu1 %v15586_v37  ;;  %19702 = vst [vmem:[#allocation39_spill] sm:$0xff] %v18202_v43  ;;  %v18208_v41 = vld [vmem:[%s19241_s6 + $0x8] sm:$0xff]  ;;  %v18214_v37 = vld [vmem:[%s19241_s6 + $0x80] sm:$0xff] }
 0x893   :  { %9979 = vmatmul.mubr.bf16.vlgmr.msra.gmra.mxu0 %v17622_v46  ;;  %v15593_v46 = vld [vmem:[%s19237_s2 + $0x440] ss:$12 sps:$4 sm:$0xff]   ;;  %19703 = vst [vmem:[#allocation40_spill] sm:$0xff] %v18208_v41  ;;  %19704 = vst [vmem:[#allocation41_spill] sm:$0xff] %v18214_v37 }
 0x894   :  { %10019 = vmatmul.mubr.bf16.vlgmr.msra.gmra.mxu1 %v17624_v35  ;;  %14777 = vmatpush3.bf16.msra.mxu0 %v15587_v9  ;;  %v15594_v35 = vld [vmem:[%s19237_s2 + $0x5c0] ss:$12 sps:$4 sm:$0xff]  }
 0x895   :  { %10058 = vmatprep.mubr.bf16.mxu0 %v17642_v0  ;;  %14799 = vmatpush3.bf16.msra.mxu1 %v15588_v1  ;;  %v15595_v0 = vld [vmem:[%s19237_s2 + $0x380] ss:$12 sps:$4 sm:$0xff]  }
 0x896   :  { %10098 = vmatprep.mubr.bf16.mxu1 %v17644_v39  ;;  %14778 = vmatprep.subr.bf16.mxu0 %v15589_v31  ;;  %v15597_v39 = vld [vmem:[%s19237_s2 + $0x428] ss:$12 sps:$4 sm:$0xff]   ;;  %v18220_v9 = vld [vmem:[%s19241_s6] sm:$0xff] }
 0x897   :  { %14800 = vmatprep.subr.bf16.mxu1 %v15590_v56  ;;  %19705 = vst [vmem:[#allocation42_spill] sm:$0xff] %v18220_v9 }
 0x898   :  { %14779 = vmatpush3.bf16.msra.mxu0 %v15591_v40 }
 0x899   :  { %14801 = vmatpush3.bf16.msra.mxu1 %v15592_v2  ;;  %14780 = vmatprep.subr.bf16.mxu0 %v15593_v46 }
 0x89a   :  { %14802 = vmatprep.subr.bf16.mxu1 %v15594_v35 }
 0x89c   :  { %14781 = vmatpush3.bf16.msra.mxu0 %v15595_v0 }
 0x89d   :  { %14803 = vmatpush3.bf16.msra.mxu1 %v15596_v5  ;;  %14782 = vmatprep.subr.bf16.mxu0 %v15597_v39  ;;  %v18229_v39 = vld [vmem:[%s19241_s6 + $0x118] sm:$0xff] }
 0x89e   :  { %14804 = vmatprep.subr.bf16.mxu1 %v15598_v15  ;;  %v18236_v15 = vld [vmem:[%s19241_s6 + $0x110] sm:$0xff] }
 0x8a0   :  { %14783 = vmatpush3.bf16.msra.mxu0 %v15599_v26  ;;  %v18241_v26 = vld [vmem:[%s19241_s6 + $0x108] sm:$0xff] }
 0x8a1   :  { %14805 = vmatpush3.bf16.msra.mxu1 %v15600_v12  ;;  %14784 = vmatprep.subr.bf16.mxu0 %v15601_v14  ;;  %v18250_v12 = vld [vmem:[%s19241_s6 + $0x100] sm:$0xff] }
 0x8a2   :  { %14806 = vmatprep.subr.bf16.mxu1 %v15602_v24 }
 0x8a4   :  { %14785 = vmatpush3.bf16.msra.mxu0 %v15603_v25 }
 0x8a5   :  { %14807 = vmatpush3.bf16.msra.mxu1 %v15604_v63  ;;  %14786 = vmatprep.subr.bf16.mxu0 %v15605_v4 }
 0x8a6   :  { %14808 = vmatprep.subr.bf16.mxu1 %v15606_v16 }
 0x8a8   :  { %14787 = vmatpush3.bf16.msra.mxu0 %v15607_v36 }
 0x8a9   :  { %14809 = vmatpush3.bf16.msra.mxu1 %v15608_v19  ;;  %14788 = vmatprep.subr.bf16.mxu0 %v15609_v7 }
 0x8aa   :  { %14810 = vmatprep.subr.bf16.mxu1 %v15610_v3 }
 0x8ac   :  { %14789 = vmatpush3.bf16.msra.mxu0 %v15611_v13 }
 0x8ad   :  { %14811 = vmatpush3.bf16.msra.mxu1 %v15612_v11  ;;  %14790 = vmatprep.subr.bf16.mxu0 %v15613_v10 }
 0x8ae   :  { %14812 = vmatprep.subr.bf16.mxu1 %v15614_v8 }
 0x8b0   :  { %14791 = vmatpush3.bf16.msra.mxu0 %v15615_v55 }
 0x8b1   :  { %14813 = vmatpush3.bf16.msra.mxu1 %v15616_v61  ;;  %14820 = vmatprep.subr.mxu0 %v18033_v17 }
 0x8b2   :  { %15155 = vmatprep.subr.mxu1 %v19589_v20 }
 0x8b3   :  { %10059 = vmatmul.mubr.bf16.vlgmr.msra.gmra.mxu0 %v17835_v44  ;;  %v18064_v44 = vld [vmem:[%s19241_s6 + $0x68] sm:$0xff] }
 0x8b4   :  { %10099 = vmatmul.mubr.bf16.vlgmr.msra.gmra.mxu1 %v17837_v50  ;;  %14821 = vmatpush3.msra.mxu0 %v18039_v33  ;;  %v18070_v50 = vld [vmem:[%s19241_s6 + $0xe0] sm:$0xff] }
 0x8b5   :  { %14822 = vmatprep.subr.mxu0 %v18044_v21  ;;  %15156 = vmatpush3.msra.mxu1 %v18229_v39 }
 0x8b6   :  { %14823 = vmatpush3.msra.mxu0 %v18051_v52  ;;  %15157 = vmatprep.subr.mxu1 %v19589_v20 }
 0x8b7   :  { %14824 = vmatprep.subr.mxu0 %v18058_v30  ;;  %15158 = vmatpush3.msra.mxu1 %v18236_v15 }
 0x8b8   :  { %14825 = vmatpush3.msra.mxu0 %v18064_v44  ;;  %15163 = vmatprep.mubr.msk.f32.mxu1 %vm15977_vm3, %v19589_v20 }
 0x8b9   :  { %14826 = vmatprep.subr.mxu0 %v18070_v50  ;;  %15159 = vmatprep.subr.mxu1 %v19589_v20 }
 0x8ba   :  { %14827 = vmatpush3.msra.mxu0 %v18076_v22  ;;  %15160 = vmatpush3.msra.mxu1 %v18241_v26 }
 0x8bb   :  { %14828 = vmatprep.subr.mxu0 %v18082_v58  ;;  %15161 = vmatprep.subr.mxu1 %v19589_v20 }
 0x8bc   :  { %14829 = vmatpush3.msra.mxu0 %v18088_v48  ;;  %15162 = vmatpush3.msra.mxu1 %v18250_v12 }
 0x8bd   :  { %14830 = vmatprep.subr.mxu0 %v18094_v32 }
 0x8be   :  { %14831 = vmatpush3.msra.mxu0 %v18100_v6 }
 0x8bf   :  { %14832 = vmatprep.subr.mxu0 %v18106_v59 }
 0x8c0   :  { %14833 = vmatpush3.msra.mxu0 %v18112_v29 }
 0x8c1   :  { %14834 = vmatprep.subr.mxu0 %v18118_v51 }
 0x8c2   :  { %14835 = vmatpush3.msra.mxu0 %v18124_v53 }
 0x8c3   :  { %14836 = vmatprep.subr.mxu0 %v18130_v54 }
 0x8c4   :  { %14837 = vmatpush3.msra.mxu0 %v18136_v42 }
 0x8c5   :  { %14838 = vmatprep.subr.mxu0 %v18142_v28 }
 0x8c6   :  { %14839 = vmatpush3.msra.mxu0 %v18148_v27 }
 0x8c7   :  { %14840 = vmatprep.subr.mxu0 %v18154_v18 }
 0x8c8   :  { %14841 = vmatpush3.msra.mxu0 %v18160_v47 }
 0x8c9   :  { %14842 = vmatprep.subr.mxu0 %v18166_v49 }
 0x8ca   :  { %14843 = vmatpush3.msra.mxu0 %v18172_v23 }
 0x8cb   :  { %14844 = vmatprep.subr.mxu0 %v18178_v60 }
 0x8cc   :  { %14845 = vmatpush3.msra.mxu0 %v18184_v45 }
 0x8cd   :  { %14846 = vmatprep.subr.mxu0 %v18190_v38 }
 0x8ce   :  { %14847 = vmatpush3.msra.mxu0 %v18196_v34 }
 0x8cf   :  { %14848 = vmatprep.subr.mxu0 %v18202_v43 }
 0x8d0   :  { %14849 = vmatpush3.msra.mxu0 %v18208_v41 }
 0x8d1   :  { %14850 = vmatprep.subr.mxu0 %v18214_v37 }
 0x8d2   :  { %14851 = vmatpush3.msra.mxu0 %v18220_v9 }
 0x8d3   :  { %15177 = vmatprep.subr.mxu0 %v19589_v20 }
 0x8f2   :  { %v9816_v1 = vpop.f32.mrf.mxu0  ;;  %v9857_v31 = vpop.f32.mrf.mxu1 }
 0x8f3   :  { %v9858_v56 = vadd.f32 %v9857_v31, %v9816_v1 }
 0x8f4   :  { %v9818_v40 = vpop.f32.mrf.mxu0  ;;  %v9859_v2 = vpop.f32.mrf.mxu1 }
 0x8f5   :  { %v9860_v25 = vadd.f32 %v9859_v2, %v9818_v40 }
 0x8f6   :  { %v9820_v46 = vpop.f32.mrf.mxu0  ;;  %v9861_v35 = vpop.f32.mrf.mxu1 }
 0x8f8   :  { %v9821_v0 = vpop.f32.mrf.mxu0  ;;  %v9862_v5 = vpop.f32.mrf.mxu1 }
 0x933   :  { %v9898_v14 = vpop.f32.mrf.mxu0  ;;  %v9939_v24 = vpop.f32.mrf.mxu1 }
 0x934   :  { %v9899_v63 = vadd.f32 %v9898_v14, %v9858_v56 }
 0x935   :  { %v9900_v4 = vpop.f32.mrf.mxu0  ;;  %v9941_v16 = vpop.f32.mrf.mxu1 }
 0x936   :  { %v18255_v36 = vadd.f32 %v9939_v24, %v9899_v63  ;;  %v9901_v19 = vadd.f32 %v9900_v4, %v9860_v25 }
 0x937   :  { %v9902_v7 = vpop.f32.mrf.mxu0  ;;  %v9943_v3 = vpop.f32.mrf.mxu1 }
 0x938   :  { %v10108_v13 = vsel %vm6815_vm1, %v18255_v36, 0.0  ;;  %v18259_v11 = vadd.f32 %v9941_v16, %v9901_v19 }
 0x939   :  { %v10109_v10 = vrot.slane %v10108_v13, 4  ;;  %v9903_v8 = vpop.f32.mrf.mxu0  ;;  %v9944_v55 = vpop.f32.mrf.mxu1 }
 0x93a   :  { %v10115_v61 = vsel %vm6815_vm1, %v18259_v11, 0.0 }
 0x93b   :  { %v10110_v1 = vadd.f32 %v10109_v10, %v10108_v13  ;;  %v10116_v31 = vrot.slane %v10115_v61, 4 }
 0x93d   :  { %v10111_v56 = vrot.slane %v10110_v1, 2  ;;  %v10117_v40 = vadd.f32 %v10116_v31, %v10115_v61 }
 0x93f   :  { %v10112_v2 = vadd.f32 %v10111_v56, %v10110_v1  ;;  %v10118_v46 = vrot.slane %v10117_v40, 2 }
 0x941   :  { %v10119_v35 = vadd.f32 %v10118_v46, %v10117_v40  ;;  %v10113_v0 = vrot.slane %v10112_v2, 1 }
 0x943   :  { %v10120_v5 = vrot.slane %v10119_v35, 1  ;;  %v10114_v24 = vadd.f32 %v10113_v0, %v10112_v2 }
 0x945   :  { %v10121_v14 = vadd.f32 %v10120_v5, %v10119_v35 }
 0x947   :  { %10198 = vmatprep.mubr.f32.mxu0 %v10121_v14 }
 0x948   :  { %10199 = vmatmul.mubr.f32.vlgmr.msra.gmra.mxu0 %v10114_v24 }
 0x949   :  { %15178 = vmatpush3.msra.mxu0 %v18229_v39  ;;  %15185 = vmatprep.mubr.msk.f32.mxu0 %vm15977_vm3, %v19589_v20 }
 0x94a   :  { %15179 = vmatprep.subr.mxu0 %v19589_v20 }
 0x94b   :  { %15180 = vmatpush3.msra.mxu0 %v18236_v15 }
 0x94c   :  { %15181 = vmatprep.subr.mxu0 %v19589_v20 }
 0x94d   :  { %15182 = vmatpush3.msra.mxu0 %v18241_v26 }
 0x94e   :  { %15183 = vmatprep.subr.mxu0 %v19589_v20 }
 0x94f   :  { %15184 = vmatpush3.msra.mxu0 %v18250_v12 }
 0x953   :  { %v14748_v25 = vpop.f32.mrf.mxu0 }
 0x954   :  { %v14770_v63 = vpop.f32.mrf.mxu1 }
 0x955   :  { %v14749_v4 = vpop.f32.mrf.mxu0 }
 0x956   :  { %v14771_v16 = vpop.f32.mrf.mxu1  ;;  %v14750_v10 = vadd.f32 %v14749_v4, %v14748_v25 }
 0x957   :  { %v14751_v19 = vpop.f32.mrf.mxu0  ;;  %v14772_v8 = vadd.f32 %v14771_v16, %v14770_v63 }
 0x958   :  { %v14773_v7 = vpop.f32.mrf.mxu1 }
 0x959   :  { %v14752_v3 = vpop.f32.mrf.mxu0  ;;  %v10021_v31 = vadd.f32 %v14772_v8, %v14750_v10  ;;  %v18280_v10 = vld [vmem:[#allocation7 + $0x48] sm:$0xff]  ;;  %v18282_v8 = vld [vmem:[#allocation7 + $0x38] sm:$0xff] }
 0x95a   :  { %v14774_v13 = vpop.f32.mrf.mxu1 }
 0x95b   :  { %v18278_v13 = vld [vmem:[#allocation7 + $0x50] sm:$0xff] }
 0x95c   :  { %10303 = vmatprep.subr.mxu1 %v18278_v13  ;;  %10635 = vmatprep.subr.mxu0 %v18278_v13 }
 0x973   :  { %v14792_v55 = vpop.f32.mrf.mxu0 }
 0x974   :  { %v14814_v61 = vpop.f32.mrf.mxu1 }
 0x975   :  { %v14793_v1 = vpop.f32.mrf.mxu0 }
 0x976   :  { %v14794_v56 = vadd.f32 %v14793_v1, %v14792_v55  ;;  %v14815_v40 = vpop.f32.mrf.mxu1  ;;  %v18285_v55 = vld [vmem:[#allocation7 + $0x30] sm:$0xff]  ;;  %v18294_v1 = vld [vmem:[#allocation7 + $0x18] sm:$0xff] }
 0x977   :  { %v14795_v2 = vpop.f32.mrf.mxu0  ;;  %v14816_v35 = vadd.f32 %v14815_v40, %v14814_v61  ;;  %v18291_v61 = vld [vmem:[#allocation7 + $0x20] sm:$0xff] }
 0x978   :  { %v10061_v46 = vadd.f32 %v14794_v56, %v10021_v31  ;;  %v14817_v0 = vpop.f32.mrf.mxu1  ;;  %v18297_v31 = vld [vmem:[#allocation7 + $0x8] sm:$0xff]  ;;  %v18299_v56 = vld [vmem:[#allocation7] sm:$0xff] }
 0x979   :  { %v14796_v5 = vpop.f32.mrf.mxu0 }
 0x97a   :  { %v18272_v14 = vadd.f32 %v14816_v35, %v10061_v46  ;;  %v14818_v24 = vpop.f32.mrf.mxu1 }
 0x97c   :  { %v10123_v19 = vsel %vm10122_vm4, %v18272_v14, 0.0 }
 0x97d   :  { %v10124_v25 = vrot.slane %v10123_v19, 4 }
 0x97f   :  { %v10125_v63 = vadd.f32 %v10124_v25, %v10123_v19  ;;  %v18306_v19 = vld [vmem:[#allocation7 + $0x58] sm:$0xff]  ;;  %v18310_v25 = vld [vmem:[#allocation7 + $0x40] sm:$0xff] }
 0x981   :  { %v10126_v4 = vrot.slane %v10125_v63, 2 }
 0x983   :  { %v10127_v16 = vadd.f32 %v10126_v4, %v10125_v63  ;;  %v18316_v63 = vld [vmem:[#allocation7 + $0x28] sm:$0xff]  ;;  %v18320_v4 = vld [vmem:[#allocation7 + $0x10] sm:$0xff] }
 0x985   :  { %v10128_v7 = vrot.slane %v10127_v16, 1 }
 0x987   :  { %v10129_v3 = vadd.f32 %v10128_v7, %v10127_v16 }
 0x989   :  { %15164 = vmatmul.mubr.msk.f32.vlgmr.msra.gmra.mxu1 %vm10130_vm5, %v10129_v3 }
 0x98a   :  { %10343 = vmatprep.mubr.f32.mxu1 %v19589_v20  ;;  %10304 = vmatpush1.msra.mxu1 %v18280_v10 }
 0x98b   :  { %10305 = vmatprep.subr.mxu1 %v18282_v8 }
 0x98c   :  { %10306 = vmatpush1.msra.mxu1 %v18285_v55 }
 0x98d   :  { %10307 = vmatprep.subr.mxu1 %v18291_v61 }
 0x98e   :  { %10308 = vmatpush1.msra.mxu1 %v18294_v1 }
 0x98f   :  { %10309 = vmatprep.subr.mxu1 %v18297_v31 }
 0x990   :  { %10310 = vmatpush1.msra.mxu1 %v18299_v56 }
 0x991   :  { %15166 = vmatprep.subr.mxu1 %v19589_v20 }
 0xa08   :  { %v14852_v40 = vpop.f32.mrf.mxu0 }
 0xa0a   :  { %v14853_v2 = vpop.f32.mrf.mxu0 }
 0xa0b   :  { %v14854_v46 = vadd.f32 %v14853_v2, %v14852_v40 }
 0xa49   :  { %v10270_v35 = vpop.f32.mrf.mxu1 }
 0xa4a   :  { %v10271_v0 = vadd.f32 %v14854_v46, %v10270_v35 }
 0xa4b   :  { %v15165_v5 = vpop.f32.mrf.mxu1 }
 0xa4c   :  { %v18304_v24 = vmul.f32 0.055555556, %v10271_v0 }
 0xa4e   :  { %14371 = vmatmul.mubr.msk.f32.vlgmr.msra.gmra.mxu1 %vm10130_vm5, %v18304_v24 }
 0xa4f   :  { %15167 = vmatpush3.msra.mxu1 %v18306_v19  ;;  %15174 = vmatprep.mubr.msk.f32.mxu1 %vm15977_vm3, %v19589_v20 }
 0xa50   :  { %15168 = vmatprep.subr.mxu1 %v19589_v20 }
 0xa51   :  { %15169 = vmatpush3.msra.mxu1 %v18310_v25 }
 0xa52   :  { %15170 = vmatprep.subr.mxu1 %v19589_v20 }
 0xa53   :  { %15171 = vmatpush3.msra.mxu1 %v18316_v63 }
 0xa54   :  { %15172 = vmatprep.subr.mxu1 %v19589_v20 }
 0xa55   :  { %15173 = vmatpush3.msra.mxu1 %v18320_v4 }
 0xa56   :  { %15175 = vmatmul.mubr.msk.f32.vlgmr.msra.gmra.mxu1 %vm10130_vm5, %v18304_v24  ;;  %14865 = vmatprep.subr.mxu1 %v18033_v17 }
 0xa57   :  { %14866 = vmatpush3.msra.mxu1 %v18039_v33 }
 0xa58   :  { %14867 = vmatprep.subr.mxu1 %v18044_v21 }
 0xa59   :  { %14868 = vmatpush3.msra.mxu1 %v18051_v52 }
 0xa5a   :  { %14869 = vmatprep.subr.mxu1 %v18058_v30 }
 0xa5b   :  { %14870 = vmatpush3.msra.mxu1 %v18064_v44 }
 0xa5c   :  { %14871 = vmatprep.subr.mxu1 %v18070_v50 }
 0xa5d   :  { %14872 = vmatpush3.msra.mxu1 %v18076_v22 }
 0xa5e   :  { %14873 = vmatprep.subr.mxu1 %v18082_v58 }
 0xa5f   :  { %14874 = vmatpush3.msra.mxu1 %v18088_v48 }
 0xa60   :  { %14875 = vmatprep.subr.mxu1 %v18094_v32 }
 0xa61   :  { %14876 = vmatpush3.msra.mxu1 %v18100_v6 }
 0xa62   :  { %14877 = vmatprep.subr.mxu1 %v18106_v59 }
 0xa63   :  { %14878 = vmatpush3.msra.mxu1 %v18112_v29 }
 0xa64   :  { %14879 = vmatprep.subr.mxu1 %v18118_v51 }
 0xa65   :  { %14880 = vmatpush3.msra.mxu1 %v18124_v53 }
 0xa66   :  { %14881 = vmatprep.subr.mxu1 %v18130_v54 }
 0xa67   :  { %14882 = vmatpush3.msra.mxu1 %v18136_v42 }
 0xa68   :  { %14883 = vmatprep.subr.mxu1 %v18142_v28 }
 0xa69   :  { %14884 = vmatpush3.msra.mxu1 %v18148_v27 }
 0xa6a   :  { %14885 = vmatprep.subr.mxu1 %v18154_v18 }
 0xa6b   :  { %14886 = vmatpush3.msra.mxu1 %v18160_v47 }
 0xa6c   :  { %14887 = vmatprep.subr.mxu1 %v18166_v49 }
 0xa6d   :  { %14888 = vmatpush3.msra.mxu1 %v18172_v23 }
 0xa6e   :  { %14889 = vmatprep.subr.mxu1 %v18178_v60 }
 0xa6f   :  { %14890 = vmatpush3.msra.mxu1 %v18184_v45 }
 0xa70   :  { %14891 = vmatprep.subr.mxu1 %v18190_v38 }
 0xa71   :  { %14892 = vmatpush3.msra.mxu1 %v18196_v34 }
 0xa72   :  { %14893 = vmatprep.subr.mxu1 %v18202_v43 }
 0xa73   :  { %14894 = vmatpush3.msra.mxu1 %v18208_v41 }
 0xa74   :  { %14895 = vmatprep.subr.mxu1 %v18214_v37 }
 0xa75   :  { %14896 = vmatpush3.msra.mxu1 %v18220_v9 }
 0xa76   :  { %15199 = vmatprep.subr.mxu1 %v19589_v20 }
 0xb0e   :  { %v10345_v16 = vpop.f32.mrf.mxu1 }
 0xb0f   :  { %v10423_v7 = vrot.slane %v10345_v16, %v17251_v62 }
 0xb10   :  { %v10347_v3 = vpop.f32.mrf.mxu1 }
 0xb11   :  { %v10432_v40 = vsub.f32 %v18255_v36, %v10423_v7  ;;  %v10427_v2 = vrot.slane %v10347_v3, %v17251_v62 }
 0xb13   :  { %v10435_v46 = vmul.f32 %v10432_v40, %v10432_v40  ;;  %v10433_v35 = vsub.f32 %v18259_v11, %v10427_v2 }
 0xb15   :  { %v10438_v0 = vsel %vm6815_vm1, %v10435_v46, 0.0  ;;  %v10436_v5 = vmul.f32 %v10433_v35, %v10433_v35 }
 0xb16   :  { %v10439_v57 = vrot.slane %v10438_v0, 4  ;;  %v10416_v37 = vpop.f32.mrf.mxu1 }
 0xb17   :  { %v10445_v9 = vsel %vm6815_vm1, %v10436_v5, 0.0  ;;  %v10431_v41 = vrot.slane %v10416_v37, %v17251_v62 }
 0xb18   :  { %v10440_v43 = vadd.f32 %v10439_v57, %v10438_v0  ;;  %v10446_v34 = vrot.slane %v10445_v9, 4  ;;  %v15176_v16 = vpop.f32.mrf.mxu1 }
 0xb19   :  { %v10434_v38 = vsub.f32 %v18272_v14, %v10431_v41  ;;  %v10106_v41 = vld [vmem:[#allocation12] sm:$0x1] }
 0xb1a   :  { %v10441_v7 = vrot.slane %v10440_v43, 2  ;;  %v10447_v45 = vadd.f32 %v10446_v34, %v10445_v9 }
 0xb1b   :  { %v10437_v3 = vmul.f32 %v10434_v38, %v10434_v38 }
 0xb1c   :  { %v10442_v40 = vadd.f32 %v10441_v7, %v10440_v43  ;;  %v10448_v60 = vrot.slane %v10447_v45, 2  ;;  %v10107_v7 = vld [vmem:[#allocation13] sm:$0x1] }
 0xb1d   :  { %v10452_v2 = vsel %vm10122_vm4, %v10437_v3, 0.0 }
 0xb1e   :  { %v10453_v46 = vrot.slane %v10452_v2, 4  ;;  %v10449_v35 = vadd.f32 %v10448_v60, %v10447_v45  ;;  %v10443_v23 = vrot.slane %v10442_v40, 1 }
 0xb20   :  { %v10454_v49 = vadd.f32 %v10453_v46, %v10452_v2  ;;  %v10450_v47 = vrot.slane %v10449_v35, 1  ;;  %v10444_v37 = vadd.f32 %v10443_v23, %v10442_v40  ;;  %v18410_v2 = vld [vmem:[#allocation4 + $0xa8] ss:$12 sps:$4 sm:$0xff]  }
 0xb21   :  { %19706 = vst [vmem:[#allocation43_spill] sm:$0xff] %v18410_v2  ;;  %v18413_v46 = vld [vmem:[#allocation4 + $0x94] ss:$12 sps:$4 sm:$0xff]  }
 0xb22   :  { %v10455_v5 = vrot.slane %v10454_v49, 2  ;;  %v10451_v18 = vadd.f32 %v10450_v47, %v10449_v35  ;;  %19707 = vst [vmem:[#allocation44_spill] sm:$0xff] %v18413_v46  ;;  %v18419_v35 = vld [vmem:[#allocation4 + $0x90] ss:$12 sps:$4 sm:$0xff]  }
 0xb23   :  { %19708 = vst [vmem:[#allocation45_spill] sm:$0xff] %v18419_v35 }
 0xb24   :  { %v10456_v57 = vadd.f32 %v10455_v5, %v10454_v49  ;;  %10526 = vmatprep.mubr.f32.mxu1 %v10451_v18  ;;  %v18422_v5 = vld [vmem:[#allocation4 + $0x7c] ss:$12 sps:$4 sm:$0xff]  }
 0xb25   :  { %10527 = vmatmul.mubr.f32.vlgmr.msra.gmra.mxu1 %v10444_v37  ;;  %19709 = vst [vmem:[#allocation46_spill] sm:$0xff] %v18422_v5  ;;  %v18425_v37 = vld [vmem:[#allocation4 + $0x78] ss:$12 sps:$4 sm:$0xff]  }
 0xb26   :  { %v10457_v0 = vrot.slane %v10456_v57, 1  ;;  %15200 = vmatpush3.msra.mxu1 %v18306_v19  ;;  %15207 = vmatprep.mubr.msk.f32.mxu1 %vm15977_vm3, %v19589_v20  ;;  %19710 = vst [vmem:[#allocation47_spill] sm:$0xff] %v18425_v37 }
 0xb27   :  { %15201 = vmatprep.subr.mxu1 %v19589_v20 }
 0xb28   :  { %v10458_v38 = vadd.f32 %v10457_v0, %v10456_v57  ;;  %15202 = vmatpush3.msra.mxu1 %v18310_v25  ;;  %v18428_v57 = vld [vmem:[#allocation4 + $0x64] ss:$12 sps:$4 sm:$0xff]   ;;  %v18431_v0 = vld [vmem:[#allocation4 + $0x60] ss:$12 sps:$4 sm:$0xff]  }
 0xb29   :  { %15203 = vmatprep.subr.mxu1 %v19589_v20  ;;  %19711 = vst [vmem:[#allocation48_spill] sm:$0xff] %v18428_v57  ;;  %19712 = vst [vmem:[#allocation49_spill] sm:$0xff] %v18431_v0 }
 0xb2a   :  { %15186 = vmatmul.mubr.msk.f32.vlgmr.msra.gmra.mxu0 %vm10130_vm5, %v10458_v38  ;;  %15204 = vmatpush3.msra.mxu1 %v18316_v63  ;;  %v18434_v38 = vld [vmem:[#allocation4 + $0x4c] ss:$12 sps:$4 sm:$0xff]  }
 0xb2b   :  { %10636 = vmatpush1.msra.mxu0 %v18280_v10  ;;  %10675 = vmatprep.mubr.f32.mxu0 %v19589_v20  ;;  %19713 = vst [vmem:[#allocation50_spill] sm:$0xff] %v18434_v38 }
 0xb2c   :  { %10637 = vmatprep.subr.mxu0 %v18282_v8  ;;  %15205 = vmatprep.subr.mxu1 %v19589_v20 }
 0xb2d   :  { %10638 = vmatpush1.msra.mxu0 %v18285_v55  ;;  %15206 = vmatpush3.msra.mxu1 %v18320_v4 }
 0xb2e   :  { %10639 = vmatprep.subr.mxu0 %v18291_v61 }
 0xb2f   :  { %10640 = vmatpush1.msra.mxu0 %v18294_v1 }
 0xb30   :  { %10641 = vmatprep.subr.mxu0 %v18297_v31 }
 0xb31   :  { %10642 = vmatpush1.msra.mxu0 %v18299_v56 }
 0xb32   :  { %15188 = vmatprep.subr.mxu0 %v19589_v20 }
 0xbe5   :  { %v14897_v18 = vpop.f32.mrf.mxu1 }
 0xbe7   :  { %v14898_v47 = vpop.f32.mrf.mxu1 }
 0xbe8   :  { %v14899_v49 = vadd.f32 %v14898_v47, %v14897_v18  ;;  %v18437_v18 = vld [vmem:[#allocation4 + $0x48] ss:$12 sps:$4 sm:$0xff]  }
 0xbe9   :  { %19714 = vst [vmem:[#allocation51_spill] sm:$0xff] %v18437_v18  ;;  %v18440_v47 = vld [vmem:[#allocation4 + $0x34] ss:$12 sps:$4 sm:$0xff]  }
 0xbea   :  { %v10598_v23 = vpop.f32.mrf.mxu0  ;;  %19715 = vst [vmem:[#allocation52_spill] sm:$0xff] %v18440_v47 }
 0xbeb   :  { %v10599_v60 = vadd.f32 %v14899_v49, %v10598_v23  ;;  %v18443_v49 = vld [vmem:[#allocation4 + $0x30] ss:$12 sps:$4 sm:$0xff]  }
 0xbec   :  { %v15187_v45 = vpop.f32.mrf.mxu0  ;;  %19716 = vst [vmem:[#allocation55_spill] sm:$0xff] %v18443_v49  ;;  %v18446_v23 = vld [vmem:[#allocation4 + $0x1c] ss:$12 sps:$4 sm:$0xff]  }
 0xbed   :  { %v10602_v34 = vmul.f32 0.055555556, %v10599_v60  ;;  %19717 = vst [vmem:[#allocation25_spill] sm:$0xff] %v18446_v23  ;;  %v18449_v60 = vld [vmem:[#allocation4 + $0x18] ss:$12 sps:$4 sm:$0xff]  }
 0xbee   :  { %19718 = vst [vmem:[#allocation26_spill] sm:$0xff] %v18449_v60  ;;  %v18452_v45 = vld [vmem:[#allocation4 + $0x4] ss:$12 sps:$4 sm:$0xff]  }
 0xbef   :  { %v10603_v43 = vadd.f32 0.001, %v10602_v34  ;;  %19719 = vst [vmem:[#allocation27_spill] sm:$0xff] %v18452_v45  ;;  %v18455_v34 = vld [vmem:[#allocation4] ss:$12 sps:$4 sm:$0xff]  }
 0xbf0   :  { %19720 = vst [vmem:[#allocation28_spill] sm:$0xff] %v18455_v34 }
 0xbf1   :  { %15691 = vrsqrt.f32 %v10603_v43  ;;  %v18458_v43 = vld [vmem:[#allocation4 + $0x16c] ss:$12 sps:$4 sm:$0xff]  }
 0xbf2   :  { %19721 = vst [vmem:[#allocation29_spill] sm:$0xff] %v18458_v43 }
 0xbfe   :  { %v15692_v9 = vpop.eup %15691 }
 0xbff   :  { %v10605_v16 = vmul.f32 %v15692_v9, %v10106_v41  ;;  %v18461_v41 = vld [vmem:[#allocation4 + $0x168] ss:$12 sps:$4 sm:$0xff]  }
 0xc00   :  { %19722 = vst [vmem:[#allocation62_spill] sm:$0xff] %v18461_v41  ;;  %v18464_v9 = vld [vmem:[#allocation4 + $0x154] ss:$12 sps:$4 sm:$0xff]  }
 0xc01   :  { %14374 = vmatmul.mubr.msk.f32.vlgmr.msra.gmra.mxu0 %vm10130_vm5, %v10605_v16  ;;  %v10606_v3 = vmul.f32 %v10605_v16, %v18304_v24  ;;  %v18407_v24 = vld [vmem:[#allocation4 + $0xac] ss:$12 sps:$4 sm:$0xff]   ;;  %19723 = vst [vmem:[#allocation53_spill] sm:$0xff] %v18464_v9 }
 0xc02   :  { %15189 = vmatpush3.msra.mxu0 %v18306_v19  ;;  %15196 = vmatprep.mubr.msk.f32.mxu0 %vm15977_vm3, %v19589_v20 }
 0xc03   :  { %15190 = vmatprep.subr.mxu0 %v19589_v20  ;;  %v10607_v40 = vsub.f32 %v10107_v7, %v10606_v3  ;;  %v18471_v7 = vld [vmem:[#allocation4 + $0x13c] ss:$12 sps:$4 sm:$0xff]   ;;  %v18473_v3 = vld [vmem:[#allocation4 + $0x138] ss:$12 sps:$4 sm:$0xff]  }
 0xc04   :  { %15191 = vmatpush3.msra.mxu0 %v18310_v25  ;;  %19725 = vst [vmem:[#allocation54_spill] sm:$0xff] %v18471_v7  ;;  %19726 = vst [vmem:[#allocation59_spill] sm:$0xff] %v18473_v3 }
 0xc05   :  { %15192 = vmatprep.subr.mxu0 %v19589_v20  ;;  %15208 = vmatmul.mubr.msk.f32.vlgmr.msra.gmra.mxu1 %vm10130_vm5, %v10607_v40 }
 0xc06   :  { %15193 = vmatpush3.msra.mxu0 %v18316_v63 }
 0xc07   :  { %15194 = vmatprep.subr.mxu0 %v19589_v20 }
 0xc08   :  { %15195 = vmatpush3.msra.mxu0 %v18320_v4 }
 0xc09   :  { %15197 = vmatmul.mubr.msk.f32.vlgmr.msra.gmra.mxu0 %vm10130_vm5, %v10605_v16  ;;  %10779 = vmatprep.subr.mxu0 %v18278_v13  ;;  %v18467_v16 = vld [vmem:[#allocation4 + $0x150] ss:$12 sps:$4 sm:$0xff]  }
 0xc0a   :  { %10780 = vmatpush1.msra.mxu0 %v18280_v10  ;;  %10819 = vmatprep.mubr.f32.mxu0 %v19589_v20  ;;  %19724 = vst [vmem:[#allocation57_spill] sm:$0xff] %v18467_v16 }
 0xc0b   :  { %10781 = vmatprep.subr.mxu0 %v18282_v8 }
 0xc0c   :  { %10782 = vmatpush1.msra.mxu0 %v18285_v55 }
 0xc0d   :  { %10783 = vmatprep.subr.mxu0 %v18291_v61 }
 0xc0e   :  { %10784 = vmatpush1.msra.mxu0 %v18294_v1 }
 0xc0f   :  { %10785 = vmatprep.subr.mxu0 %v18297_v31 }
 0xc10   :  { %10786 = vmatpush1.msra.mxu0 %v18299_v56 }
 0xc11   :  { %14376 = vmatmul.mubr.msk.f32.vlgmr.msra.gmra.mxu0 %vm10130_vm5, %v10607_v40  ;;  %11297 = vmatprep.subr.bf16.mxu0 %v18407_v24  ;;  %v18477_v40 = vld [vmem:[#allocation4 + $0x124] ss:$12 sps:$4 sm:$0xff]  }
 0xc12   :  { %11298 = vmatpush1.bf16.msra.mxu0 %v18410_v2  ;;  %19727 = vst [vmem:[#allocation56_spill] sm:$0xff] %v18477_v40 }
 0xc13   :  { %11299 = vmatprep.subr.bf16.mxu0 %v18413_v46 }
 0xc16   :  { %11300 = vmatpush1.bf16.msra.mxu0 %v18419_v35  ;;  %v18529_v35 = vld [vmem:[#allocation4 + $0xb0] ss:$12 sps:$4 sm:$0xff]  }
 0xc17   :  { %11301 = vmatprep.subr.bf16.mxu0 %v18422_v5 }
 0xc1a   :  { %11302 = vmatpush1.bf16.msra.mxu0 %v18425_v37 }
 0xc1b   :  { %11303 = vmatprep.subr.bf16.mxu0 %v18428_v57 }
 0xc1e   :  { %11304 = vmatpush1.bf16.msra.mxu0 %v18431_v0 }
 0xc1f   :  { %11305 = vmatprep.subr.bf16.mxu0 %v18434_v38 }
 0xc22   :  { %11306 = vmatpush1.bf16.msra.mxu0 %v18437_v18 }
 0xc23   :  { %11307 = vmatprep.subr.bf16.mxu0 %v18440_v47 }
 0xc26   :  { %11308 = vmatpush1.bf16.msra.mxu0 %v18443_v49 }
 0xc27   :  { %11309 = vmatprep.subr.bf16.mxu0 %v18446_v23  ;;  %v18517_v23 = vld [vmem:[#allocation4 + $0xc4] ss:$12 sps:$4 sm:$0xff]  }
 0xc28   :  { %19735 = vst [vmem:[#allocation65_spill] sm:$0xff] %v18517_v23 }
 0xc2a   :  { %11310 = vmatpush1.bf16.msra.mxu0 %v18449_v60  ;;  %v18513_v60 = vld [vmem:[#allocation4 + $0xd8] ss:$12 sps:$4 sm:$0xff]  }
 0xc2b   :  { %11311 = vmatprep.subr.bf16.mxu0 %v18452_v45  ;;  %v18506_v45 = vld [vmem:[#allocation4 + $0x170] ss:$12 sps:$4 sm:$0xff]   ;;  %19734 = vst [vmem:[#allocation68_spill] sm:$0xff] %v18513_v60 }
 0xc2e   :  { %11312 = vmatpush1.bf16.msra.mxu0 %v18455_v34  ;;  %v18503_v34 = vld [vmem:[#allocation4 + $0xf0] ss:$12 sps:$4 sm:$0xff]  }
 0xc2f   :  { %11313 = vmatprep.subr.bf16.mxu0 %v18458_v43  ;;  %v18479_v43 = vld [vmem:[#allocation4 + $0x120] ss:$12 sps:$4 sm:$0xff]   ;;  %19732 = vst [vmem:[#allocation66_spill] sm:$0xff] %v18503_v34 }
 0xc30   :  { %19728 = vst [vmem:[#allocation61_spill] sm:$0xff] %v18479_v43 }
 0xc32   :  { %11314 = vmatpush2.bf16.msra.mxu0 %v18461_v41  ;;  %v18482_v41 = vld [vmem:[#allocation4 + $0x19c] ss:$12 sps:$4 sm:$0xff]  }
 0xc33   :  { %11315 = vmatprep.subr.bf16.mxu0 %v18464_v9  ;;  %v18485_v9 = vld [vmem:[#allocation4 + $0x198] ss:$12 sps:$4 sm:$0xff]   ;;  %11350 = vmatprep.subr.bf16.mxu1 %v18482_v41 }
 0xc34   :  { %11351 = vmatpush1.bf16.msra.mxu1 %v18485_v9 }
 0xc36   :  { %11316 = vmatpush2.bf16.msra.mxu0 %v18467_v16  ;;  %v18488_v16 = vld [vmem:[#allocation4 + $0x10c] ss:$12 sps:$4 sm:$0xff]  }
 0xc37   :  { %11317 = vmatprep.subr.bf16.mxu0 %v18471_v7  ;;  %19729 = vst [vmem:[#allocation58_spill] sm:$0xff] %v18488_v16  ;;  %v18491_v7 = vld [vmem:[#allocation4 + $0x108] ss:$12 sps:$4 sm:$0xff]  }
 0xc38   :  { %19730 = vst [vmem:[#allocation64_spill] sm:$0xff] %v18491_v7 }
 0xc3a   :  { %11318 = vmatpush2.bf16.msra.mxu0 %v18473_v3  ;;  %v18494_v3 = vld [vmem:[#allocation4 + $0x184] ss:$12 sps:$4 sm:$0xff]  }
 0xc3b   :  { %11319 = vmatprep.subr.bf16.mxu0 %v18477_v40  ;;  %v18497_v40 = vld [vmem:[#allocation4 + $0x180] ss:$12 sps:$4 sm:$0xff]   ;;  %11352 = vmatprep.subr.bf16.mxu1 %v18494_v3 }
 0xc3c   :  { %11353 = vmatpush1.bf16.msra.mxu1 %v18497_v40 }
 0xc3d   :  { %14915 = vmatprep.subr.bf16.mxu1 %v18506_v45 }
 0xc3e   :  { %11320 = vmatpush2.bf16.msra.mxu0 %v18479_v43  ;;  %v18500_v43 = vld [vmem:[#allocation4 + $0xf4] ss:$12 sps:$4 sm:$0xff]  }
 0xc3f   :  { %11321 = vmatprep.subr.bf16.mxu0 %v18488_v16  ;;  %19731 = vst [vmem:[#allocation60_spill] sm:$0xff] %v18500_v43  ;;  %v19399_v16 = vmov 0  }
 0xc40   :  { %11370 = vmatprep.mubr.bf16.mxu1 %v19399_v16 }
 0xc42   :  { %11322 = vmatpush2.bf16.msra.mxu0 %v18491_v7  ;;  %v18511_v7 = vld [vmem:[#allocation4 + $0xdc] ss:$12 sps:$4 sm:$0xff]  }
 0xc43   :  { %11323 = vmatprep.subr.bf16.mxu0 %v18500_v43  ;;  %19733 = vst [vmem:[#allocation63_spill] sm:$0xff] %v18511_v7  ;;  %v18519_v43 = vld [vmem:[#allocation4 + $0xc0] ss:$12 sps:$4 sm:$0xff]  }
 0xc44   :  { %19736 = vst [vmem:[#allocation70_spill] sm:$0xff] %v18519_v43 }
 0xc46   :  { %11324 = vmatpush2.bf16.msra.mxu0 %v18503_v34 }
 0xc47   :  { %11325 = vmatprep.subr.bf16.mxu0 %v18511_v7 }
 0xc4a   :  { %11326 = vmatpush2.bf16.msra.mxu0 %v18513_v60 }
 0xc4b   :  { %11327 = vmatprep.subr.bf16.mxu0 %v18517_v23 }
 0xc4e   :  { %11328 = vmatpush2.bf16.msra.mxu0 %v18519_v43 }
 0xc4f   :  { %15218 = vmatprep.subr.mxu0 %v19589_v20 }
 0xcc1   :  { %v10677_v16 = vpop.f32.mrf.mxu0 }
 0xcc2   :  { %v10899_v57 = vrot.slane %v10677_v16, %v17251_v62  ;;  %v18566_v16 = vld [vmem:[#allocation4 + $0xf8] ss:$12 sps:$4 sm:$0xff]  }
 0xcc3   :  { %v10679_v49 = vpop.f32.mrf.mxu0 }
 0xcc4   :  { %v10903_v23 = vrot.slane %v10679_v49, %v17251_v62  ;;  %v10908_v46 = vmul.f32 %v10899_v57, %v18255_v36  ;;  %v18542_v36 = vld [vmem:[#allocation4 + $0x140] ss:$12 sps:$4 sm:$0xff]  }
 0xcc5   :  { %v10892_v34 = vpop.f32.mrf.mxu1  ;;  %v18545_v49 = vld [vmem:[#allocation4 + $0x80] ss:$12 sps:$4 sm:$0xff]  }
 0xcc6   :  { %v10922_v60 = vrot.slane %v10892_v34, %v17251_v62  ;;  %v10909_v34 = vmul.f32 %v10903_v23, %v18259_v11  ;;  %v18551_v23 = vld [vmem:[#allocation4 + $0x68] ss:$12 sps:$4 sm:$0xff]  }
 0xcc7   :  { %v15209_v47 = vpop.f32.mrf.mxu1 }
 0xcc9   :  { %v10748_v18 = vpop.f32.mrf.mxu0 }
 0xcca   :  { %v10907_v38 = vrot.slane %v10748_v18, %v17251_v62  ;;  %v18533_v18 = vld [vmem:[#allocation4 + $0x158] ss:$12 sps:$4 sm:$0xff]  }
 0xccb   :  { %v15198_v7 = vpop.f32.mrf.mxu0 }
 0xccc   :  { %v10910_v0 = vmul.f32 %v10907_v38, %v18272_v14 }
 0xcce   :  { %v10925_v37 = vadd.f32 %v10922_v60, %v10910_v0  ;;  %v18554_v60 = vld [vmem:[#allocation4 + $0x110] ss:$12 sps:$4 sm:$0xff]  }
 0xcd0   :  { %v10928_v43 = vmax.f32 %v10925_v37, 0.0  ;;  %v18539_v37 = vld [vmem:[#allocation4 + $0x98] ss:$12 sps:$4 sm:$0xff]  }
 0xcd1   :  { %v10821_v5 = vpop.f32.mrf.mxu0 }
 0xcd2   :  { %v11005_v47 = vpack.c.bf16 %v10928_v43, %v10928_v43  ;;  %v10914_v2 = vrot.slane %v10821_v5, %v17251_v62  ;;  %v18562_v43 = vld [vmem:[#allocation4 + $0x50] ss:$12 sps:$4 sm:$0xff]  }
 0xcd3   :  { %v10823_v7 = vpop.f32.mrf.mxu0 }
 0xcd4   :  { %v10923_v14 = vadd.f32 %v10914_v2, %v10908_v46  ;;  %v10918_v38 = vrot.slane %v10823_v7, %v17251_v62  ;;  %14432 = vmatmul.mubr.msk.bf16.vlgmr.msra.gmra.mxu1 %vm10130_vm5, %v11005_v47  ;;  %v18548_v2 = vld [vmem:[#allocation4 + $0x128] ss:$12 sps:$4 sm:$0xff]   ;;  %v18579_v7 = vld [vmem:[#allocation4 + $0x20] ss:$12 sps:$4 sm:$0xff]  }
 0xcd5   :  { %14916 = vmatpush3.bf16.msra.mxu1 %v18529_v35 }
 0xcd6   :  { %v10924_v0 = vadd.f32 %v10918_v38, %v10909_v34  ;;  %14917 = vmatprep.subr.bf16.mxu1 %v18533_v18  ;;  %v10926_v5 = vmax.f32 %v10923_v14, 0.0  ;;  %v18589_v34 = vld [vmem:[#allocation4 + $0x1a0] ss:$12 sps:$4 sm:$0xff]   ;;  %v18593_v14 = vld [vmem:[#allocation4 + $0x188] ss:$12 sps:$4 sm:$0xff]  }
 0xcd7   :  { %19737 = vst [vmem:[#allocation67_spill] sm:$0xff] %v18589_v34  ;;  %19738 = vst [vmem:[#allocation72_spill] sm:$0xff] %v18593_v14 }
 0xcd8   :  { %v10927_v57 = vmax.f32 %v10924_v0, 0.0  ;;  %v11003_v46 = vpack.c.bf16 %v10926_v5, %v10926_v5 }
 0xcd9   :  { %14918 = vmatpush3.bf16.msra.mxu1 %v18539_v37 }
 0xcda   :  { %v11004_v11 = vpack.c.bf16 %v10927_v57, %v10927_v57  ;;  %14919 = vmatprep.subr.bf16.mxu1 %v18542_v36 }
 0xcdc   :  { %11329 = vmatprep.mubr.bf16.mxu0 %v11004_v11  ;;  %11411 = vmatprep.mubr.bf16.mxu1 %v11004_v11 }
 0xcdd   :  { %14920 = vmatpush3.bf16.msra.mxu1 %v18545_v49  ;;  %11330 = vmatmul.mubr.bf16.vlgmr.msra.gmra.mxu0 %v11003_v46 }
 0xcde   :  { %14921 = vmatprep.subr.bf16.mxu1 %v18548_v2  ;;  %15219 = vmatpush3.msra.mxu0 %v18229_v39  ;;  %v18572_v39 = vld [vmem:[#allocation4 + $0x38] ss:$12 sps:$4 sm:$0xff]  }
 0xcdf   :  { %15220 = vmatprep.subr.mxu0 %v19589_v20  ;;  %15226 = vmatprep.mubr.msk.f32.mxu0 %vm15977_vm3, %v19589_v20 }
 0xce0   :  { %15221 = vmatpush3.msra.mxu0 %v18236_v15  ;;  %v18576_v15 = vld [vmem:[#allocation4 + $0xe0] ss:$12 sps:$4 sm:$0xff]  }
 0xce1   :  { %14922 = vmatpush3.bf16.msra.mxu1 %v18551_v23  ;;  %15222 = vmatprep.subr.mxu0 %v19589_v20 }
 0xce2   :  { %14923 = vmatprep.subr.bf16.mxu1 %v18554_v60  ;;  %15223 = vmatpush3.msra.mxu0 %v18241_v26  ;;  %v18582_v26 = vld [vmem:[#allocation4 + $0xc8] ss:$12 sps:$4 sm:$0xff]  }
 0xce3   :  { %15224 = vmatprep.subr.mxu0 %v19589_v20 }
 0xce4   :  { %15225 = vmatpush3.msra.mxu0 %v18250_v12  ;;  %v18585_v12 = vld [vmem:[#allocation4 + $0x8] ss:$12 sps:$4 sm:$0xff]  }
 0xce5   :  { %14924 = vmatpush3.bf16.msra.mxu1 %v18562_v43  ;;  %11651 = vmatprep.subr.mxu0 %v18278_v13 }
 0xce6   :  { %14925 = vmatprep.subr.bf16.mxu1 %v18566_v16 }
 0xce9   :  { %14926 = vmatpush3.bf16.msra.mxu1 %v18572_v39 }
 0xcea   :  { %14927 = vmatprep.subr.bf16.mxu1 %v18576_v15 }
 0xced   :  { %14928 = vmatpush3.bf16.msra.mxu1 %v18579_v7 }
 0xcee   :  { %14929 = vmatprep.subr.bf16.mxu1 %v18582_v26 }
 0xcf1   :  { %14930 = vmatpush3.bf16.msra.mxu1 %v18585_v12 }
 0xcf2   :  { %15210 = vmatprep.subr.bf16.mxu1 %v19589_v20 }
 0xcf4   :  { %11412 = vmatmul.mubr.bf16.vlgmr.msra.gmra.mxu1 %v11003_v46 }
 0xcf5   :  { %15211 = vmatpush3.bf16.msra.mxu1 %v18589_v34  ;;  %15214 = vmatprep.mubr.msk.bf16.mxu1 %vm15977_vm3, %v19589_v20 }
 0xcf6   :  { %15212 = vmatprep.subr.bf16.mxu1 %v19589_v20 }
 0xcf9   :  { %15213 = vmatpush3.bf16.msra.mxu1 %v18593_v14 }
 0xcfa   :  { %14940 = vmatprep.subr.mxu1 %v18033_v17  ;;  %v19739_v17 = vld [vmem:[#allocation31_spill] sm:$0xff] }
 0xcfc   :  { %15215 = vmatmul.mubr.msk.bf16.vlgmr.msra.gmra.mxu1 %vm10130_vm5, %v11005_v47 }
 0xcfd   :  { %14941 = vmatpush3.msra.mxu1 %v18039_v33  ;;  %v19740_v33 = vld [vmem:[#allocation32_spill] sm:$0xff] }
 0xcfe   :  { %14942 = vmatprep.subr.mxu1 %v18044_v21  ;;  %v19741_v21 = vld [vmem:[#allocation33_spill] sm:$0xff] }
 0xcff   :  { %14943 = vmatpush3.msra.mxu1 %v18051_v52  ;;  %v19742_v52 = vld [vmem:[#allocation34_spill] sm:$0xff] }
 0xd00   :  { %14944 = vmatprep.subr.mxu1 %v18058_v30  ;;  %v19743_v30 = vld [vmem:[#allocation35_spill] sm:$0xff] }
 0xd01   :  { %14945 = vmatpush3.msra.mxu1 %v18064_v44  ;;  %v19744_v44 = vld [vmem:[#allocation36_spill] sm:$0xff] }
 0xd02   :  { %14946 = vmatprep.subr.mxu1 %v18070_v50  ;;  %v19745_v50 = vld [vmem:[#allocation37_spill] sm:$0xff] }
 0xd03   :  { %14947 = vmatpush3.msra.mxu1 %v18076_v22  ;;  %v19746_v22 = vld [vmem:[#allocation38_spill] sm:$0xff] }
 0xd04   :  { %14948 = vmatprep.subr.mxu1 %v18082_v58  ;;  %v19747_v58 = vld [vmem:[#allocation39_spill] sm:$0xff] }
 0xd05   :  { %14949 = vmatpush3.msra.mxu1 %v18088_v48  ;;  %v19748_v48 = vld [vmem:[#allocation40_spill] sm:$0xff] }
 0xd06   :  { %14950 = vmatprep.subr.mxu1 %v18094_v32  ;;  %v19749_v32 = vld [vmem:[#allocation41_spill] sm:$0xff] }
 0xd07   :  { %14951 = vmatpush3.msra.mxu1 %v18100_v6  ;;  %v19750_v6 = vld [vmem:[#allocation42_spill] sm:$0xff] }
 0xd08   :  { %14952 = vmatprep.subr.mxu1 %v18106_v59  ;;  %v18635_v59 = vld [vmem:[%s19241_s6 + $0xf8] sm:$0xff] }
 0xd09   :  { %14953 = vmatpush3.msra.mxu1 %v18112_v29  ;;  %19751 = vst [vmem:[#allocation69_spill] sm:$0xff] %v18635_v59 }
 0xd0a   :  { %14954 = vmatprep.subr.mxu1 %v18118_v51 }
 0xd0b   :  { %14955 = vmatpush3.msra.mxu1 %v18124_v53 }
 0xd0c   :  { %14956 = vmatprep.subr.mxu1 %v18130_v54 }
 0xd0d   :  { %14957 = vmatpush3.msra.mxu1 %v18136_v42 }
 0xd0e   :  { %14958 = vmatprep.subr.mxu1 %v18142_v28 }
 0xd0f   :  { %14959 = vmatpush3.msra.mxu1 %v18148_v27 }
 0xd10   :  { %14960 = vmatprep.subr.mxu1 %v19739_v17 }
 0xd11   :  { %14961 = vmatpush3.msra.mxu1 %v19740_v33 }
 0xd12   :  { %14962 = vmatprep.subr.mxu1 %v19741_v21 }
 0xd13   :  { %14963 = vmatpush3.msra.mxu1 %v19742_v52 }
 0xd14   :  { %14964 = vmatprep.subr.mxu1 %v19743_v30 }
 0xd15   :  { %14965 = vmatpush3.msra.mxu1 %v19744_v44 }
 0xd16   :  { %14966 = vmatprep.subr.mxu1 %v19745_v50 }
 0xd17   :  { %14967 = vmatpush3.msra.mxu1 %v19746_v22 }
 0xd18   :  { %14968 = vmatprep.subr.mxu1 %v19747_v58 }
 0xd19   :  { %14969 = vmatpush3.msra.mxu1 %v19748_v48 }
 0xd1a   :  { %14970 = vmatprep.subr.mxu1 %v19749_v32  ;;  %v18649_v32 = vld [vmem:[%s19241_s6 + $0x78] sm:$0xff] }
 0xd1b   :  { %14971 = vmatpush3.msra.mxu1 %v19750_v6  ;;  %19752 = vst [vmem:[#allocation74_spill] sm:$0xff] %v18649_v32  ;;  %v18655_v6 = vld [vmem:[%s19241_s6 + $0xf0] sm:$0xff] }
 0xd1c   :  { %14985 = vmatprep.subr.mxu1 %v18635_v59  ;;  %19753 = vst [vmem:[#allocation71_spill] sm:$0xff] %v18655_v6 }
 0xd94   :  { %v11372_v29 = vpop.f32.mrf.mxu1 }
 0xd96   :  { %v11374_v51 = vpop.f32.mrf.mxu1 }
 0xd98   :  { %v11376_v53 = vpop.f32.mrf.mxu1 }
 0xd99   :  { %v18667_v53 = vld [vmem:[%s19241_s6 + $0xe8] sm:$0xff] }
 0xd9a   :  { %v11377_v54 = vpop.f32.mrf.mxu1  ;;  %19755 = vst [vmem:[#allocation73_spill] sm:$0xff] %v18667_v53 }
 0xd9b   :  { %v18673_v54 = vld [vmem:[%s19241_s6 + $0x68] sm:$0xff] }
 0xd9c   :  { %19756 = vst [vmem:[#allocation96_spill] sm:$0xff] %v18673_v54 }
 0xd9d   :  { %v11331_v42 = vpop.f32.mrf.mxu0 }
 0xd9e   :  { %v18638_v28 = vadd.f32 %v11372_v29, %v11331_v42  ;;  %v18661_v29 = vld [vmem:[%s19241_s6 + $0x70] sm:$0xff] }
 0xd9f   :  { %v11333_v27 = vpop.f32.mrf.mxu0  ;;  %19754 = vst [vmem:[#allocation76_spill] sm:$0xff] %v18661_v29 }
 0xda0   :  { %v11459_v47 = vsel %vm6815_vm1, %v18638_v28, 0.0  ;;  %v18642_v38 = vadd.f32 %v11374_v51, %v11333_v27  ;;  %v18679_v27 = vld [vmem:[%s19241_s6 + $0xe0] sm:$0xff] }
 0xda1   :  { %v11460_v0 = vrot.slane %v11459_v47, 4  ;;  %v11335_v5 = vpop.f32.mrf.mxu0  ;;  %19757 = vst [vmem:[#allocation75_spill] sm:$0xff] %v18679_v27 }
 0xda2   :  { %v11466_v57 = vsel %vm6815_vm1, %v18642_v38, 0.0  ;;  %v18691_v5 = vld [vmem:[%s19241_s6 + $0xd8] sm:$0xff] }
 0xda3   :  { %v11461_v11 = vadd.f32 %v11460_v0, %v11459_v47  ;;  %v11467_v46 = vrot.slane %v11466_v57, 4  ;;  %v11336_v17 = vpop.f32.mrf.mxu0  ;;  %v18685_v47 = vld [vmem:[%s19241_s6 + $0x60] sm:$0xff]  ;;  %19759 = vst [vmem:[#allocation77_spill] sm:$0xff] %v18691_v5 }
 0xda4   :  { %19758 = vst [vmem:[#allocation97_spill] sm:$0xff] %v18685_v47 }
 0xda5   :  { %v11462_v33 = vrot.slane %v11461_v11, 2  ;;  %v11468_v21 = vadd.f32 %v11467_v46, %v11466_v57  ;;  %v18697_v57 = vld [vmem:[%s19241_s6 + $0x58] sm:$0xff]  ;;  %v18703_v46 = vld [vmem:[%s19241_s6 + $0xd0] sm:$0xff] }
 0xda6   :  { %19760 = vst [vmem:[#allocation98_spill] sm:$0xff] %v18697_v57  ;;  %19761 = vst [vmem:[#allocation78_spill] sm:$0xff] %v18703_v46 }
 0xda7   :  { %v11463_v52 = vadd.f32 %v11462_v33, %v11461_v11  ;;  %v11469_v30 = vrot.slane %v11468_v21, 2  ;;  %v18709_v33 = vld [vmem:[%s19241_s6 + $0x50] sm:$0xff] }
 0xda8   :  { %19762 = vst [vmem:[#allocation99_spill] sm:$0xff] %v18709_v33 }
 0xda9   :  { %v11470_v44 = vadd.f32 %v11469_v30, %v11468_v21  ;;  %v11464_v50 = vrot.slane %v11463_v52, 1 }
 0xdab   :  { %v11471_v22 = vrot.slane %v11470_v44, 1  ;;  %v11465_v48 = vadd.f32 %v11464_v50, %v11463_v52  ;;  %v18715_v52 = vld [vmem:[%s19241_s6 + $0xc8] sm:$0xff] }
 0xdac   :  { %19763 = vst [vmem:[#allocation79_spill] sm:$0xff] %v18715_v52 }
 0xdad   :  { %v11472_v58 = vadd.f32 %v11471_v22, %v11470_v44  ;;  %v18723_v44 = vld [vmem:[%s19241_s6 + $0x48] sm:$0xff]  ;;  %v18729_v22 = vld [vmem:[%s19241_s6 + $0xc0] sm:$0xff] }
 0xdae   :  { %19764 = vst [vmem:[#allocation100_spill] sm:$0xff] %v18723_v44  ;;  %19765 = vst [vmem:[#allocation80_spill] sm:$0xff] %v18729_v22 }
 0xdaf   :  { %11547 = vmatprep.mubr.f32.mxu1 %v11472_v58 }
 0xdb0   :  { %11548 = vmatmul.mubr.f32.vlgmr.msra.gmra.mxu1 %v11465_v48  ;;  %v18737_v48 = vld [vmem:[%s19241_s6 + $0x40] sm:$0xff] }
 0xdb1   :  { %14986 = vmatpush3.msra.mxu1 %v18649_v32  ;;  %19766 = vst [vmem:[#allocation101_spill] sm:$0xff] %v18737_v48 }
 0xdb2   :  { %14987 = vmatprep.subr.mxu1 %v18655_v6 }
 0xdb3   :  { %14988 = vmatpush3.msra.mxu1 %v18661_v29 }
 0xdb4   :  { %v14931_v51 = vpop.f32.mrf.mxu1  ;;  %14989 = vmatprep.subr.mxu1 %v18667_v53 }
 0xdb5   :  { %14990 = vmatpush3.msra.mxu1 %v18673_v54 }
 0xdb6   :  { %v14932_v42 = vpop.f32.mrf.mxu1  ;;  %14991 = vmatprep.subr.mxu1 %v18679_v27 }
 0xdb7   :  { %14992 = vmatpush3.msra.mxu1 %v18685_v47  ;;  %v14933_v17 = vadd.f32 %v14932_v42, %v14931_v51 }
 0xdb8   :  { %v14934_v0 = vpop.f32.mrf.mxu1  ;;  %14993 = vmatprep.subr.mxu1 %v18691_v5 }
 0xdb9   :  { %14994 = vmatpush3.msra.mxu1 %v18697_v57  ;;  %v18743_v0 = vld [vmem:[%s19241_s6 + $0xb8] sm:$0xff] }
 0xdba   :  { %v14935_v11 = vpop.f32.mrf.mxu1  ;;  %14995 = vmatprep.subr.mxu1 %v18703_v46  ;;  %19767 = vst [vmem:[#allocation81_spill] sm:$0xff] %v18743_v0 }
 0xdbb   :  { %14996 = vmatpush3.msra.mxu1 %v18709_v33  ;;  %v18749_v11 = vld [vmem:[%s19241_s6 + $0x38] sm:$0xff] }
 0xdbc   :  { %v11453_v21 = vpop.f32.mrf.mxu1  ;;  %14997 = vmatprep.subr.mxu1 %v18715_v52  ;;  %19768 = vst [vmem:[#allocation102_spill] sm:$0xff] %v18749_v11 }
 0xdbd   :  { %v18718_v30 = vadd.f32 %v14933_v17, %v11453_v21  ;;  %14998 = vmatpush3.msra.mxu1 %v18723_v44 }
 0xdbe   :  { %v15216_v50 = vpop.f32.mrf.mxu1  ;;  %14999 = vmatprep.subr.mxu1 %v18729_v22 }
 0xdbf   :  { %v11473_v58 = vsel %vm10122_vm4, %v18718_v30, 0.0  ;;  %15000 = vmatpush3.msra.mxu1 %v18737_v48  ;;  %v18755_v50 = vld [vmem:[%s19241_s6 + $0xb0] sm:$0xff] }
 0xdc0   :  { %v11474_v51 = vrot.slane %v11473_v58, 4  ;;  %v11456_v42 = vpop.f32.mrf.mxu1  ;;  %15001 = vmatprep.subr.mxu1 %v18743_v0  ;;  %19769 = vst [vmem:[#allocation82_spill] sm:$0xff] %v18755_v50 }
 0xdc1   :  { %15002 = vmatpush3.msra.mxu1 %v18749_v11  ;;  %v18761_v42 = vld [vmem:[%s19241_s6 + $0x30] sm:$0xff] }
 0xdc2   :  { %v11475_v17 = vadd.f32 %v11474_v51, %v11473_v58  ;;  %v15217_v21 = vpop.f32.mrf.mxu1  ;;  %15003 = vmatprep.subr.mxu1 %v18755_v50  ;;  %19770 = vst [vmem:[#allocation103_spill] sm:$0xff] %v18761_v42  ;;  %v18767_v58 = vld [vmem:[%s19241_s6 + $0xa8] sm:$0xff]  ;;  %v18785_v50 = vld [vmem:[%s19241_s6 + $0x20] sm:$0xff] }
 0xdc3   :  { %15004 = vmatpush3.msra.mxu1 %v18761_v42  ;;  %19771 = vst [vmem:[#allocation83_spill] sm:$0xff] %v18767_v58  ;;  %v18773_v51 = vld [vmem:[%s19241_s6 + $0x28] sm:$0xff]  ;;  %v18779_v42 = vld [vmem:[%s19241_s6 + $0xa0] sm:$0xff]  ;;  %19774 = vst [vmem:[#allocation105_spill] sm:$0xff] %v18785_v50 }
 0xdc4   :  { %v11476_v0 = vrot.slane %v11475_v17, 2  ;;  %15005 = vmatprep.subr.mxu1 %v18767_v58  ;;  %19772 = vst [vmem:[#allocation104_spill] sm:$0xff] %v18773_v51  ;;  %19773 = vst [vmem:[#allocation84_spill] sm:$0xff] %v18779_v42 }
 0xdc5   :  { %15006 = vmatpush3.msra.mxu1 %v18773_v51  ;;  %v18791_v51 = vld [vmem:[%s19241_s6 + $0x98] sm:$0xff] }
 0xdc6   :  { %v11477_v21 = vadd.f32 %v11476_v0, %v11475_v17  ;;  %15007 = vmatprep.subr.mxu1 %v18779_v42  ;;  %19775 = vst [vmem:[#allocation85_spill] sm:$0xff] %v18791_v51  ;;  %v18797_v0 = vld [vmem:[%s19241_s6 + $0x18] sm:$0xff]  ;;  %v18809_v42 = vld [vmem:[%s19241_s6 + $0x10] sm:$0xff] }
 0xdc7   :  { %15008 = vmatpush3.msra.mxu1 %v18785_v50  ;;  %19776 = vst [vmem:[#allocation106_spill] sm:$0xff] %v18797_v0  ;;  %v18803_v50 = vld [vmem:[%s19241_s6 + $0x90] sm:$0xff]  ;;  %19778 = vst [vmem:[#allocation107_spill] sm:$0xff] %v18809_v42 }
 0xdc8   :  { %v11478_v58 = vrot.slane %v11477_v21, 1  ;;  %15009 = vmatprep.subr.mxu1 %v18791_v51  ;;  %19777 = vst [vmem:[#allocation86_spill] sm:$0xff] %v18803_v50 }
 0xdc9   :  { %15010 = vmatpush3.msra.mxu1 %v18797_v0 }
 0xdca   :  { %v11479_v17 = vadd.f32 %v11478_v58, %v11477_v21  ;;  %15011 = vmatprep.subr.mxu1 %v18803_v50  ;;  %v18816_v58 = vld [vmem:[%s19241_s6 + $0x88] sm:$0xff] }
 0xdcb   :  { %15012 = vmatpush3.msra.mxu1 %v18809_v42  ;;  %19779 = vst [vmem:[#allocation87_spill] sm:$0xff] %v18816_v58  ;;  %v18825_v21 = vld [vmem:[%s19241_s6 + $0x8] sm:$0xff] }
 0xdcc   :  { %15227 = vmatmul.mubr.msk.f32.vlgmr.msra.gmra.mxu0 %vm10130_vm5, %v11479_v17  ;;  %15013 = vmatprep.subr.mxu1 %v18816_v58  ;;  %19780 = vst [vmem:[#allocation108_spill] sm:$0xff] %v18825_v21  ;;  %v18832_v17 = vld [vmem:[%s19241_s6 + $0x80] sm:$0xff] }
 0xdcd   :  { %11652 = vmatpush1.msra.mxu0 %v18280_v10  ;;  %11691 = vmatprep.mubr.f32.mxu0 %v19589_v20  ;;  %19781 = vst [vmem:[#allocation88_spill] sm:$0xff] %v18832_v17  ;;  %v18839_v58 = vld [vmem:[%s19241_s6] sm:$0xff] }
 0xdce   :  { %11653 = vmatprep.subr.mxu0 %v18282_v8  ;;  %15014 = vmatpush3.msra.mxu1 %v18825_v21  ;;  %19782 = vst [vmem:[#allocation109_spill] sm:$0xff] %v18839_v58 }
 0xdcf   :  { %11654 = vmatpush1.msra.mxu0 %v18285_v55  ;;  %15015 = vmatprep.subr.mxu1 %v18832_v17 }
 0xdd0   :  { %11655 = vmatprep.subr.mxu0 %v18291_v61  ;;  %15016 = vmatpush3.msra.mxu1 %v18839_v58 }
 0xdd1   :  { %11656 = vmatpush1.msra.mxu0 %v18294_v1  ;;  %15262 = vmatprep.subr.mxu1 %v19589_v20 }
 0xdd2   :  { %11657 = vmatprep.subr.mxu0 %v18297_v31 }
 0xdd3   :  { %11658 = vmatpush1.msra.mxu0 %v18299_v56 }
 0xdd4   :  { %15229 = vmatprep.subr.mxu0 %v19589_v20 }
 0xe70   :  { %v14972_v17 = vpop.f32.mrf.mxu1 }
 0xe72   :  { %v14973_v21 = vpop.f32.mrf.mxu1 }
 0xe73   :  { %v14974_v42 = vadd.f32 %v14973_v21, %v14972_v17 }
 0xe8c   :  { %v11619_v50 = vpop.f32.mrf.mxu0 }
 0xe8d   :  { %v11620_v0 = vadd.f32 %v14974_v42, %v11619_v50  ;;  %v18866_v50 = vld [vmem:[%s19241_s6 + $0x118] sm:$0xff]  ;;  %v18875_v42 = vld [vmem:[%s19241_s6 + $0x110] sm:$0xff] }
 0xe8e   :  { %v15228_v51 = vpop.f32.mrf.mxu0 }
 0xe8f   :  { %v18847_v11 = vmul.f32 0.055555556, %v11620_v0  ;;  %v18882_v51 = vld [vmem:[%s19241_s6 + $0x108] sm:$0xff]  ;;  %v18889_v0 = vld [vmem:[%s19241_s6 + $0x100] sm:$0xff] }
 0xe91   :  { %14435 = vmatmul.mubr.msk.f32.vlgmr.msra.gmra.mxu0 %vm10130_vm5, %v18847_v11 }
 0xe92   :  { %15230 = vmatpush3.msra.mxu0 %v18306_v19  ;;  %15237 = vmatprep.mubr.msk.f32.mxu0 %vm15977_vm3, %v19589_v20 }
 0xe93   :  { %15231 = vmatprep.subr.mxu0 %v19589_v20 }
 0xe94   :  { %15232 = vmatpush3.msra.mxu0 %v18310_v25 }
 0xe95   :  { %15233 = vmatprep.subr.mxu0 %v19589_v20 }
 0xe96   :  { %15234 = vmatpush3.msra.mxu0 %v18316_v63 }
 0xe97   :  { %15235 = vmatprep.subr.mxu0 %v19589_v20 }
 0xe98   :  { %15236 = vmatpush3.msra.mxu0 %v18320_v4 }
 0xe99   :  { %15238 = vmatmul.mubr.msk.f32.vlgmr.msra.gmra.mxu0 %vm10130_vm5, %v18847_v11  ;;  %15240 = vmatprep.subr.mxu0 %v19589_v20 }
 0xe9a   :  { %15241 = vmatpush3.msra.mxu0 %v18866_v50  ;;  %15248 = vmatprep.mubr.msk.f32.mxu0 %vm15977_vm3, %v19589_v20 }
 0xe9b   :  { %15242 = vmatprep.subr.mxu0 %v19589_v20 }
 0xe9c   :  { %15243 = vmatpush3.msra.mxu0 %v18875_v42 }
 0xe9d   :  { %15244 = vmatprep.subr.mxu0 %v19589_v20 }
 0xe9e   :  { %15245 = vmatpush3.msra.mxu0 %v18882_v51 }
 0xe9f   :  { %15246 = vmatprep.subr.mxu0 %v19589_v20 }
 0xea0   :  { %15247 = vmatpush3.msra.mxu0 %v18889_v0 }
 0xea1   :  { %11983 = vmatprep.subr.mxu0 %v18278_v13 }
 0xf51   :  { %v11693_v21 = vpop.f32.mrf.mxu0 }
 0xf52   :  { %v11771_v17 = vrot.slane %v11693_v21, %v17251_v62 }
 0xf53   :  { %v11695_v58 = vpop.f32.mrf.mxu0 }
 0xf54   :  { %v11780_v48 = vsub.f32 %v18638_v28, %v11771_v17  ;;  %v11775_v22 = vrot.slane %v11695_v58, %v17251_v62 }
 0xf56   :  { %v11783_v44 = vmul.f32 %v11780_v48, %v11780_v48  ;;  %v11781_v52 = vsub.f32 %v18642_v38, %v11775_v22 }
 0xf58   :  { %v11786_v33 = vsel %vm6815_vm1, %v11783_v44, 0.0  ;;  %v11784_v46 = vmul.f32 %v11781_v52, %v11781_v52 }
 0xf59   :  { %v11787_v57 = vrot.slane %v11786_v33, 4  ;;  %v11764_v5 = vpop.f32.mrf.mxu0 }
 0xf5a   :  { %v11793_v47 = vsel %vm6815_vm1, %v11784_v46, 0.0  ;;  %v11779_v13 = vrot.slane %v11764_v5, %v17251_v62 }
 0xf5b   :  { %v11788_v27 = vadd.f32 %v11787_v57, %v11786_v33  ;;  %v11794_v54 = vrot.slane %v11793_v47, 4  ;;  %v15239_v21 = vpop.f32.mrf.mxu0 }
 0xf5c   :  { %v11782_v53 = vsub.f32 %v18718_v30, %v11779_v13  ;;  %v19789_v13 = vld [vmem:[#allocation46_spill] sm:$0xff]  ;;  %v19790_v21 = vld [vmem:[#allocation47_spill] sm:$0xff] }
 0xf5d   :  { %v11789_v17 = vrot.slane %v11788_v27, 2  ;;  %v11795_v29 = vadd.f32 %v11794_v54, %v11793_v47  ;;  %v18944_v54 = vld [vmem:[#allocation7 + $0x50] sm:$0xff]  ;;  %v18968_v47 = vld [vmem:[#allocation7] sm:$0xff] }
 0xf5e   :  { %v11785_v58 = vmul.f32 %v11782_v53, %v11782_v53 }
 0xf5f   :  { %v11790_v48 = vadd.f32 %v11789_v17, %v11788_v27  ;;  %v11796_v6 = vrot.slane %v11795_v29, 2  ;;  %v18965_v27 = vld [vmem:[#allocation7 + $0x8] sm:$0xff] }
 0xf60   :  { %v11800_v22 = vsel %vm10122_vm4, %v11785_v58, 0.0  ;;  %v19791_v17 = vld [vmem:[#allocation48_spill] sm:$0xff]  ;;  %v19792_v58 = vld [vmem:[#allocation49_spill] sm:$0xff] }
 0xf61   :  { %v11801_v44 = vrot.slane %v11800_v22, 4  ;;  %v11797_v52 = vadd.f32 %v11796_v6, %v11795_v29  ;;  %v11791_v32 = vrot.slane %v11790_v48, 1  ;;  %v18925_v29 = vld [vmem:[#allocation16] sm:$0x1] }
 0xf62   :  { %19784 = vst [vmem:[#allocation110_spill] sm:$0xff] %v18925_v29 }
 0xf63   :  { %v11802_v59 = vadd.f32 %v11801_v44, %v11800_v22  ;;  %v11798_v14 = vrot.slane %v11797_v52, 1  ;;  %v11792_v5 = vadd.f32 %v11791_v32, %v11790_v48  ;;  %v19793_v48 = vld [vmem:[#allocation50_spill] sm:$0xff]  ;;  %v19794_v22 = vld [vmem:[#allocation51_spill] sm:$0xff]  ;;  %v19795_v44 = vld [vmem:[#allocation52_spill] sm:$0xff] }
 0xf65   :  { %v11803_v46 = vrot.slane %v11802_v59, 2  ;;  %v11799_v34 = vadd.f32 %v11798_v14, %v11797_v52  ;;  %v19797_v52 = vld [vmem:[#allocation25_spill] sm:$0xff] }
 0xf67   :  { %v11804_v57 = vadd.f32 %v11803_v46, %v11802_v59  ;;  %11874 = vmatprep.mubr.f32.mxu1 %v11799_v34  ;;  %v19798_v46 = vld [vmem:[#allocation26_spill] sm:$0xff] }
 0xf68   :  { %11875 = vmatmul.mubr.f32.vlgmr.msra.gmra.mxu1 %v11792_v5  ;;  %v19799_v5 = vld [vmem:[#allocation27_spill] sm:$0xff] }
 0xf69   :  { %v11805_v33 = vrot.slane %v11804_v57, 1  ;;  %15263 = vmatpush3.msra.mxu1 %v18306_v19  ;;  %15270 = vmatprep.mubr.msk.f32.mxu1 %vm15977_vm3, %v19589_v20 }
 0xf6a   :  { %15264 = vmatprep.subr.mxu1 %v19589_v20 }
 0xf6b   :  { %v11806_v53 = vadd.f32 %v11805_v33, %v11804_v57  ;;  %15265 = vmatpush3.msra.mxu1 %v18310_v25  ;;  %v19800_v57 = vld [vmem:[#allocation28_spill] sm:$0xff]  ;;  %v19801_v33 = vld [vmem:[#allocation29_spill] sm:$0xff] }
 0xf6c   :  { %15266 = vmatprep.subr.mxu1 %v19589_v20 }
 0xf6d   :  { %15249 = vmatmul.mubr.msk.f32.vlgmr.msra.gmra.mxu0 %vm10130_vm5, %v11806_v53  ;;  %15267 = vmatpush3.msra.mxu1 %v18316_v63  ;;  %v19802_v53 = vld [vmem:[#allocation62_spill] sm:$0xff] }
 0xf6e   :  { %11984 = vmatpush1.msra.mxu0 %v18280_v10  ;;  %12023 = vmatprep.mubr.f32.mxu0 %v19589_v20 }
 0xf6f   :  { %11985 = vmatprep.subr.mxu0 %v18282_v8  ;;  %15268 = vmatprep.subr.mxu1 %v19589_v20 }
 0xf70   :  { %11986 = vmatpush1.msra.mxu0 %v18285_v55  ;;  %15269 = vmatpush3.msra.mxu1 %v18320_v4 }
 0xf71   :  { %11987 = vmatprep.subr.mxu0 %v18291_v61  ;;  %12336 = vmatprep.subr.bf16.mxu1 %v18482_v41  ;;  %v18922_v61 = vld [vmem:[#allocation15] sm:$0x1] }
 0xf72   :  { %11988 = vmatpush1.msra.mxu0 %v18294_v1  ;;  %19783 = vst [vmem:[#allocation89_spill] sm:$0xff] %v18922_v61 }
 0xf73   :  { %11989 = vmatprep.subr.mxu0 %v18297_v31 }
 0xf74   :  { %11990 = vmatpush1.msra.mxu0 %v18299_v56 }
 0xf75   :  { %15251 = vmatprep.subr.mxu0 %v19589_v20 }
0x1028   :  { %v15017_v10 = vpop.f32.mrf.mxu1 }
0x102a   :  { %v15018_v8 = vpop.f32.mrf.mxu1 }
0x102b   :  { %v15019_v34 = vadd.f32 %v15018_v8, %v15017_v10  ;;  %v19803_v10 = vld [vmem:[#allocation53_spill] sm:$0xff] }
0x102c   :  { %v19804_v8 = vld [vmem:[#allocation57_spill] sm:$0xff] }
0x102d   :  { %v11946_v14 = vpop.f32.mrf.mxu0 }
0x102e   :  { %v11947_v59 = vadd.f32 %v15019_v34, %v11946_v14  ;;  %v19805_v34 = vld [vmem:[#allocation54_spill] sm:$0xff]  ;;  %v19806_v14 = vld [vmem:[#allocation59_spill] sm:$0xff] }
0x102f   :  { %v15250_v55 = vpop.f32.mrf.mxu0 }
0x1030   :  { %v11950_v32 = vmul.f32 0.055555556, %v11947_v59  ;;  %v19807_v59 = vld [vmem:[#allocation56_spill] sm:$0xff]  ;;  %v19808_v55 = vld [vmem:[#allocation61_spill] sm:$0xff] }
0x1032   :  { %v11951_v6 = vadd.f32 0.001, %v11950_v32  ;;  %v19809_v32 = vld [vmem:[#allocation58_spill] sm:$0xff] }
0x1034   :  { %15693 = vrsqrt.f32 %v11951_v6  ;;  %v19810_v6 = vld [vmem:[#allocation64_spill] sm:$0xff] }
0x1041   :  { %v15694_v41 = vpop.eup %15693 }
0x1042   :  { %v11953_v1 = vmul.f32 %v15694_v41, %v18922_v61  ;;  %v19811_v41 = vld [vmem:[#allocation60_spill] sm:$0xff] }
0x1044   :  { %14438 = vmatmul.mubr.msk.f32.vlgmr.msra.gmra.mxu0 %vm10130_vm5, %v11953_v1  ;;  %v11954_v31 = vmul.f32 %v11953_v1, %v18847_v11  ;;  %v19788_v11 = vld [vmem:[#allocation45_spill] sm:$0xff] }
0x1045   :  { %15252 = vmatpush3.msra.mxu0 %v18306_v19  ;;  %15259 = vmatprep.mubr.msk.f32.mxu0 %vm15977_vm3, %v19589_v20  ;;  %v19785_v19 = vmov 0  }
0x1046   :  { %15253 = vmatprep.subr.mxu0 %v19589_v20  ;;  %v11955_v56 = vsub.f32 %v18925_v29, %v11954_v31  ;;  %v19813_v31 = vld [vmem:[#allocation63_spill] sm:$0xff] }
0x1047   :  { %15254 = vmatpush3.msra.mxu0 %v18310_v25  ;;  %v18947_v25 = vld [vmem:[#allocation7 + $0x48] sm:$0xff] }
0x1048   :  { %15255 = vmatprep.subr.mxu0 %v19589_v20  ;;  %15271 = vmatmul.mubr.msk.f32.vlgmr.msra.gmra.mxu1 %vm10130_vm5, %v11955_v56 }
0x1049   :  { %15256 = vmatpush3.msra.mxu0 %v18316_v63  ;;  %12337 = vmatpush1.bf16.msra.mxu1 %v18485_v9  ;;  %v18951_v63 = vld [vmem:[#allocation7 + $0x38] sm:$0xff]  ;;  %v18959_v9 = vld [vmem:[#allocation7 + $0x20] sm:$0xff] }
0x104a   :  { %15257 = vmatprep.subr.mxu0 %v19589_v20  ;;  %12338 = vmatprep.subr.bf16.mxu1 %v18494_v3  ;;  %v18962_v3 = vld [vmem:[#allocation7 + $0x18] sm:$0xff] }
0x104b   :  { %15258 = vmatpush3.msra.mxu0 %v18320_v4  ;;  %12356 = vmatprep.mubr.bf16.mxu1 %v19785_v19  ;;  %v18955_v4 = vld [vmem:[#allocation7 + $0x30] sm:$0xff] }
0x104c   :  { %15260 = vmatmul.mubr.msk.f32.vlgmr.msra.gmra.mxu0 %vm10130_vm5, %v11953_v1  ;;  %12127 = vmatprep.subr.mxu0 %v18944_v54  ;;  %v19812_v1 = vld [vmem:[#allocation66_spill] sm:$0xff]  ;;  %v19815_v19 = vld [vmem:[#allocation65_spill] sm:$0xff] }
0x104d   :  { %12128 = vmatpush1.msra.mxu0 %v18947_v25  ;;  %12167 = vmatprep.mubr.f32.mxu0 %v19589_v20 }
0x104e   :  { %12129 = vmatprep.subr.mxu0 %v18951_v63  ;;  %12339 = vmatpush1.bf16.msra.mxu1 %v18497_v40  ;;  %v19787_v40 = vld [vmem:[#allocation44_spill] sm:$0xff] }
0x104f   :  { %12130 = vmatpush1.msra.mxu0 %v18955_v4  ;;  %15035 = vmatprep.subr.bf16.mxu1 %v18506_v45  ;;  %v19786_v45 = vld [vmem:[#allocation43_spill] sm:$0xff] }
0x1050   :  { %12131 = vmatprep.subr.mxu0 %v18959_v9 }
0x1051   :  { %12132 = vmatpush1.msra.mxu0 %v18962_v3 }
0x1052   :  { %12133 = vmatprep.subr.mxu0 %v18965_v27 }
0x1053   :  { %12134 = vmatpush1.msra.mxu0 %v18968_v47 }
0x1054   :  { %14440 = vmatmul.mubr.msk.f32.vlgmr.msra.gmra.mxu0 %vm10130_vm5, %v11955_v56  ;;  %12283 = vmatprep.subr.bf16.mxu0 %v18407_v24  ;;  %v19796_v24 = vld [vmem:[#allocation55_spill] sm:$0xff]  ;;  %v19814_v56 = vld [vmem:[#allocation68_spill] sm:$0xff] }
0x1055   :  { %12284 = vmatpush1.bf16.msra.mxu0 %v19786_v45  ;;  %v19816_v45 = vld [vmem:[#allocation70_spill] sm:$0xff] }
0x1056   :  { %12285 = vmatprep.subr.bf16.mxu0 %v19787_v40 }
0x1059   :  { %12286 = vmatpush1.bf16.msra.mxu0 %v19788_v11 }
0x105a   :  { %12287 = vmatprep.subr.bf16.mxu0 %v19789_v13 }
0x105d   :  { %12288 = vmatpush1.bf16.msra.mxu0 %v19790_v21 }
0x105e   :  { %12289 = vmatprep.subr.bf16.mxu0 %v19791_v17 }
0x1061   :  { %12290 = vmatpush1.bf16.msra.mxu0 %v19792_v58 }
0x1062   :  { %12291 = vmatprep.subr.bf16.mxu0 %v19793_v48 }
0x1065   :  { %12292 = vmatpush1.bf16.msra.mxu0 %v19794_v22 }
0x1066   :  { %12293 = vmatprep.subr.bf16.mxu0 %v19795_v44 }
0x1069   :  { %12294 = vmatpush1.bf16.msra.mxu0 %v19796_v24 }
0x106a   :  { %12295 = vmatprep.subr.bf16.mxu0 %v19797_v52 }
0x106d   :  { %12296 = vmatpush1.bf16.msra.mxu0 %v19798_v46 }
0x106e   :  { %12297 = vmatprep.subr.bf16.mxu0 %v19799_v5 }
0x1071   :  { %12298 = vmatpush1.bf16.msra.mxu0 %v19800_v57 }
0x1072   :  { %12299 = vmatprep.subr.bf16.mxu0 %v19801_v33 }
0x1075   :  { %12300 = vmatpush2.bf16.msra.mxu0 %v19802_v53 }
0x1076   :  { %12301 = vmatprep.subr.bf16.mxu0 %v19803_v10 }
0x1079   :  { %12302 = vmatpush2.bf16.msra.mxu0 %v19804_v8 }
0x107a   :  { %12303 = vmatprep.subr.bf16.mxu0 %v19805_v34 }
0x107d   :  { %12304 = vmatpush2.bf16.msra.mxu0 %v19806_v14 }
0x107e   :  { %12305 = vmatprep.subr.bf16.mxu0 %v19807_v59 }
0x1081   :  { %12306 = vmatpush2.bf16.msra.mxu0 %v19808_v55 }
0x1082   :  { %12307 = vmatprep.subr.bf16.mxu0 %v19809_v32 }
0x1085   :  { %12308 = vmatpush2.bf16.msra.mxu0 %v19810_v6 }
0x1086   :  { %12309 = vmatprep.subr.bf16.mxu0 %v19811_v41  ;;  %v19833_v41 = vld [vmem:[#allocation80_spill] sm:$0xff] }
0x1089   :  { %12310 = vmatpush2.bf16.msra.mxu0 %v19812_v1  ;;  %v19834_v1 = vld [vmem:[#allocation101_spill] sm:$0xff] }
0x108a   :  { %12311 = vmatprep.subr.bf16.mxu0 %v19813_v31  ;;  %v19835_v31 = vld [vmem:[#allocation81_spill] sm:$0xff] }
0x108d   :  { %12312 = vmatpush2.bf16.msra.mxu0 %v19814_v56  ;;  %v19836_v56 = vld [vmem:[#allocation102_spill] sm:$0xff] }
0x108e   :  { %12313 = vmatprep.subr.bf16.mxu0 %v19815_v19  ;;  %v19837_v19 = vld [vmem:[#allocation82_spill] sm:$0xff] }
0x1091   :  { %12314 = vmatpush2.bf16.msra.mxu0 %v19816_v45  ;;  %v19838_v45 = vld [vmem:[#allocation103_spill] sm:$0xff] }
0x1092   :  { %15281 = vmatprep.subr.mxu0 %v19589_v20 }
0x1104   :  { %v12025_v40 = vpop.f32.mrf.mxu0 }
0x1105   :  { %v12247_v24 = vrot.slane %v12025_v40, %v17251_v62  ;;  %v19839_v40 = vld [vmem:[#allocation83_spill] sm:$0xff] }
0x1106   :  { %v12027_v13 = vpop.f32.mrf.mxu0 }
0x1107   :  { %v12251_v46 = vrot.slane %v12027_v13, %v17251_v62  ;;  %v12256_v33 = vmul.f32 %v12247_v24, %v18638_v28  ;;  %v19841_v13 = vld [vmem:[#allocation84_spill] sm:$0xff] }
0x1108   :  { %v12240_v11 = vpop.f32.mrf.mxu1  ;;  %v19848_v24 = vld [vmem:[#allocation108_spill] sm:$0xff] }
0x1109   :  { %v12270_v22 = vrot.slane %v12240_v11, %v17251_v62  ;;  %v12257_v34 = vmul.f32 %v12251_v46, %v18642_v38  ;;  %v19832_v38 = vld [vmem:[#allocation100_spill] sm:$0xff]  ;;  %v19850_v46 = vld [vmem:[#allocation109_spill] sm:$0xff] }
0x110a   :  { %v15272_v21 = vpop.f32.mrf.mxu1  ;;  %v19840_v11 = vld [vmem:[#allocation104_spill] sm:$0xff] }
0x110b   :  { %v19842_v21 = vld [vmem:[#allocation105_spill] sm:$0xff] }
0x110c   :  { %v12096_v17 = vpop.f32.mrf.mxu0 }
0x110d   :  { %v12255_v58 = vrot.slane %v12096_v17, %v17251_v62  ;;  %v19843_v17 = vld [vmem:[#allocation85_spill] sm:$0xff] }
0x110e   :  { %v15261_v48 = vpop.f32.mrf.mxu0 }
0x110f   :  { %v12258_v44 = vmul.f32 %v12255_v58, %v18718_v30  ;;  %v19844_v58 = vld [vmem:[#allocation106_spill] sm:$0xff] }
0x1110   :  { %v19845_v48 = vld [vmem:[#allocation86_spill] sm:$0xff] }
0x1111   :  { %v12273_v52 = vadd.f32 %v12270_v22, %v12258_v44  ;;  %v19846_v22 = vld [vmem:[#allocation107_spill] sm:$0xff] }
0x1112   :  { %v19847_v44 = vld [vmem:[#allocation87_spill] sm:$0xff] }
0x1113   :  { %v12276_v5 = vmax.f32 %v12273_v52, 0.0  ;;  %v19849_v52 = vld [vmem:[#allocation88_spill] sm:$0xff] }
0x1114   :  { %v12169_v57 = vpop.f32.mrf.mxu0 }
0x1115   :  { %v12279_v53 = vpack.c.bf16 %v12276_v5, %v12276_v5  ;;  %v12262_v10 = vrot.slane %v12169_v57, %v17251_v62 }
0x1116   :  { %v12171_v8 = vpop.f32.mrf.mxu0 }
0x1117   :  { %v12271_v14 = vadd.f32 %v12262_v10, %v12256_v33  ;;  %v12266_v59 = vrot.slane %v12171_v8, %v17251_v62  ;;  %14442 = vmatmul.mubr.msk.bf16.vlgmr.msra.gmra.mxu1 %vm10130_vm5, %v12279_v53 }
0x1118   :  { %15036 = vmatpush3.bf16.msra.mxu1 %v18529_v35  ;;  %v19817_v35 = vld [vmem:[#allocation67_spill] sm:$0xff] }
0x1119   :  { %v12272_v30 = vadd.f32 %v12266_v59, %v12257_v34  ;;  %15037 = vmatprep.subr.bf16.mxu1 %v18533_v18  ;;  %v12274_v55 = vmax.f32 %v12271_v14, 0.0  ;;  %v19818_v18 = vld [vmem:[#allocation72_spill] sm:$0xff] }
0x111b   :  { %v12275_v32 = vmax.f32 %v12272_v30, 0.0  ;;  %v12277_v6 = vpack.c.bf16 %v12274_v55, %v12274_v55 }
0x111c   :  { %15038 = vmatpush3.bf16.msra.mxu1 %v18539_v37  ;;  %v19819_v37 = vld [vmem:[#allocation69_spill] sm:$0xff] }
0x111d   :  { %v12278_v28 = vpack.c.bf16 %v12275_v32, %v12275_v32  ;;  %15039 = vmatprep.subr.bf16.mxu1 %v18542_v36  ;;  %v19820_v36 = vld [vmem:[#allocation74_spill] sm:$0xff] }
0x111f   :  { %12315 = vmatprep.mubr.bf16.mxu0 %v12278_v28  ;;  %12397 = vmatprep.mubr.bf16.mxu1 %v12278_v28 }
0x1120   :  { %15040 = vmatpush3.bf16.msra.mxu1 %v18545_v49  ;;  %12316 = vmatmul.mubr.bf16.vlgmr.msra.gmra.mxu0 %v12277_v6  ;;  %v19821_v49 = vld [vmem:[#allocation71_spill] sm:$0xff] }
0x1121   :  { %15041 = vmatprep.subr.bf16.mxu1 %v18548_v2  ;;  %15282 = vmatpush3.msra.mxu0 %v18866_v50  ;;  %v19822_v2 = vld [vmem:[#allocation76_spill] sm:$0xff] }
0x1122   :  { %15283 = vmatprep.subr.mxu0 %v19589_v20  ;;  %15289 = vmatprep.mubr.msk.f32.mxu0 %vm15977_vm3, %v19589_v20 }
0x1123   :  { %15284 = vmatpush3.msra.mxu0 %v18875_v42 }
0x1124   :  { %15042 = vmatpush3.bf16.msra.mxu1 %v18551_v23  ;;  %15285 = vmatprep.subr.mxu0 %v19589_v20  ;;  %v19823_v23 = vld [vmem:[#allocation73_spill] sm:$0xff] }
0x1125   :  { %15043 = vmatprep.subr.bf16.mxu1 %v18554_v60  ;;  %15286 = vmatpush3.msra.mxu0 %v18882_v51  ;;  %v19824_v60 = vld [vmem:[#allocation96_spill] sm:$0xff] }
0x1126   :  { %15287 = vmatprep.subr.mxu0 %v19589_v20 }
0x1127   :  { %15288 = vmatpush3.msra.mxu0 %v18889_v0 }
0x1128   :  { %15044 = vmatpush3.bf16.msra.mxu1 %v18562_v43  ;;  %12637 = vmatprep.subr.mxu0 %v18944_v54  ;;  %v19825_v43 = vld [vmem:[#allocation75_spill] sm:$0xff] }
0x1129   :  { %15045 = vmatprep.subr.bf16.mxu1 %v18566_v16  ;;  %v19826_v16 = vld [vmem:[#allocation97_spill] sm:$0xff] }
0x112c   :  { %15046 = vmatpush3.bf16.msra.mxu1 %v18572_v39  ;;  %v19827_v39 = vld [vmem:[#allocation77_spill] sm:$0xff] }
0x112d   :  { %15047 = vmatprep.subr.bf16.mxu1 %v18576_v15  ;;  %v19828_v15 = vld [vmem:[#allocation98_spill] sm:$0xff] }
0x1130   :  { %15048 = vmatpush3.bf16.msra.mxu1 %v18579_v7  ;;  %v19829_v7 = vld [vmem:[#allocation78_spill] sm:$0xff] }
0x1131   :  { %15049 = vmatprep.subr.bf16.mxu1 %v18582_v26  ;;  %v19830_v26 = vld [vmem:[#allocation99_spill] sm:$0xff] }
0x1134   :  { %15050 = vmatpush3.bf16.msra.mxu1 %v18585_v12  ;;  %v19831_v12 = vld [vmem:[#allocation79_spill] sm:$0xff] }
0x1135   :  { %15273 = vmatprep.subr.bf16.mxu1 %v19589_v20 }
0x1137   :  { %12398 = vmatmul.mubr.bf16.vlgmr.msra.gmra.mxu1 %v12277_v6 }
0x1138   :  { %15274 = vmatpush3.bf16.msra.mxu1 %v19817_v35  ;;  %15277 = vmatprep.mubr.msk.bf16.mxu1 %vm15977_vm3, %v19589_v20 }
0x1139   :  { %15275 = vmatprep.subr.bf16.mxu1 %v19589_v20 }
0x113c   :  { %15276 = vmatpush3.bf16.msra.mxu1 %v19818_v18 }
0x113d   :  { %15060 = vmatprep.subr.mxu1 %v19819_v37 }
0x113f   :  { %15278 = vmatmul.mubr.msk.bf16.vlgmr.msra.gmra.mxu1 %vm10130_vm5, %v12279_v53 }
0x1140   :  { %15061 = vmatpush3.msra.mxu1 %v19820_v36 }
0x1141   :  { %15062 = vmatprep.subr.mxu1 %v19821_v49 }
0x1142   :  { %15063 = vmatpush3.msra.mxu1 %v19822_v2 }
0x1143   :  { %15064 = vmatprep.subr.mxu1 %v19823_v23 }
0x1144   :  { %15065 = vmatpush3.msra.mxu1 %v19824_v60 }
0x1145   :  { %15066 = vmatprep.subr.mxu1 %v19825_v43 }
0x1146   :  { %15067 = vmatpush3.msra.mxu1 %v19826_v16 }
0x1147   :  { %15068 = vmatprep.subr.mxu1 %v19827_v39 }
0x1148   :  { %15069 = vmatpush3.msra.mxu1 %v19828_v15 }
0x1149   :  { %15070 = vmatprep.subr.mxu1 %v19829_v7 }
0x114a   :  { %15071 = vmatpush3.msra.mxu1 %v19830_v26 }
0x114b   :  { %15072 = vmatprep.subr.mxu1 %v19831_v12 }
0x114c   :  { %15073 = vmatpush3.msra.mxu1 %v19832_v38 }
0x114d   :  { %15074 = vmatprep.subr.mxu1 %v19833_v41 }
0x114e   :  { %15075 = vmatpush3.msra.mxu1 %v19834_v1 }
0x114f   :  { %15076 = vmatprep.subr.mxu1 %v19835_v31 }
0x1150   :  { %15077 = vmatpush3.msra.mxu1 %v19836_v56 }
0x1151   :  { %15078 = vmatprep.subr.mxu1 %v19837_v19 }
0x1152   :  { %15079 = vmatpush3.msra.mxu1 %v19838_v45 }
0x1153   :  { %15080 = vmatprep.subr.mxu1 %v19839_v40 }
0x1154   :  { %15081 = vmatpush3.msra.mxu1 %v19840_v11 }
0x1155   :  { %15082 = vmatprep.subr.mxu1 %v19841_v13 }
0x1156   :  { %15083 = vmatpush3.msra.mxu1 %v19842_v21 }
0x1157   :  { %15084 = vmatprep.subr.mxu1 %v19843_v17 }
0x1158   :  { %15085 = vmatpush3.msra.mxu1 %v19844_v58 }
0x1159   :  { %15086 = vmatprep.subr.mxu1 %v19845_v48 }
0x115a   :  { %15087 = vmatpush3.msra.mxu1 %v19846_v22 }
0x115b   :  { %15088 = vmatprep.subr.mxu1 %v19847_v44 }
0x115c   :  { %15089 = vmatpush3.msra.mxu1 %v19848_v24 }
0x115d   :  { %15090 = vmatprep.subr.mxu1 %v19849_v52 }
0x115e   :  { %15091 = vmatpush3.msra.mxu1 %v19850_v46 }
0x115f   :  { %15105 = vmatprep.subr.mxu1 %v19819_v37 }
0x11d7   :  { %v12358_v5 = vpop.f32.mrf.mxu1 }
0x11d9   :  { %v12360_v57 = vpop.f32.mrf.mxu1 }
0x11db   :  { %v12362_v33 = vpop.f32.mrf.mxu1 }
0x11dd   :  { %v12363_v53 = vpop.f32.mrf.mxu1 }
0x11e0   :  { %v12317_v10 = vpop.f32.mrf.mxu0 }
0x11e1   :  { %v19080_v8 = vadd.f32 %v12358_v5, %v12317_v10 }
0x11e2   :  { %v12319_v34 = vpop.f32.mrf.mxu0 }
0x11e3   :  { %v12445_v14 = vsel %vm6815_vm1, %v19080_v8, 0.0  ;;  %v19084_v59 = vadd.f32 %v12360_v57, %v12319_v34 }
0x11e4   :  { %v12446_v30 = vrot.slane %v12445_v14, 4  ;;  %v12321_v55 = vpop.f32.mrf.mxu0 }
0x11e5   :  { %v12452_v32 = vsel %vm6815_vm1, %v19084_v59, 0.0 }
0x11e6   :  { %v12447_v28 = vadd.f32 %v12446_v30, %v12445_v14  ;;  %v12453_v6 = vrot.slane %v12452_v32, 4  ;;  %v12322_v35 = vpop.f32.mrf.mxu0 }
0x11e8   :  { %v12448_v18 = vrot.slane %v12447_v28, 2  ;;  %v12454_v37 = vadd.f32 %v12453_v6, %v12452_v32 }
0x11ea   :  { %v12449_v33 = vadd.f32 %v12448_v18, %v12447_v28  ;;  %v12455_v53 = vrot.slane %v12454_v37, 2 }
0x11ec   :  { %v12456_v5 = vadd.f32 %v12455_v53, %v12454_v37  ;;  %v12450_v10 = vrot.slane %v12449_v33, 1 }
0x11ee   :  { %v12457_v29 = vrot.slane %v12456_v5, 1  ;;  %v12451_v62 = vadd.f32 %v12450_v10, %v12449_v33 }
0x11f0   :  { %v12458_v61 = vadd.f32 %v12457_v29, %v12456_v5 }
0x11f2   :  { %12533 = vmatprep.mubr.f32.mxu1 %v12458_v61 }
0x11f3   :  { %12534 = vmatmul.mubr.f32.vlgmr.msra.gmra.mxu1 %v12451_v62 }
0x11f4   :  { %15106 = vmatpush3.msra.mxu1 %v19820_v36 }
0x11f5   :  { %15107 = vmatprep.subr.mxu1 %v19821_v49 }
0x11f6   :  { %15108 = vmatpush3.msra.mxu1 %v19822_v2 }
0x11f7   :  { %v15051_v57 = vpop.f32.mrf.mxu1  ;;  %15109 = vmatprep.subr.mxu1 %v19823_v23 }
0x11f8   :  { %15110 = vmatpush3.msra.mxu1 %v19824_v60 }
0x11f9   :  { %v15052_v34 = vpop.f32.mrf.mxu1  ;;  %15111 = vmatprep.subr.mxu1 %v19825_v43 }
0x11fa   :  { %15112 = vmatpush3.msra.mxu1 %v19826_v16  ;;  %v15053_v61 = vadd.f32 %v15052_v34, %v15051_v57 }
0x11fb   :  { %v15054_v29 = vpop.f32.mrf.mxu1  ;;  %15113 = vmatprep.subr.mxu1 %v19827_v39 }
0x11fc   :  { %15114 = vmatpush3.msra.mxu1 %v19828_v15 }
0x11fd   :  { %v15055_v62 = vpop.f32.mrf.mxu1  ;;  %15115 = vmatprep.subr.mxu1 %v19829_v7 }
0x11fe   :  { %15116 = vmatpush3.msra.mxu1 %v19830_v26 }
0x11ff   :  { %v12439_v36 = vpop.f32.mrf.mxu1  ;;  %15117 = vmatprep.subr.mxu1 %v19831_v12 }
0x1200   :  { %v19100_v49 = vadd.f32 %v15053_v61, %v12439_v36  ;;  %15118 = vmatpush3.msra.mxu1 %v19832_v38 }
0x1201   :  { %v15279_v2 = vpop.f32.mrf.mxu1  ;;  %15119 = vmatprep.subr.mxu1 %v19833_v41 }
0x1202   :  { %v12459_v23 = vsel %vm10122_vm4, %v19100_v49, 0.0  ;;  %15120 = vmatpush3.msra.mxu1 %v19834_v1 }
0x1203   :  { %v12460_v60 = vrot.slane %v12459_v23, 4  ;;  %v12442_v43 = vpop.f32.mrf.mxu1  ;;  %15121 = vmatprep.subr.mxu1 %v19835_v31 }
0x1204   :  { %15122 = vmatpush3.msra.mxu1 %v19836_v56 }
0x1205   :  { %v12461_v16 = vadd.f32 %v12460_v60, %v12459_v23  ;;  %v15280_v39 = vpop.f32.mrf.mxu1  ;;  %15123 = vmatprep.subr.mxu1 %v19837_v19 }
0x1206   :  { %15124 = vmatpush3.msra.mxu1 %v19838_v45 }
0x1207   :  { %v12462_v15 = vrot.slane %v12461_v16, 2  ;;  %15125 = vmatprep.subr.mxu1 %v19839_v40  ;;  %v19138_v40 = vld [vmem:[#allocation7 + $0x58] sm:$0xff] }
0x1208   :  { %15126 = vmatpush3.msra.mxu1 %v19840_v11  ;;  %v19144_v11 = vld [vmem:[#allocation7 + $0x40] sm:$0xff] }
0x1209   :  { %v12463_v7 = vadd.f32 %v12462_v15, %v12461_v16  ;;  %15127 = vmatprep.subr.mxu1 %v19841_v13  ;;  %v19148_v13 = vld [vmem:[#allocation7 + $0x28] sm:$0xff] }
0x120a   :  { %15128 = vmatpush3.msra.mxu1 %v19842_v21  ;;  %v19152_v21 = vld [vmem:[#allocation7 + $0x10] sm:$0xff] }
0x120b   :  { %v12464_v26 = vrot.slane %v12463_v7, 1  ;;  %15129 = vmatprep.subr.mxu1 %v19843_v17 }
0x120c   :  { %15130 = vmatpush3.msra.mxu1 %v19844_v58  ;;  %v19851_v58 = vld [vmem:[#allocation30_spill] sm:$0xff] }
0x120d   :  { %v12465_v12 = vadd.f32 %v12464_v26, %v12463_v7  ;;  %15131 = vmatprep.subr.mxu1 %v19845_v48 }
0x120e   :  { %15132 = vmatpush3.msra.mxu1 %v19846_v22 }
0x120f   :  { %15290 = vmatmul.mubr.msk.f32.vlgmr.msra.gmra.mxu0 %vm10130_vm5, %v12465_v12  ;;  %15133 = vmatprep.subr.mxu1 %v19847_v44 }
0x1210   :  { %12638 = vmatpush1.msra.mxu0 %v18947_v25  ;;  %12677 = vmatprep.mubr.f32.mxu0 %v19589_v20 }
0x1211   :  { %12639 = vmatprep.subr.mxu0 %v18951_v63  ;;  %15134 = vmatpush3.msra.mxu1 %v19848_v24 }
0x1212   :  { %12640 = vmatpush1.msra.mxu0 %v18955_v4  ;;  %15135 = vmatprep.subr.mxu1 %v19849_v52 }
0x1213   :  { %12641 = vmatprep.subr.mxu0 %v18959_v9  ;;  %15136 = vmatpush3.msra.mxu1 %v19850_v46 }
0x1214   :  { %12642 = vmatpush1.msra.mxu0 %v18962_v3  ;;  %15325 = vmatprep.subr.mxu1 %v19589_v20 }
0x1215   :  { %12643 = vmatprep.subr.mxu0 %v18965_v27 }
0x1216   :  { %12644 = vmatpush1.msra.mxu0 %v18968_v47 }
0x1217   :  { %15292 = vmatprep.subr.mxu0 %v19589_v20 }
0x12b3   :  { %v15092_v38 = vpop.f32.mrf.mxu1 }
0x12b5   :  { %v15093_v41 = vpop.f32.mrf.mxu1 }
0x12b6   :  { %v15094_v1 = vadd.f32 %v15093_v41, %v15092_v38 }
0x12cf   :  { %v12605_v31 = vpop.f32.mrf.mxu0 }
0x12d0   :  { %v12606_v56 = vadd.f32 %v15094_v1, %v12605_v31  ;;  %v19852_v31 = vld [vmem:[#allocation89_spill] sm:$0xff] }
0x12d1   :  { %v15291_v19 = vpop.f32.mrf.mxu0 }
0x12d2   :  { %v19134_v45 = vmul.f32 0.055555556, %v12606_v56 }
0x12d4   :  { %14445 = vmatmul.mubr.msk.f32.vlgmr.msra.gmra.mxu0 %vm10130_vm5, %v19134_v45 }
0x12d5   :  { %15293 = vmatpush3.msra.mxu0 %v19138_v40  ;;  %15300 = vmatprep.mubr.msk.f32.mxu0 %vm15977_vm3, %v19589_v20 }
0x12d6   :  { %15294 = vmatprep.subr.mxu0 %v19589_v20 }
0x12d7   :  { %15295 = vmatpush3.msra.mxu0 %v19144_v11 }
0x12d8   :  { %15296 = vmatprep.subr.mxu0 %v19589_v20 }
0x12d9   :  { %15297 = vmatpush3.msra.mxu0 %v19148_v13 }
0x12da   :  { %15298 = vmatprep.subr.mxu0 %v19589_v20 }
0x12db   :  { %15299 = vmatpush3.msra.mxu0 %v19152_v21 }
0x12dc   :  { %15301 = vmatmul.mubr.msk.f32.vlgmr.msra.gmra.mxu0 %vm10130_vm5, %v19134_v45  ;;  %15303 = vmatprep.subr.mxu0 %v19589_v20 }
0x12dd   :  { %15304 = vmatpush3.msra.mxu0 %v18866_v50  ;;  %15311 = vmatprep.mubr.msk.f32.mxu0 %vm15977_vm3, %v19589_v20 }
0x12de   :  { %15305 = vmatprep.subr.mxu0 %v19589_v20 }
0x12df   :  { %15306 = vmatpush3.msra.mxu0 %v18875_v42 }
0x12e0   :  { %15307 = vmatprep.subr.mxu0 %v19589_v20 }
0x12e1   :  { %15308 = vmatpush3.msra.mxu0 %v18882_v51 }
0x12e2   :  { %15309 = vmatprep.subr.mxu0 %v19589_v20 }
0x12e3   :  { %15310 = vmatpush3.msra.mxu0 %v18889_v0 }
0x12e4   :  { %12969 = vmatprep.subr.mxu0 %v18944_v54 }
0x1394   :  { %v12679_v17 = vpop.f32.mrf.mxu0 }
0x1395   :  { %v12757_v50 = vrot.slane %v12679_v17, %v19851_v58  ;;  %v19853_v17 = vld [vmem:[#allocation110_spill] sm:$0xff] }
0x1396   :  { %v12681_v48 = vpop.f32.mrf.mxu0 }
0x1397   :  { %v12766_v22 = vsub.f32 %v19080_v8, %v12757_v50  ;;  %v12761_v44 = vrot.slane %v12681_v48, %v19851_v58 }
0x1399   :  { %v12769_v24 = vmul.f32 %v12766_v22, %v12766_v22  ;;  %v12767_v42 = vsub.f32 %v19084_v59, %v12761_v44 }
0x139b   :  { %v12772_v52 = vsel %vm6815_vm1, %v12769_v24, 0.0  ;;  %v12770_v51 = vmul.f32 %v12767_v42, %v12767_v42 }
0x139c   :  { %v12773_v46 = vrot.slane %v12772_v52, 4  ;;  %v12750_v14 = vpop.f32.mrf.mxu0 }
0x139d   :  { %v12779_v0 = vsel %vm6815_vm1, %v12770_v51, 0.0  ;;  %v12765_v30 = vrot.slane %v12750_v14, %v19851_v58 }
0x139e   :  { %v12774_v55 = vadd.f32 %v12773_v46, %v12772_v52  ;;  %v12780_v32 = vrot.slane %v12779_v0, 4  ;;  %v15302_v28 = vpop.f32.mrf.mxu0 }
0x139f   :  { %v12768_v6 = vsub.f32 %v19100_v49, %v12765_v30  ;;  %v19854_v30 = vld [vmem:[#allocation24_spill] sm:$0xff] }
0x13a0   :  { %v12775_v35 = vrot.slane %v12774_v55, 2  ;;  %v12781_v18 = vadd.f32 %v12780_v32, %v12779_v0 }
0x13a1   :  { %v12771_v37 = vmul.f32 %v12768_v6, %v12768_v6 }
0x13a2   :  { %v12776_v33 = vadd.f32 %v12775_v35, %v12774_v55  ;;  %v12782_v53 = vrot.slane %v12781_v18, 2 }
0x13a3   :  { %v12786_v5 = vsel %vm10122_vm4, %v12771_v37, 0.0 }
0x13a4   :  { %v12787_v10 = vrot.slane %v12786_v5, 4  ;;  %v12783_v57 = vadd.f32 %v12782_v53, %v12781_v18  ;;  %v12777_v34 = vrot.slane %v12776_v33, 1 }
0x13a6   :  { %v12788_v29 = vadd.f32 %v12787_v10, %v12786_v5  ;;  %v12784_v62 = vrot.slane %v12783_v57, 1  ;;  %v12778_v2 = vadd.f32 %v12777_v34, %v12776_v33 }
0x13a8   :  { %v12789_v61 = vrot.slane %v12788_v29, 2  ;;  %v12785_v36 = vadd.f32 %v12784_v62, %v12783_v57 }
0x13aa   :  { %v12790_v23 = vadd.f32 %v12789_v61, %v12788_v29  ;;  %12860 = vmatprep.mubr.f32.mxu1 %v12785_v36 }
0x13ab   :  { %12861 = vmatmul.mubr.f32.vlgmr.msra.gmra.mxu1 %v12778_v2 }
0x13ac   :  { %v12791_v60 = vrot.slane %v12790_v23, 1  ;;  %15326 = vmatpush3.msra.mxu1 %v19138_v40  ;;  %15333 = vmatprep.mubr.msk.f32.mxu1 %vm15977_vm3, %v19589_v20 }
0x13ad   :  { %15327 = vmatprep.subr.mxu1 %v19589_v20 }
0x13ae   :  { %v12792_v43 = vadd.f32 %v12791_v60, %v12790_v23  ;;  %15328 = vmatpush3.msra.mxu1 %v19144_v11 }
0x13af   :  { %15329 = vmatprep.subr.mxu1 %v19589_v20 }
0x13b0   :  { %15312 = vmatmul.mubr.msk.f32.vlgmr.msra.gmra.mxu0 %vm10130_vm5, %v12792_v43  ;;  %15330 = vmatpush3.msra.mxu1 %v19148_v13 }
0x13b1   :  { %12970 = vmatpush1.msra.mxu0 %v18947_v25  ;;  %13009 = vmatprep.mubr.f32.mxu0 %v19589_v20 }
0x13b2   :  { %12971 = vmatprep.subr.mxu0 %v18951_v63  ;;  %15331 = vmatprep.subr.mxu1 %v19589_v20 }
0x13b3   :  { %12972 = vmatpush1.msra.mxu0 %v18955_v4  ;;  %15332 = vmatpush3.msra.mxu1 %v19152_v21 }
0x13b4   :  { %12973 = vmatprep.subr.mxu0 %v18959_v9 }
0x13b5   :  { %12974 = vmatpush1.msra.mxu0 %v18962_v3 }
0x13b6   :  { %12975 = vmatprep.subr.mxu0 %v18965_v27 }
0x13b7   :  { %12976 = vmatpush1.msra.mxu0 %v18968_v47 }
0x13b8   :  { %15314 = vmatprep.subr.mxu0 %v19589_v20 }
0x146b   :  { %v15137_v16 = vpop.f32.mrf.mxu1 }
0x146d   :  { %v15138_v39 = vpop.f32.mrf.mxu1 }
0x146e   :  { %v15139_v15 = vadd.f32 %v15138_v39, %v15137_v16 }
0x1470   :  { %v12932_v7 = vpop.f32.mrf.mxu0 }
0x1471   :  { %v12933_v26 = vadd.f32 %v15139_v15, %v12932_v7 }
0x1472   :  { %v15313_v12 = vpop.f32.mrf.mxu0 }
0x1473   :  { %v12936_v38 = vmul.f32 0.055555556, %v12933_v26 }
0x1475   :  { %v12937_v41 = vadd.f32 0.001, %v12936_v38 }
0x1477   :  { %15695 = vrsqrt.f32 %v12937_v41 }
0x1484   :  { %v15696_v1 = vpop.eup %15695 }
0x1485   :  { %v12939_v56 = vmul.f32 %v15696_v1, %v19852_v31 }
0x1487   :  { %14448 = vmatmul.mubr.msk.f32.vlgmr.msra.gmra.mxu0 %vm10130_vm5, %v12939_v56  ;;  %v12940_v19 = vmul.f32 %v12939_v56, %v19134_v45 }
0x1488   :  { %15315 = vmatpush3.msra.mxu0 %v19138_v40  ;;  %15322 = vmatprep.mubr.msk.f32.mxu0 %vm15977_vm3, %v19589_v20 }
0x1489   :  { %15316 = vmatprep.subr.mxu0 %v19589_v20  ;;  %v12941_v50 = vsub.f32 %v19853_v17, %v12940_v19 }
0x148a   :  { %15317 = vmatpush3.msra.mxu0 %v19144_v11 }
0x148b   :  { %15318 = vmatprep.subr.mxu0 %v19589_v20  ;;  %15334 = vmatmul.mubr.msk.f32.vlgmr.msra.gmra.mxu1 %vm10130_vm5, %v12941_v50 }
0x148c   :  { %15319 = vmatpush3.msra.mxu0 %v19148_v13  ;;  %v15979_v13 = vmov 1983009808  }
0x148d   :  { %15320 = vmatprep.subr.mxu0 %v19589_v20 }
0x148e   :  { %15321 = vmatpush3.msra.mxu0 %v19152_v21 }
0x148f   :  { %15323 = vmatmul.mubr.msk.f32.vlgmr.msra.gmra.mxu0 %vm10130_vm5, %v12939_v56  ;;  %13113 = vmatprep.subr.mxu0 %v18944_v54 }
0x1490   :  { %13114 = vmatpush1.msra.mxu0 %v18947_v25  ;;  %13153 = vmatprep.mubr.f32.mxu0 %v19589_v20 }
0x1491   :  { %13115 = vmatprep.subr.mxu0 %v18951_v63 }
0x1492   :  { %13116 = vmatpush1.msra.mxu0 %v18955_v4 }
0x1493   :  { %13117 = vmatprep.subr.mxu0 %v18959_v9  ;;  %v13268_v9 = vunpack.c.l.s4 %v15979_v13 }
0x1494   :  { %13118 = vmatpush1.msra.mxu0 %v18962_v3 }
0x1495   :  { %13119 = vmatprep.subr.mxu0 %v18965_v27  ;;  %v13269_v44 = vunpack.c.0.s8 %v13268_v9 }
0x1496   :  { %13120 = vmatpush1.msra.mxu0 %v18968_v47 }
0x1497   :  { %14450 = vmatmul.mubr.msk.f32.vlgmr.msra.gmra.mxu0 %vm10130_vm5, %v12941_v50 }
0x1547   :  { %v13011_v45 = vpop.f32.mrf.mxu0 }
0x1548   :  { %v13233_v4 = vrot.slane %v13011_v45, %v19851_v58 }
0x1549   :  { %v13013_v40 = vpop.f32.mrf.mxu0 }
0x154a   :  { %v13237_v3 = vrot.slane %v13013_v40, %v19851_v58  ;;  %v13242_v47 = vmul.f32 %v13233_v4, %v19080_v8 }
0x154b   :  { %v13226_v54 = vpop.f32.mrf.mxu1 }
0x154c   :  { %v13256_v48 = vrot.slane %v13226_v54, %v19851_v58  ;;  %v13243_v42 = vmul.f32 %v13237_v3, %v19084_v59 }
0x154d   :  { %v15335_v25 = vpop.f32.mrf.mxu1 }
0x154f   :  { %v13082_v11 = vpop.f32.mrf.mxu0 }
0x1550   :  { %v13241_v63 = vrot.slane %v13082_v11, %v19851_v58 }
0x1551   :  { %v15324_v20 = vpop.f32.mrf.mxu0 }
0x1552   :  { %v13244_v27 = vmul.f32 %v13241_v63, %v19100_v49  ;;  %v13272_v49 = vsub.s32 %v13269_v44, %v19854_v30 }
0x1554   :  { %v13259_v52 = vadd.f32 %v13256_v48, %v13244_v27 }
0x1556   :  { %v13262_v0 = vmax.f32 %v13259_v52, 0.0 }
0x1557   :  { %v13155_v21 = vpop.f32.mrf.mxu0 }
0x1558   :  { %v13248_v22 = vrot.slane %v13155_v21, %v19851_v58  ;;  %v13280_v28 = vrot.slane %v13262_v0, %v13272_v49 }
0x1559   :  { %v13157_v24 = vpop.f32.mrf.mxu0 }
0x155a   :  { %v13257_v51 = vadd.f32 %v13248_v22, %v13242_v47  ;;  %v13252_v46 = vrot.slane %v13157_v24, %v19851_v58 }
0x155c   :  { %v13258_v14 = vadd.f32 %v13252_v46, %v13243_v42  ;;  %v13260_v55 = vmax.f32 %v13257_v51, 0.0 }
0x155e   :  { %v13261_v32 = vmax.f32 %v13258_v14, 0.0 }
0x1560   :  { %v13266_v8 = vcombine.low %v13260_v55, %v13261_v32 }
0x1562   :  { %v13273_v6 = vrot.slane %v13266_v8, %v13272_v49 }
0x1564   :  { %v13281_v35 = vcombine.low %v13273_v6, %v13280_v28 }
0x1566   :  { %13287 = vst.msk [vmem:[%s19249_s14] sm:$0x3f] %vm13286_vm9, %v13281_v35 }
0x1567   :  { %13292 = vsyncpa [#allocation3], 1 }
0x1568   :  { %13293 = vsyncpa [#allocation5], 1 }
0x1569   :  { %13294 = vsyncpa [#allocation8], 1 }
0x156a   :  { %13295 = vsyncpa [#allocation11], 1 }
0x156b   :  { %13296 = vsyncpa [#allocation14], 1 }
0x156c   :  { %13297 = vsyncpa [#allocation17], 1 }

</bundles_post_ra>
